<compile_context>
chip_gen: v7x
topology: tpu7x:2x2x1
jax: 0.10.0
libtpu: 0.0.40
codegen_flags: <defaults>
</compile_context>

<pallas_src>
import numpy as np
import jax
import jax.numpy as jnp
from jax.experimental import pallas as pl
from jax.experimental.pallas import tpu as pltpu

HIDDEN = 768
NUM_CLASSES = 4
OUT_PAD = 128          # lane-dense output slab (sliced to 4 on the host)
TILE_M = 512           # chunk-row tile (sweep 512/1024; 512 = good overhead/tail balance)
LN_EPS = 1e-5          # PyTorch nn.LayerNorm default


def _model_kernel(nvalid_ref, cls_ref, did_ref, wgt_ref,
                  wp_ref, bp_ref, w1_ref, b1_ref, g_ref, be_ref,
                  w3_ref, b3_ref, out_ref, acc_ref):
    i = pl.program_id(0)
    nt = pl.num_programs(0)

    @pl.when(i == 0)
    def _():
        acc_ref[...] = jnp.zeros_like(acc_ref)

    # ---- pooler + weighted segment scatter (skipped on fully-padded tiles) --
    @pl.when(i < nvalid_ref[0])
    def _():
        # BertParts.pooler: Linear(768,768) + Tanh on this chunk tile.
        # bf16 operands, f32 MXU accumulation.
        pooled = jnp.tanh(
            jnp.dot(cls_ref[...], wp_ref[...],
                    preferred_element_type=jnp.float32)
            + bp_ref[...])                                 # (TILE_M, 768) f32

        # Weighted one-hot scatter: onehot[d, m] = 1/count[d] iff chunk m
        # belongs to doc d (padded chunks carry doc id -1 -> excluded).  The
        # per-doc 1/count is folded in, so acc accumulates the mean directly.
        d_pad, tile_m = acc_ref.shape[0], cls_ref.shape[0]
        iota_d = jax.lax.broadcasted_iota(jnp.int32, (d_pad, tile_m), 0)
        onehot = jnp.where(did_ref[...] == iota_d, wgt_ref[...],
                           0.0).astype(jnp.bfloat16)
        acc_ref[...] += jnp.dot(onehot, pooled.astype(jnp.bfloat16),
                                preferred_element_type=jnp.float32)

    # ---- finalize on the last grid step: linear1 + LN + ReLU + head ---------
    @pl.when(i == nt - 1)
    def _():
        doc = acc_ref[...]                                 # per-doc mean (D_pad, 768)
        h = (jnp.dot(doc.astype(jnp.bfloat16), w1_ref[...],
                     preferred_element_type=jnp.float32) + b1_ref[...])
        mu = jnp.mean(h, axis=-1, keepdims=True)
        var = jnp.mean(jnp.square(h - mu), axis=-1, keepdims=True)
        hn = (h - mu) * jax.lax.rsqrt(var + LN_EPS)
        hn = hn * g_ref[...] + be_ref[...]
        y = jnp.maximum(hn, 0.0)                           # Dropout(eval) = identity
        out_ref[...] = (jnp.dot(y.astype(jnp.bfloat16), w3_ref[...],
                                preferred_element_type=jnp.float32) + b3_ref[...])


def init_params(key):
    """Deterministic stand-ins for the module's trainable parameters (f32)."""
    ks = jax.random.split(key, 3)

    def lin(k, fan_in, fan_out):
        bound = 1.0 / np.sqrt(fan_in)
        kw, kb = jax.random.split(k)
        w = jax.random.uniform(kw, (fan_in, fan_out), jnp.float32, -bound, bound)
        b = jax.random.uniform(kb, (1, fan_out), jnp.float32, -bound, bound)
        return w, b

    wp, bp = lin(ks[0], HIDDEN, HIDDEN)          # pooler Linear
    w1, b1 = lin(ks[1], HIDDEN, HIDDEN)          # linear1 Linear
    gamma = jnp.ones((1, HIDDEN), jnp.float32)   # LayerNorm weight
    beta = jnp.zeros((1, HIDDEN), jnp.float32)   # LayerNorm bias
    w3, b3 = lin(ks[2], HIDDEN, NUM_CLASSES)     # linear3 Linear
    return dict(wp=wp, bp=bp, w1=w1, b1=b1, gamma=gamma, beta=beta, w3=w3, b3=b3)


def model_forward(cls_embeddings, num_sublists, params):
    """cls_embeddings: [N_chunks, 768] per-chunk BERT CLS features.
    num_sublists: python list of chunk counts per document."""
    n_chunks = int(cls_embeddings.shape[0])
    n_docs = len(num_sublists)
    assert sum(num_sublists) == n_chunks and n_chunks > 0

    # Tile count: pad data to a multiple of TILE_M; bucket the GRID to a power
    # of two (retrace avoidance) and gate the padded steps in-kernel.
    nt_valid = int(pl.cdiv(n_chunks, TILE_M))
    nt_grid = max(1, int(pl.next_power_of_2(nt_valid)))
    n_pad = nt_grid * TILE_M
    d_pad = max(8, int(pl.next_power_of_2(n_docs)))

    # --- host-side metadata (O(N) + O(D), vectorized, no dense seg matrix) ---
    cls_p = np.zeros((n_pad, HIDDEN), np.float32)
    cls_p[:n_chunks] = np.asarray(cls_embeddings, np.float32)

    counts = np.asarray(num_sublists, np.int64)
    doc_of_chunk = np.repeat(np.arange(n_docs, dtype=np.int32), counts)

    doc_id = np.full((1, n_pad), -1, np.int32)         # -1 => padded chunk
    doc_id[0, :n_chunks] = doc_of_chunk

    # Per-chunk weight 1/count[doc(chunk)]  (zero-count docs -> row stays 0,
    # matching a guarded mean; the PyTorch reference would produce NaN there).
    inv_counts = np.where(counts > 0, 1.0 / np.maximum(counts, 1), 0.0)
    chunk_w = np.zeros((1, n_pad), np.float32)
    chunk_w[0, :n_chunks] = inv_counts[doc_of_chunk].astype(np.float32)

    nvalid = np.asarray([nt_valid], np.int32)

    # --- parameter packing: bf16 matmul weights, lane-dense padded head ------
    wp = params["wp"].astype(jnp.bfloat16)
    w1 = params["w1"].astype(jnp.bfloat16)
    w3p = jnp.zeros((HIDDEN, OUT_PAD), jnp.bfloat16).at[:, :NUM_CLASSES].set(
        params["w3"].astype(jnp.bfloat16))
    b3p = jnp.zeros((1, OUT_PAD), jnp.float32).at[:, :NUM_CLASSES].set(params["b3"])

    # Clamped tile index: padded grid steps reuse the last valid block index,
    # so Pallas issues no extra DMA for them (and the kernel skips the math).
    def _tile(i, nv):
        return jnp.minimum(i, nv[0] - 1)

    grid_spec = pltpu.PrefetchScalarGridSpec(
        num_scalar_prefetch=1,
        grid=(nt_grid,),
        in_specs=[
            pl.BlockSpec((TILE_M, HIDDEN), lambda i, nv: (_tile(i, nv), 0)),  # cls tile (bf16)
            pl.BlockSpec((1, TILE_M), lambda i, nv: (0, _tile(i, nv))),       # per-chunk doc id
            pl.BlockSpec((1, TILE_M), lambda i, nv: (0, _tile(i, nv))),       # per-chunk 1/count
            pl.BlockSpec((HIDDEN, HIDDEN), lambda i, nv: (0, 0)),   # wp (bf16, resident)
            pl.BlockSpec((1, HIDDEN), lambda i, nv: (0, 0)),        # bp
            pl.BlockSpec((HIDDEN, HIDDEN), lambda i, nv: (0, 0)),   # w1 (bf16, resident)
            pl.BlockSpec((1, HIDDEN), lambda i, nv: (0, 0)),        # b1
            pl.BlockSpec((1, HIDDEN), lambda i, nv: (0, 0)),        # gamma
            pl.BlockSpec((1, HIDDEN), lambda i, nv: (0, 0)),        # beta
            pl.BlockSpec((HIDDEN, OUT_PAD), lambda i, nv: (0, 0)),  # w3 padded (bf16)
            pl.BlockSpec((1, OUT_PAD), lambda i, nv: (0, 0)),       # b3 padded
        ],
        out_specs=pl.BlockSpec((d_pad, OUT_PAD), lambda i, nv: (0, 0)),
        scratch_shapes=[pltpu.VMEM((d_pad, HIDDEN), jnp.float32)],  # doc-mean acc
    )

    out = pl.pallas_call(
        _model_kernel,
        out_shape=jax.ShapeDtypeStruct((d_pad, OUT_PAD), jnp.float32),
        grid_spec=grid_spec,
        compiler_params=pltpu.CompilerParams(
            dimension_semantics=("arbitrary",),   # chunk axis carries the doc-sum
            vmem_limit_bytes=32 << 20),
    )(jnp.asarray(nvalid),
      jnp.asarray(cls_p, jnp.bfloat16), jnp.asarray(doc_id), jnp.asarray(chunk_w),
      wp, params["bp"], w1, params["b1"], params["gamma"], params["beta"],
      w3p, b3p)

    return out[:n_docs, :NUM_CLASSES]


def _reference(cls_embeddings, num_sublists, params):
    """Plain-JAX reference mirroring the kernel's bf16-operand / f32-accumulate
    matmul precision (exact f32 segment mean), so the comparison validates
    structure rather than rounding."""
    cls_b = cls_embeddings.astype(jnp.bfloat16)
    pooled = jnp.tanh(
        jnp.dot(cls_b, params["wp"].astype(jnp.bfloat16),
                preferred_element_type=jnp.float32) + params["bp"])
    docs = []
    base = 0
    for cnt in num_sublists:
        docs.append(jnp.mean(pooled[base:base + cnt], axis=0))
        base += cnt
    doc = jnp.stack(docs, axis=0)
    h = (jnp.dot(doc.astype(jnp.bfloat16), params["w1"].astype(jnp.bfloat16),
                 preferred_element_type=jnp.float32) + params["b1"])
    mu = jnp.mean(h, axis=-1, keepdims=True)
    var = jnp.mean(jnp.square(h - mu), axis=-1, keepdims=True)
    hn = (h - mu) * jax.lax.rsqrt(var + LN_EPS) * params["gamma"] + params["beta"]
    y = jnp.maximum(hn, 0.0)
    return (jnp.dot(y.astype(jnp.bfloat16), params["w3"].astype(jnp.bfloat16),
                    preferred_element_type=jnp.float32) + params["b3"])


if __name__ == "__main__":
    key = jax.random.PRNGKey(0)
    k_par, k_x = jax.random.split(key)
    params = init_params(k_par)

    # TODO(synk): tokenizer + pretrained 'dbmdz/bert-base-italian-xxl-cased'
    # encoder cannot be reproduced; synthesize per-chunk CLS embeddings instead.
    num_sublists = [1, 2, 3]                 # 3 documents, 6 BERT chunks total
    n_chunks = sum(num_sublists)
    cls_embeddings = jax.random.normal(k_x, (n_chunks, HIDDEN), jnp.float32)

    logits = model_forward(cls_embeddings, num_sublists, params)
    jax.block_until_ready(logits)

    ref = _reference(cls_embeddings, num_sublists, params)
    assert logits.shape == (len(num_sublists), NUM_CLASSES)
    np.testing.assert_allclose(np.asarray(logits), np.asarray(ref),
                               rtol=2e-2, atol=2e-2)
    print("KERNEL_OK")
</pallas_src>

<mosaic_0001>
module attributes {stable_mosaic.version = 11 : i64} {
  func.func @_model_kernel(%arg0: i32, %arg1: memref<1xi32, #tpu.memory_space<smem>>, %arg2: memref<512x768xbf16, #tpu.memory_space<vmem>>, %arg3: memref<1x512xi32, #tpu.memory_space<vmem>>, %arg4: memref<1x512xf32, #tpu.memory_space<vmem>>, %arg5: memref<768x768xbf16, #tpu.memory_space<vmem>>, %arg6: memref<1x768xf32, #tpu.memory_space<vmem>>, %arg7: memref<768x768xbf16, #tpu.memory_space<vmem>>, %arg8: memref<1x768xf32, #tpu.memory_space<vmem>>, %arg9: memref<1x768xf32, #tpu.memory_space<vmem>>, %arg10: memref<1x768xf32, #tpu.memory_space<vmem>>, %arg11: memref<768x128xbf16, #tpu.memory_space<vmem>>, %arg12: memref<1x128xf32, #tpu.memory_space<vmem>>, %arg13: memref<8x128xf32, #tpu.memory_space<vmem>>, %arg14: memref<8x768xf32, #tpu.memory_space<vmem>>) attributes {dimension_semantics = [#tpu.dimension_semantics<arbitrary>], iteration_bounds = array<i64: 1>, scalar_prefetch = 1 : i64, scratch_operands = 1 : i64, tpu.core_type = #tpu.core_type<tc>, window_params = [{transform_indices = @transform_0, window_bounds = array<i64: 512, 768>}, {transform_indices = @transform_1, window_bounds = array<i64: 1, 512>}, {transform_indices = @transform_2, window_bounds = array<i64: 1, 512>}, {pipeline_mode = #tpu.pipeline_mode<synchronous>, transform_indices = @transform_3, window_bounds = array<i64: 768, 768>}, {pipeline_mode = #tpu.pipeline_mode<synchronous>, transform_indices = @transform_4, window_bounds = array<i64: 1, 768>}, {pipeline_mode = #tpu.pipeline_mode<synchronous>, transform_indices = @transform_5, window_bounds = array<i64: 768, 768>}, {pipeline_mode = #tpu.pipeline_mode<synchronous>, transform_indices = @transform_6, window_bounds = array<i64: 1, 768>}, {pipeline_mode = #tpu.pipeline_mode<synchronous>, transform_indices = @transform_7, window_bounds = array<i64: 1, 768>}, {pipeline_mode = #tpu.pipeline_mode<synchronous>, transform_indices = @transform_8, window_bounds = array<i64: 1, 768>}, {pipeline_mode = #tpu.pipeline_mode<synchronous>, transform_indices = @transform_9, window_bounds = array<i64: 768, 128>}, {pipeline_mode = #tpu.pipeline_mode<synchronous>, transform_indices = @transform_10, window_bounds = array<i64: 1, 128>}, {pipeline_mode = #tpu.pipeline_mode<synchronous>, transform_indices = @transform_11, window_bounds = array<i64: 8, 128>}]} {
    %c0_i32 = arith.constant 0 : i32
    %0 = arith.cmpi eq, %arg0, %c0_i32 : i32
    %1 = arith.extui %0 : i1 to i32
    %c0_i32_0 = arith.constant 0 : i32
    %2 = arith.cmpi ne, %1, %c0_i32_0 : i32
    scf.if %2 {
      %cst = arith.constant 0.000000e+00 : f32
      %10 = vector.broadcast %cst : f32 to vector<8x768xf32>
      %c0_4 = arith.constant 0 : index
      %c0_5 = arith.constant 0 : index
      %11 = vector.load %arg14[%c0_4, %c0_5] : memref<8x768xf32, #tpu.memory_space<vmem>>, vector<8x768xf32>
      tpu.vector_store %arg14[%c0_4, %c0_5], %10 {strides = array<i32>} : memref<8x768xf32, #tpu.memory_space<vmem>>, vector<8x768xf32>,
    } else {
    }
    %c0 = arith.constant 0 : index
    %3 = memref.load %arg1[%c0] : memref<1xi32, #tpu.memory_space<smem>>
    %4 = arith.cmpi slt, %arg0, %3 : i32
    %5 = arith.extui %4 : i1 to i32
    %c0_i32_1 = arith.constant 0 : i32
    %6 = arith.cmpi ne, %5, %c0_i32_1 : i32
    scf.if %6 {
      %c0_4 = arith.constant 0 : index
      %c0_5 = arith.constant 0 : index
      %10 = vector.load %arg2[%c0_4, %c0_5] : memref<512x768xbf16, #tpu.memory_space<vmem>>, vector<512x768xbf16>
      %c0_6 = arith.constant 0 : index
      %c0_7 = arith.constant 0 : index
      %11 = vector.load %arg5[%c0_6, %c0_7] : memref<768x768xbf16, #tpu.memory_space<vmem>>, vector<768x768xbf16>
      %cst = arith.constant dense<0.000000e+00> : vector<512x768xf32>
      %12 = tpu.matmul %10, %11, %cst {dimension_numbers = #tpu.dot_dimension_numbers<[1], [0], [0], [1], [0, 0, 1, 1], [], []>} : vector<512x768xbf16>, vector<768x768xbf16>, vector<512x768xf32> -> vector<512x768xf32>
      %c0_8 = arith.constant 0 : index
      %c0_9 = arith.constant 0 : index
      %13 = vector.load %arg6[%c0_8, %c0_9] : memref<1x768xf32, #tpu.memory_space<vmem>>, vector<1x768xf32>
      %14 = vector.broadcast %13 : vector<1x768xf32> to vector<512x768xf32>
      %15 = arith.addf %12, %14 : vector<512x768xf32>
      %16 = math.tanh %15 : vector<512x768xf32>
      %17 = tpu.iota {dimensions = array<i32: 0>} : vector<8x512xi32>
      %c0_10 = arith.constant 0 : index
      %c0_11 = arith.constant 0 : index
      %18 = vector.load %arg3[%c0_10, %c0_11] : memref<1x512xi32, #tpu.memory_space<vmem>>, vector<1x512xi32>
      %19 = vector.broadcast %18 : vector<1x512xi32> to vector<8x512xi32>
      %20 = arith.cmpi eq, %19, %17 : vector<8x512xi32>
      %c0_12 = arith.constant 0 : index
      %c0_13 = arith.constant 0 : index
      %21 = vector.load %arg4[%c0_12, %c0_13] : memref<1x512xf32, #tpu.memory_space<vmem>>, vector<1x512xf32>
      %cst_14 = arith.constant 0.000000e+00 : f32
      %22 = vector.shape_cast %21 : vector<1x512xf32> to vector<1x512xf32>
      %23 = vector.broadcast %22 : vector<1x512xf32> to vector<8x512xf32>
      %24 = vector.broadcast %cst_14 : f32 to vector<8x512xf32>
      %25 = arith.select %20, %23, %24 : vector<8x512xi1>, vector<8x512xf32>
      %26 = arith.truncf %25 : vector<8x512xf32> to vector<8x512xbf16>
      %c0_15 = arith.constant 0 : index
      %c0_16 = arith.constant 0 : index
      %27 = vector.load %arg14[%c0_15, %c0_16] : memref<8x768xf32, #tpu.memory_space<vmem>>, vector<8x768xf32>
      %28 = arith.truncf %16 : vector<512x768xf32> to vector<512x768xbf16>
      %cst_17 = arith.constant dense<0.000000e+00> : vector<8x768xf32>
      %29 = tpu.matmul %26, %28, %cst_17 {dimension_numbers = #tpu.dot_dimension_numbers<[1], [0], [0], [1], [0, 0, 1, 1], [], []>} : vector<8x512xbf16>, vector<512x768xbf16>, vector<8x768xf32> -> vector<8x768xf32>
      %30 = arith.addf %27, %29 : vector<8x768xf32>
      %c0_18 = arith.constant 0 : index
      %c0_19 = arith.constant 0 : index
      %31 = vector.load %arg14[%c0_18, %c0_19] : memref<8x768xf32, #tpu.memory_space<vmem>>, vector<8x768xf32>
      tpu.vector_store %arg14[%c0_18, %c0_19], %30 {strides = array<i32>} : memref<8x768xf32, #tpu.memory_space<vmem>>, vector<8x768xf32>,
    } else {
    }
    %c0_i32_2 = arith.constant 0 : i32
    %7 = arith.cmpi eq, %arg0, %c0_i32_2 : i32
    %8 = arith.extui %7 : i1 to i32
    %c0_i32_3 = arith.constant 0 : i32
    %9 = arith.cmpi ne, %8, %c0_i32_3 : i32
    scf.if %9 {
      %c0_4 = arith.constant 0 : index
      %c0_5 = arith.constant 0 : index
      %10 = vector.load %arg14[%c0_4, %c0_5] : memref<8x768xf32, #tpu.memory_space<vmem>>, vector<8x768xf32>
      %11 = arith.truncf %10 : vector<8x768xf32> to vector<8x768xbf16>
      %c0_6 = arith.constant 0 : index
      %c0_7 = arith.constant 0 : index
      %12 = vector.load %arg7[%c0_6, %c0_7] : memref<768x768xbf16, #tpu.memory_space<vmem>>, vector<768x768xbf16>
      %cst = arith.constant dense<0.000000e+00> : vector<8x768xf32>
      %13 = tpu.matmul %11, %12, %cst {dimension_numbers = #tpu.dot_dimension_numbers<[1], [0], [0], [1], [0, 0, 1, 1], [], []>} : vector<8x768xbf16>, vector<768x768xbf16>, vector<8x768xf32> -> vector<8x768xf32>
      %c0_8 = arith.constant 0 : index
      %c0_9 = arith.constant 0 : index
      %14 = vector.load %arg8[%c0_8, %c0_9] : memref<1x768xf32, #tpu.memory_space<vmem>>, vector<1x768xf32>
      %15 = vector.broadcast %14 : vector<1x768xf32> to vector<8x768xf32>
      %16 = arith.addf %13, %15 : vector<8x768xf32>
      %cst_10 = arith.constant dense<0.000000e+00> : vector<8xf32>
      %17 = vector.multi_reduction <add>, %16, %cst_10 [1] : vector<8x768xf32> to vector<8xf32>
      %18 = vector.shape_cast %17 : vector<8xf32> to vector<8x1xf32>
      %cst_11 = arith.constant 7.680000e+02 : f32
      %19 = vector.broadcast %cst_11 : f32 to vector<8x1xf32>
      %20 = arith.divf %18, %19 : vector<8x1xf32>
      %21 = vector.broadcast %20 : vector<8x1xf32> to vector<8x768xf32>
      %22 = arith.subf %16, %21 : vector<8x768xf32>
      %23 = arith.mulf %22, %22 : vector<8x768xf32>
      %cst_12 = arith.constant dense<0.000000e+00> : vector<8xf32>
      %24 = vector.multi_reduction <add>, %23, %cst_12 [1] : vector<8x768xf32> to vector<8xf32>
      %25 = vector.shape_cast %24 : vector<8xf32> to vector<8x1xf32>
      %cst_13 = arith.constant 7.680000e+02 : f32
      %26 = vector.broadcast %cst_13 : f32 to vector<8x1xf32>
      %27 = arith.divf %25, %26 : vector<8x1xf32>
      %28 = vector.broadcast %20 : vector<8x1xf32> to vector<8x768xf32>
      %29 = arith.subf %16, %28 : vector<8x768xf32>
      %cst_14 = arith.constant 9.99999974E-6 : f32
      %30 = vector.broadcast %cst_14 : f32 to vector<8x1xf32>
      %31 = arith.addf %27, %30 : vector<8x1xf32>
      %32 = math.rsqrt %31 : vector<8x1xf32>
      %33 = vector.broadcast %32 : vector<8x1xf32> to vector<8x768xf32>
      %34 = arith.mulf %29, %33 : vector<8x768xf32>
      %c0_15 = arith.constant 0 : index
      %c0_16 = arith.constant 0 : index
      %35 = vector.load %arg9[%c0_15, %c0_16] : memref<1x768xf32, #tpu.memory_space<vmem>>, vector<1x768xf32>
      %36 = vector.broadcast %35 : vector<1x768xf32> to vector<8x768xf32>
      %37 = arith.mulf %34, %36 : vector<8x768xf32>
      %c0_17 = arith.constant 0 : index
      %c0_18 = arith.constant 0 : index
      %38 = vector.load %arg10[%c0_17, %c0_18] : memref<1x768xf32, #tpu.memory_space<vmem>>, vector<1x768xf32>
      %39 = vector.broadcast %38 : vector<1x768xf32> to vector<8x768xf32>
      %40 = arith.addf %37, %39 : vector<8x768xf32>
      %cst_19 = arith.constant 0.000000e+00 : f32
      %41 = vector.broadcast %cst_19 : f32 to vector<8x768xf32>
      %42 = arith.maximumf %40, %41 : vector<8x768xf32>
      %43 = arith.truncf %42 : vector<8x768xf32> to vector<8x768xbf16>
      %c0_20 = arith.constant 0 : index
      %c0_21 = arith.constant 0 : index
      %44 = vector.load %arg11[%c0_20, %c0_21] : memref<768x128xbf16, #tpu.memory_space<vmem>>, vector<768x128xbf16>
      %cst_22 = arith.constant dense<0.000000e+00> : vector<8x128xf32>
      %45 = tpu.matmul %43, %44, %cst_22 {dimension_numbers = #tpu.dot_dimension_numbers<[1], [0], [0], [1], [0, 0, 1, 1], [], []>} : vector<8x768xbf16>, vector<768x128xbf16>, vector<8x128xf32> -> vector<8x128xf32>
      %c0_23 = arith.constant 0 : index
      %c0_24 = arith.constant 0 : index
      %46 = vector.load %arg12[%c0_23, %c0_24] : memref<1x128xf32, #tpu.memory_space<vmem>>, vector<1x128xf32>
      %47 = vector.broadcast %46 : vector<1x128xf32> to vector<8x128xf32>
      %48 = arith.addf %45, %47 : vector<8x128xf32>
      %c0_25 = arith.constant 0 : index
      %c0_26 = arith.constant 0 : index
      %49 = vector.load %arg13[%c0_25, %c0_26] : memref<8x128xf32, #tpu.memory_space<vmem>>, vector<8x128xf32>
      tpu.vector_store %arg13[%c0_25, %c0_26], %48 {strides = array<i32>} : memref<8x128xf32, #tpu.memory_space<vmem>>, vector<8x128xf32>,
    } else {
    }
    return
  }
  func.func @transform_0(%arg0: i32, %arg1: memref<1xi32, #tpu.memory_space<smem>>) -> (i32, i32) {
    %c0 = arith.constant 0 : index
    %0 = memref.load %arg1[%c0] : memref<1xi32, #tpu.memory_space<smem>>
    %c1_i32 = arith.constant 1 : i32
    %1 = arith.subi %0, %c1_i32 : i32
    %2 = arith.minsi %arg0, %1 : i32
    %c0_i32 = arith.constant 0 : i32
    %c0_i32_0 = arith.constant 0 : i32
    return %2, %c0_i32 : i32, i32
  }
  func.func @transform_1(%arg0: i32, %arg1: memref<1xi32, #tpu.memory_space<smem>>) -> (i32, i32) {
    %c0 = arith.constant 0 : index
    %0 = memref.load %arg1[%c0] : memref<1xi32, #tpu.memory_space<smem>>
    %c1_i32 = arith.constant 1 : i32
    %1 = arith.subi %0, %c1_i32 : i32
    %2 = arith.minsi %arg0, %1 : i32
    %c0_i32 = arith.constant 0 : i32
    %c0_i32_0 = arith.constant 0 : i32
    return %c0_i32, %2 : i32, i32
  }
  func.func @transform_2(%arg0: i32, %arg1: memref<1xi32, #tpu.memory_space<smem>>) -> (i32, i32) {
    %c0 = arith.constant 0 : index
    %0 = memref.load %arg1[%c0] : memref<1xi32, #tpu.memory_space<smem>>
    %c1_i32 = arith.constant 1 : i32
    %1 = arith.subi %0, %c1_i32 : i32
    %2 = arith.minsi %arg0, %1 : i32
    %c0_i32 = arith.constant 0 : i32
    %c0_i32_0 = arith.constant 0 : i32
    return %c0_i32, %2 : i32, i32
  }
  func.func @transform_3(%arg0: i32, %arg1: memref<1xi32, #tpu.memory_space<smem>>) -> (i32, i32) {
    %c0_i32 = arith.constant 0 : i32
    %c0_i32_0 = arith.constant 0 : i32
    %c0_i32_1 = arith.constant 0 : i32
    return %c0_i32, %c0_i32_0 : i32, i32
  }
  func.func @transform_4(%arg0: i32, %arg1: memref<1xi32, #tpu.memory_space<smem>>) -> (i32, i32) {
    %c0_i32 = arith.constant 0 : i32
    %c0_i32_0 = arith.constant 0 : i32
    %c0_i32_1 = arith.constant 0 : i32
    return %c0_i32, %c0_i32_0 : i32, i32
  }
  func.func @transform_5(%arg0: i32, %arg1: memref<1xi32, #tpu.memory_space<smem>>) -> (i32, i32) {
    %c0_i32 = arith.constant 0 : i32
    %c0_i32_0 = arith.constant 0 : i32
    %c0_i32_1 = arith.constant 0 : i32
    return %c0_i32, %c0_i32_0 : i32, i32
  }
  func.func @transform_6(%arg0: i32, %arg1: memref<1xi32, #tpu.memory_space<smem>>) -> (i32, i32) {
    %c0_i32 = arith.constant 0 : i32
    %c0_i32_0 = arith.constant 0 : i32
    %c0_i32_1 = arith.constant 0 : i32
    return %c0_i32, %c0_i32_0 : i32, i32
  }
  func.func @transform_7(%arg0: i32, %arg1: memref<1xi32, #tpu.memory_space<smem>>) -> (i32, i32) {
    %c0_i32 = arith.constant 0 : i32
    %c0_i32_0 = arith.constant 0 : i32
    %c0_i32_1 = arith.constant 0 : i32
    return %c0_i32, %c0_i32_0 : i32, i32
  }
  func.func @transform_8(%arg0: i32, %arg1: memref<1xi32, #tpu.memory_space<smem>>) -> (i32, i32) {
    %c0_i32 = arith.constant 0 : i32
    %c0_i32_0 = arith.constant 0 : i32
    %c0_i32_1 = arith.constant 0 : i32
    return %c0_i32, %c0_i32_0 : i32, i32
  }
  func.func @transform_9(%arg0: i32, %arg1: memref<1xi32, #tpu.memory_space<smem>>) -> (i32, i32) {
    %c0_i32 = arith.constant 0 : i32
    %c0_i32_0 = arith.constant 0 : i32
    %c0_i32_1 = arith.constant 0 : i32
    return %c0_i32, %c0_i32_0 : i32, i32
  }
  func.func @transform_10(%arg0: i32, %arg1: memref<1xi32, #tpu.memory_space<smem>>) -> (i32, i32) {
    %c0_i32 = arith.constant 0 : i32
    %c0_i32_0 = arith.constant 0 : i32
    %c0_i32_1 = arith.constant 0 : i32
    return %c0_i32, %c0_i32_0 : i32, i32
  }
  func.func @transform_11(%arg0: i32, %arg1: memref<1xi32, #tpu.memory_space<smem>>) -> (i32, i32) {
    %c0_i32 = arith.constant 0 : i32
    %c0_i32_0 = arith.constant 0 : i32
    %c0_i32_1 = arith.constant 0 : i32
    return %c0_i32, %c0_i32_0 : i32, i32
  }
}

</mosaic_0001>

<bundles_post_ra>
// kernel: tpu_custom_call.1
= control target key start
LH: loop header
LB: loop body
LE: loop exit
PB: predicated region body
PF: predicated region fallthrough
CT: control target
= control target key end

     0   :  { %18 = vsyncpa [#allocation6], 0  ;;  %s17301_s0 = inlined_call_operand.<no memory space> [shape: s32[1], index: 0, kind: input, shape index: {}]   ;;  %s17302_s1 = inlined_call_operand.hbm [shape: bf16[512,768], index: 1, kind: input, shape index: {}]   ;;  %s17303_s2 = inlined_call_operand.hbm [shape: s32[1,512], index: 2, kind: input, shape index: {}]   ;;  %s17304_s3 = inlined_call_operand.hbm [shape: f32[1,512], index: 3, kind: input, shape index: {}]   ;;  %s17305_s4 = inlined_call_operand.hbm [shape: bf16[768,768], index: 4, kind: input, shape index: {}]   ;;  %s17306_s5 = inlined_call_operand.hbm [shape: f32[1,768], index: 5, kind: input, shape index: {}]   ;;  %s17307_s6 = inlined_call_operand.hbm [shape: bf16[768,768], index: 6, kind: input, shape index: {}]   ;;  %s17308_s7 = inlined_call_operand.hbm [shape: f32[1,768], index: 7, kind: input, shape index: {}]   ;;  %s17309_s8 = inlined_call_operand.hbm [shape: f32[1,768], index: 8, kind: input, shape index: {}]   ;;  %s17310_s9 = inlined_call_operand.hbm [shape: f32[1,768], index: 9, kind: input, shape index: {}]   ;;  %s17311_s10 = inlined_call_operand.hbm [shape: bf16[768,128], index: 10, kind: input, shape index: {}]   ;;  %s17312_s11 = inlined_call_operand.hbm [shape: f32[1,128], index: 11, kind: input, shape index: {}]   ;;  %s17313_s12 = inlined_call_operand.hbm [shape: f32[8,128], index: 12, kind: output, shape index: {}]  }
   0x1   :  { %19 = vsyncpa [#allocation9], 0 }
   0x2   :  { %20 = vsyncpa [#allocation12], 0 }
   0x3   :  { %21 = vsyncpa [#allocation15], 0 }
   0x4   :  { %22 = vsyncpa [#allocation18], 0 }
   0x5   :  { %23 = vsyncpa [#allocation21], 0  ;;  %s10018_s23 = sadd.s32 4294967295, %s17301_s0 }
   0x6   :  { %24 = vsyncpa [#allocation7], 0  ;;  %p10019_p0 = scmp.gt.s32.totalorder %s10018_s23, 0  ;;  %s14658_s24 = smov [#allocation8]  }
   0x7   :  { %s58_s25 = sshll.u32 %s14658_s24, 4  ;;  %s14659_s27 = smov [#allocation11]   ;;  %s59_s25 = int_to_ptr.vmem [resolvable:$true] %s58_s25 }
   0x8   :  { %s18146_s23 = smov (%p10019_p0, %s10018_s23), 0  ;;  %s84_s28 = sshll.u32 %s14659_s27, 4  ;;  %s14751_s28 = int_to_ptr.vmem [resolvable:$true] %s84_s28 }
   0x9   :  { %s10886_s26 = sshll.u32 %s18146_s23, 6  ;;  %s14376_s17 = scalar_lea.hbm %s17303_s2, 64 }
   0xa   :  { %s56_s13 = scalar_lea.hbm %s17303_s2, %s10886_s26 }
   0xb   :  { %s14374_s14 = scalar_lea.hbm %s56_s13, 64  ;;  %p14377_p2 = scmp.lt.u32.totalorder %s56_s13, %s17303_s2 }
   0xc   :  { %p14375_p1 = scmp.ne.s32.totalorder %s56_s13, %s14374_s14  ;;  %p14378_p3 = scmp.lt.u32.totalorder %s14376_s17, %s14374_s14 }
   0xd   :  { %p14380_p5 = scmp.lt.u32.totalorder %s14374_s14, %s56_s13 }
   0xe   :  { %p14379_p4 = por %p14378_p3, %p14377_p2 }
  0x10   :  { %p14381_p6 = por %p14380_p5, %p14379_p4 }
  0x12   :  { %p14382_p7 = pnand %p14381_p6, %p14375_p1 }
  0x14   :  { %14385 = shalt.err (!%p14382_p7)
}
  0x15   :  { %s14386_s20 = scalar_lea.vmem %s59_s25, 64  ;;  %p14391_p9 = scmp.lt.s32.totalorder %s59_s25, %s59_s25 }
  0x16   :  { %p14387_p8 = scmp.ne.s32.totalorder %s59_s25, %s14386_s20  ;;  %p14392_p10 = scmp.lt.s32.totalorder %s14386_s20, %s14386_s20 }
  0x18   :  { %p14393_p11 = por %p14392_p10, %p14391_p9 }
  0x1a   :  { %p14394_p12 = pnand %p14393_p11, %p14387_p8 }
  0x1c   :  { %14397 = shalt.err (!%p14394_p12)
}
  0x1d   :  { %61 = dma.hbm_to_vmem [thread:$0]  %s56_s13, 64, %s59_s25, [#allocation9]  }
  0x1e   :  { %s14398_s24 = scalar_lea.hbm %s17305_s4, 36864 }
  0x1f   :  { %p14399_p13 = scmp.ne.s32.totalorder %s17305_s4, %s14398_s24  ;;  %p14402_p0 = scmp.lt.u32.totalorder %s14398_s24, %s17305_s4 }
  0x21   :  { %p14404_p1 = pnand %p14402_p0, %p14399_p13 }
  0x23   :  { %14407 = shalt.err (!%p14404_p1)
}
  0x24   :  { %s14408_s14 = scalar_lea.vmem %s14751_s28, 36864  ;;  %p14413_p3 = scmp.lt.s32.totalorder %s14751_s28, %s14751_s28 }
  0x25   :  { %p14409_p2 = scmp.ne.s32.totalorder %s14751_s28, %s14408_s14  ;;  %p14414_p4 = scmp.lt.s32.totalorder %s14408_s14, %s14408_s14 }
  0x27   :  { %p14415_p5 = por %p14414_p4, %p14413_p3 }
  0x29   :  { %p14416_p6 = pnand %p14415_p5, %p14409_p2 }
  0x2b   :  { %14419 = shalt.err (!%p14416_p6)
}
  0x2c   :  { %s14660_s25 = smov 384   ;;  %s14661_s13 = smov 24  }
  0x2d   :  { %90 = dma.hbm_to_vmem [thread:$0]  %s17305_s4, 36864, %s14751_s28, [#allocation12], %s14660_s25, %s14660_s25, %s14661_s13  }
  0x2e   :  { %s14662_s17 = smov [#allocation14]   ;;  %s14663_s19 = smov [#allocation17]  }
  0x2f   :  { %s106_s18 = sshll.u32 %s14662_s17, 4  ;;  %s129_s20 = sshll.u32 %s14663_s19, 4  ;;  %s107_s18 = int_to_ptr.vmem [resolvable:$true] %s106_s18  ;;  %s130_s20 = int_to_ptr.vmem [resolvable:$true] %s129_s20 }
  0x30   :  { %s14420_s24 = scalar_lea.hbm %s17307_s6, 36864 }
  0x31   :  { %p14421_p7 = scmp.ne.s32.totalorder %s17307_s6, %s14420_s24  ;;  %p14424_p8 = scmp.lt.u32.totalorder %s14420_s24, %s17307_s6 }
  0x33   :  { %p14426_p9 = pnand %p14424_p8, %p14421_p7 }
  0x35   :  { %14429 = shalt.err (!%p14426_p9)
}
  0x36   :  { %s14430_s4 = scalar_lea.vmem %s107_s18, 36864  ;;  %p14435_p11 = scmp.lt.s32.totalorder %s107_s18, %s107_s18 }
  0x37   :  { %p14431_p10 = scmp.ne.s32.totalorder %s107_s18, %s14430_s4  ;;  %p14436_p12 = scmp.lt.s32.totalorder %s14430_s4, %s14430_s4 }
  0x39   :  { %p14437_p13 = por %p14436_p12, %p14435_p11 }
  0x3b   :  { %p14438_p0 = pnand %p14437_p13, %p14431_p10 }
  0x3d   :  { %14441 = shalt.err (!%p14438_p0)
}
  0x3e   :  { %112 = dma.hbm_to_vmem [thread:$0]  %s17307_s6, 36864, %s107_s18, [#allocation15], %s14660_s25, %s14660_s25, %s14661_s13  }
  0x3f   :  { %s14442_s17 = scalar_lea.hbm %s17309_s8, 96 }
  0x40   :  { %p14443_p1 = scmp.ne.s32.totalorder %s17309_s8, %s14442_s17  ;;  %p14446_p2 = scmp.lt.u32.totalorder %s14442_s17, %s17309_s8 }
  0x42   :  { %p14448_p3 = pnand %p14446_p2, %p14443_p1 }
  0x44   :  { %14451 = shalt.err (!%p14448_p3)
}
  0x45   :  { %s14452_s27 = scalar_lea.vmem %s130_s20, 96  ;;  %p14457_p5 = scmp.lt.s32.totalorder %s130_s20, %s130_s20 }
  0x46   :  { %p14453_p4 = scmp.ne.s32.totalorder %s130_s20, %s14452_s27  ;;  %p14458_p6 = scmp.lt.s32.totalorder %s14452_s27, %s14452_s27 }
  0x48   :  { %p14459_p7 = por %p14458_p6, %p14457_p5 }
  0x4a   :  { %p14460_p8 = pnand %p14459_p7, %p14453_p4 }
  0x4c   :  { %14463 = shalt.err (!%p14460_p8)
}
  0x4d   :  { %132 = dma.hbm_to_vmem [thread:$0]  %s17309_s8, 96, %s130_s20, [#allocation18]  }
  0x4e   :  { %s14664_s2 = smov [#allocation20]   ;;  %s12166_s30 = smul.u32 24576, %s18146_s23 }
  0x4f   :  { %s148_s29 = sshll.u32 %s14664_s2, 4  ;;  %s14464_s14 = scalar_lea.hbm %s17311_s10, 6144  ;;  %s149_s29 = int_to_ptr.vmem [resolvable:$true] %s148_s29 }
  0x50   :  { %p14465_p9 = scmp.ne.s32.totalorder %s17311_s10, %s14464_s14  ;;  %p14468_p10 = scmp.lt.u32.totalorder %s14464_s14, %s17311_s10 }
  0x52   :  { %p14470_p11 = pnand %p14468_p10, %p14465_p9 }
  0x54   :  { %14473 = shalt.err (!%p14470_p11)
}
  0x55   :  { %s14474_s21 = scalar_lea.vmem %s149_s29, 6144  ;;  %p14479_p13 = scmp.lt.s32.totalorder %s149_s29, %s149_s29 }
  0x56   :  { %p14475_p12 = scmp.ne.s32.totalorder %s149_s29, %s14474_s21  ;;  %p14480_p0 = scmp.lt.s32.totalorder %s14474_s21, %s14474_s21 }
  0x58   :  { %p14481_p1 = por %p14480_p0, %p14479_p13 }
  0x5a   :  { %p14482_p2 = pnand %p14481_p1, %p14475_p12 }
  0x5c   :  { %14485 = shalt.err (!%p14482_p2)
}
  0x5d   :  { %s14665_s8 = smov 64   ;;  %s14666_s20 = smov 4  }
  0x5e   :  { %154 = dma.hbm_to_vmem [thread:$0]  %s17311_s10, 6144, %s149_s29, [#allocation21], %s14665_s8, %s14665_s8, %s14666_s20  }
  0x5f   :  { %s37_s18 = scalar_lea.hbm %s17302_s1, %s12166_s30  ;;  %s14667_s2 = smov [#allocation5]  }
  0x60   :  { %s38_s4 = sshll.u32 %s14667_s2, 4  ;;  %s14827_s15 = scalar_lea.hbm %s17304_s3, %s10886_s26  ;;  %s39_s4 = int_to_ptr.vmem [resolvable:$true] %s38_s4 }
  0x61   :  { %s14486_s16 = scalar_lea.hbm %s37_s18, 24576  ;;  %s14488_s21 = scalar_lea.hbm %s17302_s1, 24576 }
  0x62   :  { %p14487_p3 = scmp.ne.s32.totalorder %s37_s18, %s14486_s16  ;;  %p14489_p4 = scmp.lt.u32.totalorder %s37_s18, %s17302_s1 }
  0x63   :  { %p14490_p5 = scmp.lt.u32.totalorder %s14488_s21, %s14486_s16  ;;  %p14492_p7 = scmp.lt.u32.totalorder %s14486_s16, %s37_s18 }
  0x65   :  { %p14491_p6 = por %p14490_p5, %p14489_p4 }
  0x67   :  { %p14493_p8 = por %p14492_p7, %p14491_p6 }
  0x69   :  { %p14494_p9 = pnand %p14493_p8, %p14487_p3 }
  0x6b   :  { %14497 = shalt.err (!%p14494_p9)
}
  0x6c   :  { %s14498_s23 = scalar_lea.vmem %s39_s4, 24576  ;;  %p14503_p11 = scmp.lt.s32.totalorder %s39_s4, %s39_s4 }
  0x6d   :  { %p14499_p10 = scmp.ne.s32.totalorder %s39_s4, %s14498_s23  ;;  %p14504_p12 = scmp.lt.s32.totalorder %s14498_s23, %s14498_s23 }
  0x6f   :  { %p14505_p13 = por %p14504_p12, %p14503_p11 }
  0x71   :  { %p14506_p0 = pnand %p14505_p13, %p14499_p10 }
  0x73   :  { %14509 = shalt.err (!%p14506_p0)
}
  0x74   :  { %44 = dma.hbm_to_vmem [thread:$0]  %s37_s18, 24576, %s39_s4, [#allocation6], %s14660_s25, %s14660_s25, %s14661_s13  }
  0x75   :  { %s14668_s1 = smov [#allocation10]   ;;  %s14669_s30 = smov [#allocation13]  }
  0x76   :  { %s75_s26 = sshll.u32 %s14668_s1, 4  ;;  %s97_s8 = sshll.u32 %s14669_s30, 4  ;;  %s76_s26 = int_to_ptr.vmem [resolvable:$true] %s75_s26  ;;  %s98_s8 = int_to_ptr.vmem [resolvable:$true] %s97_s8 }
  0x77   :  { %s14510_s20 = scalar_lea.hbm %s14827_s15, 64  ;;  %s14512_s27 = scalar_lea.hbm %s17304_s3, 64 }
  0x78   :  { %p14511_p1 = scmp.ne.s32.totalorder %s14827_s15, %s14510_s20  ;;  %p14513_p2 = scmp.lt.u32.totalorder %s14827_s15, %s17304_s3 }
  0x79   :  { %p14514_p3 = scmp.lt.u32.totalorder %s14512_s27, %s14510_s20  ;;  %p14516_p5 = scmp.lt.u32.totalorder %s14510_s20, %s14827_s15 }
  0x7b   :  { %p14515_p4 = por %p14514_p3, %p14513_p2 }
  0x7d   :  { %p14517_p6 = por %p14516_p5, %p14515_p4 }
  0x7f   :  { %p14518_p7 = pnand %p14517_p6, %p14511_p1 }
  0x81   :  { %14521 = shalt.err (!%p14518_p7)
}
  0x82   :  { %s14522_s25 = scalar_lea.vmem %s76_s26, 64  ;;  %p14527_p9 = scmp.lt.s32.totalorder %s76_s26, %s76_s26 }
  0x83   :  { %p14523_p8 = scmp.ne.s32.totalorder %s76_s26, %s14522_s25  ;;  %p14528_p10 = scmp.lt.s32.totalorder %s14522_s25, %s14522_s25 }
  0x85   :  { %p14529_p11 = por %p14528_p10, %p14527_p9 }
  0x87   :  { %p14530_p12 = pnand %p14529_p11, %p14523_p8 }
  0x89   :  { %14533 = shalt.err (!%p14530_p12)
}
  0x8a   :  { %78 = dma.hbm_to_vmem [thread:$0]  %s14827_s15, 64, %s76_s26, [#allocation9]  }
  0x8b   :  { %s14534_s3 = scalar_lea.hbm %s17306_s5, 96 }
  0x8c   :  { %p14535_p13 = scmp.ne.s32.totalorder %s17306_s5, %s14534_s3  ;;  %p14538_p0 = scmp.lt.u32.totalorder %s14534_s3, %s17306_s5 }
  0x8e   :  { %p14540_p1 = pnand %p14538_p0, %p14535_p13 }
  0x90   :  { %14543 = shalt.err (!%p14540_p1)
}
  0x91   :  { %s14544_s17 = scalar_lea.vmem %s98_s8, 96  ;;  %p14549_p3 = scmp.lt.s32.totalorder %s98_s8, %s98_s8 }
  0x92   :  { %p14545_p2 = scmp.ne.s32.totalorder %s98_s8, %s14544_s17  ;;  %p14550_p4 = scmp.lt.s32.totalorder %s14544_s17, %s14544_s17 }
  0x94   :  { %p14551_p5 = por %p14550_p4, %p14549_p3 }
  0x96   :  { %p14552_p6 = pnand %p14551_p5, %p14545_p2 }
  0x98   :  { %14555 = shalt.err (!%p14552_p6)
}
  0x99   :  { %100 = dma.hbm_to_vmem [thread:$0]  %s17306_s5, 96, %s98_s8, [#allocation12]  }
  0x9a   :  { %s14670_s21 = smov [#allocation16]   ;;  %s14671_s29 = smov [#allocation19]  }
  0x9b   :  { %s119_s10 = sshll.u32 %s14670_s21, 4  ;;  %s139_s23 = sshll.u32 %s14671_s29, 4  ;;  %s120_s10 = int_to_ptr.vmem [resolvable:$true] %s119_s10  ;;  %s140_s23 = int_to_ptr.vmem [resolvable:$true] %s139_s23 }
  0x9c   :  { %s14556_s30 = scalar_lea.hbm %s17308_s7, 96 }
  0x9d   :  { %p14557_p7 = scmp.ne.s32.totalorder %s17308_s7, %s14556_s30  ;;  %p14560_p8 = scmp.lt.u32.totalorder %s14556_s30, %s17308_s7 }
  0x9f   :  { %p14562_p9 = pnand %p14560_p8, %p14557_p7 }
  0xa1   :  { %14565 = shalt.err (!%p14562_p9)
}
  0xa2   :  { %s14566_s5 = scalar_lea.vmem %s120_s10, 96  ;;  %p14571_p11 = scmp.lt.s32.totalorder %s120_s10, %s120_s10 }
  0xa3   :  { %p14567_p10 = scmp.ne.s32.totalorder %s120_s10, %s14566_s5  ;;  %p14572_p12 = scmp.lt.s32.totalorder %s14566_s5, %s14566_s5 }
  0xa5   :  { %p14573_p13 = por %p14572_p12, %p14571_p11 }
  0xa7   :  { %p14574_p0 = pnand %p14573_p13, %p14567_p10 }
  0xa9   :  { %14577 = shalt.err (!%p14574_p0)
}
  0xaa   :  { %122 = dma.hbm_to_vmem [thread:$0]  %s17308_s7, 96, %s120_s10, [#allocation15]  }
  0xab   :  { %s14578_s13 = scalar_lea.hbm %s17310_s9, 96 }
  0xac   :  { %p14579_p1 = scmp.ne.s32.totalorder %s17310_s9, %s14578_s13  ;;  %p14582_p2 = scmp.lt.u32.totalorder %s14578_s13, %s17310_s9 }
  0xae   :  { %p14584_p3 = pnand %p14582_p2, %p14579_p1 }
  0xb0   :  { %14587 = shalt.err (!%p14584_p3)
}
  0xb1   :  { %s14588_s14 = scalar_lea.vmem %s140_s23, 96  ;;  %p14593_p5 = scmp.lt.s32.totalorder %s140_s23, %s140_s23 }
  0xb2   :  { %p14589_p4 = scmp.ne.s32.totalorder %s140_s23, %s14588_s14  ;;  %p14594_p6 = scmp.lt.s32.totalorder %s14588_s14, %s14588_s14 }
  0xb4   :  { %p14595_p7 = por %p14594_p6, %p14593_p5 }
  0xb6   :  { %p14596_p8 = pnand %p14595_p7, %p14589_p4 }
  0xb8   :  { %14599 = shalt.err (!%p14596_p8)
}
  0xb9   :  { %142 = dma.hbm_to_vmem [thread:$0]  %s17310_s9, 96, %s140_s23, [#allocation18]  }
  0xba   :  { %s14672_s17 = smov [#allocation22]   ;;  %s14600_s10 = scalar_lea.hbm %s17312_s11, 16 }
  0xbb   :  { %s161_s15 = sshll.u32 %s14672_s17, 4  ;;  %p14601_p9 = scmp.ne.s32.totalorder %s17312_s11, %s14600_s10  ;;  %s162_s15 = int_to_ptr.vmem [resolvable:$true] %s161_s15 }
  0xbc   :  { %p14604_p10 = scmp.lt.u32.totalorder %s14600_s10, %s17312_s11 }
  0xbe   :  { %p14606_p11 = pnand %p14604_p10, %p14601_p9 }
  0xc0   :  { %14609 = shalt.err (!%p14606_p11)
}
  0xc1   :  { %s14610_s20 = scalar_lea.vmem %s162_s15, 16  ;;  %s14614_s9 = scalar_lea.vmem %s162_s15, 32 }
  0xc2   :  { %p14611_p12 = scmp.ne.s32.totalorder %s162_s15, %s14610_s20  ;;  %p14615_p13 = scmp.lt.s32.totalorder %s162_s15, %s162_s15 }
  0xc3   :  { %p14616_p0 = scmp.lt.s32.totalorder %s14614_s9, %s14610_s20 }
  0xc5   :  { %p14617_p1 = por %p14616_p0, %p14615_p13 }
  0xc7   :  { %p14618_p2 = pnand %p14617_p1, %p14611_p12 }
  0xc9   :  { %14621 = shalt.err (!%p14618_p2)
}
  0xca   :  { %164 = dma.hbm_to_vmem [thread:$0]  %s17312_s11, 16, %s162_s15, [#allocation21]  }
  0xcb   :  { %14644 = dma.done.wait [#allocation6], 24576  }
  0xcc   :  { %14645 = vsyncadd [#allocation6], 4294942720 }
  0xcd   :  { %14646 = dma.done.wait [#allocation9], 128  }
  0xce   :  { %14647 = vsyncadd [#allocation9], 4294967168 }
  0xcf   :  { %14648 = dma.done.wait [#allocation12], 36960  }
  0xd0   :  { %14649 = vsyncadd [#allocation12], 4294930336 }
  0xd1   :  { %14650 = dma.done.wait [#allocation15], 36960  }
  0xd2   :  { %14651 = vsyncadd [#allocation15], 4294930336 }
  0xd3   :  { %14652 = dma.done.wait [#allocation18], 192  }
  0xd4   :  { %14653 = vsyncadd [#allocation18], 4294967104 }
  0xd5   :  { %14654 = dma.done.wait [#allocation21], 6160  }
  0xd6   :  { %14655 = vsyncadd [#allocation21], 4294961136  ;;  %v14673_v0 = vmov 0.0   ;;  %p10032_p3 = scmp.le.s32.totalorder %s17301_s0, 0 }
  0xd7   :  { %218 = vst [vmem:[#allocation2] sm:$0xff] %v14673_v0  ;;  %219 = vst [vmem:[#allocation2 + $0x8] sm:$0xff] %v14673_v0 }
  0xd8   :  { %220 = vst [vmem:[#allocation2 + $0x10] sm:$0xff] %v14673_v0  ;;  %221 = vst [vmem:[#allocation2 + $0x18] sm:$0xff] %v14673_v0  ;;  %228 = sbr.rel (%p10032_p3) target bundleno = 2161 (0x871), region = 97 }
  0xd9   :  { %222 = vst [vmem:[#allocation2 + $0x20] sm:$0xff] %v14673_v0  ;;  %223 = vst [vmem:[#allocation2 + $0x28] sm:$0xff] %v14673_v0 }
  0xdf   :  { %v12184_v1 = vld [vmem:[#allocation11 + $0x4] ss:$24 sps:$4 sm:$0xff]   ;;  %v12188_v3 = vld [vmem:[#allocation11] ss:$24 sps:$4 sm:$0xff]   ;;  %v12190_v5 = vld [vmem:[#allocation11 + $0x34] ss:$24 sps:$4 sm:$0xff]  }
  0xe0   :  { %v12186_v2 = vld [vmem:[#allocation11 + $0xc] ss:$24 sps:$4 sm:$0xff]   ;;  %3141 = vmatprep.subr.bf16.mxu0 %v12184_v1  ;;  %v12189_v4 = vld [vmem:[#allocation11 + $0x8] ss:$24 sps:$4 sm:$0xff]   ;;  %v12192_v6 = vld [vmem:[#allocation11 + $0x3c] ss:$24 sps:$4 sm:$0xff]  }
  0xe1   :  { %4200 = vmatprep.subr.bf16.mxu1 %v12186_v2  ;;  %3142 = vmatpush1.bf16.msra.mxu0 %v12188_v3  ;;  %v12194_v7 = vld [vmem:[#allocation11 + $0x30] ss:$24 sps:$4 sm:$0xff]   ;;  %v12196_v9 = vld [vmem:[#allocation11 + $0x64] ss:$24 sps:$4 sm:$0xff]   ;;  %v12200_v11 = vld [vmem:[#allocation11 + $0x60] ss:$24 sps:$4 sm:$0xff]  }
  0xe2   :  { %4201 = vmatpush1.bf16.msra.mxu1 %v12189_v4  ;;  %3143 = vmatprep.subr.bf16.mxu0 %v12190_v5  ;;  %v12195_v8 = vld [vmem:[#allocation11 + $0x38] ss:$24 sps:$4 sm:$0xff]   ;;  %v12198_v10 = vld [vmem:[#allocation11 + $0x6c] ss:$24 sps:$4 sm:$0xff]   ;;  %v12201_v12 = vld [vmem:[#allocation11 + $0x68] ss:$24 sps:$4 sm:$0xff]  }
  0xe3   :  { %4202 = vmatprep.subr.bf16.mxu1 %v12192_v6  ;;  %v12202_v13 = vld [vmem:[#allocation11 + $0x94] ss:$24 sps:$4 sm:$0xff]   ;;  %v12206_v15 = vld [vmem:[#allocation11 + $0x90] ss:$24 sps:$4 sm:$0xff]   ;;  %v12208_v17 = vld [vmem:[#allocation11 + $0xc4] ss:$24 sps:$4 sm:$0xff]  }
  0xe4   :  { %v12204_v14 = vld [vmem:[#allocation11 + $0x9c] ss:$24 sps:$4 sm:$0xff]   ;;  %v12207_v16 = vld [vmem:[#allocation11 + $0x98] ss:$24 sps:$4 sm:$0xff]   ;;  %v12210_v18 = vld [vmem:[#allocation11 + $0xcc] ss:$24 sps:$4 sm:$0xff]  }
  0xe5   :  { %3144 = vmatpush1.bf16.msra.mxu0 %v12194_v7  ;;  %v12212_v19 = vld [vmem:[#allocation11 + $0xc0] ss:$24 sps:$4 sm:$0xff]   ;;  %v12214_v21 = vld [vmem:[#allocation11 + $0xf4] ss:$24 sps:$4 sm:$0xff]   ;;  %v12218_v23 = vld [vmem:[#allocation11 + $0xf0] ss:$24 sps:$4 sm:$0xff]  }
  0xe6   :  { %4203 = vmatpush1.bf16.msra.mxu1 %v12195_v8  ;;  %3145 = vmatprep.subr.bf16.mxu0 %v12196_v9  ;;  %v12213_v20 = vld [vmem:[#allocation11 + $0xc8] ss:$24 sps:$4 sm:$0xff]   ;;  %v12216_v22 = vld [vmem:[#allocation11 + $0xfc] ss:$24 sps:$4 sm:$0xff]   ;;  %v12219_v24 = vld [vmem:[#allocation11 + $0xf8] ss:$24 sps:$4 sm:$0xff]  }
  0xe7   :  { %4204 = vmatprep.subr.bf16.mxu1 %v12198_v10  ;;  %v12220_v25 = vld [vmem:[#allocation11 + $0x124] ss:$24 sps:$4 sm:$0xff]   ;;  %v12224_v27 = vld [vmem:[#allocation11 + $0x120] ss:$24 sps:$4 sm:$0xff]   ;;  %v12226_v29 = vld [vmem:[#allocation11 + $0x154] ss:$24 sps:$4 sm:$0xff]  }
  0xe8   :  { %v12222_v26 = vld [vmem:[#allocation11 + $0x12c] ss:$24 sps:$4 sm:$0xff]   ;;  %v12225_v28 = vld [vmem:[#allocation11 + $0x128] ss:$24 sps:$4 sm:$0xff]   ;;  %v12228_v30 = vld [vmem:[#allocation11 + $0x15c] ss:$24 sps:$4 sm:$0xff]  }
  0xe9   :  { %3146 = vmatpush1.bf16.msra.mxu0 %v12200_v11  ;;  %v12230_v31 = vld [vmem:[#allocation11 + $0x150] ss:$24 sps:$4 sm:$0xff]   ;;  %v12232_v33 = vld [vmem:[#allocation11 + $0x184] ss:$24 sps:$4 sm:$0xff]   ;;  %v12236_v35 = vld [vmem:[#allocation11 + $0x180] ss:$24 sps:$4 sm:$0xff]  }
  0xea   :  { %4205 = vmatpush1.bf16.msra.mxu1 %v12201_v12  ;;  %3147 = vmatprep.subr.bf16.mxu0 %v12202_v13  ;;  %v12231_v32 = vld [vmem:[#allocation11 + $0x158] ss:$24 sps:$4 sm:$0xff]   ;;  %v12234_v34 = vld [vmem:[#allocation11 + $0x18c] ss:$24 sps:$4 sm:$0xff]   ;;  %v12237_v36 = vld [vmem:[#allocation11 + $0x188] ss:$24 sps:$4 sm:$0xff]  }
  0xeb   :  { %4206 = vmatprep.subr.bf16.mxu1 %v12204_v14  ;;  %v12238_v37 = vld [vmem:[#allocation11 + $0x1b4] ss:$24 sps:$4 sm:$0xff]   ;;  %v12242_v39 = vld [vmem:[#allocation11 + $0x1b0] ss:$24 sps:$4 sm:$0xff]   ;;  %v12244_v41 = vld [vmem:[#allocation11 + $0x1e4] ss:$24 sps:$4 sm:$0xff]  }
  0xec   :  { %v12240_v38 = vld [vmem:[#allocation11 + $0x1bc] ss:$24 sps:$4 sm:$0xff]   ;;  %v12243_v40 = vld [vmem:[#allocation11 + $0x1b8] ss:$24 sps:$4 sm:$0xff]   ;;  %v12246_v42 = vld [vmem:[#allocation11 + $0x1ec] ss:$24 sps:$4 sm:$0xff]  }
  0xed   :  { %3148 = vmatpush1.bf16.msra.mxu0 %v12206_v15  ;;  %v12248_v43 = vld [vmem:[#allocation11 + $0x1e0] ss:$24 sps:$4 sm:$0xff]   ;;  %v12250_v45 = vld [vmem:[#allocation11 + $0x214] ss:$24 sps:$4 sm:$0xff]   ;;  %v12254_v47 = vld [vmem:[#allocation11 + $0x210] ss:$24 sps:$4 sm:$0xff]  }
  0xee   :  { %4207 = vmatpush1.bf16.msra.mxu1 %v12207_v16  ;;  %3149 = vmatprep.subr.bf16.mxu0 %v12208_v17  ;;  %v12249_v44 = vld [vmem:[#allocation11 + $0x1e8] ss:$24 sps:$4 sm:$0xff]   ;;  %v12252_v46 = vld [vmem:[#allocation11 + $0x21c] ss:$24 sps:$4 sm:$0xff]   ;;  %v12255_v48 = vld [vmem:[#allocation11 + $0x218] ss:$24 sps:$4 sm:$0xff]  }
  0xef   :  { %4208 = vmatprep.subr.bf16.mxu1 %v12210_v18  ;;  %v12280_v49 = vld [vmem:[#allocation5 + $0x4] ss:$24 sps:$4 sm:$0xff]   ;;  %v12258_v51 = vld [vmem:[#allocation11 + $0x24c] ss:$24 sps:$4 sm:$0xff]   ;;  %v12260_v52 = vld [vmem:[#allocation11 + $0x240] ss:$24 sps:$4 sm:$0xff]  }
  0xf0   :  { %v12256_v50 = vld [vmem:[#allocation11 + $0x244] ss:$24 sps:$4 sm:$0xff]   ;;  %3173 = vmatprep.mubr.bf16.mxu0 %v12280_v49  ;;  %4232 = vmatprep.mubr.bf16.mxu1 %v12280_v49  ;;  %v12261_v53 = vld [vmem:[#allocation11 + $0x248] ss:$24 sps:$4 sm:$0xff]   ;;  %v12262_v54 = vld [vmem:[#allocation11 + $0x274] ss:$24 sps:$4 sm:$0xff]  }
  0xf1   :  { %3150 = vmatpush1.bf16.msra.mxu0 %v12212_v19  ;;  %v12264_v55 = vld [vmem:[#allocation11 + $0x27c] ss:$24 sps:$4 sm:$0xff]   ;;  %v12266_v56 = vld [vmem:[#allocation11 + $0x270] ss:$24 sps:$4 sm:$0xff]   ;;  %v12270_v59 = vld [vmem:[#allocation11 + $0x2ac] ss:$24 sps:$4 sm:$0xff]  }
  0xf2   :  { %4209 = vmatpush1.bf16.msra.mxu1 %v12213_v20  ;;  %3151 = vmatprep.subr.bf16.mxu0 %v12214_v21  ;;  %v12267_v57 = vld [vmem:[#allocation11 + $0x278] ss:$24 sps:$4 sm:$0xff]   ;;  %v12268_v58 = vld [vmem:[#allocation11 + $0x2a4] ss:$24 sps:$4 sm:$0xff]   ;;  %v12273_v61 = vld [vmem:[#allocation11 + $0x2a8] ss:$24 sps:$4 sm:$0xff]  }
  0xf3   :  { %4210 = vmatprep.subr.bf16.mxu1 %v12216_v22  ;;  %v12272_v60 = vld [vmem:[#allocation11 + $0x2a0] ss:$24 sps:$4 sm:$0xff]   ;;  %v12274_v62 = vld [vmem:[#allocation11 + $0x2d4] ss:$24 sps:$4 sm:$0xff]   ;;  %v12278_v0 = vld [vmem:[#allocation11 + $0x2d0] ss:$24 sps:$4 sm:$0xff]  }
  0xf4   :  { %v12276_v63 = vld [vmem:[#allocation11 + $0x2dc] ss:$24 sps:$4 sm:$0xff]   ;;  %v12279_v1 = vld [vmem:[#allocation11 + $0x2d8] ss:$24 sps:$4 sm:$0xff]   ;;  %v12286_v5 = vld [vmem:[#allocation5 + $0x34] ss:$24 sps:$4 sm:$0xff]  }
  0xf5   :  { %3152 = vmatpush1.bf16.msra.mxu0 %v12218_v23  ;;  %v12285_v2 = vld [vmem:[#allocation11 + $0x304] ss:$24 sps:$4 sm:$0xff]   ;;  %v12282_v3 = vld [vmem:[#allocation5] ss:$24 sps:$4 sm:$0xff]   ;;  %v12294_v6 = vld [vmem:[#allocation11 + $0x334] ss:$24 sps:$4 sm:$0xff]  }
  0xf6   :  { %4211 = vmatpush1.bf16.msra.mxu1 %v12219_v24  ;;  %3153 = vmatprep.subr.bf16.mxu0 %v12220_v25  ;;  %v12283_v4 = vld [vmem:[#allocation11 + $0x300] ss:$24 sps:$4 sm:$0xff]   ;;  %v12292_v7 = vld [vmem:[#allocation11 + $0x330] ss:$24 sps:$4 sm:$0xff]   ;;  %v12303_v8 = vld [vmem:[#allocation11 + $0x364] ss:$24 sps:$4 sm:$0xff]  }
  0xf7   :  { %4212 = vmatprep.subr.bf16.mxu1 %v12222_v26  ;;  %v12288_v9 = vld [vmem:[#allocation5 + $0x30] ss:$24 sps:$4 sm:$0xff]   ;;  %v12289_v10 = vld [vmem:[#allocation5 + $0x64] ss:$24 sps:$4 sm:$0xff]   ;;  %v12291_v14 = vld [vmem:[#allocation5 + $0x60] ss:$24 sps:$4 sm:$0xff]  }
  0xf8   :  { %v12301_v11 = vld [vmem:[#allocation11 + $0x360] ss:$24 sps:$4 sm:$0xff]   ;;  %v12312_v12 = vld [vmem:[#allocation11 + $0x394] ss:$24 sps:$4 sm:$0xff]   ;;  %v12310_v13 = vld [vmem:[#allocation11 + $0x390] ss:$24 sps:$4 sm:$0xff]  }
  0xf9   :  { %3154 = vmatpush1.bf16.msra.mxu0 %v12224_v27  ;;  %v12321_v15 = vld [vmem:[#allocation11 + $0x3c4] ss:$24 sps:$4 sm:$0xff]   ;;  %v12319_v17 = vld [vmem:[#allocation11 + $0x3c0] ss:$24 sps:$4 sm:$0xff]   ;;  %v12330_v18 = vld [vmem:[#allocation11 + $0x3f4] ss:$24 sps:$4 sm:$0xff]  }
  0xfa   :  { %4213 = vmatpush1.bf16.msra.mxu1 %v12225_v28  ;;  %3155 = vmatprep.subr.bf16.mxu0 %v12226_v29  ;;  %v12295_v16 = vld [vmem:[#allocation5 + $0x94] ss:$24 sps:$4 sm:$0xff]   ;;  %v12328_v19 = vld [vmem:[#allocation11 + $0x3f0] ss:$24 sps:$4 sm:$0xff]   ;;  %v12298_v22 = vld [vmem:[#allocation5 + $0xc4] ss:$24 sps:$4 sm:$0xff]  }
  0xfb   :  { %4214 = vmatprep.subr.bf16.mxu1 %v12228_v30  ;;  %v12339_v20 = vld [vmem:[#allocation11 + $0x424] ss:$24 sps:$4 sm:$0xff]   ;;  %v12297_v21 = vld [vmem:[#allocation5 + $0x90] ss:$24 sps:$4 sm:$0xff]   ;;  %v12348_v24 = vld [vmem:[#allocation11 + $0x454] ss:$24 sps:$4 sm:$0xff]  }
  0xfc   :  { %v12337_v23 = vld [vmem:[#allocation11 + $0x420] ss:$24 sps:$4 sm:$0xff]   ;;  %v12346_v25 = vld [vmem:[#allocation11 + $0x450] ss:$24 sps:$4 sm:$0xff]   ;;  %v12357_v26 = vld [vmem:[#allocation11 + $0x484] ss:$24 sps:$4 sm:$0xff]  }
  0xfd   :  { %3156 = vmatpush1.bf16.msra.mxu0 %v12230_v31  ;;  %v12300_v27 = vld [vmem:[#allocation5 + $0xc0] ss:$24 sps:$4 sm:$0xff]   ;;  %v12304_v28 = vld [vmem:[#allocation5 + $0xf4] ss:$24 sps:$4 sm:$0xff]   ;;  %v12399_v49 = vld [vmem:[#allocation11 + $0x33c] ss:$24 sps:$4 sm:$0xff]  }
  0xfe   :  { %4215 = vmatpush1.bf16.msra.mxu1 %v12231_v32  ;;  %3157 = vmatprep.subr.bf16.mxu0 %v12232_v33  ;;  %v12355_v29 = vld [vmem:[#allocation11 + $0x480] ss:$24 sps:$4 sm:$0xff]   ;;  %v12366_v30 = vld [vmem:[#allocation11 + $0x4b4] ss:$24 sps:$4 sm:$0xff]   ;;  %v12364_v31 = vld [vmem:[#allocation11 + $0x4b0] ss:$24 sps:$4 sm:$0xff]  }
  0xff   :  { %4216 = vmatprep.subr.bf16.mxu1 %v12234_v34  ;;  %v12375_v32 = vld [vmem:[#allocation11 + $0x4e4] ss:$24 sps:$4 sm:$0xff]   ;;  %v12306_v33 = vld [vmem:[#allocation5 + $0xf0] ss:$24 sps:$4 sm:$0xff]  }
 0x100   :  { %v12307_v34 = vld [vmem:[#allocation5 + $0x124] ss:$24 sps:$4 sm:$0xff]  }
 0x101   :  { %3158 = vmatpush1.bf16.msra.mxu0 %v12236_v35  ;;  %v12373_v35 = vld [vmem:[#allocation11 + $0x4e0] ss:$24 sps:$4 sm:$0xff]  }
 0x102   :  { %4217 = vmatpush1.bf16.msra.mxu1 %v12237_v36  ;;  %3159 = vmatprep.subr.bf16.mxu0 %v12238_v37  ;;  %v12309_v36 = vld [vmem:[#allocation5 + $0x120] ss:$24 sps:$4 sm:$0xff]   ;;  %v12313_v37 = vld [vmem:[#allocation5 + $0x154] ss:$24 sps:$4 sm:$0xff]  }
 0x103   :  { %4218 = vmatprep.subr.bf16.mxu1 %v12240_v38  ;;  %v12382_v38 = vld [vmem:[#allocation11 + $0x510] ss:$24 sps:$4 sm:$0xff]  }
 0x105   :  { %3160 = vmatpush1.bf16.msra.mxu0 %v12242_v39  ;;  %v12384_v39 = vld [vmem:[#allocation11 + $0x514] ss:$24 sps:$4 sm:$0xff]  }
 0x106   :  { %4219 = vmatpush1.bf16.msra.mxu1 %v12243_v40  ;;  %3161 = vmatprep.subr.bf16.mxu0 %v12244_v41  ;;  %v12315_v40 = vld [vmem:[#allocation5 + $0x150] ss:$24 sps:$4 sm:$0xff]   ;;  %v12316_v41 = vld [vmem:[#allocation5 + $0x184] ss:$24 sps:$4 sm:$0xff]  }
 0x107   :  { %4220 = vmatprep.subr.bf16.mxu1 %v12246_v42  ;;  %v12318_v42 = vld [vmem:[#allocation5 + $0x180] ss:$24 sps:$4 sm:$0xff]  }
 0x109   :  { %3162 = vmatpush1.bf16.msra.mxu0 %v12248_v43  ;;  %v12322_v43 = vld [vmem:[#allocation5 + $0x1b4] ss:$24 sps:$4 sm:$0xff]  }
 0x10a   :  { %4221 = vmatpush1.bf16.msra.mxu1 %v12249_v44  ;;  %3163 = vmatprep.subr.bf16.mxu0 %v12250_v45  ;;  %v12396_v44 = vld [vmem:[#allocation11 + $0x30c] ss:$24 sps:$4 sm:$0xff]   ;;  %v12394_v45 = vld [vmem:[#allocation11 + $0x308] ss:$24 sps:$4 sm:$0xff]  }
 0x10b   :  { %4222 = vmatprep.subr.bf16.mxu1 %v12252_v46  ;;  %v12391_v46 = vld [vmem:[#allocation11 + $0x540] ss:$24 sps:$4 sm:$0xff]  }
 0x10d   :  { %3164 = vmatpush1.bf16.msra.mxu0 %v12254_v47  ;;  %v12393_v47 = vld [vmem:[#allocation11 + $0x544] ss:$24 sps:$4 sm:$0xff]  }
 0x10e   :  { %4223 = vmatpush1.bf16.msra.mxu1 %v12255_v48  ;;  %3165 = vmatprep.subr.bf16.mxu0 %v12256_v50  ;;  %v12397_v48 = vld [vmem:[#allocation11 + $0x338] ss:$24 sps:$4 sm:$0xff]   ;;  %v12324_v50 = vld [vmem:[#allocation5 + $0x1b0] ss:$24 sps:$4 sm:$0xff]  }
 0x10f   :  { %4224 = vmatprep.subr.bf16.mxu1 %v12258_v51  ;;  %v12325_v51 = vld [vmem:[#allocation5 + $0x1e4] ss:$24 sps:$4 sm:$0xff]  }
 0x111   :  { %3166 = vmatpush1.bf16.msra.mxu0 %v12260_v52  ;;  %v12405_v52 = vld [vmem:[#allocation11 + $0x36c] ss:$24 sps:$4 sm:$0xff]  }
 0x112   :  { %4225 = vmatpush1.bf16.msra.mxu1 %v12261_v53  ;;  %3167 = vmatprep.subr.bf16.mxu0 %v12262_v54  ;;  %v12403_v53 = vld [vmem:[#allocation11 + $0x368] ss:$24 sps:$4 sm:$0xff]   ;;  %v12408_v54 = vld [vmem:[#allocation11 + $0x39c] ss:$24 sps:$4 sm:$0xff]  }
 0x113   :  { %4226 = vmatprep.subr.bf16.mxu1 %v12264_v55  ;;  %v12406_v55 = vld [vmem:[#allocation11 + $0x398] ss:$24 sps:$4 sm:$0xff]  }
 0x115   :  { %3168 = vmatpush1.bf16.msra.mxu0 %v12266_v56  ;;  %v12327_v56 = vld [vmem:[#allocation5 + $0x1e0] ss:$24 sps:$4 sm:$0xff]  }
 0x116   :  { %4227 = vmatpush1.bf16.msra.mxu1 %v12267_v57  ;;  %3169 = vmatprep.subr.bf16.mxu0 %v12268_v58  ;;  %v12331_v57 = vld [vmem:[#allocation5 + $0x214] ss:$24 sps:$4 sm:$0xff]  }
 0x117   :  { %4228 = vmatprep.subr.bf16.mxu1 %v12270_v59  ;;  %v12417_v58 = vld [vmem:[#allocation11 + $0x3cc] ss:$24 sps:$4 sm:$0xff]   ;;  %v12415_v59 = vld [vmem:[#allocation11 + $0x3c8] ss:$24 sps:$4 sm:$0xff]  }
 0x119   :  { %3170 = vmatpush1.bf16.msra.mxu0 %v12272_v60  ;;  %v12412_v60 = vld [vmem:[#allocation11 + $0x570] ss:$24 sps:$4 sm:$0xff]  }
 0x11a   :  { %4229 = vmatpush1.bf16.msra.mxu1 %v12273_v61  ;;  %3171 = vmatprep.subr.bf16.mxu0 %v12274_v62  ;;  %v12414_v61 = vld [vmem:[#allocation11 + $0x574] ss:$24 sps:$4 sm:$0xff]   ;;  %v12418_v62 = vld [vmem:[#allocation11 + $0x3f8] ss:$24 sps:$4 sm:$0xff]  }
 0x11b   :  { %4230 = vmatprep.subr.bf16.mxu1 %v12276_v63  ;;  %v12420_v63 = vld [vmem:[#allocation11 + $0x3fc] ss:$24 sps:$4 sm:$0xff]  }
 0x11d   :  { %3172 = vmatpush1.bf16.msra.mxu0 %v12278_v0  ;;  %v12333_v0 = vld [vmem:[#allocation5 + $0x210] ss:$24 sps:$4 sm:$0xff]  }
 0x11e   :  { %4231 = vmatpush1.bf16.msra.mxu1 %v12279_v1  ;;  %3494 = vmatprep.subr.bf16.mxu0 %v12285_v2  ;;  %v12334_v1 = vld [vmem:[#allocation5 + $0x244] ss:$24 sps:$4 sm:$0xff]   ;;  %v12426_v2 = vld [vmem:[#allocation11 + $0x42c] ss:$24 sps:$4 sm:$0xff]  }
 0x11f   :  { %4553 = vmatprep.subr.bf16.mxu1 %v12396_v44  ;;  %v12376_v44 = vld [vmem:[#allocation5 + $0x3f4] ss:$24 sps:$4 sm:$0xff]  }
 0x120   :  { %3174 = vmatmul.mubr.bf16.vlgmr.msra.gmra.mrb[0].mxu0 %v12282_v3 }
 0x121   :  { %4233 = vmatmul.mubr.bf16.vlgmr.msra.gmra.mrb[0].mxu1 %v12282_v3  ;;  %3495 = vmatpush1.bf16.msra.mxu0 %v12283_v4  ;;  %v12424_v3 = vld [vmem:[#allocation11 + $0x428] ss:$24 sps:$4 sm:$0xff]   ;;  %v12429_v4 = vld [vmem:[#allocation11 + $0x45c] ss:$24 sps:$4 sm:$0xff]  }
 0x122   :  { %3183 = vmatprep.mubr.bf16.mxu0 %v12286_v5  ;;  %4242 = vmatprep.mubr.bf16.mxu1 %v12286_v5  ;;  %v12427_v5 = vld [vmem:[#allocation11 + $0x458] ss:$24 sps:$4 sm:$0xff]  }
 0x123   :  { %3496 = vmatprep.subr.bf16.mxu0 %v12294_v6  ;;  %4554 = vmatpush1.bf16.msra.mxu1 %v12394_v45  ;;  %v12336_v6 = vld [vmem:[#allocation5 + $0x240] ss:$24 sps:$4 sm:$0xff]   ;;  %v12378_v45 = vld [vmem:[#allocation5 + $0x3f0] ss:$24 sps:$4 sm:$0xff]  }
 0x124   :  { %4555 = vmatprep.subr.bf16.mxu1 %v12399_v49  ;;  %v12387_v49 = vld [vmem:[#allocation5 + $0x450] ss:$24 sps:$4 sm:$0xff]  }
 0x125   :  { %3497 = vmatpush1.bf16.msra.mxu0 %v12292_v7  ;;  %v12340_v7 = vld [vmem:[#allocation5 + $0x274] ss:$24 sps:$4 sm:$0xff]  }
 0x126   :  { %3498 = vmatprep.subr.bf16.mxu0 %v12303_v8  ;;  %v12438_v8 = vld [vmem:[#allocation11 + $0x48c] ss:$24 sps:$4 sm:$0xff]  }
 0x127   :  { %4556 = vmatpush1.bf16.msra.mxu1 %v12397_v48  ;;  %v12385_v48 = vld [vmem:[#allocation5 + $0x454] ss:$24 sps:$4 sm:$0xff]  }
 0x128   :  { %3184 = vmatmul.mubr.bf16.gmra.mrb[4].mxu0 %v12288_v9  ;;  %4557 = vmatprep.subr.bf16.mxu1 %v12405_v52  ;;  %v12400_v52 = vld [vmem:[#allocation5 + $0x4b4] ss:$24 sps:$4 sm:$0xff]  }
 0x129   :  { %4243 = vmatmul.mubr.bf16.gmra.mrb[4].mxu1 %v12288_v9  ;;  %3193 = vmatprep.mubr.bf16.mxu0 %v12289_v10  ;;  %v12436_v9 = vld [vmem:[#allocation11 + $0x488] ss:$24 sps:$4 sm:$0xff]  }
 0x12a   :  { %4252 = vmatprep.mubr.bf16.mxu1 %v12289_v10  ;;  %3499 = vmatpush1.bf16.msra.mxu0 %v12301_v11  ;;  %v12433_v10 = vld [vmem:[#allocation11 + $0x5a0] ss:$24 sps:$4 sm:$0xff]   ;;  %v12435_v11 = vld [vmem:[#allocation11 + $0x5a4] ss:$24 sps:$4 sm:$0xff]  }
 0x12b   :  { %3500 = vmatprep.subr.bf16.mxu0 %v12312_v12  ;;  %4558 = vmatpush1.bf16.msra.mxu1 %v12403_v53  ;;  %v12439_v12 = vld [vmem:[#allocation11 + $0x4b8] ss:$24 sps:$4 sm:$0xff]   ;;  %v12402_v53 = vld [vmem:[#allocation5 + $0x4b0] ss:$24 sps:$4 sm:$0xff]  }
 0x12c   :  { %4559 = vmatprep.subr.bf16.mxu1 %v12408_v54  ;;  %v12409_v54 = vld [vmem:[#allocation5 + $0x4e4] ss:$24 sps:$4 sm:$0xff]  }
 0x12e   :  { %3501 = vmatpush1.bf16.msra.mxu0 %v12310_v13  ;;  %v12441_v13 = vld [vmem:[#allocation11 + $0x4bc] ss:$24 sps:$4 sm:$0xff]  }
 0x12f   :  { %3502 = vmatprep.subr.bf16.mxu0 %v12321_v15  ;;  %4560 = vmatpush1.bf16.msra.mxu1 %v12406_v55  ;;  %v12343_v15 = vld [vmem:[#allocation5 + $0x2a4] ss:$24 sps:$4 sm:$0xff]   ;;  %v12411_v55 = vld [vmem:[#allocation5 + $0x4e0] ss:$24 sps:$4 sm:$0xff]  }
 0x130   :  { %3194 = vmatmul.mubr.bf16.gmra.mrb[8].mxu0 %v12291_v14  ;;  %4561 = vmatprep.subr.bf16.mxu1 %v12417_v58  ;;  %v12430_v58 = vld [vmem:[#allocation5 + $0x544] ss:$24 sps:$4 sm:$0xff]  }
 0x131   :  { %4253 = vmatmul.mubr.bf16.gmra.mrb[8].mxu1 %v12291_v14  ;;  %3203 = vmatprep.mubr.bf16.mxu0 %v12295_v16  ;;  %v12342_v14 = vld [vmem:[#allocation5 + $0x270] ss:$24 sps:$4 sm:$0xff]  }
 0x132   :  { %4262 = vmatprep.mubr.bf16.mxu1 %v12295_v16  ;;  %3503 = vmatpush1.bf16.msra.mxu0 %v12319_v17  ;;  %v12447_v16 = vld [vmem:[#allocation11 + $0x4ec] ss:$24 sps:$4 sm:$0xff]   ;;  %v12445_v17 = vld [vmem:[#allocation11 + $0x4e8] ss:$24 sps:$4 sm:$0xff]  }
 0x133   :  { %3504 = vmatprep.subr.bf16.mxu0 %v12330_v18  ;;  %4562 = vmatpush1.bf16.msra.mxu1 %v12415_v59  ;;  %v12450_v18 = vld [vmem:[#allocation11 + $0x51c] ss:$24 sps:$4 sm:$0xff]   ;;  %v12432_v59 = vld [vmem:[#allocation5 + $0x540] ss:$24 sps:$4 sm:$0xff]  }
 0x134   :  { %4563 = vmatprep.subr.bf16.mxu1 %v12420_v63  ;;  %v12453_v63 = vld [vmem:[#allocation5 + $0x5a0] ss:$24 sps:$4 sm:$0xff]  }
 0x136   :  { %3505 = vmatpush1.bf16.msra.mxu0 %v12328_v19  ;;  %v12448_v19 = vld [vmem:[#allocation11 + $0x518] ss:$24 sps:$4 sm:$0xff]  }
 0x137   :  { %3506 = vmatprep.subr.bf16.mxu0 %v12339_v20  ;;  %4564 = vmatpush1.bf16.msra.mxu1 %v12418_v62  ;;  %v12345_v20 = vld [vmem:[#allocation5 + $0x2a0] ss:$24 sps:$4 sm:$0xff]   ;;  %v12451_v62 = vld [vmem:[#allocation5 + $0x5a4] ss:$24 sps:$4 sm:$0xff]  }
 0x138   :  { %3204 = vmatmul.mubr.bf16.gmra.mrb[12].mxu0 %v12297_v21  ;;  %4565 = vmatprep.subr.bf16.mxu1 %v12426_v2  ;;  %v12474_v2 = vld [vmem:[#allocation5 + $0xc] ss:$24 sps:$4 sm:$0xff]  }
 0x139   :  { %4263 = vmatmul.mubr.bf16.gmra.mrb[12].mxu1 %v12297_v21  ;;  %3213 = vmatprep.mubr.bf16.mxu0 %v12298_v22  ;;  %v12349_v21 = vld [vmem:[#allocation5 + $0x2d4] ss:$24 sps:$4 sm:$0xff]  }
 0x13a   :  { %4272 = vmatprep.mubr.bf16.mxu1 %v12298_v22  ;;  %3507 = vmatpush1.bf16.msra.mxu0 %v12337_v23  ;;  %v12459_v22 = vld [vmem:[#allocation11 + $0x54c] ss:$24 sps:$4 sm:$0xff]   ;;  %v12457_v23 = vld [vmem:[#allocation11 + $0x548] ss:$24 sps:$4 sm:$0xff]  }
 0x13b   :  { %3508 = vmatprep.subr.bf16.mxu0 %v12348_v24  ;;  %4566 = vmatpush1.bf16.msra.mxu1 %v12424_v3  ;;  %v12454_v24 = vld [vmem:[#allocation11 + $0x5d0] ss:$24 sps:$4 sm:$0xff]   ;;  %v12472_v3 = vld [vmem:[#allocation5 + $0x8] ss:$24 sps:$4 sm:$0xff]  }
 0x13c   :  { %4567 = vmatprep.subr.bf16.mxu1 %v12429_v4  ;;  %v12475_v4 = vld [vmem:[#allocation11 + $0x600] ss:$24 sps:$4 sm:$0xff]  }
 0x13e   :  { %3509 = vmatpush1.bf16.msra.mxu0 %v12346_v25  ;;  %v12456_v25 = vld [vmem:[#allocation11 + $0x5d4] ss:$24 sps:$4 sm:$0xff]  }
 0x13f   :  { %3510 = vmatprep.subr.bf16.mxu0 %v12357_v26  ;;  %4568 = vmatpush1.bf16.msra.mxu1 %v12427_v5  ;;  %v12460_v26 = vld [vmem:[#allocation11 + $0x578] ss:$24 sps:$4 sm:$0xff]   ;;  %v12478_v5 = vld [vmem:[#allocation5 + $0x3c] ss:$24 sps:$4 sm:$0xff]  }
 0x140   :  { %3214 = vmatmul.mubr.bf16.gmra.mrb[16].mxu0 %v12300_v27  ;;  %4569 = vmatprep.subr.bf16.mxu1 %v12438_v8  ;;  %v12495_v8 = vld [vmem:[#allocation11 + $0x664] ss:$24 sps:$4 sm:$0xff]  }
 0x141   :  { %4273 = vmatmul.mubr.bf16.gmra.mrb[16].mxu1 %v12300_v27  ;;  %3223 = vmatprep.mubr.bf16.mxu0 %v12304_v28  ;;  %v12462_v27 = vld [vmem:[#allocation11 + $0x57c] ss:$24 sps:$4 sm:$0xff]  }
 0x142   :  { %4282 = vmatprep.mubr.bf16.mxu1 %v12304_v28  ;;  %3511 = vmatpush1.bf16.msra.mxu0 %v12355_v29  ;;  %v12351_v28 = vld [vmem:[#allocation5 + $0x2d0] ss:$24 sps:$4 sm:$0xff]   ;;  %v12352_v29 = vld [vmem:[#allocation5 + $0x304] ss:$24 sps:$4 sm:$0xff]  }
 0x143   :  { %3512 = vmatprep.subr.bf16.mxu0 %v12366_v30  ;;  %4570 = vmatpush1.bf16.msra.mxu1 %v12436_v9  ;;  %v12468_v30 = vld [vmem:[#allocation11 + $0x5ac] ss:$24 sps:$4 sm:$0xff]   ;;  %v12480_v9 = vld [vmem:[#allocation5 + $0x38] ss:$24 sps:$4 sm:$0xff]  }
 0x144   :  { %4571 = vmatprep.subr.bf16.mxu1 %v12441_v13  ;;  %v12502_v13 = vld [vmem:[#allocation11 + $0x690] ss:$24 sps:$4 sm:$0xff]  }
 0x146   :  { %3513 = vmatpush1.bf16.msra.mxu0 %v12364_v31  ;;  %v12466_v31 = vld [vmem:[#allocation11 + $0x5a8] ss:$24 sps:$4 sm:$0xff]  }
 0x147   :  { %3514 = vmatprep.subr.bf16.mxu0 %v12375_v32  ;;  %4572 = vmatpush1.bf16.msra.mxu1 %v12439_v12  ;;  %v12471_v32 = vld [vmem:[#allocation11 + $0x5dc] ss:$24 sps:$4 sm:$0xff]  }
 0x148   :  { %3224 = vmatmul.mubr.bf16.gmra.mrb[20].mxu0 %v12306_v33  ;;  %4573 = vmatprep.subr.bf16.mxu1 %v12447_v16  ;;  %v12504_v12 = vld [vmem:[#allocation11 + $0x694] ss:$24 sps:$4 sm:$0xff]  }
 0x149   :  { %4283 = vmatmul.mubr.bf16.gmra.mrb[20].mxu1 %v12306_v33  ;;  %3233 = vmatprep.mubr.bf16.mxu0 %v12307_v34  ;;  %v12469_v33 = vld [vmem:[#allocation11 + $0x5d8] ss:$24 sps:$4 sm:$0xff]   ;;  %v12487_v16 = vld [vmem:[#allocation5 + $0x9c] ss:$24 sps:$4 sm:$0xff]  }
 0x14a   :  { %4292 = vmatprep.mubr.bf16.mxu1 %v12307_v34  ;;  %3515 = vmatpush1.bf16.msra.mxu0 %v12373_v35  ;;  %v12354_v34 = vld [vmem:[#allocation5 + $0x300] ss:$24 sps:$4 sm:$0xff]   ;;  %v12358_v35 = vld [vmem:[#allocation5 + $0x334] ss:$24 sps:$4 sm:$0xff]  }
 0x14b   :  { %3516 = vmatprep.subr.bf16.mxu0 %v12384_v39  ;;  %4574 = vmatpush1.bf16.msra.mxu1 %v12445_v17  ;;  %v12363_v39 = vld [vmem:[#allocation5 + $0x360] ss:$24 sps:$4 sm:$0xff]  }
 0x14c   :  { %4575 = vmatprep.subr.bf16.mxu1 %v12450_v18  ;;  %v12511_v17 = vld [vmem:[#allocation11 + $0x6c0] ss:$24 sps:$4 sm:$0xff]   ;;  %v12522_v18 = vld [vmem:[#allocation11 + $0x6f4] ss:$24 sps:$4 sm:$0xff]  }
 0x14e   :  { %3517 = vmatpush1.bf16.msra.mxu0 %v12382_v38  ;;  %v12361_v38 = vld [vmem:[#allocation5 + $0x364] ss:$24 sps:$4 sm:$0xff]  }
 0x14f   :  { %3518 = vmatprep.subr.bf16.mxu0 %v12393_v47  ;;  %4576 = vmatpush1.bf16.msra.mxu1 %v12448_v19  ;;  %v12381_v47 = vld [vmem:[#allocation5 + $0x420] ss:$24 sps:$4 sm:$0xff]  }
 0x150   :  { %3234 = vmatmul.mubr.bf16.gmra.mrb[24].mxu0 %v12309_v36  ;;  %4577 = vmatprep.subr.bf16.mxu1 %v12459_v22  ;;  %v12520_v19 = vld [vmem:[#allocation11 + $0x6f0] ss:$24 sps:$4 sm:$0xff]   ;;  %v12490_v22 = vld [vmem:[#allocation5 + $0xcc] ss:$24 sps:$4 sm:$0xff]  }
 0x151   :  { %4293 = vmatmul.mubr.bf16.gmra.mrb[24].mxu1 %v12309_v36  ;;  %3243 = vmatprep.mubr.bf16.mxu0 %v12313_v37  ;;  %v12477_v36 = vld [vmem:[#allocation11 + $0x604] ss:$24 sps:$4 sm:$0xff]  }
 0x152   :  { %4302 = vmatprep.mubr.bf16.mxu1 %v12313_v37  ;;  %3519 = vmatpush1.bf16.msra.mxu0 %v12391_v46  ;;  %v12360_v37 = vld [vmem:[#allocation5 + $0x330] ss:$24 sps:$4 sm:$0xff]   ;;  %v12379_v46 = vld [vmem:[#allocation5 + $0x424] ss:$24 sps:$4 sm:$0xff]  }
 0x153   :  { %3520 = vmatprep.subr.bf16.mxu0 %v12414_v61  ;;  %4578 = vmatpush1.bf16.msra.mxu1 %v12457_v23  ;;  %v12444_v61 = vld [vmem:[#allocation5 + $0x570] ss:$24 sps:$4 sm:$0xff]  }
 0x154   :  { %4579 = vmatprep.subr.bf16.mxu1 %v12462_v27  ;;  %v12529_v23 = vld [vmem:[#allocation11 + $0x720] ss:$24 sps:$4 sm:$0xff]  }
 0x155   :  { %v12492_v27 = vld [vmem:[#allocation5 + $0xc8] ss:$24 sps:$4 sm:$0xff]  }
 0x156   :  { %3521 = vmatpush1.bf16.msra.mxu0 %v12412_v60  ;;  %v12442_v60 = vld [vmem:[#allocation5 + $0x574] ss:$24 sps:$4 sm:$0xff]  }
 0x157   :  { %3522 = vmatprep.subr.bf16.mxu0 %v12435_v11  ;;  %4580 = vmatpush1.bf16.msra.mxu1 %v12460_v26  ;;  %v12493_v11 = vld [vmem:[#allocation11 + $0x660] ss:$24 sps:$4 sm:$0xff]   ;;  %v12549_v26 = vld [vmem:[#allocation11 + $0x784] ss:$24 sps:$4 sm:$0xff]  }
 0x158   :  { %3244 = vmatmul.mubr.bf16.gmra.mrb[28].mxu0 %v12315_v40  ;;  %4581 = vmatprep.subr.bf16.mxu1 %v12468_v30  ;;  %v12558_v30 = vld [vmem:[#allocation11 + $0x7b4] ss:$24 sps:$4 sm:$0xff]  }
 0x159   :  { %4303 = vmatmul.mubr.bf16.gmra.mrb[28].mxu1 %v12315_v40  ;;  %3253 = vmatprep.mubr.bf16.mxu0 %v12316_v41  ;;  %v12367_v40 = vld [vmem:[#allocation5 + $0x394] ss:$24 sps:$4 sm:$0xff]  }
 0x15a   :  { %4312 = vmatprep.mubr.bf16.mxu1 %v12316_v41  ;;  %3523 = vmatpush1.bf16.msra.mxu0 %v12433_v10  ;;  %v12369_v41 = vld [vmem:[#allocation5 + $0x390] ss:$24 sps:$4 sm:$0xff]   ;;  %v12481_v10 = vld [vmem:[#allocation5 + $0x6c] ss:$24 sps:$4 sm:$0xff]  }
 0x15b   :  { %3524 = vmatprep.subr.bf16.mxu0 %v12456_v25  ;;  %4582 = vmatpush1.bf16.msra.mxu1 %v12466_v31  ;;  %v12538_v25 = vld [vmem:[#allocation11 + $0x750] ss:$24 sps:$4 sm:$0xff]  }
 0x15c   :  { %4583 = vmatprep.subr.bf16.mxu1 %v12471_v32  ;;  %v12556_v31 = vld [vmem:[#allocation11 + $0x7b0] ss:$24 sps:$4 sm:$0xff]   ;;  %v12567_v32 = vld [vmem:[#allocation11 + $0x7e4] ss:$24 sps:$4 sm:$0xff]  }
 0x15e   :  { %3525 = vmatpush1.bf16.msra.mxu0 %v12454_v24  ;;  %v12540_v24 = vld [vmem:[#allocation11 + $0x754] ss:$24 sps:$4 sm:$0xff]  }
 0x15f   :  { %4584 = vmatpush1.bf16.msra.mxu1 %v12469_v33  ;;  %3847 = vmatprep.subr.bf16.mxu0 %v12477_v36  ;;  %v12498_v33 = vld [vmem:[#allocation5 + $0xf8] ss:$24 sps:$4 sm:$0xff]   ;;  %v12501_v36 = vld [vmem:[#allocation5 + $0x128] ss:$24 sps:$4 sm:$0xff]  }
 0x160   :  { %3254 = vmatmul.mubr.bf16.gmra.mrb[32].mxu0 %v12318_v42 }
 0x161   :  { %4313 = vmatmul.mubr.bf16.gmra.mrb[32].mxu1 %v12318_v42  ;;  %3263 = vmatprep.mubr.bf16.mxu0 %v12322_v43  ;;  %v12370_v42 = vld [vmem:[#allocation5 + $0x3c4] ss:$24 sps:$4 sm:$0xff]  }
 0x162   :  { %4322 = vmatprep.mubr.bf16.mxu1 %v12322_v43  ;;  %v12372_v43 = vld [vmem:[#allocation5 + $0x3c0] ss:$24 sps:$4 sm:$0xff]  }
 0x168   :  { %3264 = vmatmul.mubr.bf16.gmra.mrb[36].mxu0 %v12324_v50 }
 0x169   :  { %4323 = vmatmul.mubr.bf16.gmra.mrb[36].mxu1 %v12324_v50  ;;  %3273 = vmatprep.mubr.bf16.mxu0 %v12325_v51  ;;  %v12388_v50 = vld [vmem:[#allocation5 + $0x484] ss:$24 sps:$4 sm:$0xff]  }
 0x16a   :  { %4332 = vmatprep.mubr.bf16.mxu1 %v12325_v51  ;;  %v12390_v51 = vld [vmem:[#allocation5 + $0x480] ss:$24 sps:$4 sm:$0xff]  }
 0x170   :  { %3274 = vmatmul.mubr.bf16.gmra.mrb[40].mxu0 %v12327_v56 }
 0x171   :  { %4333 = vmatmul.mubr.bf16.gmra.mrb[40].mxu1 %v12327_v56  ;;  %3283 = vmatprep.mubr.bf16.mxu0 %v12331_v57  ;;  %v12421_v56 = vld [vmem:[#allocation5 + $0x514] ss:$24 sps:$4 sm:$0xff]  }
 0x172   :  { %4342 = vmatprep.mubr.bf16.mxu1 %v12331_v57  ;;  %v12423_v57 = vld [vmem:[#allocation5 + $0x510] ss:$24 sps:$4 sm:$0xff]  }
 0x178   :  { %3284 = vmatmul.mubr.bf16.gmra.mrb[44].mxu0 %v12333_v0 }
 0x179   :  { %4343 = vmatmul.mubr.bf16.gmra.mrb[44].mxu1 %v12333_v0  ;;  %3293 = vmatprep.mubr.bf16.mxu0 %v12334_v1  ;;  %v12463_v0 = vld [vmem:[#allocation5 + $0x5d4] ss:$24 sps:$4 sm:$0xff]  }
 0x17a   :  { %4352 = vmatprep.mubr.bf16.mxu1 %v12334_v1  ;;  %v12465_v1 = vld [vmem:[#allocation5 + $0x5d0] ss:$24 sps:$4 sm:$0xff]  }
 0x180   :  { %3294 = vmatmul.mubr.bf16.gmra.mrb[48].mxu0 %v12336_v6 }
 0x181   :  { %4353 = vmatmul.mubr.bf16.gmra.mrb[48].mxu1 %v12336_v6  ;;  %3303 = vmatprep.mubr.bf16.mxu0 %v12340_v7  ;;  %v12486_v6 = vld [vmem:[#allocation11 + $0x634] ss:$24 sps:$4 sm:$0xff]  }
 0x182   :  { %4362 = vmatprep.mubr.bf16.mxu1 %v12340_v7  ;;  %v12484_v7 = vld [vmem:[#allocation11 + $0x630] ss:$24 sps:$4 sm:$0xff]  }
 0x188   :  { %3304 = vmatmul.mubr.bf16.gmra.mrb[52].mxu0 %v12342_v14 }
 0x189   :  { %4363 = vmatmul.mubr.bf16.gmra.mrb[52].mxu1 %v12342_v14  ;;  %3313 = vmatprep.mubr.bf16.mxu0 %v12343_v15  ;;  %v12513_v14 = vld [vmem:[#allocation11 + $0x6c4] ss:$24 sps:$4 sm:$0xff]  }
 0x18a   :  { %4372 = vmatprep.mubr.bf16.mxu1 %v12343_v15  ;;  %v12483_v15 = vld [vmem:[#allocation5 + $0x68] ss:$24 sps:$4 sm:$0xff]  }
 0x190   :  { %3314 = vmatmul.mubr.bf16.gmra.mrb[56].mxu0 %v12345_v20 }
 0x191   :  { %4373 = vmatmul.mubr.bf16.gmra.mrb[56].mxu1 %v12345_v20  ;;  %3323 = vmatprep.mubr.bf16.mxu0 %v12349_v21  ;;  %v12531_v20 = vld [vmem:[#allocation11 + $0x724] ss:$24 sps:$4 sm:$0xff]  }
 0x192   :  { %4382 = vmatprep.mubr.bf16.mxu1 %v12349_v21  ;;  %v12489_v21 = vld [vmem:[#allocation5 + $0x98] ss:$24 sps:$4 sm:$0xff]  }
 0x198   :  { %3324 = vmatmul.mubr.bf16.gmra.mrb[60].mxu0 %v12351_v28 }
 0x199   :  { %4383 = vmatmul.mubr.bf16.gmra.mrb[60].mxu1 %v12351_v28  ;;  %3333 = vmatprep.mubr.bf16.mxu0 %v12352_v29  ;;  %v12496_v28 = vld [vmem:[#allocation5 + $0xfc] ss:$24 sps:$4 sm:$0xff]  }
 0x19a   :  { %4392 = vmatprep.mubr.bf16.mxu1 %v12352_v29  ;;  %v12547_v29 = vld [vmem:[#allocation11 + $0x780] ss:$24 sps:$4 sm:$0xff]  }
 0x1a0   :  { %3334 = vmatmul.mubr.bf16.gmra.mrb[64].mxu0 %v12354_v34 }
 0x1a1   :  { %4393 = vmatmul.mubr.bf16.gmra.mrb[64].mxu1 %v12354_v34  ;;  %3343 = vmatprep.mubr.bf16.mxu0 %v12358_v35  ;;  %v12499_v34 = vld [vmem:[#allocation5 + $0x12c] ss:$24 sps:$4 sm:$0xff]  }
 0x1a2   :  { %4402 = vmatprep.mubr.bf16.mxu1 %v12358_v35  ;;  %v12565_v35 = vld [vmem:[#allocation11 + $0x7e0] ss:$24 sps:$4 sm:$0xff]  }
 0x1a8   :  { %3344 = vmatmul.mubr.bf16.gmra.mrb[68].mxu0 %v12360_v37 }
 0x1a9   :  { %4403 = vmatmul.mubr.bf16.gmra.mrb[68].mxu1 %v12360_v37  ;;  %3353 = vmatprep.mubr.bf16.mxu0 %v12361_v38  ;;  %v12505_v37 = vld [vmem:[#allocation5 + $0x15c] ss:$24 sps:$4 sm:$0xff]  }
 0x1aa   :  { %4412 = vmatprep.mubr.bf16.mxu1 %v12361_v38  ;;  %v12574_v38 = vld [vmem:[#allocation11 + $0x810] ss:$24 sps:$4 sm:$0xff]  }
 0x1b0   :  { %3354 = vmatmul.mubr.bf16.gmra.mrb[72].mxu0 %v12363_v39 }
 0x1b1   :  { %4413 = vmatmul.mubr.bf16.gmra.mrb[72].mxu1 %v12363_v39  ;;  %3363 = vmatprep.mubr.bf16.mxu0 %v12367_v40  ;;  %v12576_v39 = vld [vmem:[#allocation11 + $0x814] ss:$24 sps:$4 sm:$0xff]  }
 0x1b2   :  { %4422 = vmatprep.mubr.bf16.mxu1 %v12367_v40  ;;  %v12507_v40 = vld [vmem:[#allocation5 + $0x158] ss:$24 sps:$4 sm:$0xff]  }
 0x1b8   :  { %3364 = vmatmul.mubr.bf16.gmra.mrb[76].mxu0 %v12369_v41 }
 0x1b9   :  { %4423 = vmatmul.mubr.bf16.gmra.mrb[76].mxu1 %v12369_v41  ;;  %3373 = vmatprep.mubr.bf16.mxu0 %v12370_v42  ;;  %v12508_v41 = vld [vmem:[#allocation5 + $0x18c] ss:$24 sps:$4 sm:$0xff]  }
 0x1ba   :  { %4432 = vmatprep.mubr.bf16.mxu1 %v12370_v42  ;;  %v12510_v42 = vld [vmem:[#allocation5 + $0x188] ss:$24 sps:$4 sm:$0xff]  }
 0x1c0   :  { %3374 = vmatmul.mubr.bf16.gmra.mrb[80].mxu0 %v12372_v43 }
 0x1c1   :  { %4433 = vmatmul.mubr.bf16.gmra.mrb[80].mxu1 %v12372_v43  ;;  %3383 = vmatprep.mubr.bf16.mxu0 %v12376_v44  ;;  %v12514_v43 = vld [vmem:[#allocation5 + $0x1bc] ss:$24 sps:$4 sm:$0xff]  }
 0x1c2   :  { %4442 = vmatprep.mubr.bf16.mxu1 %v12376_v44  ;;  %v12588_v44 = vld [vmem:[#allocation11 + $0x60c] ss:$24 sps:$4 sm:$0xff]  }
 0x1c3   :  { %4906 = vmatprep.subr.bf16.mxu1 %v12588_v44  ;;  %v12568_v44 = vld [vmem:[#allocation5 + $0x3fc] ss:$24 sps:$4 sm:$0xff]  }
 0x1c8   :  { %3384 = vmatmul.mubr.bf16.gmra.mrb[84].mxu0 %v12378_v45 }
 0x1c9   :  { %4443 = vmatmul.mubr.bf16.gmra.mrb[84].mxu1 %v12378_v45  ;;  %3393 = vmatprep.mubr.bf16.mxu0 %v12379_v46  ;;  %v12586_v45 = vld [vmem:[#allocation11 + $0x608] ss:$24 sps:$4 sm:$0xff]  }
 0x1ca   :  { %4452 = vmatprep.mubr.bf16.mxu1 %v12379_v46  ;;  %v12583_v46 = vld [vmem:[#allocation11 + $0x840] ss:$24 sps:$4 sm:$0xff]  }
 0x1d0   :  { %3394 = vmatmul.mubr.bf16.gmra.mrb[88].mxu0 %v12381_v47 }
 0x1d1   :  { %4453 = vmatmul.mubr.bf16.gmra.mrb[88].mxu1 %v12381_v47  ;;  %3403 = vmatprep.mubr.bf16.mxu0 %v12385_v48  ;;  %v12585_v47 = vld [vmem:[#allocation11 + $0x844] ss:$24 sps:$4 sm:$0xff]  }
 0x1d2   :  { %4462 = vmatprep.mubr.bf16.mxu1 %v12385_v48  ;;  %v12591_v48 = vld [vmem:[#allocation11 + $0x63c] ss:$24 sps:$4 sm:$0xff]  }
 0x1d8   :  { %3404 = vmatmul.mubr.bf16.gmra.mrb[92].mxu0 %v12387_v49 }
 0x1d9   :  { %4463 = vmatmul.mubr.bf16.gmra.mrb[92].mxu1 %v12387_v49  ;;  %3413 = vmatprep.mubr.bf16.mxu0 %v12388_v50  ;;  %v12589_v49 = vld [vmem:[#allocation11 + $0x638] ss:$24 sps:$4 sm:$0xff]  }
 0x1da   :  { %4472 = vmatprep.mubr.bf16.mxu1 %v12388_v50  ;;  %v12516_v50 = vld [vmem:[#allocation5 + $0x1b8] ss:$24 sps:$4 sm:$0xff]  }
 0x1e0   :  { %3414 = vmatmul.mubr.bf16.gmra.mrb[96].mxu0 %v12390_v51 }
 0x1e1   :  { %4473 = vmatmul.mubr.bf16.gmra.mrb[96].mxu1 %v12390_v51  ;;  %3423 = vmatprep.mubr.bf16.mxu0 %v12400_v52  ;;  %v12517_v51 = vld [vmem:[#allocation5 + $0x1ec] ss:$24 sps:$4 sm:$0xff]  }
 0x1e2   :  { %4482 = vmatprep.mubr.bf16.mxu1 %v12400_v52  ;;  %v12597_v52 = vld [vmem:[#allocation11 + $0x66c] ss:$24 sps:$4 sm:$0xff]  }
 0x1e8   :  { %3424 = vmatmul.mubr.bf16.gmra.mrb[100].mxu0 %v12402_v53 }
 0x1e9   :  { %4483 = vmatmul.mubr.bf16.gmra.mrb[100].mxu1 %v12402_v53  ;;  %3433 = vmatprep.mubr.bf16.mxu0 %v12409_v54  ;;  %v12595_v53 = vld [vmem:[#allocation11 + $0x668] ss:$24 sps:$4 sm:$0xff]  }
 0x1ea   :  { %4492 = vmatprep.mubr.bf16.mxu1 %v12409_v54  ;;  %v12600_v54 = vld [vmem:[#allocation11 + $0x69c] ss:$24 sps:$4 sm:$0xff]  }
 0x1f0   :  { %3434 = vmatmul.mubr.bf16.gmra.mrb[104].mxu0 %v12411_v55 }
 0x1f1   :  { %4493 = vmatmul.mubr.bf16.gmra.mrb[104].mxu1 %v12411_v55  ;;  %3443 = vmatprep.mubr.bf16.mxu0 %v12421_v56  ;;  %v12598_v55 = vld [vmem:[#allocation11 + $0x698] ss:$24 sps:$4 sm:$0xff]  }
 0x1f2   :  { %4502 = vmatprep.mubr.bf16.mxu1 %v12421_v56  ;;  %v12519_v56 = vld [vmem:[#allocation5 + $0x1e8] ss:$24 sps:$4 sm:$0xff]  }
 0x1f8   :  { %3444 = vmatmul.mubr.bf16.gmra.mrb[108].mxu0 %v12423_v57 }
 0x1f9   :  { %4503 = vmatmul.mubr.bf16.gmra.mrb[108].mxu1 %v12423_v57  ;;  %3453 = vmatprep.mubr.bf16.mxu0 %v12430_v58  ;;  %v12523_v57 = vld [vmem:[#allocation5 + $0x21c] ss:$24 sps:$4 sm:$0xff]  }
 0x1fa   :  { %4512 = vmatprep.mubr.bf16.mxu1 %v12430_v58  ;;  %v12609_v58 = vld [vmem:[#allocation11 + $0x6cc] ss:$24 sps:$4 sm:$0xff]  }
 0x200   :  { %3454 = vmatmul.mubr.bf16.gmra.mrb[112].mxu0 %v12432_v59 }
 0x201   :  { %4513 = vmatmul.mubr.bf16.gmra.mrb[112].mxu1 %v12432_v59  ;;  %3463 = vmatprep.mubr.bf16.mxu0 %v12442_v60  ;;  %v12607_v59 = vld [vmem:[#allocation11 + $0x6c8] ss:$24 sps:$4 sm:$0xff]  }
 0x202   :  { %4522 = vmatprep.mubr.bf16.mxu1 %v12442_v60  ;;  %v12604_v60 = vld [vmem:[#allocation11 + $0x870] ss:$24 sps:$4 sm:$0xff]  }
 0x208   :  { %3464 = vmatmul.mubr.bf16.gmra.mrb[116].mxu0 %v12444_v61 }
 0x209   :  { %4523 = vmatmul.mubr.bf16.gmra.mrb[116].mxu1 %v12444_v61  ;;  %3473 = vmatprep.mubr.bf16.mxu0 %v12451_v62  ;;  %v12606_v61 = vld [vmem:[#allocation11 + $0x874] ss:$24 sps:$4 sm:$0xff]  }
 0x20a   :  { %4532 = vmatprep.mubr.bf16.mxu1 %v12451_v62  ;;  %v12612_v62 = vld [vmem:[#allocation11 + $0x6fc] ss:$24 sps:$4 sm:$0xff]  }
 0x210   :  { %3474 = vmatmul.mubr.bf16.gmra.mrb[120].mxu0 %v12453_v63 }
 0x211   :  { %4533 = vmatmul.mubr.bf16.gmra.mrb[120].mxu1 %v12453_v63  ;;  %3483 = vmatprep.mubr.bf16.mxu0 %v12463_v0  ;;  %v12610_v63 = vld [vmem:[#allocation11 + $0x6f8] ss:$24 sps:$4 sm:$0xff]  }
 0x212   :  { %4542 = vmatprep.mubr.bf16.mxu1 %v12463_v0  ;;  %v12525_v0 = vld [vmem:[#allocation5 + $0x218] ss:$24 sps:$4 sm:$0xff]  }
 0x218   :  { %3484 = vmatmul.mubr.bf16.gmra.mrb[124].mxu0 %v12465_v1 }
 0x219   :  { %4543 = vmatmul.mubr.bf16.gmra.mrb[124].mxu1 %v12465_v1  ;;  %3526 = vmatprep.mubr.bf16.mxu0 %v12474_v2  ;;  %v12526_v1 = vld [vmem:[#allocation5 + $0x24c] ss:$24 sps:$4 sm:$0xff]  }
 0x21a   :  { %4585 = vmatprep.mubr.bf16.mxu1 %v12474_v2  ;;  %v12618_v2 = vld [vmem:[#allocation11 + $0x72c] ss:$24 sps:$4 sm:$0xff]  }
 0x220   :  { %3527 = vmatmul.mubr.bf16.vlgmr.msra.gmra.mrb[0].mxu0 %v12472_v3 }
 0x221   :  { %4586 = vmatmul.mubr.bf16.vlgmr.msra.gmra.mrb[0].mxu1 %v12472_v3  ;;  %3848 = vmatpush1.bf16.msra.mxu0 %v12475_v4  ;;  %v12616_v3 = vld [vmem:[#allocation11 + $0x728] ss:$24 sps:$4 sm:$0xff]   ;;  %v12621_v4 = vld [vmem:[#allocation11 + $0x75c] ss:$24 sps:$4 sm:$0xff]  }
 0x222   :  { %3536 = vmatprep.mubr.bf16.mxu0 %v12478_v5  ;;  %4595 = vmatprep.mubr.bf16.mxu1 %v12478_v5  ;;  %v12619_v5 = vld [vmem:[#allocation11 + $0x758] ss:$24 sps:$4 sm:$0xff]  }
 0x223   :  { %3849 = vmatprep.subr.bf16.mxu0 %v12486_v6  ;;  %4907 = vmatpush1.bf16.msra.mxu1 %v12586_v45  ;;  %v12528_v6 = vld [vmem:[#allocation5 + $0x248] ss:$24 sps:$4 sm:$0xff]   ;;  %v12570_v45 = vld [vmem:[#allocation5 + $0x3f8] ss:$24 sps:$4 sm:$0xff]  }
 0x224   :  { %4908 = vmatprep.subr.bf16.mxu1 %v12591_v48  ;;  %v12577_v48 = vld [vmem:[#allocation5 + $0x45c] ss:$24 sps:$4 sm:$0xff]  }
 0x225   :  { %3850 = vmatpush1.bf16.msra.mxu0 %v12484_v7  ;;  %v12532_v7 = vld [vmem:[#allocation5 + $0x27c] ss:$24 sps:$4 sm:$0xff]  }
 0x226   :  { %3851 = vmatprep.subr.bf16.mxu0 %v12495_v8  ;;  %v12630_v8 = vld [vmem:[#allocation11 + $0x78c] ss:$24 sps:$4 sm:$0xff]  }
 0x227   :  { %4909 = vmatpush1.bf16.msra.mxu1 %v12589_v49  ;;  %v12579_v49 = vld [vmem:[#allocation5 + $0x458] ss:$24 sps:$4 sm:$0xff]  }
 0x228   :  { %3537 = vmatmul.mubr.bf16.gmra.mrb[4].mxu0 %v12480_v9  ;;  %4910 = vmatprep.subr.bf16.mxu1 %v12597_v52  ;;  %v12592_v52 = vld [vmem:[#allocation5 + $0x4bc] ss:$24 sps:$4 sm:$0xff]  }
 0x229   :  { %4596 = vmatmul.mubr.bf16.gmra.mrb[4].mxu1 %v12480_v9  ;;  %3546 = vmatprep.mubr.bf16.mxu0 %v12481_v10  ;;  %v12628_v9 = vld [vmem:[#allocation11 + $0x788] ss:$24 sps:$4 sm:$0xff]  }
 0x22a   :  { %4605 = vmatprep.mubr.bf16.mxu1 %v12481_v10  ;;  %3852 = vmatpush1.bf16.msra.mxu0 %v12493_v11  ;;  %v12625_v10 = vld [vmem:[#allocation11 + $0x8a0] ss:$24 sps:$4 sm:$0xff]   ;;  %v12627_v11 = vld [vmem:[#allocation11 + $0x8a4] ss:$24 sps:$4 sm:$0xff]  }
 0x22b   :  { %3853 = vmatprep.subr.bf16.mxu0 %v12504_v12  ;;  %4911 = vmatpush1.bf16.msra.mxu1 %v12595_v53  ;;  %v12633_v12 = vld [vmem:[#allocation11 + $0x7bc] ss:$24 sps:$4 sm:$0xff]   ;;  %v12594_v53 = vld [vmem:[#allocation5 + $0x4b8] ss:$24 sps:$4 sm:$0xff]  }
 0x22c   :  { %4912 = vmatprep.subr.bf16.mxu1 %v12600_v54  ;;  %v12601_v54 = vld [vmem:[#allocation5 + $0x4ec] ss:$24 sps:$4 sm:$0xff]  }
 0x22e   :  { %3854 = vmatpush1.bf16.msra.mxu0 %v12502_v13  ;;  %v12631_v13 = vld [vmem:[#allocation11 + $0x7b8] ss:$24 sps:$4 sm:$0xff]  }
 0x22f   :  { %3855 = vmatprep.subr.bf16.mxu0 %v12513_v14  ;;  %4913 = vmatpush1.bf16.msra.mxu1 %v12598_v55  ;;  %v12534_v14 = vld [vmem:[#allocation5 + $0x278] ss:$24 sps:$4 sm:$0xff]   ;;  %v12603_v55 = vld [vmem:[#allocation5 + $0x4e8] ss:$24 sps:$4 sm:$0xff]  }
 0x230   :  { %3547 = vmatmul.mubr.bf16.gmra.mrb[8].mxu0 %v12483_v15  ;;  %4914 = vmatprep.subr.bf16.mxu1 %v12609_v58  ;;  %v12622_v58 = vld [vmem:[#allocation5 + $0x54c] ss:$24 sps:$4 sm:$0xff]  }
 0x231   :  { %4606 = vmatmul.mubr.bf16.gmra.mrb[8].mxu1 %v12483_v15  ;;  %3556 = vmatprep.mubr.bf16.mxu0 %v12487_v16  ;;  %v12535_v15 = vld [vmem:[#allocation5 + $0x2ac] ss:$24 sps:$4 sm:$0xff]  }
 0x232   :  { %4615 = vmatprep.mubr.bf16.mxu1 %v12487_v16  ;;  %3856 = vmatpush1.bf16.msra.mxu0 %v12511_v17  ;;  %v12639_v16 = vld [vmem:[#allocation11 + $0x7ec] ss:$24 sps:$4 sm:$0xff]   ;;  %v12637_v17 = vld [vmem:[#allocation11 + $0x7e8] ss:$24 sps:$4 sm:$0xff]  }
 0x233   :  { %3857 = vmatprep.subr.bf16.mxu0 %v12522_v18  ;;  %4915 = vmatpush1.bf16.msra.mxu1 %v12607_v59  ;;  %v12642_v18 = vld [vmem:[#allocation11 + $0x81c] ss:$24 sps:$4 sm:$0xff]   ;;  %v12624_v59 = vld [vmem:[#allocation5 + $0x548] ss:$24 sps:$4 sm:$0xff]  }
 0x234   :  { %4916 = vmatprep.subr.bf16.mxu1 %v12612_v62  ;;  %v12643_v62 = vld [vmem:[#allocation5 + $0x5ac] ss:$24 sps:$4 sm:$0xff]  }
 0x236   :  { %3858 = vmatpush1.bf16.msra.mxu0 %v12520_v19  ;;  %v12640_v19 = vld [vmem:[#allocation11 + $0x818] ss:$24 sps:$4 sm:$0xff]  }
 0x237   :  { %3859 = vmatprep.subr.bf16.mxu0 %v12531_v20  ;;  %4917 = vmatpush1.bf16.msra.mxu1 %v12610_v63  ;;  %v12537_v20 = vld [vmem:[#allocation5 + $0x2a8] ss:$24 sps:$4 sm:$0xff]  }
 0x238   :  { %3557 = vmatmul.mubr.bf16.gmra.mrb[12].mxu0 %v12489_v21  ;;  %4918 = vmatprep.subr.bf16.mxu1 %v12618_v2  ;;  %v12645_v63 = vld [vmem:[#allocation5 + $0x5a8] ss:$24 sps:$4 sm:$0xff]   ;;  %v12666_v2 = vld [vmem:[#allocation5 + $0x14] ss:$24 sps:$4 sm:$0xff]  }
 0x239   :  { %4616 = vmatmul.mubr.bf16.gmra.mrb[12].mxu1 %v12489_v21  ;;  %3566 = vmatprep.mubr.bf16.mxu0 %v12490_v22  ;;  %v12541_v21 = vld [vmem:[#allocation5 + $0x2dc] ss:$24 sps:$4 sm:$0xff]  }
 0x23a   :  { %4625 = vmatprep.mubr.bf16.mxu1 %v12490_v22  ;;  %3860 = vmatpush1.bf16.msra.mxu0 %v12529_v23  ;;  %v12651_v22 = vld [vmem:[#allocation11 + $0x84c] ss:$24 sps:$4 sm:$0xff]   ;;  %v12649_v23 = vld [vmem:[#allocation11 + $0x848] ss:$24 sps:$4 sm:$0xff]  }
 0x23b   :  { %3861 = vmatprep.subr.bf16.mxu0 %v12540_v24  ;;  %4919 = vmatpush1.bf16.msra.mxu1 %v12616_v3  ;;  %v12646_v24 = vld [vmem:[#allocation11 + $0x8d0] ss:$24 sps:$4 sm:$0xff]  }
 0x23c   :  { %4920 = vmatprep.subr.bf16.mxu1 %v12621_v4  ;;  %v12664_v3 = vld [vmem:[#allocation5 + $0x10] ss:$24 sps:$4 sm:$0xff]  }
 0x23d   :  { %v12667_v4 = vld [vmem:[#allocation11 + $0x10] ss:$24 sps:$4 sm:$0xff]  }
 0x23e   :  { %3862 = vmatpush1.bf16.msra.mxu0 %v12538_v25  ;;  %v12648_v25 = vld [vmem:[#allocation11 + $0x8d4] ss:$24 sps:$4 sm:$0xff]  }
 0x23f   :  { %3863 = vmatprep.subr.bf16.mxu0 %v12549_v26  ;;  %4921 = vmatpush1.bf16.msra.mxu1 %v12619_v5  ;;  %v12654_v26 = vld [vmem:[#allocation11 + $0x87c] ss:$24 sps:$4 sm:$0xff]  }
 0x240   :  { %3567 = vmatmul.mubr.bf16.gmra.mrb[16].mxu0 %v12492_v27  ;;  %4922 = vmatprep.subr.bf16.mxu1 %v12630_v8  ;;  %v12670_v5 = vld [vmem:[#allocation5 + $0x44] ss:$24 sps:$4 sm:$0xff]  }
 0x241   :  { %4626 = vmatmul.mubr.bf16.gmra.mrb[16].mxu1 %v12492_v27  ;;  %3576 = vmatprep.mubr.bf16.mxu0 %v12496_v28  ;;  %v12652_v27 = vld [vmem:[#allocation11 + $0x878] ss:$24 sps:$4 sm:$0xff]   ;;  %v12687_v8 = vld [vmem:[#allocation11 + $0x74] ss:$24 sps:$4 sm:$0xff]  }
 0x242   :  { %4635 = vmatprep.mubr.bf16.mxu1 %v12496_v28  ;;  %3864 = vmatpush1.bf16.msra.mxu0 %v12547_v29  ;;  %v12543_v28 = vld [vmem:[#allocation5 + $0x2d8] ss:$24 sps:$4 sm:$0xff]   ;;  %v12544_v29 = vld [vmem:[#allocation5 + $0x30c] ss:$24 sps:$4 sm:$0xff]  }
 0x243   :  { %3865 = vmatprep.subr.bf16.mxu0 %v12558_v30  ;;  %4923 = vmatpush1.bf16.msra.mxu1 %v12628_v9  ;;  %v12660_v30 = vld [vmem:[#allocation11 + $0x8ac] ss:$24 sps:$4 sm:$0xff]   ;;  %v12672_v9 = vld [vmem:[#allocation5 + $0x40] ss:$24 sps:$4 sm:$0xff]  }
 0x244   :  { %4924 = vmatprep.subr.bf16.mxu1 %v12633_v12  ;;  %v12696_v12 = vld [vmem:[#allocation11 + $0xa4] ss:$24 sps:$4 sm:$0xff]  }
 0x246   :  { %3866 = vmatpush1.bf16.msra.mxu0 %v12556_v31  ;;  %v12658_v31 = vld [vmem:[#allocation11 + $0x8a8] ss:$24 sps:$4 sm:$0xff]  }
 0x247   :  { %3867 = vmatprep.subr.bf16.mxu0 %v12567_v32  ;;  %4925 = vmatpush1.bf16.msra.mxu1 %v12631_v13  ;;  %v12663_v32 = vld [vmem:[#allocation11 + $0x8dc] ss:$24 sps:$4 sm:$0xff]   ;;  %v12694_v13 = vld [vmem:[#allocation11 + $0xa0] ss:$24 sps:$4 sm:$0xff]  }
 0x248   :  { %3577 = vmatmul.mubr.bf16.gmra.mrb[20].mxu0 %v12498_v33  ;;  %4926 = vmatprep.subr.bf16.mxu1 %v12639_v16  ;;  %v12679_v16 = vld [vmem:[#allocation5 + $0xa4] ss:$24 sps:$4 sm:$0xff]  }
 0x249   :  { %4636 = vmatmul.mubr.bf16.gmra.mrb[20].mxu1 %v12498_v33  ;;  %3586 = vmatprep.mubr.bf16.mxu0 %v12499_v34  ;;  %v12661_v33 = vld [vmem:[#allocation11 + $0x8d8] ss:$24 sps:$4 sm:$0xff]  }
 0x24a   :  { %4645 = vmatprep.mubr.bf16.mxu1 %v12499_v34  ;;  %3868 = vmatpush1.bf16.msra.mxu0 %v12565_v35  ;;  %v12546_v34 = vld [vmem:[#allocation5 + $0x308] ss:$24 sps:$4 sm:$0xff]   ;;  %v12550_v35 = vld [vmem:[#allocation5 + $0x33c] ss:$24 sps:$4 sm:$0xff]  }
 0x24b   :  { %3869 = vmatprep.subr.bf16.mxu0 %v12576_v39  ;;  %4927 = vmatpush1.bf16.msra.mxu1 %v12637_v17  ;;  %v12555_v39 = vld [vmem:[#allocation5 + $0x368] ss:$24 sps:$4 sm:$0xff]   ;;  %v12703_v17 = vld [vmem:[#allocation11 + $0xd0] ss:$24 sps:$4 sm:$0xff]  }
 0x24c   :  { %4928 = vmatprep.subr.bf16.mxu1 %v12642_v18  ;;  %v12714_v18 = vld [vmem:[#allocation11 + $0x104] ss:$24 sps:$4 sm:$0xff]  }
 0x24e   :  { %3870 = vmatpush1.bf16.msra.mxu0 %v12574_v38  ;;  %v12553_v38 = vld [vmem:[#allocation5 + $0x36c] ss:$24 sps:$4 sm:$0xff]  }
 0x24f   :  { %3871 = vmatprep.subr.bf16.mxu0 %v12585_v47  ;;  %4929 = vmatpush1.bf16.msra.mxu1 %v12640_v19  ;;  %v12573_v47 = vld [vmem:[#allocation5 + $0x428] ss:$24 sps:$4 sm:$0xff]  }
 0x250   :  { %3587 = vmatmul.mubr.bf16.gmra.mrb[24].mxu0 %v12501_v36  ;;  %4930 = vmatprep.subr.bf16.mxu1 %v12651_v22  ;;  %v12712_v19 = vld [vmem:[#allocation11 + $0x100] ss:$24 sps:$4 sm:$0xff]   ;;  %v12682_v22 = vld [vmem:[#allocation5 + $0xd4] ss:$24 sps:$4 sm:$0xff]  }
 0x251   :  { %4646 = vmatmul.mubr.bf16.gmra.mrb[24].mxu1 %v12501_v36  ;;  %3596 = vmatprep.mubr.bf16.mxu0 %v12505_v37  ;;  %v12669_v36 = vld [vmem:[#allocation11 + $0x14] ss:$24 sps:$4 sm:$0xff]  }
 0x252   :  { %4655 = vmatprep.mubr.bf16.mxu1 %v12505_v37  ;;  %3872 = vmatpush1.bf16.msra.mxu0 %v12583_v46  ;;  %v12552_v37 = vld [vmem:[#allocation5 + $0x338] ss:$24 sps:$4 sm:$0xff]   ;;  %v12571_v46 = vld [vmem:[#allocation5 + $0x42c] ss:$24 sps:$4 sm:$0xff]  }
 0x253   :  { %3873 = vmatprep.subr.bf16.mxu0 %v12606_v61  ;;  %4931 = vmatpush1.bf16.msra.mxu1 %v12649_v23  ;;  %v12636_v61 = vld [vmem:[#allocation5 + $0x578] ss:$24 sps:$4 sm:$0xff]  }
 0x254   :  { %4932 = vmatprep.subr.bf16.mxu1 %v12654_v26  ;;  %v12721_v23 = vld [vmem:[#allocation11 + $0x130] ss:$24 sps:$4 sm:$0xff]   ;;  %v12741_v26 = vld [vmem:[#allocation11 + $0x194] ss:$24 sps:$4 sm:$0xff]  }
 0x256   :  { %3874 = vmatpush1.bf16.msra.mxu0 %v12604_v60  ;;  %v12634_v60 = vld [vmem:[#allocation5 + $0x57c] ss:$24 sps:$4 sm:$0xff]  }
 0x257   :  { %3875 = vmatprep.subr.bf16.mxu0 %v12627_v11  ;;  %4933 = vmatpush1.bf16.msra.mxu1 %v12652_v27  ;;  %v12685_v11 = vld [vmem:[#allocation11 + $0x70] ss:$24 sps:$4 sm:$0xff]  }
 0x258   :  { %3597 = vmatmul.mubr.bf16.gmra.mrb[28].mxu0 %v12507_v40  ;;  %4934 = vmatprep.subr.bf16.mxu1 %v12660_v30  ;;  %v12684_v27 = vld [vmem:[#allocation5 + $0xd0] ss:$24 sps:$4 sm:$0xff]   ;;  %v12750_v30 = vld [vmem:[#allocation11 + $0x1c4] ss:$24 sps:$4 sm:$0xff]  }
 0x259   :  { %4656 = vmatmul.mubr.bf16.gmra.mrb[28].mxu1 %v12507_v40  ;;  %3606 = vmatprep.mubr.bf16.mxu0 %v12508_v41  ;;  %v12559_v40 = vld [vmem:[#allocation5 + $0x39c] ss:$24 sps:$4 sm:$0xff]  }
 0x25a   :  { %4665 = vmatprep.mubr.bf16.mxu1 %v12508_v41  ;;  %3876 = vmatpush1.bf16.msra.mxu0 %v12625_v10  ;;  %v12561_v41 = vld [vmem:[#allocation5 + $0x398] ss:$24 sps:$4 sm:$0xff]   ;;  %v12673_v10 = vld [vmem:[#allocation5 + $0x74] ss:$24 sps:$4 sm:$0xff]  }
 0x25b   :  { %3877 = vmatprep.subr.bf16.mxu0 %v12648_v25  ;;  %4935 = vmatpush1.bf16.msra.mxu1 %v12658_v31  ;;  %v12730_v25 = vld [vmem:[#allocation11 + $0x160] ss:$24 sps:$4 sm:$0xff]  }
 0x25c   :  { %4936 = vmatprep.subr.bf16.mxu1 %v12663_v32  ;;  %v12748_v31 = vld [vmem:[#allocation11 + $0x1c0] ss:$24 sps:$4 sm:$0xff]   ;;  %v12759_v32 = vld [vmem:[#allocation11 + $0x1f4] ss:$24 sps:$4 sm:$0xff]  }
 0x25e   :  { %3878 = vmatpush1.bf16.msra.mxu0 %v12646_v24  ;;  %v12732_v24 = vld [vmem:[#allocation11 + $0x164] ss:$24 sps:$4 sm:$0xff]  }
 0x25f   :  { %4937 = vmatpush1.bf16.msra.mxu1 %v12661_v33  ;;  %5259 = vmatprep.subr.bf16.mxu0 %v12669_v36  ;;  %v14904_v33 = vld [vmem:[#allocation5 + $0x100] ss:$24 sps:$4 sm:$0xff]   ;;  %v12765_v36 = vld [vmem:[#allocation11 + $0x614] ss:$24 sps:$4 sm:$0xff]  }
 0x260   :  { %3607 = vmatmul.mubr.bf16.gmra.mrb[32].mxu0 %v12510_v42  ;;  %10954 = vmatprep.subr.bf16.mxu1 %v12765_v36  ;;  %v12850_v36 = vld [vmem:[#allocation11 + $0x2e0] ss:$24 sps:$4 sm:$0xff]  }
 0x261   :  { %4666 = vmatmul.mubr.bf16.gmra.mrb[32].mxu1 %v12510_v42  ;;  %3616 = vmatprep.mubr.bf16.mxu0 %v12514_v43  ;;  %v12562_v42 = vld [vmem:[#allocation5 + $0x3cc] ss:$24 sps:$4 sm:$0xff]  }
 0x262   :  { %4675 = vmatprep.mubr.bf16.mxu1 %v12514_v43  ;;  %v12564_v43 = vld [vmem:[#allocation5 + $0x3c8] ss:$24 sps:$4 sm:$0xff]  }
 0x268   :  { %3617 = vmatmul.mubr.bf16.gmra.mrb[36].mxu0 %v12516_v50 }
 0x269   :  { %4676 = vmatmul.mubr.bf16.gmra.mrb[36].mxu1 %v12516_v50  ;;  %3626 = vmatprep.mubr.bf16.mxu0 %v12517_v51  ;;  %v12580_v50 = vld [vmem:[#allocation5 + $0x48c] ss:$24 sps:$4 sm:$0xff]  }
 0x26a   :  { %4685 = vmatprep.mubr.bf16.mxu1 %v12517_v51  ;;  %v12582_v51 = vld [vmem:[#allocation5 + $0x488] ss:$24 sps:$4 sm:$0xff]  }
 0x270   :  { %3627 = vmatmul.mubr.bf16.gmra.mrb[40].mxu0 %v12519_v56 }
 0x271   :  { %4686 = vmatmul.mubr.bf16.gmra.mrb[40].mxu1 %v12519_v56  ;;  %3636 = vmatprep.mubr.bf16.mxu0 %v12523_v57  ;;  %v12613_v56 = vld [vmem:[#allocation5 + $0x51c] ss:$24 sps:$4 sm:$0xff]  }
 0x272   :  { %4695 = vmatprep.mubr.bf16.mxu1 %v12523_v57  ;;  %v12615_v57 = vld [vmem:[#allocation5 + $0x518] ss:$24 sps:$4 sm:$0xff]  }
 0x278   :  { %3637 = vmatmul.mubr.bf16.gmra.mrb[44].mxu0 %v12525_v0 }
 0x279   :  { %4696 = vmatmul.mubr.bf16.gmra.mrb[44].mxu1 %v12525_v0  ;;  %3646 = vmatprep.mubr.bf16.mxu0 %v12526_v1  ;;  %v12655_v0 = vld [vmem:[#allocation5 + $0x5dc] ss:$24 sps:$4 sm:$0xff]  }
 0x27a   :  { %4705 = vmatprep.mubr.bf16.mxu1 %v12526_v1  ;;  %v12657_v1 = vld [vmem:[#allocation5 + $0x5d8] ss:$24 sps:$4 sm:$0xff]  }
 0x280   :  { %3647 = vmatmul.mubr.bf16.gmra.mrb[48].mxu0 %v12528_v6 }
 0x281   :  { %4706 = vmatmul.mubr.bf16.gmra.mrb[48].mxu1 %v12528_v6  ;;  %3656 = vmatprep.mubr.bf16.mxu0 %v12532_v7  ;;  %v12678_v6 = vld [vmem:[#allocation11 + $0x44] ss:$24 sps:$4 sm:$0xff]  }
 0x282   :  { %4715 = vmatprep.mubr.bf16.mxu1 %v12532_v7  ;;  %v12676_v7 = vld [vmem:[#allocation11 + $0x40] ss:$24 sps:$4 sm:$0xff]  }
 0x288   :  { %3657 = vmatmul.mubr.bf16.gmra.mrb[52].mxu0 %v12534_v14 }
 0x289   :  { %4716 = vmatmul.mubr.bf16.gmra.mrb[52].mxu1 %v12534_v14  ;;  %3666 = vmatprep.mubr.bf16.mxu0 %v12535_v15  ;;  %v12705_v14 = vld [vmem:[#allocation11 + $0xd4] ss:$24 sps:$4 sm:$0xff]  }
 0x28a   :  { %4725 = vmatprep.mubr.bf16.mxu1 %v12535_v15  ;;  %v12675_v15 = vld [vmem:[#allocation5 + $0x70] ss:$24 sps:$4 sm:$0xff]  }
 0x290   :  { %3667 = vmatmul.mubr.bf16.gmra.mrb[56].mxu0 %v12537_v20 }
 0x291   :  { %4726 = vmatmul.mubr.bf16.gmra.mrb[56].mxu1 %v12537_v20  ;;  %3676 = vmatprep.mubr.bf16.mxu0 %v12541_v21  ;;  %v12723_v20 = vld [vmem:[#allocation11 + $0x134] ss:$24 sps:$4 sm:$0xff]  }
 0x292   :  { %4735 = vmatprep.mubr.bf16.mxu1 %v12541_v21  ;;  %v12681_v21 = vld [vmem:[#allocation5 + $0xa0] ss:$24 sps:$4 sm:$0xff]  }
 0x298   :  { %3677 = vmatmul.mubr.bf16.gmra.mrb[60].mxu0 %v12543_v28 }
 0x299   :  { %4736 = vmatmul.mubr.bf16.gmra.mrb[60].mxu1 %v12543_v28  ;;  %3686 = vmatprep.mubr.bf16.mxu0 %v12544_v29  ;;  %v14900_v28 = vld [vmem:[#allocation5 + $0x104] ss:$24 sps:$4 sm:$0xff]  }
 0x29a   :  { %4745 = vmatprep.mubr.bf16.mxu1 %v12544_v29  ;;  %v12739_v29 = vld [vmem:[#allocation11 + $0x190] ss:$24 sps:$4 sm:$0xff]  }
 0x2a0   :  { %3687 = vmatmul.mubr.bf16.gmra.mrb[64].mxu0 %v12546_v34 }
 0x2a1   :  { %4746 = vmatmul.mubr.bf16.gmra.mrb[64].mxu1 %v12546_v34  ;;  %3696 = vmatprep.mubr.bf16.mxu0 %v12550_v35  ;;  %v14906_v34 = vld [vmem:[#allocation5 + $0x134] ss:$24 sps:$4 sm:$0xff]  }
 0x2a2   :  { %4755 = vmatprep.mubr.bf16.mxu1 %v12550_v35  ;;  %v12757_v35 = vld [vmem:[#allocation11 + $0x1f0] ss:$24 sps:$4 sm:$0xff]  }
 0x2a8   :  { %3697 = vmatmul.mubr.bf16.gmra.mrb[68].mxu0 %v12552_v37 }
 0x2a9   :  { %4756 = vmatmul.mubr.bf16.gmra.mrb[68].mxu1 %v12552_v37  ;;  %3706 = vmatprep.mubr.bf16.mxu0 %v12553_v38  ;;  %v12763_v37 = vld [vmem:[#allocation11 + $0x610] ss:$24 sps:$4 sm:$0xff]  }
 0x2aa   :  { %4765 = vmatprep.mubr.bf16.mxu1 %v12553_v38  ;;  %v12768_v38 = vld [vmem:[#allocation11 + $0x644] ss:$24 sps:$4 sm:$0xff]  }
 0x2b0   :  { %3707 = vmatmul.mubr.bf16.gmra.mrb[72].mxu0 %v12555_v39 }
 0x2b1   :  { %4766 = vmatmul.mubr.bf16.gmra.mrb[72].mxu1 %v12555_v39  ;;  %3716 = vmatprep.mubr.bf16.mxu0 %v12559_v40  ;;  %v12766_v39 = vld [vmem:[#allocation11 + $0x640] ss:$24 sps:$4 sm:$0xff]  }
 0x2b2   :  { %4775 = vmatprep.mubr.bf16.mxu1 %v12559_v40  ;;  %v14912_v40 = vld [vmem:[#allocation5 + $0x130] ss:$24 sps:$4 sm:$0xff]  }
 0x2b8   :  { %3717 = vmatmul.mubr.bf16.gmra.mrb[76].mxu0 %v12561_v41 }
 0x2b9   :  { %4776 = vmatmul.mubr.bf16.gmra.mrb[76].mxu1 %v12561_v41  ;;  %3726 = vmatprep.mubr.bf16.mxu0 %v12562_v42  ;;  %v14914_v41 = vld [vmem:[#allocation5 + $0x164] ss:$24 sps:$4 sm:$0xff]  }
 0x2ba   :  { %4785 = vmatprep.mubr.bf16.mxu1 %v12562_v42  ;;  %v12777_v42 = vld [vmem:[#allocation11 + $0x674] ss:$24 sps:$4 sm:$0xff]  }
 0x2c0   :  { %3727 = vmatmul.mubr.bf16.gmra.mrb[80].mxu0 %v12564_v43 }
 0x2c1   :  { %4786 = vmatmul.mubr.bf16.gmra.mrb[80].mxu1 %v12564_v43  ;;  %3736 = vmatprep.mubr.bf16.mxu0 %v12568_v44  ;;  %v12775_v43 = vld [vmem:[#allocation11 + $0x670] ss:$24 sps:$4 sm:$0xff]  }
 0x2c2   :  { %4795 = vmatprep.mubr.bf16.mxu1 %v12568_v44  ;;  %v12772_v44 = vld [vmem:[#allocation11 + $0x220] ss:$24 sps:$4 sm:$0xff]  }
 0x2c8   :  { %3737 = vmatmul.mubr.bf16.gmra.mrb[84].mxu0 %v12570_v45 }
 0x2c9   :  { %4796 = vmatmul.mubr.bf16.gmra.mrb[84].mxu1 %v12570_v45  ;;  %3746 = vmatprep.mubr.bf16.mxu0 %v12571_v46  ;;  %v12774_v45 = vld [vmem:[#allocation11 + $0x224] ss:$24 sps:$4 sm:$0xff]  }
 0x2ca   :  { %4805 = vmatprep.mubr.bf16.mxu1 %v12571_v46  ;;  %v12780_v46 = vld [vmem:[#allocation11 + $0x6a4] ss:$24 sps:$4 sm:$0xff]  }
 0x2d0   :  { %3747 = vmatmul.mubr.bf16.gmra.mrb[88].mxu0 %v12573_v47 }
 0x2d1   :  { %4806 = vmatmul.mubr.bf16.gmra.mrb[88].mxu1 %v12573_v47  ;;  %3756 = vmatprep.mubr.bf16.mxu0 %v12577_v48  ;;  %v12778_v47 = vld [vmem:[#allocation11 + $0x6a0] ss:$24 sps:$4 sm:$0xff]  }
 0x2d2   :  { %4815 = vmatprep.mubr.bf16.mxu1 %v12577_v48  ;;  %v12699_v48 = vld [vmem:[#allocation5 + $0x160] ss:$24 sps:$4 sm:$0xff]  }
 0x2d8   :  { %3757 = vmatmul.mubr.bf16.gmra.mrb[92].mxu0 %v12579_v49 }
 0x2d9   :  { %4816 = vmatmul.mubr.bf16.gmra.mrb[92].mxu1 %v12579_v49  ;;  %3766 = vmatprep.mubr.bf16.mxu0 %v12580_v50  ;;  %v12700_v49 = vld [vmem:[#allocation5 + $0x194] ss:$24 sps:$4 sm:$0xff]  }
 0x2da   :  { %4825 = vmatprep.mubr.bf16.mxu1 %v12580_v50  ;;  %v12786_v50 = vld [vmem:[#allocation11 + $0x6d4] ss:$24 sps:$4 sm:$0xff]  }
 0x2e0   :  { %3767 = vmatmul.mubr.bf16.gmra.mrb[96].mxu0 %v12582_v51 }
 0x2e1   :  { %4826 = vmatmul.mubr.bf16.gmra.mrb[96].mxu1 %v12582_v51  ;;  %3776 = vmatprep.mubr.bf16.mxu0 %v12592_v52  ;;  %v12784_v51 = vld [vmem:[#allocation11 + $0x6d0] ss:$24 sps:$4 sm:$0xff]  }
 0x2e2   :  { %4835 = vmatprep.mubr.bf16.mxu1 %v12592_v52  ;;  %v12789_v52 = vld [vmem:[#allocation11 + $0x704] ss:$24 sps:$4 sm:$0xff]  }
 0x2e8   :  { %3777 = vmatmul.mubr.bf16.gmra.mrb[100].mxu0 %v12594_v53 }
 0x2e9   :  { %4836 = vmatmul.mubr.bf16.gmra.mrb[100].mxu1 %v12594_v53  ;;  %3786 = vmatprep.mubr.bf16.mxu0 %v12601_v54  ;;  %v12787_v53 = vld [vmem:[#allocation11 + $0x700] ss:$24 sps:$4 sm:$0xff]  }
 0x2ea   :  { %4845 = vmatprep.mubr.bf16.mxu1 %v12601_v54  ;;  %v12702_v54 = vld [vmem:[#allocation5 + $0x190] ss:$24 sps:$4 sm:$0xff]  }
 0x2f0   :  { %3787 = vmatmul.mubr.bf16.gmra.mrb[104].mxu0 %v12603_v55 }
 0x2f1   :  { %4846 = vmatmul.mubr.bf16.gmra.mrb[104].mxu1 %v12603_v55  ;;  %3796 = vmatprep.mubr.bf16.mxu0 %v12613_v56  ;;  %v12706_v55 = vld [vmem:[#allocation5 + $0x1c4] ss:$24 sps:$4 sm:$0xff]  }
 0x2f2   :  { %4855 = vmatprep.mubr.bf16.mxu1 %v12613_v56  ;;  %v12798_v56 = vld [vmem:[#allocation11 + $0x734] ss:$24 sps:$4 sm:$0xff]  }
 0x2f8   :  { %3797 = vmatmul.mubr.bf16.gmra.mrb[108].mxu0 %v12615_v57 }
 0x2f9   :  { %4856 = vmatmul.mubr.bf16.gmra.mrb[108].mxu1 %v12615_v57  ;;  %3806 = vmatprep.mubr.bf16.mxu0 %v12622_v58  ;;  %v12796_v57 = vld [vmem:[#allocation11 + $0x730] ss:$24 sps:$4 sm:$0xff]  }
 0x2fa   :  { %4865 = vmatprep.mubr.bf16.mxu1 %v12622_v58  ;;  %v12793_v58 = vld [vmem:[#allocation11 + $0x250] ss:$24 sps:$4 sm:$0xff]  }
 0x300   :  { %3807 = vmatmul.mubr.bf16.gmra.mrb[112].mxu0 %v12624_v59 }
 0x301   :  { %4866 = vmatmul.mubr.bf16.gmra.mrb[112].mxu1 %v12624_v59  ;;  %3816 = vmatprep.mubr.bf16.mxu0 %v12634_v60  ;;  %v12795_v59 = vld [vmem:[#allocation11 + $0x254] ss:$24 sps:$4 sm:$0xff]  }
 0x302   :  { %4875 = vmatprep.mubr.bf16.mxu1 %v12634_v60  ;;  %v12801_v60 = vld [vmem:[#allocation11 + $0x764] ss:$24 sps:$4 sm:$0xff]  }
 0x308   :  { %3817 = vmatmul.mubr.bf16.gmra.mrb[116].mxu0 %v12636_v61 }
 0x309   :  { %4876 = vmatmul.mubr.bf16.gmra.mrb[116].mxu1 %v12636_v61  ;;  %3826 = vmatprep.mubr.bf16.mxu0 %v12643_v62  ;;  %v12799_v61 = vld [vmem:[#allocation11 + $0x760] ss:$24 sps:$4 sm:$0xff]  }
 0x30a   :  { %4885 = vmatprep.mubr.bf16.mxu1 %v12643_v62  ;;  %v12708_v62 = vld [vmem:[#allocation5 + $0x1c0] ss:$24 sps:$4 sm:$0xff]  }
 0x310   :  { %3827 = vmatmul.mubr.bf16.gmra.mrb[120].mxu0 %v12645_v63 }
 0x311   :  { %4886 = vmatmul.mubr.bf16.gmra.mrb[120].mxu1 %v12645_v63  ;;  %3836 = vmatprep.mubr.bf16.mxu0 %v12655_v0  ;;  %v12709_v63 = vld [vmem:[#allocation5 + $0x1f4] ss:$24 sps:$4 sm:$0xff]  }
 0x312   :  { %4895 = vmatprep.mubr.bf16.mxu1 %v12655_v0  ;;  %v12807_v0 = vld [vmem:[#allocation11 + $0x794] ss:$24 sps:$4 sm:$0xff]  }
 0x318   :  { %3837 = vmatmul.mubr.bf16.gmra.mrb[124].mxu0 %v12657_v1 }
 0x319   :  { %4896 = vmatmul.mubr.bf16.gmra.mrb[124].mxu1 %v12657_v1  ;;  %3879 = vmatprep.mubr.bf16.mxu0 %v12666_v2  ;;  %v12805_v1 = vld [vmem:[#allocation11 + $0x790] ss:$24 sps:$4 sm:$0xff]  }
 0x31a   :  { %4938 = vmatprep.mubr.bf16.mxu1 %v12666_v2  ;;  %v12810_v2 = vld [vmem:[#allocation11 + $0x7c4] ss:$24 sps:$4 sm:$0xff]  }
 0x320   :  { %3880 = vmatmul.mubr.bf16.vlgmr.msra.gmra.mrb[0].mxu0 %v12664_v3 }
 0x321   :  { %4939 = vmatmul.mubr.bf16.vlgmr.msra.gmra.mrb[0].mxu1 %v12664_v3  ;;  %5260 = vmatpush1.bf16.msra.mxu0 %v12667_v4  ;;  %v12808_v3 = vld [vmem:[#allocation11 + $0x7c0] ss:$24 sps:$4 sm:$0xff]  }
 0x322   :  { %3889 = vmatprep.mubr.bf16.mxu0 %v12670_v5  ;;  %4948 = vmatprep.mubr.bf16.mxu1 %v12670_v5  ;;  %v12711_v4 = vld [vmem:[#allocation5 + $0x1f0] ss:$24 sps:$4 sm:$0xff]   ;;  %v12715_v5 = vld [vmem:[#allocation5 + $0x224] ss:$24 sps:$4 sm:$0xff]  }
 0x323   :  { %5261 = vmatprep.subr.bf16.mxu0 %v12678_v6  ;;  %10970 = vmatpush1.bf16.msra.mxu1 %v12763_v37  ;;  %v12819_v6 = vld [vmem:[#allocation11 + $0x7f4] ss:$24 sps:$4 sm:$0xff]   ;;  %v12738_v37 = vld [vmem:[#allocation5 + $0x310] ss:$24 sps:$4 sm:$0xff]  }
 0x324   :  { %10955 = vmatprep.subr.bf16.mxu1 %v12768_v38  ;;  %v12742_v38 = vld [vmem:[#allocation5 + $0x344] ss:$24 sps:$4 sm:$0xff]  }
 0x325   :  { %5262 = vmatpush1.bf16.msra.mxu0 %v12676_v7  ;;  %v12817_v7 = vld [vmem:[#allocation11 + $0x7f0] ss:$24 sps:$4 sm:$0xff]  }
 0x326   :  { %5263 = vmatprep.subr.bf16.mxu0 %v12687_v8  ;;  %v12814_v8 = vld [vmem:[#allocation11 + $0x280] ss:$24 sps:$4 sm:$0xff]  }
 0x327   :  { %10971 = vmatpush1.bf16.msra.mxu1 %v12766_v39  ;;  %v12744_v39 = vld [vmem:[#allocation5 + $0x340] ss:$24 sps:$4 sm:$0xff]  }
 0x328   :  { %3890 = vmatmul.mubr.bf16.gmra.mrb[4].mxu0 %v12672_v9  ;;  %10956 = vmatprep.subr.bf16.mxu1 %v12777_v42  ;;  %v12745_v42 = vld [vmem:[#allocation5 + $0x374] ss:$24 sps:$4 sm:$0xff]  }
 0x329   :  { %4949 = vmatmul.mubr.bf16.gmra.mrb[4].mxu1 %v12672_v9  ;;  %3899 = vmatprep.mubr.bf16.mxu0 %v12673_v10  ;;  %v12816_v9 = vld [vmem:[#allocation11 + $0x284] ss:$24 sps:$4 sm:$0xff]  }
 0x32a   :  { %4958 = vmatprep.mubr.bf16.mxu1 %v12673_v10  ;;  %5264 = vmatpush1.bf16.msra.mxu0 %v12685_v11  ;;  %v12717_v10 = vld [vmem:[#allocation5 + $0x220] ss:$24 sps:$4 sm:$0xff]   ;;  %v12822_v11 = vld [vmem:[#allocation11 + $0x824] ss:$24 sps:$4 sm:$0xff]  }
 0x32b   :  { %5265 = vmatprep.subr.bf16.mxu0 %v12696_v12  ;;  %10972 = vmatpush1.bf16.msra.mxu1 %v12775_v43  ;;  %v12718_v12 = vld [vmem:[#allocation5 + $0x254] ss:$24 sps:$4 sm:$0xff]  }
 0x32c   :  { %10957 = vmatprep.subr.bf16.mxu1 %v12780_v46  ;;  %v12858_v43 = vld [vmem:[#allocation11 + $0x314] ss:$24 sps:$4 sm:$0xff]   ;;  %v12753_v46 = vld [vmem:[#allocation5 + $0x3a0] ss:$24 sps:$4 sm:$0xff]  }
 0x32e   :  { %5266 = vmatpush1.bf16.msra.mxu0 %v12694_v13  ;;  %v12820_v13 = vld [vmem:[#allocation11 + $0x820] ss:$24 sps:$4 sm:$0xff]  }
 0x32f   :  { %5267 = vmatprep.subr.bf16.mxu0 %v12705_v14  ;;  %10973 = vmatpush1.bf16.msra.mxu1 %v12778_v47  ;;  %v12828_v14 = vld [vmem:[#allocation11 + $0x854] ss:$24 sps:$4 sm:$0xff]  }
 0x330   :  { %3900 = vmatmul.mubr.bf16.gmra.mrb[8].mxu0 %v12675_v15  ;;  %10958 = vmatprep.subr.bf16.mxu1 %v12786_v50  ;;  %v12754_v47 = vld [vmem:[#allocation5 + $0x3d4] ss:$24 sps:$4 sm:$0xff]   ;;  %v12762_v50 = vld [vmem:[#allocation5 + $0x400] ss:$24 sps:$4 sm:$0xff]  }
 0x331   :  { %4959 = vmatmul.mubr.bf16.gmra.mrb[8].mxu1 %v12675_v15  ;;  %3909 = vmatprep.mubr.bf16.mxu0 %v12679_v16  ;;  %v12826_v15 = vld [vmem:[#allocation11 + $0x850] ss:$24 sps:$4 sm:$0xff]  }
 0x332   :  { %4968 = vmatprep.mubr.bf16.mxu1 %v12679_v16  ;;  %5268 = vmatpush1.bf16.msra.mxu0 %v12703_v17  ;;  %v12720_v16 = vld [vmem:[#allocation5 + $0x250] ss:$24 sps:$4 sm:$0xff]   ;;  %v12724_v17 = vld [vmem:[#allocation5 + $0x284] ss:$24 sps:$4 sm:$0xff]  }
 0x333   :  { %5269 = vmatprep.subr.bf16.mxu0 %v12714_v18  ;;  %10974 = vmatpush1.bf16.msra.mxu1 %v12784_v51  ;;  %v12831_v18 = vld [vmem:[#allocation11 + $0x884] ss:$24 sps:$4 sm:$0xff]  }
 0x334   :  { %10959 = vmatprep.subr.bf16.mxu1 %v12789_v52  ;;  %v12769_v51 = vld [vmem:[#allocation5 + $0x434] ss:$24 sps:$4 sm:$0xff]   ;;  %v12771_v52 = vld [vmem:[#allocation5 + $0x430] ss:$24 sps:$4 sm:$0xff]  }
 0x336   :  { %5270 = vmatpush1.bf16.msra.mxu0 %v12712_v19  ;;  %v12829_v19 = vld [vmem:[#allocation11 + $0x880] ss:$24 sps:$4 sm:$0xff]  }
 0x337   :  { %5271 = vmatprep.subr.bf16.mxu0 %v12723_v20  ;;  %10975 = vmatpush1.bf16.msra.mxu1 %v12787_v53  ;;  %v12840_v20 = vld [vmem:[#allocation11 + $0x8b4] ss:$24 sps:$4 sm:$0xff]  }
 0x338   :  { %3910 = vmatmul.mubr.bf16.gmra.mrb[12].mxu0 %v12681_v21  ;;  %10960 = vmatprep.subr.bf16.mxu1 %v12798_v56  ;;  %v12781_v53 = vld [vmem:[#allocation5 + $0x464] ss:$24 sps:$4 sm:$0xff]   ;;  %v12792_v56 = vld [vmem:[#allocation5 + $0x490] ss:$24 sps:$4 sm:$0xff]  }
 0x339   :  { %4969 = vmatmul.mubr.bf16.gmra.mrb[12].mxu1 %v12681_v21  ;;  %3919 = vmatprep.mubr.bf16.mxu0 %v12682_v22  ;;  %v12838_v21 = vld [vmem:[#allocation11 + $0x8b0] ss:$24 sps:$4 sm:$0xff]  }
 0x33a   :  { %4978 = vmatprep.mubr.bf16.mxu1 %v12682_v22  ;;  %5272 = vmatpush1.bf16.msra.mxu0 %v12721_v23  ;;  %v12726_v22 = vld [vmem:[#allocation5 + $0x280] ss:$24 sps:$4 sm:$0xff]   ;;  %v12727_v23 = vld [vmem:[#allocation5 + $0x2b4] ss:$24 sps:$4 sm:$0xff]  }
 0x33b   :  { %5273 = vmatprep.subr.bf16.mxu0 %v12732_v24  ;;  %10976 = vmatpush1.bf16.msra.mxu1 %v12796_v57  ;;  %v12837_v24 = vld [vmem:[#allocation11 + $0x2b4] ss:$24 sps:$4 sm:$0xff]  }
 0x33c   :  { %10961 = vmatprep.subr.bf16.mxu1 %v12801_v60  ;;  %v12802_v57 = vld [vmem:[#allocation5 + $0x4c4] ss:$24 sps:$4 sm:$0xff]   ;;  %v12811_v60 = vld [vmem:[#allocation5 + $0x4f4] ss:$24 sps:$4 sm:$0xff]  }
 0x33e   :  { %5274 = vmatpush1.bf16.msra.mxu0 %v12730_v25  ;;  %v12835_v25 = vld [vmem:[#allocation11 + $0x2b0] ss:$24 sps:$4 sm:$0xff]  }
 0x33f   :  { %5275 = vmatprep.subr.bf16.mxu0 %v12741_v26  ;;  %10977 = vmatpush1.bf16.msra.mxu1 %v12799_v61  ;;  %v12843_v26 = vld [vmem:[#allocation11 + $0x8e4] ss:$24 sps:$4 sm:$0xff]  }
 0x340   :  { %3920 = vmatmul.mubr.bf16.gmra.mrb[16].mxu0 %v12684_v27  ;;  %10962 = vmatprep.subr.bf16.mxu1 %v12807_v0 }
 0x341   :  { %4979 = vmatmul.mubr.bf16.gmra.mrb[16].mxu1 %v12684_v27  ;;  %3929 = vmatprep.mubr.bf16.mxu0 %v14900_v28  ;;  %v12841_v27 = vld [vmem:[#allocation11 + $0x8e0] ss:$24 sps:$4 sm:$0xff]  }
 0x342   :  { %4988 = vmatprep.mubr.bf16.mxu1 %v14900_v28  ;;  %5276 = vmatpush1.bf16.msra.mxu0 %v12739_v29  ;;  %v12729_v29 = vld [vmem:[#allocation5 + $0x2b0] ss:$24 sps:$4 sm:$0xff]  }
 0x343   :  { %5277 = vmatprep.subr.bf16.mxu0 %v12750_v30  ;;  %10978 = vmatpush1.bf16.msra.mxu1 %v12805_v1  ;;  %v12733_v30 = vld [vmem:[#allocation5 + $0x2e4] ss:$24 sps:$4 sm:$0xff]   ;;  %v709_v1 = vld [vmem:[#allocation13] sm:$0x3f] }
 0x344   :  { %10963 = vmatprep.subr.bf16.mxu1 %v12810_v2 }
 0x346   :  { %5278 = vmatpush1.bf16.msra.mxu0 %v12748_v31  ;;  %v12735_v31 = vld [vmem:[#allocation5 + $0x2e0] ss:$24 sps:$4 sm:$0xff]  }
 0x347   :  { %5279 = vmatprep.subr.bf16.mxu0 %v12759_v32  ;;  %10979 = vmatpush1.bf16.msra.mxu1 %v12808_v3  ;;  %v12736_v32 = vld [vmem:[#allocation5 + $0x314] ss:$24 sps:$4 sm:$0xff]  }
 0x348   :  { %3930 = vmatmul.mubr.bf16.gmra.mrb[20].mxu0 %v14904_v33  ;;  %10964 = vmatprep.subr.bf16.mxu1 %v12819_v6 }
 0x349   :  { %4989 = vmatmul.mubr.bf16.gmra.mrb[20].mxu1 %v14904_v33  ;;  %3939 = vmatprep.mubr.bf16.mxu0 %v14906_v34 }
 0x34a   :  { %4998 = vmatprep.mubr.bf16.mxu1 %v14906_v34  ;;  %5280 = vmatpush1.bf16.msra.mxu0 %v12757_v35  ;;  %v12852_v35 = vld [vmem:[#allocation11 + $0x2e4] ss:$24 sps:$4 sm:$0xff]  }
 0x34b   :  { %5281 = vmatprep.subr.bf16.mxu0 %v12774_v45  ;;  %10980 = vmatpush1.bf16.msra.mxu1 %v12817_v7  ;;  %v12751_v45 = vld [vmem:[#allocation5 + $0x3a4] ss:$24 sps:$4 sm:$0xff]  }
 0x34c   :  { %10965 = vmatprep.subr.bf16.mxu1 %v12822_v11 }
 0x34e   :  { %5282 = vmatpush1.bf16.msra.mxu0 %v12772_v44  ;;  %v12747_v44 = vld [vmem:[#allocation5 + $0x370] ss:$24 sps:$4 sm:$0xff]  }
 0x34f   :  { %5283 = vmatprep.subr.bf16.mxu0 %v12795_v59  ;;  %10981 = vmatpush1.bf16.msra.mxu1 %v12820_v13  ;;  %v711_v59 = vlaneseq }
 0x350   :  { %3940 = vmatmul.mubr.bf16.gmra.mrb[24].mxu0 %v14912_v40  ;;  %10966 = vmatprep.subr.bf16.mxu1 %v12828_v14 }
 0x351   :  { %4999 = vmatmul.mubr.bf16.gmra.mrb[24].mxu1 %v14912_v40  ;;  %3949 = vmatprep.mubr.bf16.mxu0 %v14914_v41  ;;  %v14920_v61 = vshrl.u32 %v711_v59, 7 }
 0x352   :  { %5008 = vmatprep.mubr.bf16.mxu1 %v14914_v41  ;;  %5284 = vmatpush1.bf16.msra.mxu0 %v12793_v58  ;;  %v12804_v58 = vld [vmem:[#allocation5 + $0x4c0] ss:$24 sps:$4 sm:$0xff]  }
 0x353   :  { %5285 = vmatprep.subr.bf16.mxu0 %v12816_v9  ;;  %10982 = vmatpush1.bf16.msra.mxu1 %v12826_v15  ;;  %v14926_v0 = vsub.s32 2, %v14920_v61  ;;  %v14929_v2 = vsub.s32 1, %v14920_v61  ;;  %v14932_v3 = vsub.s32 3, %v14920_v61  ;;  %v12825_v15 = vld [vmem:[#allocation5 + $0x520] ss:$24 sps:$4 sm:$0xff]  }
 0x354   :  { %10967 = vmatprep.subr.bf16.mxu1 %v12831_v18 }
 0x355   :  { %17527 = vst [vmem:[#allocation31_spill] sm:$0xff] %v14926_v0  ;;  %v14938_v6 = vrot.slane %v709_v1, %v14926_v0  ;;  %v14941_v7 = vrot.slane %v709_v1, %v14929_v2 }
 0x356   :  { %5286 = vmatpush1.bf16.msra.mxu0 %v12814_v8  ;;  %v14944_v8 = vrot.slane %v709_v1, %v14932_v3 }
 0x357   :  { %10983 = vmatpush1.bf16.msra.mxu1 %v12829_v19  ;;  %5287 = vmatprep.subr.bf16.mxu0 %v12837_v24 }
 0x358   :  { %3950 = vmatmul.mubr.bf16.gmra.mrb[28].mxu0 %v12699_v48  ;;  %10968 = vmatprep.subr.bf16.mxu1 %v12840_v20  ;;  %v12832_v20 = vld [vmem:[#allocation5 + $0x554] ss:$24 sps:$4 sm:$0xff]  }
 0x359   :  { %5009 = vmatmul.mubr.bf16.gmra.mrb[28].mxu1 %v12699_v48  ;;  %3959 = vmatprep.mubr.bf16.mxu0 %v12700_v49  ;;  %v12756_v48 = vld [vmem:[#allocation5 + $0x3d0] ss:$24 sps:$4 sm:$0xff]  }
 0x35a   :  { %5018 = vmatprep.mubr.bf16.mxu1 %v12700_v49  ;;  %5288 = vmatpush1.bf16.msra.mxu0 %v12835_v25  ;;  %v12760_v49 = vld [vmem:[#allocation5 + $0x404] ss:$24 sps:$4 sm:$0xff]  }
 0x35b   :  { %10984 = vmatpush1.bf16.msra.mxu1 %v12838_v21  ;;  %5289 = vmatprep.subr.bf16.mxu0 %v12852_v35 }
 0x35c   :  { %10969 = vmatprep.subr.bf16.mxu1 %v12843_v26 }
 0x35e   :  { %5290 = vmatpush1.bf16.msra.mxu0 %v12850_v36  ;;  %v12834_v36 = vld [vmem:[#allocation5 + $0x550] ss:$24 sps:$4 sm:$0xff]  }
 0x35f   :  { %10985 = vmatpush1.bf16.msra.mxu1 %v12841_v27  ;;  %5612 = vmatprep.subr.bf16.mxu0 %v12858_v43  ;;  %v12844_v43 = vld [vmem:[#allocation5 + $0x584] ss:$24 sps:$4 sm:$0xff]  }
 0x360   :  { %3960 = vmatmul.mubr.bf16.gmra.mrb[32].mxu0 %v12702_v54 }
 0x361   :  { %5019 = vmatmul.mubr.bf16.gmra.mrb[32].mxu1 %v12702_v54  ;;  %3969 = vmatprep.mubr.bf16.mxu0 %v12706_v55  ;;  %v12783_v54 = vld [vmem:[#allocation5 + $0x460] ss:$24 sps:$4 sm:$0xff]  }
 0x362   :  { %5028 = vmatprep.mubr.bf16.mxu1 %v12706_v55  ;;  %v12790_v55 = vld [vmem:[#allocation5 + $0x494] ss:$24 sps:$4 sm:$0xff]  }
 0x368   :  { %3970 = vmatmul.mubr.bf16.gmra.mrb[36].mxu0 %v12708_v62 }
 0x369   :  { %5029 = vmatmul.mubr.bf16.gmra.mrb[36].mxu1 %v12708_v62  ;;  %3979 = vmatprep.mubr.bf16.mxu0 %v12709_v63  ;;  %v12813_v62 = vld [vmem:[#allocation5 + $0x4f0] ss:$24 sps:$4 sm:$0xff]  }
 0x36a   :  { %5038 = vmatprep.mubr.bf16.mxu1 %v12709_v63  ;;  %v14923_v63 = vsub.s32 0, %v14920_v61 }
 0x370   :  { %3980 = vmatmul.mubr.bf16.gmra.mrb[40].mxu0 %v12711_v4 }
 0x371   :  { %5039 = vmatmul.mubr.bf16.gmra.mrb[40].mxu1 %v12711_v4  ;;  %3989 = vmatprep.mubr.bf16.mxu0 %v12715_v5  ;;  %v12823_v4 = vld [vmem:[#allocation5 + $0x524] ss:$24 sps:$4 sm:$0xff]  }
 0x372   :  { %5048 = vmatprep.mubr.bf16.mxu1 %v12715_v5  ;;  %v14935_v5 = vrot.slane %v709_v1, %v14923_v63 }
 0x378   :  { %3990 = vmatmul.mubr.bf16.gmra.mrb[44].mxu0 %v12717_v10 }
 0x379   :  { %5049 = vmatmul.mubr.bf16.gmra.mrb[44].mxu1 %v12717_v10  ;;  %3999 = vmatprep.mubr.bf16.mxu0 %v12718_v12 }
 0x37a   :  { %5058 = vmatprep.mubr.bf16.mxu1 %v12718_v12 }
 0x380   :  { %4000 = vmatmul.mubr.bf16.gmra.mrb[48].mxu0 %v12720_v16 }
 0x381   :  { %5059 = vmatmul.mubr.bf16.gmra.mrb[48].mxu1 %v12720_v16  ;;  %4009 = vmatprep.mubr.bf16.mxu0 %v12724_v17 }
 0x382   :  { %5068 = vmatprep.mubr.bf16.mxu1 %v12724_v17 }
 0x388   :  { %4010 = vmatmul.mubr.bf16.gmra.mrb[52].mxu0 %v12726_v22 }
 0x389   :  { %5069 = vmatmul.mubr.bf16.gmra.mrb[52].mxu1 %v12726_v22  ;;  %4019 = vmatprep.mubr.bf16.mxu0 %v12727_v23 }
 0x38a   :  { %5078 = vmatprep.mubr.bf16.mxu1 %v12727_v23 }
 0x390   :  { %4020 = vmatmul.mubr.bf16.gmra.mrb[56].mxu0 %v12729_v29 }
 0x391   :  { %5079 = vmatmul.mubr.bf16.gmra.mrb[56].mxu1 %v12729_v29  ;;  %4029 = vmatprep.mubr.bf16.mxu0 %v12733_v30 }
 0x392   :  { %5088 = vmatprep.mubr.bf16.mxu1 %v12733_v30 }
 0x398   :  { %4030 = vmatmul.mubr.bf16.gmra.mrb[60].mxu0 %v12735_v31 }
 0x399   :  { %5089 = vmatmul.mubr.bf16.gmra.mrb[60].mxu1 %v12735_v31  ;;  %4039 = vmatprep.mubr.bf16.mxu0 %v12736_v32 }
 0x39a   :  { %5098 = vmatprep.mubr.bf16.mxu1 %v12736_v32 }
 0x3a0   :  { %4040 = vmatmul.mubr.bf16.gmra.mrb[64].mxu0 %v12738_v37 }
 0x3a1   :  { %5099 = vmatmul.mubr.bf16.gmra.mrb[64].mxu1 %v12738_v37  ;;  %4049 = vmatprep.mubr.bf16.mxu0 %v12742_v38 }
 0x3a2   :  { %5108 = vmatprep.mubr.bf16.mxu1 %v12742_v38 }
 0x3a8   :  { %4050 = vmatmul.mubr.bf16.gmra.mrb[68].mxu0 %v12744_v39 }
 0x3a9   :  { %5109 = vmatmul.mubr.bf16.gmra.mrb[68].mxu1 %v12744_v39  ;;  %4059 = vmatprep.mubr.bf16.mxu0 %v12745_v42 }
 0x3aa   :  { %5118 = vmatprep.mubr.bf16.mxu1 %v12745_v42 }
 0x3b0   :  { %4060 = vmatmul.mubr.bf16.gmra.mrb[72].mxu0 %v12747_v44 }
 0x3b1   :  { %5119 = vmatmul.mubr.bf16.gmra.mrb[72].mxu1 %v12747_v44  ;;  %4069 = vmatprep.mubr.bf16.mxu0 %v12751_v45 }
 0x3b2   :  { %5128 = vmatprep.mubr.bf16.mxu1 %v12751_v45 }
 0x3b8   :  { %4070 = vmatmul.mubr.bf16.gmra.mrb[76].mxu0 %v12753_v46 }
 0x3b9   :  { %5129 = vmatmul.mubr.bf16.gmra.mrb[76].mxu1 %v12753_v46  ;;  %4079 = vmatprep.mubr.bf16.mxu0 %v12754_v47 }
 0x3ba   :  { %5138 = vmatprep.mubr.bf16.mxu1 %v12754_v47 }
 0x3c0   :  { %4080 = vmatmul.mubr.bf16.gmra.mrb[80].mxu0 %v12756_v48 }
 0x3c1   :  { %5139 = vmatmul.mubr.bf16.gmra.mrb[80].mxu1 %v12756_v48  ;;  %4089 = vmatprep.mubr.bf16.mxu0 %v12760_v49 }
 0x3c2   :  { %5148 = vmatprep.mubr.bf16.mxu1 %v12760_v49 }
 0x3c8   :  { %4090 = vmatmul.mubr.bf16.gmra.mrb[84].mxu0 %v12762_v50 }
 0x3c9   :  { %5149 = vmatmul.mubr.bf16.gmra.mrb[84].mxu1 %v12762_v50  ;;  %4099 = vmatprep.mubr.bf16.mxu0 %v12769_v51 }
 0x3ca   :  { %5158 = vmatprep.mubr.bf16.mxu1 %v12769_v51 }
 0x3d0   :  { %4100 = vmatmul.mubr.bf16.gmra.mrb[88].mxu0 %v12771_v52 }
 0x3d1   :  { %5159 = vmatmul.mubr.bf16.gmra.mrb[88].mxu1 %v12771_v52  ;;  %4109 = vmatprep.mubr.bf16.mxu0 %v12781_v53 }
 0x3d2   :  { %5168 = vmatprep.mubr.bf16.mxu1 %v12781_v53 }
 0x3d8   :  { %4110 = vmatmul.mubr.bf16.gmra.mrb[92].mxu0 %v12783_v54 }
 0x3d9   :  { %5169 = vmatmul.mubr.bf16.gmra.mrb[92].mxu1 %v12783_v54  ;;  %4119 = vmatprep.mubr.bf16.mxu0 %v12790_v55 }
 0x3da   :  { %5178 = vmatprep.mubr.bf16.mxu1 %v12790_v55 }
 0x3e0   :  { %4120 = vmatmul.mubr.bf16.gmra.mrb[96].mxu0 %v12792_v56 }
 0x3e1   :  { %5179 = vmatmul.mubr.bf16.gmra.mrb[96].mxu1 %v12792_v56  ;;  %4129 = vmatprep.mubr.bf16.mxu0 %v12802_v57 }
 0x3e2   :  { %5188 = vmatprep.mubr.bf16.mxu1 %v12802_v57 }
 0x3e8   :  { %4130 = vmatmul.mubr.bf16.gmra.mrb[100].mxu0 %v12804_v58 }
 0x3e9   :  { %5189 = vmatmul.mubr.bf16.gmra.mrb[100].mxu1 %v12804_v58  ;;  %4139 = vmatprep.mubr.bf16.mxu0 %v12811_v60 }
 0x3ea   :  { %5198 = vmatprep.mubr.bf16.mxu1 %v12811_v60 }
 0x3f0   :  { %4140 = vmatmul.mubr.bf16.gmra.mrb[104].mxu0 %v12813_v62 }
 0x3f1   :  { %5199 = vmatmul.mubr.bf16.gmra.mrb[104].mxu1 %v12813_v62  ;;  %4149 = vmatprep.mubr.bf16.mxu0 %v12823_v4  ;;  %v12846_v62 = vld [vmem:[#allocation5 + $0x580] ss:$24 sps:$4 sm:$0xff]  }
 0x3f2   :  { %5208 = vmatprep.mubr.bf16.mxu1 %v12823_v4 }
 0x3f3   :  { %v3881_v9 = vpop.f32.mrb[0].mxu0 }
 0x3f4   :  { %v4940_v10 = vpop.f32.mrb[0].mxu1  ;;  %v10986_v11 = vadd.f32 %v3881_v9, %v14935_v5  ;;  %v3883_v13 = vpop.f32.mrb[1].mxu0 }
 0x3f5   :  { %v11114_v12 = vadd.f32 %v4940_v10, %v14938_v6  ;;  %v4942_v14 = vpop.f32.mrb[1].mxu1  ;;  %v10987_v16 = vadd.f32 %v3883_v13, %v14941_v7  ;;  %v3885_v18 = vpop.f32.mrb[2].mxu0 }
 0x3f6   :  { %v11115_v17 = vadd.f32 %v4942_v14, %v14944_v8  ;;  %v4944_v19 = vpop.f32.mrb[2].mxu1  ;;  %12904 = vtanh.f32 %v10986_v11  ;;  %v10988_v21 = vadd.f32 %v3885_v18, %v14935_v5  ;;  %v3887_v22 = vpop.f32.mrb[3].mxu0  ;;  %v12861_v18 = vld [vmem:[#allocation11 + $0x344] ss:$24 sps:$4 sm:$0xff]  }
 0x3f7   :  { %v4946_v23 = vpop.f32.mrb[3].mxu1  ;;  %12906 = vtanh.f32 %v11114_v12  ;;  %v11116_v24 = vadd.f32 %v4944_v19, %v14938_v6  ;;  %v10989_v25 = vadd.f32 %v3887_v22, %v14941_v7  ;;  %v12847_v12 = vld [vmem:[#allocation5 + $0x5b4] ss:$24 sps:$4 sm:$0xff]  }
 0x3f8   :  { %12908 = vtanh.f32 %v10987_v16  ;;  %4150 = vmatmul.mubr.bf16.gmra.mrb[108].mxu0 %v12825_v15  ;;  %v11117_v26 = vadd.f32 %v4946_v23, %v14944_v8 }
 0x3f9   :  { %5209 = vmatmul.mubr.bf16.gmra.mrb[108].mxu1 %v12825_v15  ;;  %12910 = vtanh.f32 %v11115_v17  ;;  %4159 = vmatprep.mubr.bf16.mxu0 %v12832_v20 }
 0x3fa   :  { %5218 = vmatprep.mubr.bf16.mxu1 %v12832_v20  ;;  %12912 = vtanh.f32 %v10988_v21 }
 0x3fb   :  { %12914 = vtanh.f32 %v11116_v24  ;;  %v3891_v27 = vpop.f32.mrb[4].mxu0 }
 0x3fc   :  { %v4950_v29 = vpop.f32.mrb[4].mxu1  ;;  %12916 = vtanh.f32 %v10989_v25  ;;  %v10990_v30 = vadd.f32 %v3891_v27, %v14935_v5  ;;  %v3893_v32 = vpop.f32.mrb[5].mxu0 }
 0x3fd   :  { %v11118_v31 = vadd.f32 %v4950_v29, %v14938_v6  ;;  %v4952_v35 = vpop.f32.mrb[5].mxu1  ;;  %12918 = vtanh.f32 %v11117_v26  ;;  %v10991_v37 = vadd.f32 %v3893_v32, %v14941_v7  ;;  %v3895_v39 = vpop.f32.mrb[6].mxu0 }
 0x3fe   :  { %v11119_v38 = vadd.f32 %v4952_v35, %v14944_v8  ;;  %v4954_v42 = vpop.f32.mrb[6].mxu1  ;;  %12920 = vtanh.f32 %v10990_v30  ;;  %v10992_v44 = vadd.f32 %v3895_v39, %v14935_v5  ;;  %v3897_v45 = vpop.f32.mrb[7].mxu0  ;;  %v12849_v39 = vld [vmem:[#allocation5 + $0x5b0] ss:$24 sps:$4 sm:$0xff]  }
 0x3ff   :  { %v4956_v46 = vpop.f32.mrb[7].mxu1  ;;  %12922 = vtanh.f32 %v11118_v31  ;;  %v11120_v47 = vadd.f32 %v4954_v42, %v14938_v6  ;;  %v10993_v49 = vadd.f32 %v3897_v45, %v14941_v7 }
 0x400   :  { %v14960_v48 = vpop.eup %12904  ;;  %12924 = vtanh.f32 %v10991_v37  ;;  %4160 = vmatmul.mubr.bf16.gmra.mrb[112].mxu0 %v12834_v36  ;;  %v11121_v51 = vadd.f32 %v4956_v46, %v14944_v8 }
 0x401   :  { %5219 = vmatmul.mubr.bf16.gmra.mrb[112].mxu1 %v12834_v36  ;;  %v14963_v50 = vpop.eup %12906  ;;  %12926 = vtanh.f32 %v11119_v38  ;;  %4169 = vmatprep.mubr.bf16.mxu0 %v12844_v43 }
 0x402   :  { %17528 = vst [vmem:[#allocation32_spill] sm:$0xff] %v14963_v50  ;;  %5228 = vmatprep.mubr.bf16.mxu1 %v12844_v43  ;;  %v12909_v52 = vpop.eup %12908  ;;  %12928 = vtanh.f32 %v10992_v44 }
 0x403   :  { %v14966_v53 = vpop.eup %12910  ;;  %12930 = vtanh.f32 %v11120_v47  ;;  %v3901_v54 = vpop.f32.mrb[8].mxu0  ;;  %v12853_v47 = vld [vmem:[#allocation5 + $0x5e4] ss:$24 sps:$4 sm:$0xff]  }
 0x404   :  { %17529 = vst [vmem:[#allocation33_spill] sm:$0xff] %v14966_v53  ;;  %v4960_v55 = vpop.f32.mrb[8].mxu1  ;;  %v14968_v56 = vpop.eup %12912  ;;  %12932 = vtanh.f32 %v10993_v49  ;;  %v10994_v57 = vadd.f32 %v3901_v54, %v14935_v5 }
 0x405   :  { %v11122_v58 = vadd.f32 %v4960_v55, %v14938_v6  ;;  %v3903_v59 = vpop.f32.mrb[9].mxu0  ;;  %v4962_v60 = vpop.f32.mrb[9].mxu1  ;;  %12934 = vtanh.f32 %v11121_v51  ;;  %v6761_v13 = vpack.c.bf16 %v14968_v56, %v14960_v48 }
 0x406   :  { %v14972_v1 = vpop.eup %12914  ;;  %v10995_v4 = vadd.f32 %v3903_v59, %v14941_v7  ;;  %v11123_v9 = vadd.f32 %v4962_v60, %v14944_v8  ;;  %v3905_v10 = vpop.f32.mrb[10].mxu0  ;;  %12936 = vtanh.f32 %v10994_v57 }
 0x407   :  { %17530 = vst [vmem:[#allocation34_spill] sm:$0xff] %v14972_v1  ;;  %v4964_v11 = vpop.f32.mrb[10].mxu1  ;;  %v12917_v14 = vpop.eup %12916  ;;  %v10996_v15 = vadd.f32 %v3905_v10, %v14935_v5  ;;  %12938 = vtanh.f32 %v11122_v58  ;;  %v13758_v1 = vld [vmem:[#allocation5 + $0x420] ss:$24 sps:$4 sm:$0xff]  }
 0x408   :  { %v3907_v16 = vpop.f32.mrb[11].mxu0  ;;  %v4966_v17 = vpop.f32.mrb[11].mxu1  ;;  %v11124_v20 = vadd.f32 %v4964_v11, %v14938_v6  ;;  %v6762_v21 = vpack.c.bf16 %v12917_v14, %v12909_v52  ;;  %12940 = vtanh.f32 %v10995_v4  ;;  %4170 = vmatmul.mubr.bf16.gmra.mrb[116].mxu0 %v12846_v62 }
 0x409   :  { %v14981_v19 = vpop.eup %12918  ;;  %v10997_v23 = vadd.f32 %v3907_v16, %v14941_v7  ;;  %5229 = vmatmul.mubr.bf16.gmra.mrb[116].mxu1 %v12846_v62  ;;  %12942 = vtanh.f32 %v11123_v9  ;;  %v11125_v26 = vadd.f32 %v4966_v17, %v14944_v8  ;;  %4179 = vmatprep.mubr.bf16.mxu0 %v12847_v12 }
 0x40a   :  { %17531 = vst [vmem:[#allocation35_spill] sm:$0xff] %v14981_v19  ;;  %v14984_v22 = vpop.eup %12920  ;;  %6953 = vmatprep.subr.bf16.mxu1 %v6762_v21  ;;  %12944 = vtanh.f32 %v10996_v15  ;;  %5238 = vmatprep.mubr.bf16.mxu1 %v12847_v12 }
 0x40b   :  { %v14989_v25 = vpop.eup %12922  ;;  %12946 = vtanh.f32 %v11124_v20  ;;  %v3911_v30 = vpop.f32.mrb[12].mxu0 }
 0x40c   :  { %17532 = vst [vmem:[#allocation36_spill] sm:$0xff] %v14989_v25  ;;  %v14992_v27 = vpop.eup %12924  ;;  %v4970_v31 = vpop.f32.mrb[12].mxu1  ;;  %12948 = vtanh.f32 %v10997_v23  ;;  %v10998_v35 = vadd.f32 %v3911_v30, %v14935_v5  ;;  %v12855_v30 = vld [vmem:[#allocation5 + $0x5e0] ss:$24 sps:$4 sm:$0xff]  }
 0x40d   :  { %v14994_v29 = vpop.eup %12926  ;;  %v11126_v36 = vadd.f32 %v4970_v31, %v14938_v6  ;;  %v3913_v37 = vpop.f32.mrb[13].mxu0  ;;  %12950 = vtanh.f32 %v11125_v26 }
 0x40e   :  { %17533 = vst [vmem:[#allocation37_spill] sm:$0xff] %v14994_v29  ;;  %v14996_v32 = vpop.eup %12928  ;;  %v4972_v38 = vpop.f32.mrb[13].mxu1  ;;  %v10999_v43 = vadd.f32 %v3913_v37, %v14941_v7  ;;  %12952 = vtanh.f32 %v10998_v35 }
 0x40f   :  { %v15000_v42 = vpop.eup %12930  ;;  %v11127_v44 = vadd.f32 %v4972_v38, %v14944_v8  ;;  %v3915_v45 = vpop.f32.mrb[14].mxu0  ;;  %v6767_v49 = vpack.c.bf16 %v14996_v32, %v14984_v22  ;;  %12954 = vtanh.f32 %v11126_v36 }
 0x410   :  { %17534 = vst [vmem:[#allocation38_spill] sm:$0xff] %v15000_v42  ;;  %v4974_v46 = vpop.f32.mrb[14].mxu1  ;;  %v15006_v51 = vpop.eup %12932  ;;  %v11000_v52 = vadd.f32 %v3915_v45, %v14935_v5  ;;  %12956 = vtanh.f32 %v10999_v43  ;;  %4180 = vmatmul.mubr.bf16.gmra.mrb[120].mxu0 %v12849_v39  ;;  %v13754_v42 = vld [vmem:[#allocation5 + $0x3f0] ss:$24 sps:$4 sm:$0xff]  }
 0x411   :  { %v3917_v54 = vpop.f32.mrb[15].mxu0  ;;  %v4976_v55 = vpop.f32.mrb[15].mxu1  ;;  %v11128_v59 = vadd.f32 %v4974_v46, %v14938_v6  ;;  %v6768_v60 = vpack.c.bf16 %v15006_v51, %v14992_v27  ;;  %5239 = vmatmul.mubr.bf16.gmra.mrb[120].mxu1 %v12849_v39  ;;  %12958 = vtanh.f32 %v11127_v44  ;;  %4189 = vmatprep.mubr.bf16.mxu0 %v12853_v47 }
 0x412   :  { %v15011_v58 = vpop.eup %12934  ;;  %v11001_v4 = vadd.f32 %v3917_v54, %v14941_v7  ;;  %v11129_v11 = vadd.f32 %v4976_v55, %v14944_v8  ;;  %5248 = vmatprep.mubr.bf16.mxu1 %v12853_v47  ;;  %12960 = vtanh.f32 %v11000_v52  ;;  %v12856_v47 = vld [vmem:[#allocation11 + $0x310] ss:$24 sps:$4 sm:$0xff]  }
 0x413   :  { %17535 = vst [vmem:[#allocation39_spill] sm:$0xff] %v15011_v58  ;;  %v15016_v62 = vpop.eup %12936  ;;  %12962 = vtanh.f32 %v11128_v59  ;;  %v3921_v15 = vpop.f32.mrb[16].mxu0 }
 0x414   :  { %v15021_v10 = vpop.eup %12938  ;;  %v4980_v16 = vpop.f32.mrb[16].mxu1  ;;  %12964 = vtanh.f32 %v11001_v4  ;;  %v11002_v20 = vadd.f32 %v3921_v15, %v14935_v5 }
 0x415   :  { %17536 = vst [vmem:[#allocation40_spill] sm:$0xff] %v15021_v10  ;;  %v15024_v12 = vpop.eup %12940  ;;  %v11130_v21 = vadd.f32 %v4980_v16, %v14938_v6  ;;  %v3923_v23 = vpop.f32.mrb[17].mxu0  ;;  %12966 = vtanh.f32 %v11129_v11  ;;  %v13746_v10 = vld [vmem:[#allocation5 + $0x390] ss:$24 sps:$4 sm:$0xff]  }
 0x416   :  { %v15026_v14 = vpop.eup %12942  ;;  %v4982_v26 = vpop.f32.mrb[17].mxu1  ;;  %v11003_v35 = vadd.f32 %v3923_v23, %v14941_v7  ;;  %12968 = vtanh.f32 %v11002_v20  ;;  %v13672_v20 = vld [vmem:[#allocation5 + $0x4] ss:$24 sps:$4 sm:$0xff]  }
 0x417   :  { %17537 = vst [vmem:[#allocation41_spill] sm:$0xff] %v15026_v14  ;;  %v15028_v17 = vpop.eup %12944  ;;  %v11131_v36 = vadd.f32 %v4982_v26, %v14944_v8  ;;  %v3925_v37 = vpop.f32.mrb[18].mxu0  ;;  %12970 = vtanh.f32 %v11130_v21 }
 0x418   :  { %v15032_v31 = vpop.eup %12946  ;;  %v4984_v38 = vpop.f32.mrb[18].mxu1  ;;  %v6773_v39 = vpack.c.bf16 %v15028_v17, %v15016_v62  ;;  %v11004_v44 = vadd.f32 %v3925_v37, %v14935_v5  ;;  %12972 = vtanh.f32 %v11003_v35  ;;  %4190 = vmatmul.mubr.bf16.gmra.mrb[124].mxu0 %v12855_v30 }
 0x419   :  { %17538 = vst [vmem:[#allocation42_spill] sm:$0xff] %v15032_v31  ;;  %v15038_v43 = vpop.eup %12948  ;;  %v3927_v45 = vpop.f32.mrb[19].mxu0  ;;  %v11132_v54 = vadd.f32 %v4984_v38, %v14938_v6  ;;  %5249 = vmatmul.mubr.bf16.gmra.mrb[124].mxu1 %v12855_v30  ;;  %12974 = vtanh.f32 %v11131_v36  ;;  %5291 = vmatprep.mubr.bf16.mxu0 %v13672_v20 }
 0x41a   :  { %v4986_v46 = vpop.f32.mrb[19].mxu1  ;;  %v15043_v52 = vpop.eup %12950  ;;  %v6774_v55 = vpack.c.bf16 %v15038_v43, %v15024_v12  ;;  %v11005_v4 = vadd.f32 %v3927_v45, %v14941_v7  ;;  %6047 = vmatprep.mubr.bf16.mxu1 %v14900_v28  ;;  %12976 = vtanh.f32 %v11004_v44  ;;  %v13675_v43 = vld [vmem:[#allocation5 + $0x30] ss:$24 sps:$4 sm:$0xff]  }
 0x41b   :  { %17539 = vst [vmem:[#allocation43_spill] sm:$0xff] %v15043_v52  ;;  %v15048_v59 = vpop.eup %12952  ;;  %v11133_v16 = vadd.f32 %v4986_v46, %v14944_v8  ;;  %12978 = vtanh.f32 %v11132_v54  ;;  %v3931_v26 = vpop.f32.mrb[20].mxu0 }
 0x41c   :  { %v15053_v15 = vpop.eup %12954  ;;  %v4990_v30 = vpop.f32.mrb[20].mxu1  ;;  %12980 = vtanh.f32 %v11005_v4  ;;  %v11006_v37 = vadd.f32 %v3931_v26, %v14935_v5 }
 0x41d   :  { %17540 = vst [vmem:[#allocation44_spill] sm:$0xff] %v15053_v15  ;;  %v15057_v21 = vpop.eup %12956  ;;  %v11134_v36 = vadd.f32 %v4990_v30, %v14938_v6  ;;  %v3933_v38 = vpop.f32.mrb[21].mxu0  ;;  %12982 = vtanh.f32 %v11133_v16 }
 0x41e   :  { %v15059_v23 = vpop.eup %12958  ;;  %v4992_v45 = vpop.f32.mrb[21].mxu1  ;;  %v11007_v28 = vadd.f32 %v3933_v38, %v14941_v7  ;;  %12984 = vtanh.f32 %v11006_v37 }
 0x41f   :  { %17541 = vst [vmem:[#allocation45_spill] sm:$0xff] %v15059_v23  ;;  %v15061_v35 = vpop.eup %12960  ;;  %v11135_v44 = vadd.f32 %v4992_v45, %v14944_v8  ;;  %v3935_v20 = vpop.f32.mrb[22].mxu0  ;;  %12986 = vtanh.f32 %v11134_v36 }
 0x420   :  { %v15065_v46 = vpop.eup %12962  ;;  %v4994_v54 = vpop.f32.mrb[22].mxu1  ;;  %v11008_v26 = vadd.f32 %v3935_v20, %v14935_v5  ;;  %12988 = vtanh.f32 %v11007_v28  ;;  %v13673_v20 = vld [vmem:[#allocation5] ss:$24 sps:$4 sm:$0xff]  }
 0x421   :  { %17542 = vst [vmem:[#allocation46_spill] sm:$0xff] %v15065_v46  ;;  %v15071_v4 = vpop.eup %12964  ;;  %v3937_v30 = vpop.f32.mrb[23].mxu0  ;;  %v11136_v38 = vadd.f32 %v4994_v54, %v14938_v6  ;;  %5292 = vmatmul.mubr.bf16.vlgmr.msra.gmra.mrb[128].mxu0 %v13673_v20  ;;  %6048 = vmatmul.mubr.bf16.vlgmr.msra.gmra.mrb[128].mxu1 %v14904_v33  ;;  %12990 = vtanh.f32 %v11135_v44  ;;  %v12859_v28 = vld [vmem:[#allocation11 + $0x340] ss:$24 sps:$4 sm:$0xff]   ;;  %v13674_v33 = vld [vmem:[#allocation5 + $0x34] ss:$24 sps:$4 sm:$0xff]  }
 0x422   :  { %v4996_v57 = vpop.f32.mrb[23].mxu1  ;;  %v15076_v9 = vpop.eup %12966  ;;  %v6780_v45 = vpack.c.bf16 %v15071_v4, %v15057_v21  ;;  %v11009_v37 = vadd.f32 %v3937_v30, %v14941_v7  ;;  %6954 = vmatpush1.bf16.msra.mxu1 %v6761_v13  ;;  %5613 = vmatpush1.bf16.msra.mxu0 %v12856_v47  ;;  %12992 = vtanh.f32 %v11008_v26  ;;  %v12864_v30 = vld [vmem:[#allocation11 + $0x374] ss:$24 sps:$4 sm:$0xff]  }
 0x423   :  { %17543 = vst [vmem:[#allocation47_spill] sm:$0xff] %v15076_v9  ;;  %v15081_v24 = vpop.eup %12968  ;;  %v11137_v36 = vadd.f32 %v4996_v57, %v14944_v8  ;;  %6955 = vmatprep.subr.bf16.mxu1 %v6768_v60  ;;  %5301 = vmatprep.mubr.bf16.mxu0 %v13674_v33  ;;  %12994 = vtanh.f32 %v11136_v38  ;;  %v3941_v57 = vpop.f32.mrb[24].mxu0 }
 0x424   :  { %v15087_v11 = vpop.eup %12970  ;;  %v5000_v44 = vpop.f32.mrb[24].mxu1  ;;  %6057 = vmatprep.mubr.bf16.mxu1 %v14906_v34  ;;  %5614 = vmatprep.subr.bf16.mxu0 %v12861_v18  ;;  %12996 = vtanh.f32 %v11009_v37  ;;  %v11010_v56 = vadd.f32 %v3941_v57, %v14935_v5 }
 0x425   :  { %17544 = vst [vmem:[#allocation48_spill] sm:$0xff] %v15087_v11  ;;  %v15093_v54 = vpop.eup %12972  ;;  %v11138_v13 = vadd.f32 %v5000_v44, %v14938_v6  ;;  %v3943_v27 = vpop.f32.mrb[25].mxu0  ;;  %12998 = vtanh.f32 %v11137_v36  ;;  %v12862_v44 = vld [vmem:[#allocation11 + $0x370] ss:$24 sps:$4 sm:$0xff]  }
 0x426   :  { %v15098_v20 = vpop.eup %12974  ;;  %v5002_v51 = vpop.f32.mrb[25].mxu1  ;;  %v11011_v47 = vadd.f32 %v3943_v27, %v14941_v7  ;;  %6956 = vmatpush1.bf16.msra.mxu1 %v6767_v49  ;;  %5615 = vmatpush1.bf16.msra.mxu0 %v12859_v28  ;;  %13000 = vtanh.f32 %v11010_v56 }
 0x427   :  { %17545 = vst [vmem:[#allocation49_spill] sm:$0xff] %v15098_v20  ;;  %v15101_v48 = vpop.eup %12976  ;;  %v11139_v26 = vadd.f32 %v5002_v51, %v14944_v8  ;;  %v3945_v34 = vpop.f32.mrb[26].mxu0  ;;  %6957 = vmatprep.subr.bf16.mxu1 %v6774_v55  ;;  %5616 = vmatprep.subr.bf16.mxu0 %v12864_v30  ;;  %13002 = vtanh.f32 %v11138_v13  ;;  %v12867_v55 = vld [vmem:[#allocation11 + $0x3a4] ss:$24 sps:$4 sm:$0xff]  }
 0x428   :  { %v15105_v60 = vpop.eup %12978  ;;  %v5004_v18 = vpop.f32.mrb[26].mxu1  ;;  %v6785_v38 = vpack.c.bf16 %v15101_v48, %v15081_v24  ;;  %v11012_v33 = vadd.f32 %v3945_v34, %v14935_v5  ;;  %13004 = vtanh.f32 %v11011_v47  ;;  %v12865_v34 = vld [vmem:[#allocation11 + $0x3a0] ss:$24 sps:$4 sm:$0xff]  }
 0x429   :  { %17546 = vst [vmem:[#allocation50_spill] sm:$0xff] %v15105_v60  ;;  %v12981_v37 = vpop.eup %12980  ;;  %v3947_v36 = vpop.f32.mrb[27].mxu0  ;;  %v11140_v49 = vadd.f32 %v5004_v18, %v14938_v6  ;;  %5302 = vmatmul.mubr.bf16.gmra.mrb[132].mxu0 %v13675_v43  ;;  %6058 = vmatmul.mubr.bf16.gmra.mrb[132].mxu1 %v14912_v40  ;;  %13006 = vtanh.f32 %v11139_v26  ;;  %v13742_v60 = vld [vmem:[#allocation5 + $0x360] ss:$24 sps:$4 sm:$0xff]  }
 0x42a   :  { %v5006_v57 = vpop.f32.mrb[27].mxu1  ;;  %v15120_v32 = vpop.eup %12982  ;;  %v6786_v28 = vpack.c.bf16 %v12981_v37, %v15093_v54  ;;  %v11013_v12 = vadd.f32 %v3947_v36, %v14941_v7  ;;  %6958 = vmatpush1.bf16.msra.mxu1 %v6773_v39  ;;  %v13676_v54 = vld [vmem:[#allocation5 + $0x64] ss:$24 sps:$4 sm:$0xff]   ;;  %13008 = vtanh.f32 %v11012_v33  ;;  %6067 = vmatprep.mubr.bf16.mxu1 %v14914_v41 }
 0x42b   :  { %17547 = vst [vmem:[#allocation51_spill] sm:$0xff] %v15120_v32  ;;  %v15124_v56 = vpop.eup %12984  ;;  %v11141_v13 = vadd.f32 %v5006_v57, %v14944_v8  ;;  %5311 = vmatprep.mubr.bf16.mxu0 %v13676_v54  ;;  %6959 = vmatprep.subr.bf16.mxu1 %v6780_v45  ;;  %13010 = vtanh.f32 %v11140_v49  ;;  %v3951_v47 = vpop.f32.mrb[28].mxu0  ;;  %v17551_v45 = vpack.c.bf16 %v15061_v35, %v15048_v59  ;;  %v12870_v54 = vld [vmem:[#allocation11 + $0x3d4] ss:$24 sps:$4 sm:$0xff]  }
 0x42c   :  { %v15130_v27 = vpop.eup %12986  ;;  %v5010_v26 = vpop.f32.mrb[28].mxu1  ;;  %5617 = vmatpush1.bf16.msra.mxu0 %v12862_v44  ;;  %13012 = vtanh.f32 %v11013_v12  ;;  %v11014_v62 = vadd.f32 %v3951_v47, %v14935_v5 }
 0x42d   :  { %17548 = vst [vmem:[#allocation52_spill] sm:$0xff] %v15130_v27  ;;  %v12989_v51 = vpop.eup %12988  ;;  %v11142_v17 = vadd.f32 %v5010_v26, %v14938_v6  ;;  %v3953_v39 = vpop.f32.mrb[29].mxu0  ;;  %5618 = vmatprep.subr.bf16.mxu0 %v12867_v55  ;;  %13014 = vtanh.f32 %v11141_v13  ;;  %v13677_v26 = vld [vmem:[#allocation5 + $0x60] ss:$24 sps:$4 sm:$0xff]  }
 0x42e   :  { %v15140_v40 = vpop.eup %12990  ;;  %v5012_v37 = vpop.f32.mrb[29].mxu1  ;;  %v11015_v41 = vadd.f32 %v3953_v39, %v14941_v7  ;;  %6960 = vmatpush1.bf16.msra.mxu1 %v17551_v45  ;;  %13016 = vtanh.f32 %v11014_v62 }
 0x42f   :  { %17549 = vst [vmem:[#allocation53_spill] sm:$0xff] %v15140_v40  ;;  %v15142_v18 = vpop.eup %12992  ;;  %v11143_v4 = vadd.f32 %v5012_v37, %v14944_v8  ;;  %v3955_v33 = vpop.f32.mrb[30].mxu0  ;;  %6961 = vmatprep.subr.bf16.mxu1 %v6786_v28  ;;  %13018 = vtanh.f32 %v11142_v17  ;;  %v13678_v28 = vld [vmem:[#allocation5 + $0x160] ss:$24 sps:$4 sm:$0xff]   ;;  %v12873_v17 = vld [vmem:[#allocation11 + $0x404] ss:$24 sps:$4 sm:$0xff]  }
 0x430   :  { %v15146_v21 = vpop.eup %12994  ;;  %v5014_v36 = vpop.f32.mrb[30].mxu1  ;;  %v6791_v57 = vpack.c.bf16 %v15142_v18, %v15124_v56  ;;  %v11016_v44 = vadd.f32 %v3955_v33, %v14935_v5  ;;  %5619 = vmatpush1.bf16.msra.mxu0 %v12865_v34  ;;  %13020 = vtanh.f32 %v11015_v41  ;;  %v12868_v18 = vld [vmem:[#allocation11 + $0x3d0] ss:$24 sps:$4 sm:$0xff]   ;;  %v13679_v34 = vld [vmem:[#allocation5 + $0x94] ss:$24 sps:$4 sm:$0xff]  }
 0x431   :  { %17550 = vst [vmem:[#allocation54_spill] sm:$0xff] %v15146_v21  ;;  %v12997_v49 = vpop.eup %12996  ;;  %v3957_v12 = vpop.f32.mrb[31].mxu0  ;;  %v11144_v59 = vadd.f32 %v5014_v36, %v14938_v6  ;;  %5312 = vmatmul.mubr.bf16.gmra.mrb[136].mxu0 %v13677_v26  ;;  %6068 = vmatmul.mubr.bf16.gmra.mrb[136].mxu1 %v13678_v28  ;;  %13022 = vtanh.f32 %v11143_v4  ;;  %v13680_v41 = vld [vmem:[#allocation5 + $0x194] ss:$24 sps:$4 sm:$0xff]   ;;  %v13738_v21 = vld [vmem:[#allocation5 + $0x330] ss:$24 sps:$4 sm:$0xff]  }
 0x432   :  { %v5016_v43 = vpop.f32.mrb[31].mxu1  ;;  %v15158_v13 = vpop.eup %12998  ;;  %v6792_v35 = vpack.c.bf16 %v12997_v49, %v12989_v51  ;;  %v11017_v56 = vadd.f32 %v3957_v12, %v14941_v7  ;;  %6962 = vmatpush1.bf16.msra.mxu1 %v6785_v38  ;;  %5321 = vmatprep.mubr.bf16.mxu0 %v13679_v34  ;;  %13024 = vtanh.f32 %v11016_v44 }
 0x433   :  { %17552 = vst [vmem:[#allocation55_spill] sm:$0xff] %v15158_v13  ;;  %v15161_v47 = vpop.eup %13000  ;;  %v11145_v51 = vadd.f32 %v5016_v43, %v14944_v8  ;;  %6077 = vmatprep.mubr.bf16.mxu1 %v13680_v41  ;;  %13026 = vtanh.f32 %v11144_v59  ;;  %v3961_v33 = vpop.f32.mrb[32].mxu0  ;;  %5620 = vmatprep.subr.bf16.mxu0 %v12870_v54 }
 0x434   :  { %v15166_v39 = vpop.eup %13002  ;;  %6963 = vmatprep.subr.bf16.mxu1 %v6792_v35  ;;  %v5020_v36 = vpop.f32.mrb[32].mxu1  ;;  %13028 = vtanh.f32 %v11017_v56  ;;  %v11018_v49 = vadd.f32 %v3961_v33, %v14935_v5  ;;  %5621 = vmatpush1.bf16.msra.mxu0 %v12868_v18  ;;  %v12871_v33 = vld [vmem:[#allocation11 + $0x400] ss:$24 sps:$4 sm:$0xff]  }
 0x435   :  { %17553 = vst [vmem:[#allocation56_spill] sm:$0xff] %v15166_v39  ;;  %v13005_v37 = vpop.eup %13004  ;;  %v11146_v24 = vadd.f32 %v5020_v36, %v14938_v6  ;;  %v3963_v48 = vpop.f32.mrb[33].mxu0  ;;  %13030 = vtanh.f32 %v11145_v51  ;;  %5622 = vmatprep.subr.bf16.mxu0 %v12873_v17  ;;  %v13681_v17 = vld [vmem:[#allocation5 + $0x90] ss:$24 sps:$4 sm:$0xff]  }
 0x436   :  { %v15172_v45 = vpop.eup %13006  ;;  %v5022_v38 = vpop.f32.mrb[33].mxu1  ;;  %v11019_v44 = vadd.f32 %v3963_v48, %v14941_v7  ;;  %6964 = vmatpush1.bf16.msra.mxu1 %v6791_v57  ;;  %13032 = vtanh.f32 %v11018_v49  ;;  %v12876_v49 = vld [vmem:[#allocation11 + $0x434] ss:$24 sps:$4 sm:$0xff]  }
 0x437   :  { %17554 = vst [vmem:[#allocation57_spill] sm:$0xff] %v15172_v45  ;;  %v13009_v4 = vpop.eup %13008  ;;  %v11147_v43 = vadd.f32 %v5022_v38, %v14944_v8  ;;  %v3965_v59 = vpop.f32.mrb[34].mxu0  ;;  %13034 = vtanh.f32 %v11146_v24 }
 0x438   :  { %v15176_v12 = vpop.eup %13010  ;;  %v5024_v35 = vpop.f32.mrb[34].mxu1  ;;  %v6797_v54 = vpack.c.bf16 %v13009_v4, %v15161_v47  ;;  %v11020_v26 = vadd.f32 %v3965_v59, %v14935_v5  ;;  %13036 = vtanh.f32 %v11019_v44  ;;  %v13682_v4 = vld [vmem:[#allocation5 + $0x190] ss:$24 sps:$4 sm:$0xff]   ;;  %v13684_v44 = vld [vmem:[#allocation5 + $0x1c4] ss:$24 sps:$4 sm:$0xff]   ;;  %5623 = vmatpush1.bf16.msra.mxu0 %v12871_v33 }
 0x439   :  { %17555 = vst [vmem:[#allocation58_spill] sm:$0xff] %v15176_v12  ;;  %v13013_v56 = vpop.eup %13012  ;;  %v3967_v28 = vpop.f32.mrb[35].mxu0  ;;  %v11148_v41 = vadd.f32 %v5024_v35, %v14938_v6  ;;  %5322 = vmatmul.mubr.bf16.gmra.mrb[140].mxu0 %v13681_v17  ;;  %6078 = vmatmul.mubr.bf16.gmra.mrb[140].mxu1 %v13682_v4  ;;  %13038 = vtanh.f32 %v11147_v43  ;;  %v12874_v17 = vld [vmem:[#allocation11 + $0x430] ss:$24 sps:$4 sm:$0xff]  }
 0x43a   :  { %v5026_v34 = vpop.f32.mrb[35].mxu1  ;;  %v15184_v51 = vpop.eup %13014  ;;  %v6798_v57 = vpack.c.bf16 %v13013_v56, %v13005_v37  ;;  %v11021_v47 = vadd.f32 %v3967_v28, %v14941_v7  ;;  %v13683_v37 = vld [vmem:[#allocation5 + $0xc4] ss:$24 sps:$4 sm:$0xff]   ;;  %13040 = vtanh.f32 %v11020_v26  ;;  %6087 = vmatprep.mubr.bf16.mxu1 %v13684_v44  ;;  %5624 = vmatprep.subr.bf16.mxu0 %v12876_v49  ;;  %v13734_v12 = vld [vmem:[#allocation5 + $0x300] ss:$24 sps:$4 sm:$0xff]  }
 0x43b   :  { %17556 = vst [vmem:[#allocation59_spill] sm:$0xff] %v15184_v51  ;;  %v15187_v36 = vpop.eup %13016  ;;  %v11149_v24 = vadd.f32 %v5026_v34, %v14944_v8  ;;  %5331 = vmatprep.mubr.bf16.mxu0 %v13683_v37  ;;  %13042 = vtanh.f32 %v11148_v41  ;;  %v3971_v56 = vpop.f32.mrb[36].mxu0 }
 0x43c   :  { %v15192_v38 = vpop.eup %13018  ;;  %6965 = vmatprep.subr.bf16.mxu1 %v6798_v57  ;;  %v5030_v28 = vpop.f32.mrb[36].mxu1  ;;  %13044 = vtanh.f32 %v11021_v47  ;;  %v11022_v43 = vadd.f32 %v3971_v56, %v14935_v5  ;;  %5625 = vmatpush1.bf16.msra.mxu0 %v12874_v17 }
 0x43d   :  { %17557 = vst [vmem:[#allocation60_spill] sm:$0xff] %v15192_v38  ;;  %v13021_v59 = vpop.eup %13020  ;;  %6966 = vmatpush1.bf16.msra.mxu1 %v6797_v54  ;;  %v11150_v34 = vadd.f32 %v5030_v28, %v14938_v6  ;;  %v3973_v57 = vpop.f32.mrb[37].mxu0  ;;  %13046 = vtanh.f32 %v11149_v24 }
 0x43e   :  { %v15195_v35 = vpop.eup %13022  ;;  %v5032_v37 = vpop.f32.mrb[37].mxu1  ;;  %v11023_v54 = vadd.f32 %v3973_v57, %v14941_v7  ;;  %13048 = vtanh.f32 %v11022_v43  ;;  %v13686_v43 = vld [vmem:[#allocation5 + $0x1c0] ss:$24 sps:$4 sm:$0xff]  }
 0x43f   :  { %17558 = vst [vmem:[#allocation61_spill] sm:$0xff] %v15195_v35  ;;  %v13025_v4 = vpop.eup %13024  ;;  %v11151_v41 = vadd.f32 %v5032_v37, %v14944_v8  ;;  %v3975_v44 = vpop.f32.mrb[38].mxu0  ;;  %13050 = vtanh.f32 %v11150_v34  ;;  %v12879_v37 = vld [vmem:[#allocation11 + $0x464] ss:$24 sps:$4 sm:$0xff]  }
 0x440   :  { %v15199_v26 = vpop.eup %13026  ;;  %v5034_v18 = vpop.f32.mrb[38].mxu1  ;;  %v6803_v33 = vpack.c.bf16 %v13025_v4, %v15187_v36  ;;  %v11024_v47 = vadd.f32 %v3975_v44, %v14935_v5  ;;  %13052 = vtanh.f32 %v11023_v54  ;;  %v13685_v4 = vld [vmem:[#allocation5 + $0xc0] ss:$24 sps:$4 sm:$0xff]   ;;  %v13688_v34 = vld [vmem:[#allocation5 + $0x1f4] ss:$24 sps:$4 sm:$0xff]   ;;  %5626 = vmatprep.subr.bf16.mxu0 %v12879_v37 }
 0x441   :  { %17559 = vst [vmem:[#allocation62_spill] sm:$0xff] %v15199_v26  ;;  %v13029_v48 = vpop.eup %13028  ;;  %v3977_v56 = vpop.f32.mrb[39].mxu0  ;;  %v11152_v24 = vadd.f32 %v5034_v18, %v14938_v6  ;;  %5332 = vmatmul.mubr.bf16.gmra.mrb[144].mxu0 %v13685_v4  ;;  %6088 = vmatmul.mubr.bf16.gmra.mrb[144].mxu1 %v13686_v43  ;;  %v12877_v44 = vld [vmem:[#allocation11 + $0x460] ss:$24 sps:$4 sm:$0xff]   ;;  %13054 = vtanh.f32 %v11151_v41  ;;  %v12903_v35 = vld [vmem:[#allocation11 + $0x5e4] ss:$24 sps:$4 sm:$0xff]  }
 0x442   :  { %v5036_v28 = vpop.f32.mrb[39].mxu1  ;;  %v15207_v55 = vpop.eup %13030  ;;  %v6804_v57 = vpack.c.bf16 %v13029_v48, %v13021_v59  ;;  %v11025_v36 = vadd.f32 %v3977_v56, %v14941_v7  ;;  %v13687_v48 = vld [vmem:[#allocation5 + $0xf4] ss:$24 sps:$4 sm:$0xff]   ;;  %13056 = vtanh.f32 %v11024_v47  ;;  %6097 = vmatprep.mubr.bf16.mxu1 %v13688_v34  ;;  %5627 = vmatpush1.bf16.msra.mxu0 %v12877_v44  ;;  %v12901_v26 = vld [vmem:[#allocation11 + $0x5e0] ss:$24 sps:$4 sm:$0xff]  }
 0x443   :  { %17560 = vst [vmem:[#allocation63_spill] sm:$0xff] %v15207_v55  ;;  %v15210_v62 = vpop.eup %13032  ;;  %v11153_v18 = vadd.f32 %v5036_v28, %v14944_v8  ;;  %5341 = vmatprep.mubr.bf16.mxu0 %v13687_v48  ;;  %v12882_v59 = vld [vmem:[#allocation11 + $0x494] ss:$24 sps:$4 sm:$0xff]   ;;  %13058 = vtanh.f32 %v11152_v24  ;;  %v3981_v56 = vpop.f32.mrb[40].mxu0 }
 0x444   :  { %v15215_v22 = vpop.eup %13034  ;;  %6967 = vmatprep.subr.bf16.mxu1 %v6804_v57  ;;  %v5040_v4 = vpop.f32.mrb[40].mxu1  ;;  %13060 = vtanh.f32 %v11025_v36  ;;  %v11026_v41 = vadd.f32 %v3981_v56, %v14935_v5  ;;  %5628 = vmatprep.subr.bf16.mxu0 %v12882_v59  ;;  %v13689_v59 = vld [vmem:[#allocation5 + $0xf0] ss:$24 sps:$4 sm:$0xff]  }
 0x445   :  { %17561 = vst [vmem:[#allocation64_spill] sm:$0xff] %v15215_v22  ;;  %v13037_v17 = vpop.eup %13036  ;;  %6968 = vmatpush1.bf16.msra.mxu1 %v6803_v33  ;;  %v11154_v28 = vadd.f32 %v5040_v4, %v14938_v6  ;;  %v3983_v57 = vpop.f32.mrb[41].mxu0  ;;  %13062 = vtanh.f32 %v11153_v18 }
 0x446   :  { %v15218_v54 = vpop.eup %13038  ;;  %v5042_v48 = vpop.f32.mrb[41].mxu1  ;;  %v11027_v33 = vadd.f32 %v3983_v57, %v14941_v7  ;;  %13064 = vtanh.f32 %v11026_v41  ;;  %v12885_v41 = vld [vmem:[#allocation11 + $0x4c4] ss:$24 sps:$4 sm:$0xff]  }
 0x447   :  { %17562 = vst [vmem:[#allocation65_spill] sm:$0xff] %v15218_v54  ;;  %v13041_v43 = vpop.eup %13040  ;;  %v11155_v47 = vadd.f32 %v5042_v48, %v14944_v8  ;;  %v3985_v24 = vpop.f32.mrb[42].mxu0  ;;  %13066 = vtanh.f32 %v11154_v28  ;;  %v12880_v48 = vld [vmem:[#allocation11 + $0x490] ss:$24 sps:$4 sm:$0xff]  }
 0x448   :  { %v15222_v49 = vpop.eup %13042  ;;  %v5044_v34 = vpop.f32.mrb[42].mxu1  ;;  %v6809_v37 = vpack.c.bf16 %v13041_v43, %v15210_v62  ;;  %v11028_v56 = vadd.f32 %v3985_v24, %v14935_v5  ;;  %13068 = vtanh.f32 %v11027_v33  ;;  %v13690_v43 = vld [vmem:[#allocation5 + $0x1f0] ss:$24 sps:$4 sm:$0xff]   ;;  %v13692_v33 = vld [vmem:[#allocation5 + $0x224] ss:$24 sps:$4 sm:$0xff]   ;;  %5629 = vmatpush1.bf16.msra.mxu0 %v12880_v48 }
 0x449   :  { %17563 = vst [vmem:[#allocation66_spill] sm:$0xff] %v15222_v49  ;;  %v13045_v36 = vpop.eup %13044  ;;  %v3987_v4 = vpop.f32.mrb[43].mxu0  ;;  %v11156_v18 = vadd.f32 %v5044_v34, %v14938_v6  ;;  %5342 = vmatmul.mubr.bf16.gmra.mrb[148].mxu0 %v13689_v59  ;;  %6098 = vmatmul.mubr.bf16.gmra.mrb[148].mxu1 %v13690_v43  ;;  %13070 = vtanh.f32 %v11155_v47  ;;  %v12883_v43 = vld [vmem:[#allocation11 + $0x4c0] ss:$24 sps:$4 sm:$0xff]  }
 0x44a   :  { %v5046_v30 = vpop.f32.mrb[43].mxu1  ;;  %v15230_v16 = vpop.eup %13046  ;;  %v6810_v57 = vpack.c.bf16 %v13045_v36, %v13037_v17  ;;  %v11029_v62 = vadd.f32 %v3987_v4, %v14941_v7  ;;  %v13691_v17 = vld [vmem:[#allocation5 + $0x124] ss:$24 sps:$4 sm:$0xff]   ;;  %13072 = vtanh.f32 %v11028_v56  ;;  %6107 = vmatprep.mubr.bf16.mxu1 %v13692_v33  ;;  %5630 = vmatprep.subr.bf16.mxu0 %v12885_v41 }
 0x44b   :  { %17564 = vst [vmem:[#allocation67_spill] sm:$0xff] %v15230_v16  ;;  %v15233_v38 = vpop.eup %13048  ;;  %v11157_v28 = vadd.f32 %v5046_v30, %v14944_v8  ;;  %5351 = vmatprep.mubr.bf16.mxu0 %v13691_v17  ;;  %13074 = vtanh.f32 %v11156_v18  ;;  %v3991_v4 = vpop.f32.mrb[44].mxu0  ;;  %v12891_v41 = vld [vmem:[#allocation11 + $0x524] ss:$24 sps:$4 sm:$0xff]  }
 0x44c   :  { %v15238_v44 = vpop.eup %13050  ;;  %6969 = vmatprep.subr.bf16.mxu1 %v6810_v57  ;;  %v5050_v59 = vpop.f32.mrb[44].mxu1  ;;  %13076 = vtanh.f32 %v11029_v62  ;;  %v11030_v47 = vadd.f32 %v3991_v4, %v14935_v5  ;;  %5631 = vmatpush1.bf16.msra.mxu0 %v12883_v43  ;;  %v13696_v43 = vld [vmem:[#allocation5 + $0x254] ss:$24 sps:$4 sm:$0xff]  }
 0x44d   :  { %17565 = vst [vmem:[#allocation68_spill] sm:$0xff] %v15238_v44  ;;  %v13053_v34 = vpop.eup %13052  ;;  %6970 = vmatpush1.bf16.msra.mxu1 %v6809_v37  ;;  %v11158_v30 = vadd.f32 %v5050_v59, %v14938_v6  ;;  %v3993_v57 = vpop.f32.mrb[45].mxu0  ;;  %13078 = vtanh.f32 %v11157_v28 }
 0x44e   :  { %v15241_v36 = vpop.eup %13054  ;;  %v5052_v17 = vpop.f32.mrb[45].mxu1  ;;  %v11031_v37 = vadd.f32 %v3993_v57, %v14941_v7  ;;  %13080 = vtanh.f32 %v11030_v47  ;;  %v13694_v47 = vld [vmem:[#allocation5 + $0x220] ss:$24 sps:$4 sm:$0xff]  }
 0x44f   :  { %17566 = vst [vmem:[#allocation69_spill] sm:$0xff] %v15241_v36  ;;  %v13057_v24 = vpop.eup %13056  ;;  %v11159_v18 = vadd.f32 %v5052_v17, %v14944_v8  ;;  %v3995_v33 = vpop.f32.mrb[46].mxu0  ;;  %13082 = vtanh.f32 %v11158_v30  ;;  %v12888_v17 = vld [vmem:[#allocation11 + $0x4f4] ss:$24 sps:$4 sm:$0xff]  }
 0x450   :  { %v15245_v56 = vpop.eup %13058  ;;  %v5054_v22 = vpop.f32.mrb[46].mxu1  ;;  %v6815_v48 = vpack.c.bf16 %v13057_v24, %v15233_v38  ;;  %v11032_v62 = vadd.f32 %v3995_v33, %v14935_v5  ;;  %13084 = vtanh.f32 %v11031_v37  ;;  %v13693_v24 = vld [vmem:[#allocation5 + $0x120] ss:$24 sps:$4 sm:$0xff]   ;;  %5632 = vmatprep.subr.bf16.mxu0 %v12888_v17 }
 0x451   :  { %17567 = vst [vmem:[#allocation70_spill] sm:$0xff] %v15245_v56  ;;  %v13061_v49 = vpop.eup %13060  ;;  %v3997_v4 = vpop.f32.mrb[47].mxu0  ;;  %v11160_v28 = vadd.f32 %v5054_v22, %v14938_v6  ;;  %5352 = vmatmul.mubr.bf16.gmra.mrb[152].mxu0 %v13693_v24  ;;  %6108 = vmatmul.mubr.bf16.gmra.mrb[152].mxu1 %v13694_v47  ;;  %v12886_v33 = vld [vmem:[#allocation11 + $0x4f0] ss:$24 sps:$4 sm:$0xff]   ;;  %13086 = vtanh.f32 %v11159_v18 }
 0x452   :  { %v5056_v59 = vpop.f32.mrb[47].mxu1  ;;  %v15253_v54 = vpop.eup %13062  ;;  %v6816_v57 = vpack.c.bf16 %v13061_v49, %v13053_v34  ;;  %v11033_v38 = vadd.f32 %v3997_v4, %v14941_v7  ;;  %v13695_v49 = vld [vmem:[#allocation5 + $0x154] ss:$24 sps:$4 sm:$0xff]   ;;  %13088 = vtanh.f32 %v11032_v62  ;;  %6117 = vmatprep.mubr.bf16.mxu1 %v13696_v43  ;;  %5633 = vmatpush1.bf16.msra.mxu0 %v12886_v33 }
 0x453   :  { %17568 = vst [vmem:[#allocation71_spill] sm:$0xff] %v15253_v54  ;;  %v15256_v16 = vpop.eup %13064  ;;  %v11161_v22 = vadd.f32 %v5056_v59, %v14944_v8  ;;  %5361 = vmatprep.mubr.bf16.mxu0 %v13695_v49  ;;  %13090 = vtanh.f32 %v11160_v28  ;;  %v4001_v37 = vpop.f32.mrb[48].mxu0  ;;  %5634 = vmatprep.subr.bf16.mxu0 %v12891_v41 }
 0x454   :  { %v15261_v44 = vpop.eup %13066  ;;  %6971 = vmatprep.subr.bf16.mxu1 %v6816_v57  ;;  %v5060_v4 = vpop.f32.mrb[48].mxu1  ;;  %13092 = vtanh.f32 %v11033_v38  ;;  %v11034_v18 = vadd.f32 %v4001_v37, %v14935_v5 }
 0x455   :  { %17569 = vst [vmem:[#allocation72_spill] sm:$0xff] %v15261_v44  ;;  %v13069_v34 = vpop.eup %13068  ;;  %6972 = vmatpush1.bf16.msra.mxu1 %v6815_v48  ;;  %v11162_v59 = vadd.f32 %v5060_v4, %v14938_v6  ;;  %v4003_v57 = vpop.f32.mrb[49].mxu0  ;;  %13094 = vtanh.f32 %v11161_v22 }
 0x456   :  { %v15264_v30 = vpop.eup %13070  ;;  %v5062_v47 = vpop.f32.mrb[49].mxu1  ;;  %v11035_v48 = vadd.f32 %v4003_v57, %v14941_v7  ;;  %13096 = vtanh.f32 %v11034_v18  ;;  %v13698_v18 = vld [vmem:[#allocation5 + $0x250] ss:$24 sps:$4 sm:$0xff]  }
 0x457   :  { %17570 = vst [vmem:[#allocation73_spill] sm:$0xff] %v15264_v30  ;;  %v13073_v24 = vpop.eup %13072  ;;  %v11163_v62 = vadd.f32 %v5062_v47, %v14944_v8  ;;  %v4005_v28 = vpop.f32.mrb[50].mxu0  ;;  %13098 = vtanh.f32 %v11162_v59  ;;  %v12889_v47 = vld [vmem:[#allocation11 + $0x520] ss:$24 sps:$4 sm:$0xff]  }
 0x458   :  { %v15268_v49 = vpop.eup %13074  ;;  %v5064_v43 = vpop.f32.mrb[50].mxu1  ;;  %v6821_v17 = vpack.c.bf16 %v13073_v24, %v15256_v16  ;;  %v11036_v37 = vadd.f32 %v4005_v28, %v14935_v5  ;;  %13100 = vtanh.f32 %v11035_v48  ;;  %v13697_v24 = vld [vmem:[#allocation5 + $0x150] ss:$24 sps:$4 sm:$0xff]   ;;  %v13700_v48 = vld [vmem:[#allocation5 + $0x284] ss:$24 sps:$4 sm:$0xff]   ;;  %5635 = vmatpush1.bf16.msra.mxu0 %v12889_v47 }
 0x459   :  { %17571 = vst [vmem:[#allocation74_spill] sm:$0xff] %v15268_v49  ;;  %v13077_v38 = vpop.eup %13076  ;;  %v4007_v4 = vpop.f32.mrb[51].mxu0  ;;  %v11164_v22 = vadd.f32 %v5064_v43, %v14938_v6  ;;  %5362 = vmatmul.mubr.bf16.gmra.mrb[156].mxu0 %v13697_v24  ;;  %6118 = vmatmul.mubr.bf16.gmra.mrb[156].mxu1 %v13698_v18  ;;  %13102 = vtanh.f32 %v11163_v62 }
 0x45a   :  { %v5066_v56 = vpop.f32.mrb[51].mxu1  ;;  %v15276_v36 = vpop.eup %13078  ;;  %v6822_v57 = vpack.c.bf16 %v13077_v38, %v13069_v34  ;;  %v11037_v16 = vadd.f32 %v4007_v4, %v14941_v7  ;;  %v13699_v34 = vld [vmem:[#allocation5 + $0x184] ss:$24 sps:$4 sm:$0xff]   ;;  %13104 = vtanh.f32 %v11036_v37  ;;  %6127 = vmatprep.mubr.bf16.mxu1 %v13700_v48 }
 0x45b   :  { %17572 = vst [vmem:[#allocation75_spill] sm:$0xff] %v15276_v36  ;;  %v15279_v54 = vpop.eup %13080  ;;  %v11165_v59 = vadd.f32 %v5066_v56, %v14944_v8  ;;  %5371 = vmatprep.mubr.bf16.mxu0 %v13699_v34  ;;  %13106 = vtanh.f32 %v11164_v22  ;;  %v4011_v38 = vpop.f32.mrb[52].mxu0 }
 0x45c   :  { %v15284_v33 = vpop.eup %13082  ;;  %6973 = vmatprep.subr.bf16.mxu1 %v6822_v57  ;;  %v5070_v4 = vpop.f32.mrb[52].mxu1  ;;  %13108 = vtanh.f32 %v11037_v16  ;;  %v11038_v62 = vadd.f32 %v4011_v38, %v14935_v5 }
 0x45d   :  { %17573 = vst [vmem:[#allocation76_spill] sm:$0xff] %v15284_v33  ;;  %v13085_v41 = vpop.eup %13084  ;;  %6974 = vmatpush1.bf16.msra.mxu1 %v6821_v17  ;;  %v11166_v56 = vadd.f32 %v5070_v4, %v14938_v6  ;;  %v4013_v57 = vpop.f32.mrb[53].mxu0  ;;  %13110 = vtanh.f32 %v11165_v59  ;;  %v12894_v33 = vld [vmem:[#allocation11 + $0x554] ss:$24 sps:$4 sm:$0xff]  }
 0x45e   :  { %v15287_v43 = vpop.eup %13086  ;;  %v5072_v18 = vpop.f32.mrb[53].mxu1  ;;  %v11039_v17 = vadd.f32 %v4013_v57, %v14941_v7  ;;  %13112 = vtanh.f32 %v11038_v62  ;;  %v13702_v62 = vld [vmem:[#allocation5 + $0x280] ss:$24 sps:$4 sm:$0xff]   ;;  %5636 = vmatprep.subr.bf16.mxu0 %v12894_v33 }
 0x45f   :  { %17574 = vst [vmem:[#allocation77_spill] sm:$0xff] %v15287_v43  ;;  %v13089_v24 = vpop.eup %13088  ;;  %v11167_v37 = vadd.f32 %v5072_v18, %v14944_v8  ;;  %v4015_v48 = vpop.f32.mrb[54].mxu0  ;;  %13114 = vtanh.f32 %v11166_v56 }
 0x460   :  { %v15291_v34 = vpop.eup %13090  ;;  %v5074_v22 = vpop.f32.mrb[54].mxu1  ;;  %v6827_v28 = vpack.c.bf16 %v13089_v24, %v15279_v54  ;;  %v11040_v16 = vadd.f32 %v4015_v48, %v14935_v5  ;;  %13116 = vtanh.f32 %v11039_v17  ;;  %v13701_v24 = vld [vmem:[#allocation5 + $0x180] ss:$24 sps:$4 sm:$0xff]   ;;  %v13704_v17 = vld [vmem:[#allocation5 + $0x2b4] ss:$24 sps:$4 sm:$0xff]  }
 0x461   :  { %17575 = vst [vmem:[#allocation78_spill] sm:$0xff] %v15291_v34  ;;  %v13093_v47 = vpop.eup %13092  ;;  %v4017_v38 = vpop.f32.mrb[55].mxu0  ;;  %v11168_v59 = vadd.f32 %v5074_v22, %v14938_v6  ;;  %5372 = vmatmul.mubr.bf16.gmra.mrb[160].mxu0 %v13701_v24  ;;  %6128 = vmatmul.mubr.bf16.gmra.mrb[160].mxu1 %v13702_v62  ;;  %13118 = vtanh.f32 %v11167_v37  ;;  %v13703_v22 = vld [vmem:[#allocation5 + $0x1b4] ss:$24 sps:$4 sm:$0xff]  }
 0x462   :  { %v5076_v44 = vpop.f32.mrb[55].mxu1  ;;  %v15299_v49 = vpop.eup %13094  ;;  %v6828_v57 = vpack.c.bf16 %v13093_v47, %v13085_v41  ;;  %v11041_v54 = vadd.f32 %v4017_v38, %v14941_v7  ;;  %5381 = vmatprep.mubr.bf16.mxu0 %v13703_v22  ;;  %13120 = vtanh.f32 %v11040_v16  ;;  %6137 = vmatprep.mubr.bf16.mxu1 %v13704_v17 }
 0x463   :  { %17576 = vst [vmem:[#allocation79_spill] sm:$0xff] %v15299_v49  ;;  %v15302_v18 = vpop.eup %13096  ;;  %v11169_v56 = vadd.f32 %v5076_v44, %v14944_v8  ;;  %13122 = vtanh.f32 %v11168_v59  ;;  %v4021_v38 = vpop.f32.mrb[56].mxu0 }
 0x464   :  { %v15307_v30 = vpop.eup %13098  ;;  %6975 = vmatprep.subr.bf16.mxu1 %v6828_v57  ;;  %v5080_v24 = vpop.f32.mrb[56].mxu1  ;;  %13124 = vtanh.f32 %v11041_v54  ;;  %v11042_v4 = vadd.f32 %v4021_v38, %v14935_v5 }
 0x465   :  { %17577 = vst [vmem:[#allocation80_spill] sm:$0xff] %v15307_v30  ;;  %v13101_v41 = vpop.eup %13100  ;;  %6976 = vmatpush1.bf16.msra.mxu1 %v6827_v28  ;;  %v11170_v37 = vadd.f32 %v5080_v24, %v14938_v6  ;;  %v4023_v44 = vpop.f32.mrb[57].mxu0  ;;  %13126 = vtanh.f32 %v11169_v56 }
 0x466   :  { %v15310_v47 = vpop.eup %13102  ;;  %v5082_v57 = vpop.f32.mrb[57].mxu1  ;;  %v11043_v28 = vadd.f32 %v4023_v44, %v14941_v7  ;;  %13128 = vtanh.f32 %v11042_v4 }
 0x467   :  { %17578 = vst [vmem:[#allocation81_spill] sm:$0xff] %v15310_v47  ;;  %v13105_v62 = vpop.eup %13104  ;;  %v11171_v16 = vadd.f32 %v5082_v57, %v14944_v8  ;;  %v4025_v22 = vpop.f32.mrb[58].mxu0  ;;  %13130 = vtanh.f32 %v11170_v37  ;;  %v12892_v57 = vld [vmem:[#allocation11 + $0x550] ss:$24 sps:$4 sm:$0xff]  }
 0x468   :  { %v15314_v48 = vpop.eup %13106  ;;  %v5084_v17 = vpop.f32.mrb[58].mxu1  ;;  %v6833_v59 = vpack.c.bf16 %v13105_v62, %v15302_v18  ;;  %v11044_v54 = vadd.f32 %v4025_v22, %v14935_v5  ;;  %13132 = vtanh.f32 %v11043_v28  ;;  %v13705_v18 = vld [vmem:[#allocation5 + $0x1b0] ss:$24 sps:$4 sm:$0xff]   ;;  %5637 = vmatpush1.bf16.msra.mxu0 %v12892_v57 }
 0x469   :  { %17579 = vst [vmem:[#allocation82_spill] sm:$0xff] %v15314_v48  ;;  %v13109_v34 = vpop.eup %13108  ;;  %v4027_v38 = vpop.f32.mrb[59].mxu0  ;;  %v11172_v56 = vadd.f32 %v5084_v17, %v14938_v6  ;;  %5382 = vmatmul.mubr.bf16.gmra.mrb[164].mxu0 %v13705_v18  ;;  %v13706_v62 = vld [vmem:[#allocation5 + $0x2b0] ss:$24 sps:$4 sm:$0xff]   ;;  %13134 = vtanh.f32 %v11171_v16 }
 0x46a   :  { %v5086_v24 = vpop.f32.mrb[59].mxu1  ;;  %v15322_v49 = vpop.eup %13110  ;;  %v6834_v44 = vpack.c.bf16 %v13109_v34, %v13101_v41  ;;  %v11045_v4 = vadd.f32 %v4027_v38, %v14941_v7  ;;  %6138 = vmatmul.mubr.bf16.gmra.mrb[164].mxu1 %v13706_v62  ;;  %v13707_v34 = vld [vmem:[#allocation5 + $0x1e4] ss:$24 sps:$4 sm:$0xff]   ;;  %13136 = vtanh.f32 %v11044_v54 }
 0x46b   :  { %17580 = vst [vmem:[#allocation83_spill] sm:$0xff] %v15322_v49  ;;  %v15325_v36 = vpop.eup %13112  ;;  %v11173_v37 = vadd.f32 %v5086_v24, %v14944_v8  ;;  %5391 = vmatprep.mubr.bf16.mxu0 %v13707_v34  ;;  %v13708_v41 = vld [vmem:[#allocation5 + $0x2e4] ss:$24 sps:$4 sm:$0xff]   ;;  %13138 = vtanh.f32 %v11172_v56  ;;  %v4031_v17 = vpop.f32.mrb[60].mxu0 }
 0x46c   :  { %v15330_v43 = vpop.eup %13114  ;;  %6977 = vmatprep.subr.bf16.mxu1 %v6834_v44  ;;  %6147 = vmatprep.mubr.bf16.mxu1 %v13708_v41  ;;  %v5090_v38 = vpop.f32.mrb[60].mxu1  ;;  %13140 = vtanh.f32 %v11045_v4  ;;  %v11046_v16 = vadd.f32 %v4031_v17, %v14935_v5 }
 0x46d   :  { %17581 = vst [vmem:[#allocation84_spill] sm:$0xff] %v15330_v43  ;;  %v13117_v33 = vpop.eup %13116  ;;  %6978 = vmatpush1.bf16.msra.mxu1 %v6833_v59  ;;  %v11174_v24 = vadd.f32 %v5090_v38, %v14938_v6  ;;  %v4033_v44 = vpop.f32.mrb[61].mxu0  ;;  %13142 = vtanh.f32 %v11173_v37  ;;  %v12897_v43 = vld [vmem:[#allocation11 + $0x584] ss:$24 sps:$4 sm:$0xff]  }
 0x46e   :  { %v15333_v28 = vpop.eup %13118  ;;  %v5092_v62 = vpop.f32.mrb[61].mxu1  ;;  %v11047_v59 = vadd.f32 %v4033_v44, %v14941_v7  ;;  %13144 = vtanh.f32 %v11046_v16  ;;  %v13710_v16 = vld [vmem:[#allocation5 + $0x2e0] ss:$24 sps:$4 sm:$0xff]   ;;  %5638 = vmatprep.subr.bf16.mxu0 %v12897_v43 }
 0x46f   :  { %17582 = vst [vmem:[#allocation85_spill] sm:$0xff] %v15333_v28  ;;  %v13121_v18 = vpop.eup %13120  ;;  %v11175_v54 = vadd.f32 %v5092_v62, %v14944_v8  ;;  %v4035_v41 = vpop.f32.mrb[62].mxu0  ;;  %13146 = vtanh.f32 %v11174_v24 }
 0x470   :  { %v15337_v34 = vpop.eup %13122  ;;  %v5094_v56 = vpop.f32.mrb[62].mxu1  ;;  %v6839_v22 = vpack.c.bf16 %v13121_v18, %v15325_v36  ;;  %v11048_v4 = vadd.f32 %v4035_v41, %v14935_v5  ;;  %13148 = vtanh.f32 %v11047_v59  ;;  %v13709_v18 = vld [vmem:[#allocation5 + $0x1e0] ss:$24 sps:$4 sm:$0xff]   ;;  %v13712_v59 = vld [vmem:[#allocation5 + $0x314] ss:$24 sps:$4 sm:$0xff]  }
 0x471   :  { %17583 = vst [vmem:[#allocation86_spill] sm:$0xff] %v15337_v34  ;;  %v13125_v57 = vpop.eup %13124  ;;  %v4037_v17 = vpop.f32.mrb[63].mxu0  ;;  %v11176_v37 = vadd.f32 %v5094_v56, %v14938_v6  ;;  %5392 = vmatmul.mubr.bf16.gmra.mrb[168].mxu0 %v13709_v18  ;;  %13150 = vtanh.f32 %v11175_v54  ;;  %v13711_v56 = vld [vmem:[#allocation5 + $0x214] ss:$24 sps:$4 sm:$0xff]  }
 0x472   :  { %v5096_v30 = vpop.f32.mrb[63].mxu1  ;;  %v15345_v48 = vpop.eup %13126  ;;  %v6840_v44 = vpack.c.bf16 %v13125_v57, %v13117_v33  ;;  %v11049_v36 = vadd.f32 %v4037_v17, %v14941_v7  ;;  %6148 = vmatmul.mubr.bf16.gmra.mrb[168].mxu1 %v13710_v16  ;;  %5401 = vmatprep.mubr.bf16.mxu0 %v13711_v56  ;;  %13152 = vtanh.f32 %v11048_v4 }
 0x473   :  { %17584 = vst [vmem:[#allocation87_spill] sm:$0xff] %v15345_v48  ;;  %v15348_v62 = vpop.eup %13128  ;;  %v11177_v24 = vadd.f32 %v5096_v30, %v14944_v8  ;;  %6157 = vmatprep.mubr.bf16.mxu1 %v13712_v59  ;;  %13154 = vtanh.f32 %v11176_v37  ;;  %v4041_v17 = vpop.f32.mrb[64].mxu0 }
 0x474   :  { %v15353_v47 = vpop.eup %13130  ;;  %6979 = vmatprep.subr.bf16.mxu1 %v6840_v44  ;;  %v5100_v18 = vpop.f32.mrb[64].mxu1  ;;  %13156 = vtanh.f32 %v11049_v36  ;;  %v11050_v38 = vadd.f32 %v4041_v17, %v14935_v5 }
 0x475   :  { %17585 = vst [vmem:[#allocation88_spill] sm:$0xff] %v15353_v47  ;;  %v13133_v33 = vpop.eup %13132  ;;  %6980 = vmatpush1.bf16.msra.mxu1 %v6839_v22  ;;  %v11178_v54 = vadd.f32 %v5100_v18, %v14938_v6  ;;  %v4043_v30 = vpop.f32.mrb[65].mxu0  ;;  %13158 = vtanh.f32 %v11177_v24 }
 0x476   :  { %v15356_v57 = vpop.eup %13134  ;;  %v5102_v44 = vpop.f32.mrb[65].mxu1  ;;  %v11051_v22 = vadd.f32 %v4043_v30, %v14941_v7  ;;  %13160 = vtanh.f32 %v11050_v38 }
 0x477   :  { %17586 = vst [vmem:[#allocation89_spill] sm:$0xff] %v15356_v57  ;;  %v13137_v16 = vpop.eup %13136  ;;  %v11179_v4 = vadd.f32 %v5102_v44, %v14944_v8  ;;  %v4045_v56 = vpop.f32.mrb[66].mxu0  ;;  %13162 = vtanh.f32 %v11178_v54  ;;  %v12895_v44 = vld [vmem:[#allocation11 + $0x580] ss:$24 sps:$4 sm:$0xff]   ;;  %v13715_v54 = vld [vmem:[#allocation5 + $0x244] ss:$24 sps:$4 sm:$0xff]  }
 0x478   :  { %v15360_v41 = vpop.eup %13138  ;;  %v5104_v59 = vpop.f32.mrb[66].mxu1  ;;  %v6845_v37 = vpack.c.bf16 %v13137_v16, %v15348_v62  ;;  %v11052_v36 = vadd.f32 %v4045_v56, %v14935_v5  ;;  %13164 = vtanh.f32 %v11051_v22  ;;  %v13713_v62 = vld [vmem:[#allocation5 + $0x210] ss:$24 sps:$4 sm:$0xff]   ;;  %5639 = vmatpush1.bf16.msra.mxu0 %v12895_v44  ;;  %v12900_v57 = vld [vmem:[#allocation11 + $0x5b4] ss:$24 sps:$4 sm:$0xff]  }
 0x479   :  { %17587 = vst [vmem:[#allocation90_spill] sm:$0xff] %v15360_v41  ;;  %v13141_v34 = vpop.eup %13140  ;;  %v4047_v17 = vpop.f32.mrb[67].mxu0  ;;  %v11180_v24 = vadd.f32 %v5104_v59, %v14938_v6  ;;  %5402 = vmatmul.mubr.bf16.gmra.mrb[172].mxu0 %v13713_v62  ;;  %v13714_v16 = vld [vmem:[#allocation5 + $0x310] ss:$24 sps:$4 sm:$0xff]   ;;  %13166 = vtanh.f32 %v11179_v4  ;;  %5640 = vmatprep.subr.bf16.mxu0 %v12900_v57 }
 0x47a   :  { %v5106_v18 = vpop.f32.mrb[67].mxu1  ;;  %v15368_v48 = vpop.eup %13142  ;;  %v6846_v30 = vpack.c.bf16 %v13141_v34, %v13133_v33  ;;  %v11053_v38 = vadd.f32 %v4047_v17, %v14941_v7  ;;  %6158 = vmatmul.mubr.bf16.gmra.mrb[172].mxu1 %v13714_v16  ;;  %5411 = vmatprep.mubr.bf16.mxu0 %v13715_v54  ;;  %13168 = vtanh.f32 %v11052_v36  ;;  %v13716_v33 = vld [vmem:[#allocation5 + $0x344] ss:$24 sps:$4 sm:$0xff]  }
 0x47b   :  { %17588 = vst [vmem:[#allocation91_spill] sm:$0xff] %v15368_v48  ;;  %v15371_v49 = vpop.eup %13144  ;;  %v11181_v28 = vadd.f32 %v5106_v18, %v14944_v8  ;;  %6167 = vmatprep.mubr.bf16.mxu1 %v13716_v33  ;;  %13170 = vtanh.f32 %v11180_v24  ;;  %v4051_v59 = vpop.f32.mrb[68].mxu0 }
 0x47c   :  { %v15374_v56 = vpop.eup %13146  ;;  %6981 = vmatprep.subr.bf16.mxu1 %v6846_v30  ;;  %v5110_v17 = vpop.f32.mrb[68].mxu1  ;;  %13172 = vtanh.f32 %v11053_v38  ;;  %v11054_v18 = vadd.f32 %v4051_v59, %v14935_v5 }
 0x47d   :  { %17589 = vst [vmem:[#allocation92_spill] sm:$0xff] %v15374_v56  ;;  %v13149_v34 = vpop.eup %13148  ;;  %6982 = vmatpush1.bf16.msra.mxu1 %v6845_v37  ;;  %v11182_v30 = vadd.f32 %v5110_v17, %v14938_v6  ;;  %v4053_v62 = vpop.f32.mrb[69].mxu0  ;;  %13174 = vtanh.f32 %v11181_v28 }
 0x47e   :  { %v15379_v22 = vpop.eup %13150  ;;  %v5112_v16 = vpop.f32.mrb[69].mxu1  ;;  %v11055_v37 = vadd.f32 %v4053_v62, %v14941_v7  ;;  %13176 = vtanh.f32 %v11054_v18  ;;  %v13718_v18 = vld [vmem:[#allocation5 + $0x340] ss:$24 sps:$4 sm:$0xff]  }
 0x47f   :  { %17590 = vst [vmem:[#allocation93_spill] sm:$0xff] %v15379_v22  ;;  %v13153_v4 = vpop.eup %13152  ;;  %v11183_v36 = vadd.f32 %v5112_v16, %v14944_v8  ;;  %v4055_v33 = vpop.f32.mrb[70].mxu0  ;;  %13178 = vtanh.f32 %v11182_v30 }
 0x480   :  { %v15383_v54 = vpop.eup %13154  ;;  %v5114_v24 = vpop.f32.mrb[70].mxu1  ;;  %v6851_v43 = vpack.c.bf16 %v13153_v4, %v15371_v49  ;;  %v11056_v38 = vadd.f32 %v4055_v33, %v14935_v5  ;;  %13180 = vtanh.f32 %v11055_v37  ;;  %v13717_v4 = vld [vmem:[#allocation5 + $0x240] ss:$24 sps:$4 sm:$0xff]  }
 0x481   :  { %17591 = vst [vmem:[#allocation94_spill] sm:$0xff] %v15383_v54  ;;  %v13157_v44 = vpop.eup %13156  ;;  %v4057_v59 = vpop.f32.mrb[71].mxu0  ;;  %v11184_v28 = vadd.f32 %v5114_v24, %v14938_v6  ;;  %5412 = vmatmul.mubr.bf16.gmra.mrb[176].mxu0 %v13717_v4  ;;  %v12898_v33 = vld [vmem:[#allocation11 + $0x5b0] ss:$24 sps:$4 sm:$0xff]   ;;  %13182 = vtanh.f32 %v11183_v36  ;;  %v13720_v24 = vld [vmem:[#allocation5 + $0x374] ss:$24 sps:$4 sm:$0xff]  }
 0x482   :  { %v5116_v47 = vpop.f32.mrb[71].mxu1  ;;  %v15391_v41 = vpop.eup %13158  ;;  %v6852_v62 = vpack.c.bf16 %v13157_v44, %v13149_v34  ;;  %v11057_v49 = vadd.f32 %v4057_v59, %v14941_v7  ;;  %6168 = vmatmul.mubr.bf16.gmra.mrb[176].mxu1 %v13718_v18  ;;  %v13719_v34 = vld [vmem:[#allocation5 + $0x274] ss:$24 sps:$4 sm:$0xff]   ;;  %13184 = vtanh.f32 %v11056_v38  ;;  %5641 = vmatpush1.bf16.msra.mxu0 %v12898_v33 }
 0x483   :  { %17592 = vst [vmem:[#allocation95_spill] sm:$0xff] %v15391_v41  ;;  %v15394_v16 = vpop.eup %13160  ;;  %v11185_v30 = vadd.f32 %v5116_v47, %v14944_v8  ;;  %5421 = vmatprep.mubr.bf16.mxu0 %v13719_v34  ;;  %6177 = vmatprep.mubr.bf16.mxu1 %v13720_v24  ;;  %13186 = vtanh.f32 %v11184_v28  ;;  %v4061_v59 = vpop.f32.mrb[72].mxu0  ;;  %v13721_v41 = vld [vmem:[#allocation5 + $0x270] ss:$24 sps:$4 sm:$0xff]  }
 0x484   :  { %v15399_v56 = vpop.eup %13162  ;;  %6983 = vmatprep.subr.bf16.mxu1 %v6852_v62  ;;  %v5120_v4 = vpop.f32.mrb[72].mxu1  ;;  %13188 = vtanh.f32 %v11057_v49  ;;  %v11058_v36 = vadd.f32 %v4061_v59, %v14935_v5  ;;  %5642 = vmatprep.subr.bf16.mxu0 %v12903_v35 }
 0x485   :  { %17593 = vst [vmem:[#allocation96_spill] sm:$0xff] %v15399_v56  ;;  %v13165_v37 = vpop.eup %13164  ;;  %6984 = vmatpush1.bf16.msra.mxu1 %v6851_v43  ;;  %v11186_v47 = vadd.f32 %v5120_v4, %v14938_v6  ;;  %v4063_v62 = vpop.f32.mrb[73].mxu0  ;;  %13190 = vtanh.f32 %v11185_v30  ;;  %v13725_v56 = vld [vmem:[#allocation5 + $0x2a0] ss:$24 sps:$4 sm:$0xff]  }
 0x486   :  { %v15402_v44 = vpop.eup %13166  ;;  %v5122_v34 = vpop.f32.mrb[73].mxu1  ;;  %v11059_v43 = vadd.f32 %v4063_v62, %v14941_v7  ;;  %13192 = vtanh.f32 %v11058_v36  ;;  %v13722_v36 = vld [vmem:[#allocation5 + $0x370] ss:$24 sps:$4 sm:$0xff]   ;;  %5643 = vmatpush1.bf16.msra.mxu0 %v12901_v26 }
 0x487   :  { %17594 = vst [vmem:[#allocation97_spill] sm:$0xff] %v15402_v44  ;;  %v15404_v18 = vpop.eup %13168  ;;  %v11187_v28 = vadd.f32 %v5122_v34, %v14944_v8  ;;  %v4065_v24 = vpop.f32.mrb[74].mxu0  ;;  %13194 = vtanh.f32 %v11186_v47 }
 0x488   :  { %v15408_v38 = vpop.eup %13170  ;;  %v5124_v17 = vpop.f32.mrb[74].mxu1  ;;  %v11060_v59 = vadd.f32 %v4065_v24, %v14935_v5  ;;  %13196 = vtanh.f32 %v11059_v43  ;;  %v13724_v43 = vld [vmem:[#allocation5 + $0x3a4] ss:$24 sps:$4 sm:$0xff]  }
 0x489   :  { %17595 = vst [vmem:[#allocation98_spill] sm:$0xff] %v15408_v38  ;;  %v13173_v49 = vpop.eup %13172  ;;  %v4067_v4 = vpop.f32.mrb[75].mxu0  ;;  %v11188_v30 = vadd.f32 %v5124_v17, %v14938_v6  ;;  %5422 = vmatmul.mubr.bf16.gmra.mrb[180].mxu0 %v13721_v41  ;;  %13198 = vtanh.f32 %v11187_v28  ;;  %v13723_v17 = vld [vmem:[#allocation5 + $0x2a4] ss:$24 sps:$4 sm:$0xff]  }
 0x48a   :  { %v5126_v54 = vpop.f32.mrb[75].mxu1  ;;  %v15417_v22 = vpop.eup %13174  ;;  %v6858_v62 = vpack.c.bf16 %v13173_v49, %v13165_v37  ;;  %v11061_v57 = vadd.f32 %v4067_v4, %v14941_v7  ;;  %6178 = vmatmul.mubr.bf16.gmra.mrb[180].mxu1 %v13722_v36  ;;  %5431 = vmatprep.mubr.bf16.mxu0 %v13723_v17  ;;  %13200 = vtanh.f32 %v11060_v59 }
 0x48b   :  { %17596 = vst [vmem:[#allocation99_spill] sm:$0xff] %v15417_v22  ;;  %v15420_v34 = vpop.eup %13176  ;;  %v11189_v47 = vadd.f32 %v5126_v54, %v14944_v8  ;;  %6187 = vmatprep.mubr.bf16.mxu1 %v13724_v43  ;;  %13202 = vtanh.f32 %v11188_v30  ;;  %v4071_v41 = vpop.f32.mrb[76].mxu0 }
 0x48c   :  { %v15425_v48 = vpop.eup %13178  ;;  %6994 = vmatprep.subr.bf16.mxu1 %v6858_v62  ;;  %v5130_v4 = vpop.f32.mrb[76].mxu1  ;;  %13204 = vtanh.f32 %v11061_v57  ;;  %v11062_v28 = vadd.f32 %v4071_v41, %v14935_v5 }
 0x48d   :  { %17597 = vst [vmem:[#allocation100_spill] sm:$0xff] %v15425_v48  ;;  %v15428_v37 = vpop.eup %13180  ;;  %v11190_v54 = vadd.f32 %v5130_v4, %v14938_v6  ;;  %v4073_v62 = vpop.f32.mrb[77].mxu0  ;;  %13206 = vtanh.f32 %v11189_v47  ;;  %v13728_v48 = vld [vmem:[#allocation5 + $0x3d4] ss:$24 sps:$4 sm:$0xff]  }
 0x48e   :  { %v15430_v49 = vpop.eup %13182  ;;  %v5132_v33 = vpop.f32.mrb[77].mxu1  ;;  %v11063_v59 = vadd.f32 %v4073_v62, %v14941_v7  ;;  %13208 = vtanh.f32 %v11062_v28  ;;  %v13727_v62 = vld [vmem:[#allocation5 + $0x2d4] ss:$24 sps:$4 sm:$0xff]  }
 0x48f   :  { %17598 = vst [vmem:[#allocation101_spill] sm:$0xff] %v15430_v49  ;;  %v15432_v36 = vpop.eup %13184  ;;  %v11191_v43 = vadd.f32 %v5132_v33, %v14944_v8  ;;  %v4075_v24 = vpop.f32.mrb[78].mxu0  ;;  %13210 = vtanh.f32 %v11190_v54 }
 0x490   :  { %v15436_v17 = vpop.eup %13186  ;;  %v5134_v30 = vpop.f32.mrb[78].mxu1  ;;  %v11064_v57 = vadd.f32 %v4075_v24, %v14935_v5  ;;  %13212 = vtanh.f32 %v11063_v59  ;;  %v13726_v24 = vld [vmem:[#allocation5 + $0x3a0] ss:$24 sps:$4 sm:$0xff]  }
 0x491   :  { %17599 = vst [vmem:[#allocation102_spill] sm:$0xff] %v15436_v17  ;;  %v15442_v38 = vpop.eup %13188  ;;  %v4077_v41 = vpop.f32.mrb[79].mxu0  ;;  %v11192_v33 = vadd.f32 %v5134_v30, %v14938_v6  ;;  %5432 = vmatmul.mubr.bf16.gmra.mrb[184].mxu0 %v13725_v56  ;;  %13214 = vtanh.f32 %v11191_v43 }
 0x492   :  { %v5136_v4 = vpop.f32.mrb[79].mxu1  ;;  %v15447_v47 = vpop.eup %13190  ;;  %v11065_v28 = vadd.f32 %v4077_v41, %v14941_v7  ;;  %6188 = vmatmul.mubr.bf16.gmra.mrb[184].mxu1 %v13726_v24  ;;  %5441 = vmatprep.mubr.bf16.mxu0 %v13727_v62  ;;  %13216 = vtanh.f32 %v11064_v57 }
 0x493   :  { %17600 = vst [vmem:[#allocation103_spill] sm:$0xff] %v15447_v47  ;;  %v15452_v22 = vpop.eup %13192  ;;  %v11193_v30 = vadd.f32 %v5136_v4, %v14944_v8  ;;  %6197 = vmatprep.mubr.bf16.mxu1 %v13728_v48  ;;  %13218 = vtanh.f32 %v11192_v33  ;;  %v4081_v41 = vpop.f32.mrb[80].mxu0  ;;  %v13729_v48 = vld [vmem:[#allocation11 + $0x614] ss:$24 sps:$4 sm:$0xff]  }
 0x494   :  { %v15457_v54 = vpop.eup %13194  ;;  %v5140_v24 = vpop.f32.mrb[80].mxu1  ;;  %13220 = vtanh.f32 %v11065_v28  ;;  %v11066_v43 = vadd.f32 %v4081_v41, %v14935_v5  ;;  %5965 = vmatprep.subr.bf16.mxu0 %v13729_v48  ;;  %v13730_v28 = vld [vmem:[#allocation5 + $0x2d0] ss:$24 sps:$4 sm:$0xff]  }
 0x495   :  { %17601 = vst [vmem:[#allocation104_spill] sm:$0xff] %v15457_v54  ;;  %v15460_v59 = vpop.eup %13196  ;;  %v11194_v4 = vadd.f32 %v5140_v24, %v14938_v6  ;;  %v4083_v62 = vpop.f32.mrb[81].mxu0  ;;  %13222 = vtanh.f32 %v11193_v30 }
 0x496   :  { %v15462_v56 = vpop.eup %13198  ;;  %v5142_v17 = vpop.f32.mrb[81].mxu1  ;;  %v11067_v35 = vadd.f32 %v4083_v62, %v14941_v7  ;;  %13224 = vtanh.f32 %v11066_v43  ;;  %v13733_v62 = vld [vmem:[#allocation5 + $0x404] ss:$24 sps:$4 sm:$0xff]  }
 0x497   :  { %17602 = vst [vmem:[#allocation105_spill] sm:$0xff] %v15462_v56  ;;  %v15464_v44 = vpop.eup %13200  ;;  %v11195_v57 = vadd.f32 %v5142_v17, %v14944_v8  ;;  %v4085_v33 = vpop.f32.mrb[82].mxu0  ;;  %13226 = vtanh.f32 %v11194_v4 }
 0x498   :  { %v15468_v49 = vpop.eup %13202  ;;  %v5144_v26 = vpop.f32.mrb[82].mxu1  ;;  %v11068_v41 = vadd.f32 %v4085_v33, %v14935_v5  ;;  %13228 = vtanh.f32 %v11067_v35  ;;  %v13731_v33 = vld [vmem:[#allocation5 + $0x3d0] ss:$24 sps:$4 sm:$0xff]  }
 0x499   :  { %17603 = vst [vmem:[#allocation106_spill] sm:$0xff] %v15468_v49  ;;  %v15474_v47 = vpop.eup %13204  ;;  %v4087_v24 = vpop.f32.mrb[83].mxu0  ;;  %v11196_v17 = vadd.f32 %v5144_v26, %v14938_v6  ;;  %5442 = vmatmul.mubr.bf16.gmra.mrb[188].mxu0 %v13730_v28  ;;  %13230 = vtanh.f32 %v11195_v57  ;;  %v13732_v26 = vld [vmem:[#allocation5 + $0x304] ss:$24 sps:$4 sm:$0xff]  }
 0x49a   :  { %v5146_v55 = vpop.f32.mrb[83].mxu1  ;;  %v15479_v30 = vpop.eup %13206  ;;  %v11069_v43 = vadd.f32 %v4087_v24, %v14941_v7  ;;  %6198 = vmatmul.mubr.bf16.gmra.mrb[188].mxu1 %v13731_v33  ;;  %5451 = vmatprep.mubr.bf16.mxu0 %v13732_v26  ;;  %13232 = vtanh.f32 %v11068_v41 }
 0x49b   :  { %17604 = vst [vmem:[#allocation107_spill] sm:$0xff] %v15479_v30  ;;  %v15484_v39 = vpop.eup %13208  ;;  %v11197_v4 = vadd.f32 %v5146_v55, %v14944_v8  ;;  %6207 = vmatprep.mubr.bf16.mxu1 %v13733_v62  ;;  %13234 = vtanh.f32 %v11196_v17  ;;  %v4091_v28 = vpop.f32.mrb[84].mxu0 }
 0x49c   :  { %v15489_v54 = vpop.eup %13210  ;;  %v5150_v24 = vpop.f32.mrb[84].mxu1  ;;  %13236 = vtanh.f32 %v11069_v43  ;;  %v11070_v48 = vadd.f32 %v4091_v28, %v14935_v5 }
 0x49d   :  { %17605 = vst [vmem:[#allocation108_spill] sm:$0xff] %v15489_v54  ;;  %v15492_v49 = vpop.eup %13212  ;;  %v11198_v57 = vadd.f32 %v5150_v24, %v14938_v6  ;;  %v4093_v55 = vpop.f32.mrb[85].mxu0  ;;  %13238 = vtanh.f32 %v11197_v4 }
 0x49e   :  { %v15494_v35 = vpop.eup %13214  ;;  %v5152_v56 = vpop.f32.mrb[85].mxu1  ;;  %v11071_v62 = vadd.f32 %v4093_v55, %v14941_v7  ;;  %13240 = vtanh.f32 %v11070_v48  ;;  %v13737_v55 = vld [vmem:[#allocation5 + $0x434] ss:$24 sps:$4 sm:$0xff]  }
 0x49f   :  { %17606 = vst [vmem:[#allocation109_spill] sm:$0xff] %v15494_v35  ;;  %v15496_v33 = vpop.eup %13216  ;;  %v11199_v41 = vadd.f32 %v5152_v56, %v14944_v8  ;;  %v4095_v30 = vpop.f32.mrb[86].mxu0  ;;  %13242 = vtanh.f32 %v11198_v57 }
 0x4a0   :  { %v15500_v26 = vpop.eup %13218  ;;  %v5154_v17 = vpop.f32.mrb[86].mxu1  ;;  %v11072_v43 = vadd.f32 %v4095_v30, %v14935_v5  ;;  %13244 = vtanh.f32 %v11071_v62  ;;  %v13735_v30 = vld [vmem:[#allocation5 + $0x400] ss:$24 sps:$4 sm:$0xff]  }
 0x4a1   :  { %17607 = vst [vmem:[#allocation110_spill] sm:$0xff] %v15500_v26  ;;  %v15506_v45 = vpop.eup %13220  ;;  %v4097_v28 = vpop.f32.mrb[87].mxu0  ;;  %v11200_v56 = vadd.f32 %v5154_v17, %v14938_v6  ;;  %5452 = vmatmul.mubr.bf16.gmra.mrb[192].mxu0 %v13734_v12  ;;  %13246 = vtanh.f32 %v11199_v41  ;;  %v13736_v17 = vld [vmem:[#allocation5 + $0x334] ss:$24 sps:$4 sm:$0xff]  }
 0x4a2   :  { %v5156_v24 = vpop.f32.mrb[87].mxu1  ;;  %v15511_v4 = vpop.eup %13222  ;;  %v11073_v48 = vadd.f32 %v4097_v28, %v14941_v7  ;;  %6208 = vmatmul.mubr.bf16.gmra.mrb[192].mxu1 %v13735_v30  ;;  %5461 = vmatprep.mubr.bf16.mxu0 %v13736_v17  ;;  %13248 = vtanh.f32 %v11072_v43 }
 0x4a3   :  { %17608 = vst [vmem:[#allocation111_spill] sm:$0xff] %v15511_v4  ;;  %v15516_v27 = vpop.eup %13224  ;;  %v11201_v57 = vadd.f32 %v5156_v24, %v14944_v8  ;;  %6217 = vmatprep.mubr.bf16.mxu1 %v13737_v55  ;;  %13250 = vtanh.f32 %v11200_v56  ;;  %v4101_v12 = vpop.f32.mrb[88].mxu0 }
 0x4a4   :  { %v15521_v54 = vpop.eup %13226  ;;  %v5160_v28 = vpop.f32.mrb[88].mxu1  ;;  %13252 = vtanh.f32 %v11073_v48  ;;  %v11074_v51 = vadd.f32 %v4101_v12, %v14935_v5 }
 0x4a5   :  { %17609 = vst [vmem:[#allocation112_spill] sm:$0xff] %v15521_v54  ;;  %v15524_v26 = vpop.eup %13228  ;;  %v11202_v41 = vadd.f32 %v5160_v28, %v14938_v6  ;;  %v4103_v24 = vpop.f32.mrb[89].mxu0  ;;  %13254 = vtanh.f32 %v11201_v57 }
 0x4a6   :  { %v15526_v62 = vpop.eup %13230  ;;  %v5162_v35 = vpop.f32.mrb[89].mxu1  ;;  %v11075_v55 = vadd.f32 %v4103_v24, %v14941_v7  ;;  %13256 = vtanh.f32 %v11074_v51  ;;  %v13741_v24 = vld [vmem:[#allocation5 + $0x464] ss:$24 sps:$4 sm:$0xff]  }
 0x4a7   :  { %17610 = vst [vmem:[#allocation113_spill] sm:$0xff] %v15526_v62  ;;  %v15528_v30 = vpop.eup %13232  ;;  %v11203_v43 = vadd.f32 %v5162_v35, %v14944_v8  ;;  %v4105_v4 = vpop.f32.mrb[90].mxu0  ;;  %13258 = vtanh.f32 %v11202_v41 }
 0x4a8   :  { %v15532_v17 = vpop.eup %13234  ;;  %v5164_v56 = vpop.f32.mrb[90].mxu1  ;;  %v11076_v48 = vadd.f32 %v4105_v4, %v14935_v5  ;;  %13260 = vtanh.f32 %v11075_v55  ;;  %v13739_v4 = vld [vmem:[#allocation5 + $0x430] ss:$24 sps:$4 sm:$0xff]  }
 0x4a9   :  { %17611 = vst [vmem:[#allocation114_spill] sm:$0xff] %v15532_v17  ;;  %v15538_v40 = vpop.eup %13236  ;;  %v4107_v12 = vpop.f32.mrb[91].mxu0  ;;  %v11204_v35 = vadd.f32 %v5164_v56, %v14938_v6  ;;  %5462 = vmatmul.mubr.bf16.gmra.mrb[196].mxu0 %v13738_v21  ;;  %13262 = vtanh.f32 %v11203_v43  ;;  %v13740_v56 = vld [vmem:[#allocation5 + $0x364] ss:$24 sps:$4 sm:$0xff]  }
 0x4aa   :  { %v5166_v28 = vpop.f32.mrb[91].mxu1  ;;  %v15543_v57 = vpop.eup %13238  ;;  %v11077_v51 = vadd.f32 %v4107_v12, %v14941_v7  ;;  %6218 = vmatmul.mubr.bf16.gmra.mrb[196].mxu1 %v13739_v4  ;;  %5471 = vmatprep.mubr.bf16.mxu0 %v13740_v56  ;;  %13264 = vtanh.f32 %v11076_v48 }
 0x4ab   :  { %17612 = vst [vmem:[#allocation115_spill] sm:$0xff] %v15543_v57  ;;  %v15548_v11 = vpop.eup %13240  ;;  %v11205_v41 = vadd.f32 %v5166_v28, %v14944_v8  ;;  %6227 = vmatprep.mubr.bf16.mxu1 %v13741_v24  ;;  %13266 = vtanh.f32 %v11204_v35  ;;  %v4111_v21 = vpop.f32.mrb[92].mxu0 }
 0x4ac   :  { %v15553_v54 = vpop.eup %13242  ;;  %v5170_v12 = vpop.f32.mrb[92].mxu1  ;;  %13268 = vtanh.f32 %v11077_v51  ;;  %v11078_v13 = vadd.f32 %v4111_v21, %v14935_v5 }
 0x4ad   :  { %17613 = vst [vmem:[#allocation116_spill] sm:$0xff] %v15553_v54  ;;  %v15556_v17 = vpop.eup %13244  ;;  %v11206_v43 = vadd.f32 %v5170_v12, %v14938_v6  ;;  %v4113_v28 = vpop.f32.mrb[93].mxu0  ;;  %13270 = vtanh.f32 %v11205_v41 }
 0x4ae   :  { %v15558_v55 = vpop.eup %13246  ;;  %v5172_v62 = vpop.f32.mrb[93].mxu1  ;;  %v11079_v24 = vadd.f32 %v4113_v28, %v14941_v7  ;;  %13272 = vtanh.f32 %v11078_v13  ;;  %v13745_v28 = vld [vmem:[#allocation5 + $0x494] ss:$24 sps:$4 sm:$0xff]  }
 0x4af   :  { %17614 = vst [vmem:[#allocation117_spill] sm:$0xff] %v15558_v55  ;;  %v15560_v4 = vpop.eup %13248  ;;  %v11207_v48 = vadd.f32 %v5172_v62, %v14944_v8  ;;  %v4115_v57 = vpop.f32.mrb[94].mxu0  ;;  %13274 = vtanh.f32 %v11206_v43 }
 0x4b0   :  { %v15564_v56 = vpop.eup %13250  ;;  %v5174_v35 = vpop.f32.mrb[94].mxu1  ;;  %v11080_v51 = vadd.f32 %v4115_v57, %v14935_v5  ;;  %13276 = vtanh.f32 %v11079_v24  ;;  %v13743_v57 = vld [vmem:[#allocation5 + $0x460] ss:$24 sps:$4 sm:$0xff]  }
 0x4b1   :  { %17615 = vst [vmem:[#allocation118_spill] sm:$0xff] %v15564_v56  ;;  %v15570_v20 = vpop.eup %13252  ;;  %v4117_v21 = vpop.f32.mrb[95].mxu0  ;;  %v11208_v62 = vadd.f32 %v5174_v35, %v14938_v6  ;;  %5472 = vmatmul.mubr.bf16.gmra.mrb[200].mxu0 %v13742_v60  ;;  %13278 = vtanh.f32 %v11207_v48  ;;  %v13744_v35 = vld [vmem:[#allocation5 + $0x394] ss:$24 sps:$4 sm:$0xff]  }
 0x4b2   :  { %v5176_v12 = vpop.f32.mrb[95].mxu1  ;;  %v15575_v41 = vpop.eup %13254  ;;  %v11081_v13 = vadd.f32 %v4117_v21, %v14941_v7  ;;  %6228 = vmatmul.mubr.bf16.gmra.mrb[200].mxu1 %v13743_v57  ;;  %5481 = vmatprep.mubr.bf16.mxu0 %v13744_v35  ;;  %13280 = vtanh.f32 %v11080_v51 }
 0x4b3   :  { %17616 = vst [vmem:[#allocation119_spill] sm:$0xff] %v15575_v41  ;;  %v15580_v15 = vpop.eup %13256  ;;  %v11209_v43 = vadd.f32 %v5176_v12, %v14944_v8  ;;  %6237 = vmatprep.mubr.bf16.mxu1 %v13745_v28  ;;  %13282 = vtanh.f32 %v11208_v62  ;;  %v4121_v60 = vpop.f32.mrb[96].mxu0 }
 0x4b4   :  { %v15585_v54 = vpop.eup %13258  ;;  %v5180_v21 = vpop.f32.mrb[96].mxu1  ;;  %13284 = vtanh.f32 %v11081_v13  ;;  %v11082_v32 = vadd.f32 %v4121_v60, %v14935_v5 }
 0x4b5   :  { %17617 = vst [vmem:[#allocation120_spill] sm:$0xff] %v15585_v54  ;;  %v15588_v56 = vpop.eup %13260  ;;  %v11210_v48 = vadd.f32 %v5180_v21, %v14938_v6  ;;  %v4123_v12 = vpop.f32.mrb[97].mxu0  ;;  %13286 = vtanh.f32 %v11209_v43 }
 0x4b6   :  { %v15590_v24 = vpop.eup %13262  ;;  %v5182_v55 = vpop.f32.mrb[97].mxu1  ;;  %v11083_v28 = vadd.f32 %v4123_v12, %v14941_v7  ;;  %13288 = vtanh.f32 %v11082_v32  ;;  %v13747_v32 = vld [vmem:[#allocation5 + $0x490] ss:$24 sps:$4 sm:$0xff]  }
 0x4b7   :  { %17618 = vst [vmem:[#allocation121_spill] sm:$0xff] %v15590_v24  ;;  %v15592_v57 = vpop.eup %13264  ;;  %v11211_v51 = vadd.f32 %v5182_v55, %v14944_v8  ;;  %v4125_v41 = vpop.f32.mrb[98].mxu0  ;;  %13290 = vtanh.f32 %v11210_v48  ;;  %v13748_v48 = vld [vmem:[#allocation5 + $0x3c4] ss:$24 sps:$4 sm:$0xff]  }
 0x4b8   :  { %v15596_v35 = vpop.eup %13266  ;;  %v5184_v62 = vpop.f32.mrb[98].mxu1  ;;  %v11084_v13 = vadd.f32 %v4125_v41, %v14935_v5  ;;  %13292 = vtanh.f32 %v11083_v28 }
 0x4b9   :  { %17619 = vst [vmem:[#allocation122_spill] sm:$0xff] %v15596_v35  ;;  %v15602_v23 = vpop.eup %13268  ;;  %v4127_v60 = vpop.f32.mrb[99].mxu0  ;;  %v11212_v43 = vadd.f32 %v5184_v62, %v14938_v6  ;;  %5482 = vmatmul.mubr.bf16.gmra.mrb[204].mxu0 %v13746_v10  ;;  %13294 = vtanh.f32 %v11211_v51  ;;  %v13749_v62 = vld [vmem:[#allocation5 + $0x4c4] ss:$24 sps:$4 sm:$0xff]   ;;  %v13750_v35 = vld [vmem:[#allocation5 + $0x3c0] ss:$24 sps:$4 sm:$0xff]  }
 0x4ba   :  { %v5186_v21 = vpop.f32.mrb[99].mxu1  ;;  %v15605_v9 = vpop.eup %13270  ;;  %v11085_v46 = vadd.f32 %v4127_v60, %v14941_v7  ;;  %6238 = vmatmul.mubr.bf16.gmra.mrb[204].mxu1 %v13747_v32  ;;  %5491 = vmatprep.mubr.bf16.mxu0 %v13748_v48  ;;  %13296 = vtanh.f32 %v11084_v13 }
 0x4bb   :  { %17620 = vst [vmem:[#allocation123_spill] sm:$0xff] %v15605_v9  ;;  %v15610_v12 = vpop.eup %13272  ;;  %v11213_v31 = vadd.f32 %v5186_v21, %v14944_v8  ;;  %6247 = vmatprep.mubr.bf16.mxu1 %v13749_v62  ;;  %13298 = vtanh.f32 %v11212_v43  ;;  %v4131_v32 = vpop.f32.mrb[100].mxu0 }
 0x4bc   :  { %v15613_v41 = vpop.eup %13274  ;;  %v5190_v51 = vpop.f32.mrb[100].mxu1  ;;  %13300 = vtanh.f32 %v11085_v46  ;;  %v11086_v21 = vadd.f32 %v4131_v32, %v14935_v5 }
 0x4bd   :  { %17621 = vst [vmem:[#allocation124_spill] sm:$0xff] %v15613_v41  ;;  %v15620_v60 = vpop.eup %13276  ;;  %v11214_v48 = vadd.f32 %v5190_v51, %v14938_v6  ;;  %v4133_v62 = vpop.f32.mrb[101].mxu0  ;;  %13302 = vtanh.f32 %v11213_v31 }
 0x4be   :  { %v15622_v10 = vpop.eup %13278  ;;  %v5192_v55 = vpop.f32.mrb[101].mxu1  ;;  %v11087_v28 = vadd.f32 %v4133_v62, %v14941_v7  ;;  %13304 = vtanh.f32 %v11086_v21  ;;  %v13753_v62 = vld [vmem:[#allocation5 + $0x4f4] ss:$24 sps:$4 sm:$0xff]  }
 0x4bf   :  { %17622 = vst [vmem:[#allocation125_spill] sm:$0xff] %v15622_v10  ;;  %v15624_v14 = vpop.eup %13280  ;;  %v11215_v13 = vadd.f32 %v5192_v55, %v14944_v8  ;;  %v4135_v54 = vpop.f32.mrb[102].mxu0  ;;  %13306 = vtanh.f32 %v11214_v48 }
 0x4c0   :  { %v15628_v24 = vpop.eup %13282  ;;  %v5194_v43 = vpop.f32.mrb[102].mxu1  ;;  %v11088_v46 = vadd.f32 %v4135_v54, %v14935_v5  ;;  %13308 = vtanh.f32 %v11087_v28  ;;  %v13751_v54 = vld [vmem:[#allocation5 + $0x4c0] ss:$24 sps:$4 sm:$0xff]  }
 0x4c1   :  { %17623 = vst [vmem:[#allocation126_spill] sm:$0xff] %v15628_v24  ;;  %v15634_v9 = vpop.eup %13284  ;;  %v4137_v32 = vpop.f32.mrb[103].mxu0  ;;  %v11216_v55 = vadd.f32 %v5194_v43, %v14938_v6  ;;  %5492 = vmatmul.mubr.bf16.gmra.mrb[208].mxu0 %v13750_v35  ;;  %13310 = vtanh.f32 %v11215_v13  ;;  %v13752_v43 = vld [vmem:[#allocation5 + $0x3f4] ss:$24 sps:$4 sm:$0xff]  }
 0x4c2   :  { %v5196_v51 = vpop.f32.mrb[103].mxu1  ;;  %v15639_v31 = vpop.eup %13286  ;;  %v11089_v21 = vadd.f32 %v4137_v32, %v14941_v7  ;;  %6248 = vmatmul.mubr.bf16.gmra.mrb[208].mxu1 %v13751_v54  ;;  %5501 = vmatprep.mubr.bf16.mxu0 %v13752_v43  ;;  %13312 = vtanh.f32 %v11088_v46 }
 0x4c3   :  { %17624 = vst [vmem:[#allocation127_spill] sm:$0xff] %v15639_v31  ;;  %v15644_v25 = vpop.eup %13288  ;;  %v11217_v48 = vadd.f32 %v5196_v51, %v14944_v8  ;;  %6257 = vmatprep.mubr.bf16.mxu1 %v13753_v62  ;;  %13314 = vtanh.f32 %v11216_v55  ;;  %v4141_v35 = vpop.f32.mrb[104].mxu0 }
 0x4c4   :  { %17625 = vst [vmem:[#allocation128_spill] sm:$0xff] %v15644_v25  ;;  %v15649_v41 = vpop.eup %13290  ;;  %v5200_v32 = vpop.f32.mrb[104].mxu1  ;;  %13316 = vtanh.f32 %v11089_v21  ;;  %v11090_v52 = vadd.f32 %v4141_v35, %v14935_v5 }
 0x4c5   :  { %17626 = vst [vmem:[#allocation129_spill] sm:$0xff] %v15649_v41  ;;  %v15652_v24 = vpop.eup %13292  ;;  %v11218_v13 = vadd.f32 %v5200_v32, %v14938_v6  ;;  %v4143_v51 = vpop.f32.mrb[105].mxu0  ;;  %13318 = vtanh.f32 %v11217_v48 }
 0x4c6   :  { %v15654_v28 = vpop.eup %13294  ;;  %v5202_v10 = vpop.f32.mrb[105].mxu1  ;;  %v11091_v62 = vadd.f32 %v4143_v51, %v14941_v7  ;;  %13320 = vtanh.f32 %v11090_v52  ;;  %v13757_v51 = vld [vmem:[#allocation5 + $0x524] ss:$24 sps:$4 sm:$0xff]  }
 0x4c7   :  { %17627 = vst [vmem:[#allocation130_spill] sm:$0xff] %v15654_v28  ;;  %v15656_v54 = vpop.eup %13296  ;;  %v11219_v46 = vadd.f32 %v5202_v10, %v14944_v8  ;;  %v4145_v31 = vpop.f32.mrb[106].mxu0  ;;  %13322 = vtanh.f32 %v11218_v13 }
 0x4c8   :  { %17628 = vst [vmem:[#allocation131_spill] sm:$0xff] %v15656_v54  ;;  %v15660_v43 = vpop.eup %13298  ;;  %v5204_v55 = vpop.f32.mrb[106].mxu1  ;;  %v11092_v21 = vadd.f32 %v4145_v31, %v14935_v5  ;;  %13324 = vtanh.f32 %v11091_v62  ;;  %v13755_v31 = vld [vmem:[#allocation5 + $0x4f0] ss:$24 sps:$4 sm:$0xff]   ;;  %v13775_v54 = vld [vmem:[#allocation5 + $0x5e0] ss:$24 sps:$4 sm:$0xff]  }
 0x4c9   :  { %17629 = vst [vmem:[#allocation132_spill] sm:$0xff] %v15660_v43  ;;  %v15666_v29 = vpop.eup %13300  ;;  %v4147_v35 = vpop.f32.mrb[107].mxu0  ;;  %v11220_v10 = vadd.f32 %v5204_v55, %v14938_v6  ;;  %5502 = vmatmul.mubr.bf16.gmra.mrb[212].mxu0 %v13754_v42  ;;  %13326 = vtanh.f32 %v11219_v46  ;;  %v13756_v55 = vld [vmem:[#allocation5 + $0x424] ss:$24 sps:$4 sm:$0xff]  }
 0x4ca   :  { %v5206_v32 = vpop.f32.mrb[107].mxu1  ;;  %v15671_v48 = vpop.eup %13302  ;;  %v11093_v52 = vadd.f32 %v4147_v35, %v14941_v7  ;;  %6258 = vmatmul.mubr.bf16.gmra.mrb[212].mxu1 %v13755_v31  ;;  %5511 = vmatprep.mubr.bf16.mxu0 %v13756_v55  ;;  %13328 = vtanh.f32 %v11092_v21 }
 0x4cb   :  { %17630 = vst [vmem:[#allocation133_spill] sm:$0xff] %v15671_v48  ;;  %v15676_v50 = vpop.eup %13304  ;;  %v11221_v13 = vadd.f32 %v5206_v32, %v14944_v8  ;;  %6267 = vmatprep.mubr.bf16.mxu1 %v13757_v51  ;;  %13330 = vtanh.f32 %v11220_v10  ;;  %v4151_v42 = vpop.f32.mrb[108].mxu0 }
 0x4cc   :  { %17631 = vst [vmem:[#allocation134_spill] sm:$0xff] %v15676_v50  ;;  %v15681_v41 = vpop.eup %13306  ;;  %v5210_v35 = vpop.f32.mrb[108].mxu1  ;;  %13332 = vtanh.f32 %v11093_v52  ;;  %v11094_v58 = vadd.f32 %v4151_v42, %v14935_v5  ;;  %v13762_v50 = vld [vmem:[#allocation5 + $0x450] ss:$24 sps:$4 sm:$0xff]  }
 0x4cd   :  { %17632 = vst [vmem:[#allocation135_spill] sm:$0xff] %v15681_v41  ;;  %v15684_v43 = vpop.eup %13308  ;;  %v11222_v46 = vadd.f32 %v5210_v35, %v14938_v6  ;;  %v4153_v32 = vpop.f32.mrb[109].mxu0  ;;  %13334 = vtanh.f32 %v11221_v13 }
 0x4ce   :  { %17633 = vst [vmem:[#allocation136_spill] sm:$0xff] %v15684_v43  ;;  %v15686_v62 = vpop.eup %13310  ;;  %v5212_v28 = vpop.f32.mrb[109].mxu1  ;;  %v11095_v51 = vadd.f32 %v4153_v32, %v14941_v7  ;;  %13336 = vtanh.f32 %v11094_v58  ;;  %v13761_v32 = vld [vmem:[#allocation5 + $0x554] ss:$24 sps:$4 sm:$0xff]  }
 0x4cf   :  { %17634 = vst [vmem:[#allocation137_spill] sm:$0xff] %v15686_v62  ;;  %v15688_v31 = vpop.eup %13312  ;;  %v11223_v21 = vadd.f32 %v5212_v28, %v14944_v8  ;;  %v4155_v48 = vpop.f32.mrb[110].mxu0  ;;  %13338 = vtanh.f32 %v11222_v46 }
 0x4d0   :  { %17635 = vst [vmem:[#allocation138_spill] sm:$0xff] %v15688_v31  ;;  %v15692_v55 = vpop.eup %13314  ;;  %v5214_v10 = vpop.f32.mrb[110].mxu1  ;;  %v11096_v52 = vadd.f32 %v4155_v48, %v14935_v5  ;;  %13340 = vtanh.f32 %v11095_v51  ;;  %v13759_v48 = vld [vmem:[#allocation5 + $0x520] ss:$24 sps:$4 sm:$0xff]  }
 0x4d1   :  { %17636 = vst [vmem:[#allocation139_spill] sm:$0xff] %v15692_v55  ;;  %v15698_v53 = vpop.eup %13316  ;;  %v4157_v42 = vpop.f32.mrb[111].mxu0  ;;  %v11224_v28 = vadd.f32 %v5214_v10, %v14938_v6  ;;  %5512 = vmatmul.mubr.bf16.gmra.mrb[216].mxu0 %v13758_v1  ;;  %13342 = vtanh.f32 %v11223_v21  ;;  %v13760_v10 = vld [vmem:[#allocation5 + $0x454] ss:$24 sps:$4 sm:$0xff]  }
 0x4d2   :  { %17637 = vst [vmem:[#allocation140_spill] sm:$0xff] %v15698_v53  ;;  %v5216_v35 = vpop.f32.mrb[111].mxu1  ;;  %v15703_v13 = vpop.eup %13318  ;;  %v11097_v58 = vadd.f32 %v4157_v42, %v14941_v7  ;;  %6268 = vmatmul.mubr.bf16.gmra.mrb[216].mxu1 %v13759_v48  ;;  %5521 = vmatprep.mubr.bf16.mxu0 %v13760_v10  ;;  %13344 = vtanh.f32 %v11096_v52 }
 0x4d3   :  { %17638 = vst [vmem:[#allocation141_spill] sm:$0xff] %v15703_v13  ;;  %v15708_v0 = vpop.eup %13320  ;;  %v11225_v46 = vadd.f32 %v5216_v35, %v14944_v8  ;;  %6277 = vmatprep.mubr.bf16.mxu1 %v13761_v32  ;;  %13346 = vtanh.f32 %v11224_v28  ;;  %v4161_v1 = vpop.f32.mrb[112].mxu0 }
 0x4d4   :  { %17639 = vst [vmem:[#allocation142_spill] sm:$0xff] %v15708_v0  ;;  %v15713_v41 = vpop.eup %13322  ;;  %v5220_v42 = vpop.f32.mrb[112].mxu1  ;;  %13348 = vtanh.f32 %v11097_v58  ;;  %v11098_v19 = vadd.f32 %v4161_v1, %v14935_v5  ;;  %v13766_v0 = vld [vmem:[#allocation5 + $0x480] ss:$24 sps:$4 sm:$0xff]  }
 0x4d5   :  { %17640 = vst [vmem:[#allocation143_spill] sm:$0xff] %v15713_v41  ;;  %v15716_v55 = vpop.eup %13324  ;;  %v11226_v21 = vadd.f32 %v5220_v42, %v14938_v6  ;;  %v4163_v35 = vpop.f32.mrb[113].mxu0  ;;  %13350 = vtanh.f32 %v11225_v46 }
 0x4d6   :  { %17641 = vst [vmem:[#allocation144_spill] sm:$0xff] %v15716_v55  ;;  %v15718_v51 = vpop.eup %13326  ;;  %v5222_v62 = vpop.f32.mrb[113].mxu1  ;;  %v11099_v32 = vadd.f32 %v4163_v35, %v14941_v7  ;;  %13352 = vtanh.f32 %v11098_v19  ;;  %v13765_v35 = vld [vmem:[#allocation5 + $0x584] ss:$24 sps:$4 sm:$0xff]  }
 0x4d7   :  { %17642 = vst [vmem:[#allocation145_spill] sm:$0xff] %v15718_v51  ;;  %v15720_v48 = vpop.eup %13328  ;;  %v11227_v52 = vadd.f32 %v5222_v62, %v14944_v8  ;;  %v4165_v13 = vpop.f32.mrb[114].mxu0  ;;  %13354 = vtanh.f32 %v11226_v21 }
 0x4d8   :  { %17643 = vst [vmem:[#allocation146_spill] sm:$0xff] %v15720_v48  ;;  %v15724_v10 = vpop.eup %13330  ;;  %v5224_v28 = vpop.f32.mrb[114].mxu1  ;;  %v11100_v58 = vadd.f32 %v4165_v13, %v14935_v5  ;;  %13356 = vtanh.f32 %v11099_v32  ;;  %v13763_v13 = vld [vmem:[#allocation5 + $0x550] ss:$24 sps:$4 sm:$0xff]  }
 0x4d9   :  { %17644 = vst [vmem:[#allocation147_spill] sm:$0xff] %v15724_v10  ;;  %v15730_v31 = vpop.eup %13332  ;;  %v4167_v1 = vpop.f32.mrb[115].mxu0  ;;  %v11228_v62 = vadd.f32 %v5224_v28, %v14938_v6  ;;  %5522 = vmatmul.mubr.bf16.gmra.mrb[220].mxu0 %v13762_v50  ;;  %13358 = vtanh.f32 %v11227_v52  ;;  %v13764_v28 = vld [vmem:[#allocation5 + $0x484] ss:$24 sps:$4 sm:$0xff]  }
 0x4da   :  { %17645 = vst [vmem:[#allocation148_spill] sm:$0xff] %v15730_v31  ;;  %v5226_v42 = vpop.f32.mrb[115].mxu1  ;;  %v15735_v46 = vpop.eup %13334  ;;  %v11101_v19 = vadd.f32 %v4167_v1, %v14941_v7  ;;  %6278 = vmatmul.mubr.bf16.gmra.mrb[220].mxu1 %v13763_v13  ;;  %5531 = vmatprep.mubr.bf16.mxu0 %v13764_v28  ;;  %13360 = vtanh.f32 %v11100_v58 }
 0x4db   :  { %17646 = vst [vmem:[#allocation149_spill] sm:$0xff] %v15735_v46  ;;  %v15740_v53 = vpop.eup %13336  ;;  %v11229_v21 = vadd.f32 %v5226_v42, %v14944_v8  ;;  %6287 = vmatprep.mubr.bf16.mxu1 %v13765_v35  ;;  %13362 = vtanh.f32 %v11228_v62  ;;  %v4171_v50 = vpop.f32.mrb[116].mxu0 }
 0x4dc   :  { %17647 = vst [vmem:[#allocation150_spill] sm:$0xff] %v15740_v53  ;;  %v15745_v41 = vpop.eup %13338  ;;  %v5230_v1 = vpop.f32.mrb[116].mxu1  ;;  %13364 = vtanh.f32 %v11101_v19  ;;  %v11102_v43 = vadd.f32 %v4171_v50, %v14935_v5 }
 0x4dd   :  { %17648 = vst [vmem:[#allocation151_spill] sm:$0xff] %v15745_v41  ;;  %v15748_v10 = vpop.eup %13340  ;;  %v11230_v52 = vadd.f32 %v5230_v1, %v14938_v6  ;;  %v4173_v42 = vpop.f32.mrb[117].mxu0  ;;  %13366 = vtanh.f32 %v11229_v21 }
 0x4de   :  { %17649 = vst [vmem:[#allocation152_spill] sm:$0xff] %v15748_v10  ;;  %v15750_v32 = vpop.eup %13342  ;;  %v5232_v51 = vpop.f32.mrb[117].mxu1  ;;  %v11103_v35 = vadd.f32 %v4173_v42, %v14941_v7  ;;  %13368 = vtanh.f32 %v11102_v43  ;;  %v13769_v42 = vld [vmem:[#allocation5 + $0x5b4] ss:$24 sps:$4 sm:$0xff]  }
 0x4df   :  { %17650 = vst [vmem:[#allocation153_spill] sm:$0xff] %v15750_v32  ;;  %v15752_v13 = vpop.eup %13344  ;;  %v11231_v58 = vadd.f32 %v5232_v51, %v14944_v8  ;;  %v4175_v46 = vpop.f32.mrb[118].mxu0  ;;  %13370 = vtanh.f32 %v11230_v52 }
 0x4e0   :  { %17651 = vst [vmem:[#allocation154_spill] sm:$0xff] %v15752_v13  ;;  %v15756_v28 = vpop.eup %13346  ;;  %v5234_v62 = vpop.f32.mrb[118].mxu1  ;;  %v11104_v19 = vadd.f32 %v4175_v46, %v14935_v5  ;;  %13372 = vtanh.f32 %v11103_v35  ;;  %v13767_v46 = vld [vmem:[#allocation5 + $0x580] ss:$24 sps:$4 sm:$0xff]   ;;  %v15794_v13 = vld [vmem:[#allocation10] sm:$0xf] }
 0x4e1   :  { %17652 = vst [vmem:[#allocation155_spill] sm:$0xff] %v15756_v28  ;;  %v15762_v48 = vpop.eup %13348  ;;  %v4177_v50 = vpop.f32.mrb[119].mxu0  ;;  %v11232_v51 = vadd.f32 %v5234_v62, %v14938_v6  ;;  %5532 = vmatmul.mubr.bf16.gmra.mrb[224].mxu0 %v13766_v0  ;;  %13374 = vtanh.f32 %v11231_v58  ;;  %v13768_v62 = vld [vmem:[#allocation5 + $0x4b4] ss:$24 sps:$4 sm:$0xff]  }
 0x4e2   :  { %17653 = vst [vmem:[#allocation156_spill] sm:$0xff] %v15762_v48  ;;  %v5236_v1 = vpop.f32.mrb[119].mxu1  ;;  %v15767_v21 = vpop.eup %13350  ;;  %v11105_v43 = vadd.f32 %v4177_v50, %v14941_v7  ;;  %6288 = vmatmul.mubr.bf16.gmra.mrb[224].mxu1 %v13767_v46  ;;  %5541 = vmatprep.mubr.bf16.mxu0 %v13768_v62  ;;  %13376 = vtanh.f32 %v11104_v19  ;;  %v15788_v62 = vld [vmem:[#allocation8] sm:$0xf] }
 0x4e3   :  { %17654 = vst [vmem:[#allocation157_spill] sm:$0xff] %v15767_v21  ;;  %v15772_v31 = vpop.eup %13352  ;;  %v11233_v52 = vadd.f32 %v5236_v1, %v14944_v8  ;;  %6297 = vmatprep.mubr.bf16.mxu1 %v13769_v42  ;;  %13378 = vtanh.f32 %v11232_v51  ;;  %v4181_v0 = vpop.f32.mrb[120].mxu0  ;;  %v6712_v25 = vrot.slane %v15788_v62, %v14929_v2 }
 0x4e4   :  { %17655 = vst [vmem:[#allocation158_spill] sm:$0xff] %v15772_v31  ;;  %v15777_v41 = vpop.eup %13354  ;;  %v5240_v50 = vpop.f32.mrb[120].mxu1  ;;  %13380 = vtanh.f32 %v11105_v43  ;;  %v11106_v55 = vadd.f32 %v4181_v0, %v14935_v5 }
 0x4e5   :  { %17656 = vst [vmem:[#allocation159_spill] sm:$0xff] %v15777_v41  ;;  %v15780_v28 = vpop.eup %13356  ;;  %v11234_v58 = vadd.f32 %v5240_v50, %v14938_v6  ;;  %v4183_v1 = vpop.f32.mrb[121].mxu0  ;;  %13382 = vtanh.f32 %v11233_v52  ;;  %v13772_v41 = vld [vmem:[#allocation5 + $0x4e4] ss:$24 sps:$4 sm:$0xff]   ;;  %vm15825_vm0 = vcmp.eq.s32.totalorder %v6712_v25, %v14920_v61 }
 0x4e6   :  { %17657 = vst [vmem:[#allocation160_spill] sm:$0xff] %v15780_v28  ;;  %v15782_v35 = vpop.eup %13358  ;;  %v5242_v32 = vpop.f32.mrb[121].mxu1  ;;  %v11107_v19 = vadd.f32 %v4183_v1, %v14941_v7  ;;  %13384 = vtanh.f32 %v11106_v55  ;;  %vm15847_vm1 = vmpackc.low %vm15825_vm0, %vm15825_vm0 }
 0x4e7   :  { %17658 = vst [vmem:[#allocation161_spill] sm:$0xff] %v15782_v35  ;;  %v15784_v46 = vpop.eup %13360  ;;  %v11235_v51 = vadd.f32 %v5242_v32, %v14944_v8  ;;  %v4185_v21 = vpop.f32.mrb[122].mxu0  ;;  %13386 = vtanh.f32 %v11234_v58  ;;  %v6734_v58 = vrot.slane %v15794_v13, %v14929_v2 }
 0x4e8   :  { %17659 = vst [vmem:[#allocation162_spill] sm:$0xff] %v15784_v46  ;;  %v15790_v42 = vpop.eup %13362  ;;  %v5244_v53 = vpop.f32.mrb[122].mxu1  ;;  %v11108_v50 = vadd.f32 %v4185_v21, %v14935_v5  ;;  %13388 = vtanh.f32 %v11107_v19  ;;  %v13770_v21 = vld [vmem:[#allocation5 + $0x4b0] ss:$24 sps:$4 sm:$0xff]   ;;  %v13773_v19 = vld [vmem:[#allocation5 + $0x5e4] ss:$24 sps:$4 sm:$0xff]  }
 0x4e9   :  { %17660 = vst [vmem:[#allocation163_spill] sm:$0xff] %v15790_v42  ;;  %v15798_v0 = vpop.eup %13364  ;;  %v4187_v10 = vpop.f32.mrb[123].mxu0  ;;  %v11236_v32 = vadd.f32 %v5244_v53, %v14938_v6  ;;  %5542 = vmatmul.mubr.bf16.gmra.mrb[228].mxu0 %v13770_v21  ;;  %v13771_v46 = vld [vmem:[#allocation5 + $0x5b0] ss:$24 sps:$4 sm:$0xff]   ;;  %13390 = vtanh.f32 %v11235_v51 }
 0x4ea   :  { %17661 = vst [vmem:[#allocation164_spill] sm:$0xff] %v15798_v0  ;;  %v5246_v48 = vpop.f32.mrb[123].mxu1  ;;  %v15803_v1 = vpop.eup %13366  ;;  %v11109_v55 = vadd.f32 %v4187_v10, %v14941_v7  ;;  %6298 = vmatmul.mubr.bf16.gmra.mrb[228].mxu1 %v13771_v46  ;;  %5551 = vmatprep.mubr.bf16.mxu0 %v13772_v41  ;;  %13392 = vtanh.f32 %v11108_v50  ;;  %v15833_v50 = vpack.c.bf16 %v6734_v58, %v6734_v58 }
 0x4eb   :  { %17662 = vst [vmem:[#allocation165_spill] sm:$0xff] %v15803_v1  ;;  %v15810_v31 = vpop.eup %13368  ;;  %v11237_v43 = vadd.f32 %v5246_v48, %v14944_v8  ;;  %6307 = vmatprep.mubr.bf16.mxu1 %v13773_v19  ;;  %13394 = vtanh.f32 %v11236_v32  ;;  %v4191_v46 = vpop.f32.mrb[124].mxu0 }
 0x4ec   :  { %17663 = vst [vmem:[#allocation166_spill] sm:$0xff] %v15810_v31  ;;  %v15817_v52 = vpop.eup %13370  ;;  %v5250_v2 = vpop.f32.mrb[124].mxu1  ;;  %13396 = vtanh.f32 %v11109_v55  ;;  %v11110_v41 = vadd.f32 %v4191_v46, %v14935_v5 }
 0x4ed   :  { %v15820_v10 = vpop.eup %13372  ;;  %v11238_v48 = vadd.f32 %v5250_v2, %v14938_v6  ;;  %v4193_v19 = vpop.f32.mrb[125].mxu0  ;;  %13398 = vtanh.f32 %v11237_v43 }
 0x4ee   :  { %v15822_v21 = vpop.eup %13374  ;;  %v5252_v42 = vpop.f32.mrb[125].mxu1  ;;  %v11111_v32 = vadd.f32 %v4193_v19, %v14941_v7  ;;  %13400 = vtanh.f32 %v11110_v41  ;;  %v13776_v19 = vld [vmem:[#allocation5 + $0x514] ss:$24 sps:$4 sm:$0xff]  }
 0x4ef   :  { %v15829_v51 = vpop.eup %13376  ;;  %v11239_v25 = vadd.f32 %v5252_v42, %v14944_v8  ;;  %v4195_v1 = vpop.f32.mrb[126].mxu0  ;;  %v6708_v42 = vrot.slane %v15788_v62, %v14923_v63  ;;  %13402 = vtanh.f32 %v11238_v48  ;;  %v6720_v48 = vrot.slane %v15788_v62, %v14932_v3 }
 0x4f0   :  { %17666 = vst [vmem:[#allocation167_spill] sm:$0xff] %v15829_v51  ;;  %v15835_v35 = vpop.eup %13378  ;;  %v5254_v28 = vpop.f32.mrb[126].mxu1  ;;  %v11112_v46 = vadd.f32 %v4195_v1, %v14935_v5  ;;  %v6730_v1 = vrot.slane %v15794_v13, %v14923_v63  ;;  %13404 = vtanh.f32 %v11111_v32  ;;  %v13774_v51 = vld [vmem:[#allocation5 + $0x4e0] ss:$24 sps:$4 sm:$0xff]  }
 0x4f1   :  { %v15841_v0 = vpop.eup %13380  ;;  %v4197_v2 = vpop.f32.mrb[127].mxu0  ;;  %v11240_v5 = vadd.f32 %v5254_v28, %v14938_v6  ;;  %5552 = vmatmul.mubr.bf16.gmra.mrb[232].mxu0 %v13774_v51  ;;  %13406 = vtanh.f32 %v11239_v25  ;;  %vm6721_vm2 = vcmp.eq.s32.totalorder %v6708_v42, %v14920_v61  ;;  %vm6724_vm3 = vcmp.eq.s32.totalorder %v6720_v48, %v14920_v61  ;;  %v13777_v48 = vld [vmem:[#allocation5 + $0x510] ss:$24 sps:$4 sm:$0xff]   ;;  %v13778_v6 = vld [vmem:[#allocation5 + $0x544] ss:$24 sps:$4 sm:$0xff]  }
 0x4f2   :  { %v5256_v58 = vpop.f32.mrb[127].mxu1  ;;  %v15855_v55 = vpop.eup %13382  ;;  %v11113_v31 = vadd.f32 %v4197_v2, %v14941_v7  ;;  %6308 = vmatmul.mubr.bf16.gmra.mrb[232].mxu1 %v13775_v54  ;;  %5561 = vmatprep.mubr.bf16.mxu0 %v13776_v19  ;;  %13408 = vtanh.f32 %v11112_v46  ;;  %v6742_v54 = vrot.slane %v15794_v13, %v14932_v3  ;;  %vm15889_vm4 = vmpackc.low %vm6721_vm2, %vm6721_vm2  ;;  %v17671_v46 = vmov 0 }
 0x4f3   :  { %v15862_v41 = vpop.eup %13384  ;;  %v11241_v63 = vadd.f32 %v5256_v58, %v14944_v8  ;;  %10515 = vmatprep.mubr.msk.bf16.mxu1 %vm15847_vm1, %v15833_v50  ;;  %13410 = vtanh.f32 %v11240_v5  ;;  %v15884_v8 = vpack.c.bf16 %v6730_v1, %v6730_v1  ;;  %v17672_v46 = vsel %vm15889_vm4, 4294967295, %v17671_v46  ;;  %vm15905_vm5 = vmpackc.low %vm6724_vm3, %vm6724_vm3 }
 0x4f4   :  { %v15869_v28 = vpop.eup %13386  ;;  %13412 = vtanh.f32 %v11113_v31  ;;  %17673 = vst [vmem:[#allocation170_spill] sm:$0xff] %v17672_v46  ;;  %v15897_v58 = vpack.c.bf16 %v6742_v54, %v6742_v54  ;;  %v17675_v5 = vmov 0  ;;  %v17678_v31 = vpack.c.bf16 %v15404_v18, %v15394_v16  ;;  %v13879_v46 = vld [vmem:[#allocation5 + $0x5dc] ss:$24 sps:$4 sm:$0xff]  }
 0x4f5   :  { %17669 = vst [vmem:[#allocation168_spill] sm:$0xff] %v15869_v28  ;;  %v15875_v7 = vpop.eup %13388  ;;  %17670 = vst [vmem:[#allocation169_spill] sm:$0xff] %v15884_v8  ;;  %13414 = vtanh.f32 %v11241_v63  ;;  %v17676_v5 = vsel %vm15905_vm5, 4294967295, %v17675_v5  ;;  %v17680_v16 = vpack.c.bf16 %v15432_v36, %v15420_v34  ;;  %v13779_v28 = vld [vmem:[#allocation5 + $0x540] ss:$24 sps:$4 sm:$0xff]   ;;  %v17682_v36 = vpack.c.bf16 %v15464_v44, %v15452_v22 }
 0x4f6   :  { %v15880_v51 = vpop.eup %13390  ;;  %17674 = vst [vmem:[#allocation171_spill] sm:$0xff] %v15897_v58  ;;  %17677 = vst [vmem:[#allocation172_spill] sm:$0xff] %v17676_v5  ;;  %v17686_v22 = vpack.c.bf16 %v15528_v30, %v15516_v27  ;;  %v13782_v44 = vld [vmem:[#allocation5 + $0x5a4] ss:$24 sps:$4 sm:$0xff]   ;;  %v17690_v27 = vpack.c.bf16 %v15592_v57, %v15580_v15  ;;  %v17694_v30 = vld [vmem:[#allocation131_spill] sm:$0xff] }
 0x4f7   :  { %v15882_v32 = vpop.eup %13392  ;;  %v17698_v57 = vld [vmem:[#allocation136_spill] sm:$0xff] }
 0x4f8   :  { %v15887_v25 = vpop.eup %13394 }
 0x4f9   :  { %v15895_v2 = vpop.eup %13396  ;;  %5562 = vmatmul.mubr.bf16.gmra.mrb[236].mxu0 %v13777_v48  ;;  %v17679_v48 = vpack.c.bf16 %v15442_v38, %v15428_v37  ;;  %v17681_v38 = vpack.c.bf16 %v15474_v47, %v15460_v59  ;;  %v17683_v47 = vpack.c.bf16 %v15506_v45, %v15492_v49  ;;  %v17684_v59 = vpack.c.bf16 %v15496_v33, %v15484_v39  ;;  %v13783_v49 = vld [vmem:[#allocation5 + $0x5a0] ss:$24 sps:$4 sm:$0xff]   ;;  %v13784_v33 = vld [vmem:[#allocation5 + $0x5d4] ss:$24 sps:$4 sm:$0xff]  }
 0x4fa   :  { %v15901_v42 = vpop.eup %13398  ;;  %10518 = vmatmul.mubr.msk.bf16.vlgmr.msra.gmra.mrb[236].mxu1 %vm15889_vm4, %v15884_v8  ;;  %5571 = vmatprep.mubr.bf16.mxu0 %v13778_v6  ;;  %v17687_v45 = vpack.c.bf16 %v15570_v20, %v15556_v17  ;;  %v17688_v39 = vpack.c.bf16 %v15560_v4, %v15548_v11  ;;  %v17691_v20 = vpack.c.bf16 %v15634_v9, %v15620_v60  ;;  %v17695_v17 = vld [vmem:[#allocation128_spill] sm:$0xff]  ;;  %v13786_v4 = vld [vmem:[#allocation5 + $0xc] ss:$24 sps:$4 sm:$0xff]  }
 0x4fb   :  { %v15909_v1 = vpop.eup %13400  ;;  %6995 = vmatpush1.bf16.msra.mxu1 %v17678_v31  ;;  %10521 = vmatprep.mubr.msk.bf16.mxu1 %vm15905_vm5, %v15897_v58  ;;  %v17692_v11 = vpack.c.bf16 %v15624_v14, %v15610_v12  ;;  %v17696_v15 = vpack.c.bf16 %v17694_v30, %v17695_v17  ;;  %v17700_v60 = vld [vmem:[#allocation138_spill] sm:$0xff]  ;;  %v17703_v12 = vld [vmem:[#allocation148_spill] sm:$0xff] }
 0x4fc   :  { %v15916_v54 = vpop.eup %13402  ;;  %6996 = vmatprep.subr.bf16.mxu1 %v17679_v48  ;;  %v13792_v30 = vld [vmem:[#allocation11 + $0x674] ss:$24 sps:$4 sm:$0xff]   ;;  %v13793_v17 = vld [vmem:[#allocation5 + $0x38] ss:$24 sps:$4 sm:$0xff]  }
 0x4fd   :  { %v15921_v3 = vpop.eup %13404 }
 0x4fe   :  { %v15929_v19 = vpop.eup %13406 }
 0x4ff   :  { %v15931_v63 = vpop.eup %13408  ;;  %6997 = vmatpush1.bf16.msra.mxu1 %v17680_v16  ;;  %v13780_v16 = vld [vmem:[#allocation5 + $0x574] ss:$24 sps:$4 sm:$0xff]  }
 0x500   :  { %v15933_v53 = vpop.eup %13410  ;;  %v6947_v18 = vpack.c.bf16 %v15931_v63, %v15909_v1  ;;  %6998 = vmatprep.subr.bf16.mxu1 %v17681_v38  ;;  %v13781_v38 = vld [vmem:[#allocation5 + $0x570] ss:$24 sps:$4 sm:$0xff]  }
 0x501   :  { %v15940_v6 = vpop.eup %13412  ;;  %v6949_v37 = vpack.c.bf16 %v15933_v53, %v15916_v54  ;;  %5572 = vmatmul.mubr.bf16.gmra.mrb[240].mxu0 %v13779_v28  ;;  %v17685_v28 = vpack.c.bf16 %v15538_v40, %v15524_v26  ;;  %v17689_v40 = vpack.c.bf16 %v15602_v23, %v15588_v56  ;;  %v17693_v23 = vpack.c.bf16 %v15666_v29, %v15652_v24  ;;  %v13785_v26 = vld [vmem:[#allocation5 + $0x5d0] ss:$24 sps:$4 sm:$0xff]  }
 0x502   :  { %v15947_v31 = vpop.eup %13414  ;;  %v6948_v48 = vpack.c.bf16 %v15940_v6, %v15921_v3  ;;  %5581 = vmatprep.mubr.bf16.mxu0 %v13780_v16  ;;  %v17697_v56 = vld [vmem:[#allocation140_spill] sm:$0xff]  ;;  %v13787_v24 = vld [vmem:[#allocation5 + $0x8] ss:$24 sps:$4 sm:$0xff]  }
 0x503   :  { %v6950_v34 = vpack.c.bf16 %v15947_v31, %v15929_v19  ;;  %6999 = vmatpush1.bf16.msra.mxu1 %v17682_v36  ;;  %v17699_v9 = vpack.c.bf16 %v17697_v56, %v17698_v57  ;;  %v17701_v36 = vld [vmem:[#allocation134_spill] sm:$0xff]  ;;  %v17704_v16 = vld [vmem:[#allocation144_spill] sm:$0xff] }
 0x504   :  { %7000 = vmatprep.subr.bf16.mxu1 %v17683_v47  ;;  %v17702_v14 = vpack.c.bf16 %v17700_v60, %v17701_v36  ;;  %v17705_v29 = vpack.c.bf16 %v17703_v12, %v17704_v16  ;;  %v17706_v47 = vld [vmem:[#allocation146_spill] sm:$0xff]  ;;  %v13795_v60 = vld [vmem:[#allocation11 + $0x670] ss:$24 sps:$4 sm:$0xff]  }
 0x505   :  { %v13794_v57 = vld [vmem:[#allocation5 + $0x6c] ss:$24 sps:$4 sm:$0xff]   ;;  %v13803_v6 = vld [vmem:[#allocation11 + $0x700] ss:$24 sps:$4 sm:$0xff]   ;;  %v17736_v63 = vld [vmem:[#allocation32_spill] sm:$0xff] }
 0x506   :  { %v13796_v36 = vld [vmem:[#allocation11 + $0x6a4] ss:$24 sps:$4 sm:$0xff]  }
 0x507   :  { %7001 = vmatpush1.bf16.msra.mxu1 %v17684_v59  ;;  %v17707_v59 = vld [vmem:[#allocation142_spill] sm:$0xff] }
 0x508   :  { %7002 = vmatprep.subr.bf16.mxu1 %v17685_v28  ;;  %v17708_v28 = vpack.c.bf16 %v17706_v47, %v17707_v59  ;;  %v17723_v12 = vld [vmem:[#allocation166_spill] sm:$0xff] }
 0x509   :  { %5582 = vmatmul.mubr.bf16.gmra.mrb[244].mxu0 %v13781_v38  ;;  %v13788_v38 = vld [vmem:[#allocation11 + $0x610] ss:$24 sps:$4 sm:$0xff]   ;;  %v13797_v59 = vld [vmem:[#allocation11 + $0x6a0] ss:$24 sps:$4 sm:$0xff]  }
 0x50a   :  { %5591 = vmatprep.mubr.bf16.mxu0 %v13782_v44  ;;  %v17710_v44 = vld [vmem:[#allocation152_spill] sm:$0xff]  ;;  %v17735_v1 = vld [vmem:[#allocation34_spill] sm:$0xff] }
 0x50b   :  { %7003 = vmatpush1.bf16.msra.mxu1 %v17686_v22  ;;  %v17709_v22 = vld [vmem:[#allocation156_spill] sm:$0xff] }
 0x50c   :  { %7004 = vmatprep.subr.bf16.mxu1 %v17687_v45  ;;  %v17711_v45 = vpack.c.bf16 %v17709_v22, %v17710_v44  ;;  %v13800_v22 = vld [vmem:[#allocation5 + $0x9c] ss:$24 sps:$4 sm:$0xff]   ;;  %v13805_v44 = vld [vmem:[#allocation5 + $0x98] ss:$24 sps:$4 sm:$0xff]  }
 0x50f   :  { %7005 = vmatpush1.bf16.msra.mxu1 %v17688_v39  ;;  %v13789_v39 = vld [vmem:[#allocation5 + $0x3c] ss:$24 sps:$4 sm:$0xff]  }
 0x510   :  { %7006 = vmatprep.subr.bf16.mxu1 %v17689_v40  ;;  %v13790_v40 = vld [vmem:[#allocation11 + $0x644] ss:$24 sps:$4 sm:$0xff]  }
 0x511   :  { %5592 = vmatmul.mubr.bf16.gmra.mrb[248].mxu0 %v13783_v49  ;;  %v17712_v49 = vld [vmem:[#allocation154_spill] sm:$0xff] }
 0x512   :  { %5601 = vmatprep.mubr.bf16.mxu0 %v13784_v33 }
 0x513   :  { %7007 = vmatpush1.bf16.msra.mxu1 %v17690_v27  ;;  %v17713_v27 = vld [vmem:[#allocation150_spill] sm:$0xff] }
 0x514   :  { %7008 = vmatprep.subr.bf16.mxu1 %v17691_v20  ;;  %v17714_v33 = vpack.c.bf16 %v17712_v49, %v17713_v27  ;;  %v13791_v20 = vld [vmem:[#allocation11 + $0x640] ss:$24 sps:$4 sm:$0xff]   ;;  %v13807_v27 = vld [vmem:[#allocation11 + $0x730] ss:$24 sps:$4 sm:$0xff]  }
 0x517   :  { %7009 = vmatpush1.bf16.msra.mxu1 %v17692_v11  ;;  %v17715_v11 = vld [vmem:[#allocation164_spill] sm:$0xff] }
 0x518   :  { %7010 = vmatprep.subr.bf16.mxu1 %v17693_v23  ;;  %v17716_v23 = vld [vmem:[#allocation160_spill] sm:$0xff] }
 0x519   :  { %5602 = vmatmul.mubr.bf16.gmra.mrb[252].mxu0 %v13785_v26  ;;  %v17717_v26 = vpack.c.bf16 %v17715_v11, %v17716_v23  ;;  %v17742_v11 = vld [vmem:[#allocation36_spill] sm:$0xff] }
 0x51a   :  { %5644 = vmatprep.mubr.bf16.mxu0 %v13786_v4  ;;  %v17719_v4 = vld [vmem:[#allocation158_spill] sm:$0xff] }
 0x51b   :  { %7011 = vmatpush1.bf16.msra.mxu1 %v17696_v15  ;;  %v17718_v15 = vld [vmem:[#allocation162_spill] sm:$0xff] }
 0x51c   :  { %7012 = vmatprep.subr.bf16.mxu1 %v17699_v9  ;;  %v17720_v56 = vpack.c.bf16 %v17718_v15, %v17719_v4  ;;  %v17721_v9 = vpack.c.bf16 %v15841_v0, %v15820_v10  ;;  %v13799_v0 = vld [vmem:[#allocation5 + $0x68] ss:$24 sps:$4 sm:$0xff]  }
 0x51d   :  { %v13809_v15 = vld [vmem:[#allocation11 + $0x760] ss:$24 sps:$4 sm:$0xff]  }
 0x51e   :  { %v13810_v4 = vld [vmem:[#allocation5 + $0xc8] ss:$24 sps:$4 sm:$0xff]  }
 0x51f   :  { %7013 = vmatpush1.bf16.msra.mxu1 %v17702_v14  ;;  %v17722_v14 = vld [vmem:[#allocation167_spill] sm:$0xff] }
 0x520   :  { %7014 = vmatprep.subr.bf16.mxu1 %v17705_v29  ;;  %v17724_v16 = vpack.c.bf16 %v17722_v14, %v17723_v12  ;;  %v17725_v29 = vpack.c.bf16 %v15895_v2, %v15875_v7  ;;  %v13802_v7 = vld [vmem:[#allocation11 + $0x704] ss:$24 sps:$4 sm:$0xff]   ;;  %v17751_v12 = vld [vmem:[#allocation45_spill] sm:$0xff] }
 0x521   :  { %5645 = vmatmul.mubr.bf16.vlgmr.msra.gmra.mrb[128].mxu0 %v13787_v24  ;;  %v17726_v24 = vld [vmem:[#allocation31_spill] sm:$0xff] }
 0x522   :  { %5966 = vmatpush1.bf16.msra.mxu0 %v13788_v38  ;;  %5654 = vmatprep.mubr.bf16.mxu0 %v13789_v39  ;;  %v6716_v47 = vrot.slane %v15788_v62, %v17726_v24  ;;  %v6738_v10 = vrot.slane %v15794_v13, %v17726_v24  ;;  %v17727_v38 = vpack.c.bf16 %v15882_v32, %v15862_v41  ;;  %v13801_v62 = vld [vmem:[#allocation11 + $0x6d0] ss:$24 sps:$4 sm:$0xff]   ;;  %v17729_v13 = vmov 0  ;;  %v13814_v24 = vld [vmem:[#allocation11 + $0x7c4] ss:$24 sps:$4 sm:$0xff]  }
 0x523   :  { %7015 = vmatpush1.bf16.msra.mxu1 %v17708_v28  ;;  %5967 = vmatprep.subr.bf16.mxu0 %v13790_v40  ;;  %v13798_v28 = vld [vmem:[#allocation11 + $0x6d4] ss:$24 sps:$4 sm:$0xff]   ;;  %v17732_v41 = vld [vmem:[#allocation35_spill] sm:$0xff] }
 0x524   :  { %7016 = vmatprep.subr.bf16.mxu1 %v17711_v45  ;;  %vm6723_vm6 = vcmp.eq.s32.totalorder %v6716_v47, %v14920_v61  ;;  %v16036_v2 = vpack.c.bf16 %v6738_v10, %v6738_v10  ;;  %v17733_v32 = vld [vmem:[#allocation33_spill] sm:$0xff]  ;;  %v13806_v45 = vld [vmem:[#allocation5 + $0xcc] ss:$24 sps:$4 sm:$0xff]  }
 0x525   :  { %vm16041_vm7 = vmpackc.low %vm6723_vm6, %vm6723_vm6  ;;  %v17734_v3 = vpack.c.bf16 %v17732_v41, %v17733_v32  ;;  %v17738_v39 = vld [vmem:[#allocation39_spill] sm:$0xff]  ;;  %v17739_v40 = vld [vmem:[#allocation37_spill] sm:$0xff] }
 0x526   :  { %5968 = vmatpush1.bf16.msra.mxu0 %v13791_v20  ;;  %17728 = vst [vmem:[#allocation131_spill] sm:$0xff] %v16036_v2  ;;  %v17730_v13 = vsel %vm16041_vm7, 4294967295, %v17729_v13  ;;  %v17740_v49 = vpack.c.bf16 %v17738_v39, %v17739_v40  ;;  %v17741_v20 = vld [vmem:[#allocation38_spill] sm:$0xff]  ;;  %v17750_v14 = vld [vmem:[#allocation47_spill] sm:$0xff]  ;;  %v17757_v10 = vld [vmem:[#allocation49_spill] sm:$0xff] }
 0x527   :  { %7017 = vmatpush1.bf16.msra.mxu1 %v17714_v33  ;;  %5969 = vmatprep.subr.bf16.mxu0 %v13792_v30  ;;  %17731 = vst [vmem:[#allocation128_spill] sm:$0xff] %v17730_v13  ;;  %v13808_v33 = vld [vmem:[#allocation11 + $0x764] ss:$24 sps:$4 sm:$0xff]   ;;  %v17743_v23 = vpack.c.bf16 %v17741_v20, %v17742_v11  ;;  %v17745_v30 = vld [vmem:[#allocation41_spill] sm:$0xff]  ;;  %v17760_v32 = vld [vmem:[#allocation48_spill] sm:$0xff] }
 0x528   :  { %7018 = vmatprep.subr.bf16.mxu1 %v17717_v26  ;;  %v17744_v26 = vld [vmem:[#allocation43_spill] sm:$0xff]  ;;  %v17753_v47 = vld [vmem:[#allocation46_spill] sm:$0xff]  ;;  %v17766_v39 = vld [vmem:[#allocation52_spill] sm:$0xff] }
 0x529   :  { %5655 = vmatmul.mubr.bf16.gmra.mrb[132].mxu0 %v13793_v17  ;;  %v17746_v17 = vpack.c.bf16 %v17744_v26, %v17745_v30  ;;  %v17759_v41 = vld [vmem:[#allocation50_spill] sm:$0xff]  ;;  %v17772_v30 = vld [vmem:[#allocation56_spill] sm:$0xff] }
 0x52a   :  { %5664 = vmatprep.mubr.bf16.mxu0 %v13794_v57  ;;  %5970 = vmatpush1.bf16.msra.mxu0 %v13795_v60  ;;  %v17747_v57 = vld [vmem:[#allocation42_spill] sm:$0xff] }
 0x52b   :  { %7019 = vmatpush1.bf16.msra.mxu1 %v17720_v56  ;;  %5971 = vmatprep.subr.bf16.mxu0 %v13796_v36  ;;  %v13811_v56 = vld [vmem:[#allocation11 + $0x794] ss:$24 sps:$4 sm:$0xff]   ;;  %v13821_v20 = vld [vmem:[#allocation11 + $0x820] ss:$24 sps:$4 sm:$0xff]   ;;  %v13877_v13 = vld [vmem:[#allocation5 + $0x5ac] ss:$24 sps:$4 sm:$0xff]  }
 0x52c   :  { %7020 = vmatprep.subr.bf16.mxu1 %v17721_v9  ;;  %v17748_v9 = vld [vmem:[#allocation40_spill] sm:$0xff]  ;;  %v13822_v11 = vld [vmem:[#allocation5 + $0x128] ss:$24 sps:$4 sm:$0xff]  }
 0x52d   :  { %v17749_v60 = vpack.c.bf16 %v17747_v57, %v17748_v9  ;;  %v13812_v36 = vld [vmem:[#allocation5 + $0xfc] ss:$24 sps:$4 sm:$0xff]   ;;  %v17771_v26 = vld [vmem:[#allocation58_spill] sm:$0xff]  ;;  %v13825_v9 = vld [vmem:[#allocation11 + $0x850] ss:$24 sps:$4 sm:$0xff]  }
 0x52e   :  { %5972 = vmatpush1.bf16.msra.mxu0 %v13797_v59  ;;  %v17754_v59 = vld [vmem:[#allocation44_spill] sm:$0xff] }
 0x52f   :  { %7021 = vmatpush1.bf16.msra.mxu1 %v17724_v16  ;;  %5973 = vmatprep.subr.bf16.mxu0 %v13798_v28  ;;  %v17752_v16 = vpack.c.bf16 %v17750_v14, %v17751_v12  ;;  %v17755_v28 = vpack.c.bf16 %v17753_v47, %v17754_v59  ;;  %v17778_v14 = vld [vmem:[#allocation60_spill] sm:$0xff]  ;;  %v13827_v47 = vld [vmem:[#allocation11 + $0x880] ss:$24 sps:$4 sm:$0xff]  }
 0x530   :  { %7022 = vmatprep.subr.bf16.mxu1 %v17725_v29  ;;  %v13813_v29 = vld [vmem:[#allocation11 + $0x790] ss:$24 sps:$4 sm:$0xff]  }
 0x531   :  { %5665 = vmatmul.mubr.bf16.gmra.mrb[136].mxu0 %v13799_v0  ;;  %v17756_v0 = vld [vmem:[#allocation51_spill] sm:$0xff] }
 0x532   :  { %5674 = vmatprep.mubr.bf16.mxu0 %v13800_v22  ;;  %5974 = vmatpush1.bf16.msra.mxu0 %v13801_v62  ;;  %v13815_v22 = vld [vmem:[#allocation11 + $0x7c0] ss:$24 sps:$4 sm:$0xff]   ;;  %v13816_v62 = vld [vmem:[#allocation5 + $0xf8] ss:$24 sps:$4 sm:$0xff]  }
 0x533   :  { %7023 = vmatpush1.bf16.msra.mxu1 %v17727_v38  ;;  %5975 = vmatprep.subr.bf16.mxu0 %v13802_v7  ;;  %v17758_v38 = vpack.c.bf16 %v17756_v0, %v17757_v10  ;;  %v13817_v7 = vld [vmem:[#allocation11 + $0x7f4] ss:$24 sps:$4 sm:$0xff]   ;;  %v13828_v59 = vld [vmem:[#allocation5 + $0x158] ss:$24 sps:$4 sm:$0xff]   ;;  %v17783_v0 = vld [vmem:[#allocation66_spill] sm:$0xff] }
 0x534   :  { %7024 = vmatprep.subr.bf16.mxu1 %v6948_v48  ;;  %v13804_v48 = vld [vmem:[#allocation11 + $0x734] ss:$24 sps:$4 sm:$0xff]  }
 0x535   :  { %v17784_v10 = vld [vmem:[#allocation64_spill] sm:$0xff] }
 0x536   :  { %5976 = vmatpush1.bf16.msra.mxu0 %v13803_v6  ;;  %v13818_v6 = vld [vmem:[#allocation5 + $0x12c] ss:$24 sps:$4 sm:$0xff]  }
 0x537   :  { %7025 = vmatpush1.bf16.msra.mxu1 %v6947_v18  ;;  %5977 = vmatprep.subr.bf16.mxu0 %v13804_v48  ;;  %v17737_v18 = vpack.c.bf16 %v17735_v1, %v17736_v63  ;;  %v17762_v48 = vld [vmem:[#allocation55_spill] sm:$0xff] }
 0x538   :  { %7035 = vmatprep.subr.bf16.mxu1 %v17734_v3  ;;  %v17761_v3 = vpack.c.bf16 %v17759_v41, %v17760_v32  ;;  %v13819_v63 = vld [vmem:[#allocation11 + $0x7f0] ss:$24 sps:$4 sm:$0xff]  }
 0x539   :  { %5675 = vmatmul.mubr.bf16.gmra.mrb[140].mxu0 %v13805_v44  ;;  %v17763_v44 = vld [vmem:[#allocation53_spill] sm:$0xff] }
 0x53a   :  { %10524 = vmatmul.mubr.msk.bf16.vlgmr.msra.gmra.mrb[240].mxu1 %vm16041_vm7, %v16036_v2  ;;  %5684 = vmatprep.mubr.bf16.mxu0 %v13806_v45  ;;  %v17764_v1 = vpack.c.bf16 %v17762_v48, %v17763_v44  ;;  %v17765_v45 = vld [vmem:[#allocation54_spill] sm:$0xff]  ;;  %v13831_v32 = vld [vmem:[#allocation11 + $0x8b0] ss:$24 sps:$4 sm:$0xff]  }
 0x53b   :  { %7036 = vmatpush1.bf16.msra.mxu1 %v17737_v18  ;;  %10527 = vmatprep.mubr.msk.bf16.mxu1 %vm15847_vm1, %v15833_v50  ;;  %v13820_v18 = vld [vmem:[#allocation11 + $0x824] ss:$24 sps:$4 sm:$0xff]   ;;  %v17767_v40 = vpack.c.bf16 %v17765_v45, %v17766_v39  ;;  %v17790_v48 = vld [vmem:[#allocation68_spill] sm:$0xff]  ;;  %v13833_v45 = vld [vmem:[#allocation11 + $0x8e0] ss:$24 sps:$4 sm:$0xff]  }
 0x53c   :  { %7037 = vmatprep.subr.bf16.mxu1 %v17740_v49  ;;  %5978 = vmatpush1.bf16.msra.mxu0 %v13807_v27  ;;  %v17768_v49 = vld [vmem:[#allocation59_spill] sm:$0xff]  ;;  %v17769_v27 = vld [vmem:[#allocation57_spill] sm:$0xff] }
 0x53d   :  { %5979 = vmatprep.subr.bf16.mxu0 %v13808_v33  ;;  %v17770_v33 = vpack.c.bf16 %v17768_v49, %v17769_v27  ;;  %v13834_v39 = vld [vmem:[#allocation5 + $0x188] ss:$24 sps:$4 sm:$0xff]   ;;  %v17796_v49 = vld [vmem:[#allocation72_spill] sm:$0xff] }
 0x53f   :  { %7038 = vmatpush1.bf16.msra.mxu1 %v17743_v23  ;;  %v13823_v23 = vld [vmem:[#allocation11 + $0x854] ss:$24 sps:$4 sm:$0xff]  }
 0x540   :  { %7039 = vmatprep.subr.bf16.mxu1 %v17746_v17  ;;  %5980 = vmatpush1.bf16.msra.mxu0 %v13809_v15  ;;  %v17773_v17 = vpack.c.bf16 %v17771_v26, %v17772_v30  ;;  %v13824_v15 = vld [vmem:[#allocation5 + $0x15c] ss:$24 sps:$4 sm:$0xff]   ;;  %v17801_v26 = vld [vmem:[#allocation78_spill] sm:$0xff] }
 0x541   :  { %5685 = vmatmul.mubr.bf16.gmra.mrb[144].mxu0 %v13810_v4  ;;  %5981 = vmatprep.subr.bf16.mxu0 %v13811_v56  ;;  %v17774_v4 = vld [vmem:[#allocation63_spill] sm:$0xff]  ;;  %v17775_v56 = vld [vmem:[#allocation61_spill] sm:$0xff]  ;;  %v17802_v30 = vld [vmem:[#allocation76_spill] sm:$0xff] }
 0x542   :  { %5694 = vmatprep.mubr.bf16.mxu0 %v13812_v36  ;;  %v17776_v57 = vpack.c.bf16 %v17774_v4, %v17775_v56  ;;  %v17777_v36 = vld [vmem:[#allocation62_spill] sm:$0xff]  ;;  %v17805_v4 = vld [vmem:[#allocation81_spill] sm:$0xff] }
 0x543   :  { %7040 = vmatpush1.bf16.msra.mxu1 %v17749_v60  ;;  %v13826_v60 = vld [vmem:[#allocation11 + $0x884] ss:$24 sps:$4 sm:$0xff]   ;;  %v17779_v12 = vpack.c.bf16 %v17777_v36, %v17778_v14 }
 0x544   :  { %7041 = vmatprep.subr.bf16.mxu1 %v17752_v16  ;;  %5982 = vmatpush1.bf16.msra.mxu0 %v13813_v29  ;;  %v17780_v16 = vld [vmem:[#allocation67_spill] sm:$0xff]  ;;  %v17781_v29 = vld [vmem:[#allocation65_spill] sm:$0xff] }
 0x545   :  { %5983 = vmatprep.subr.bf16.mxu0 %v13814_v24  ;;  %v17782_v24 = vpack.c.bf16 %v17780_v16, %v17781_v29  ;;  %v13837_v14 = vld [vmem:[#allocation5 + $0x1ec] ss:$24 sps:$4 sm:$0xff]   ;;  %v17811_v16 = vld [vmem:[#allocation85_spill] sm:$0xff] }
 0x547   :  { %7042 = vmatpush1.bf16.msra.mxu1 %v17755_v28  ;;  %v13829_v28 = vld [vmem:[#allocation11 + $0x8b4] ss:$24 sps:$4 sm:$0xff]  }
 0x548   :  { %7043 = vmatprep.subr.bf16.mxu1 %v17758_v38  ;;  %5984 = vmatpush1.bf16.msra.mxu0 %v13815_v22  ;;  %v17785_v38 = vpack.c.bf16 %v17783_v0, %v17784_v10  ;;  %v13830_v22 = vld [vmem:[#allocation5 + $0x18c] ss:$24 sps:$4 sm:$0xff]   ;;  %v17817_v0 = vld [vmem:[#allocation89_spill] sm:$0xff] }
 0x549   :  { %5695 = vmatmul.mubr.bf16.gmra.mrb[148].mxu0 %v13816_v62  ;;  %5985 = vmatprep.subr.bf16.mxu0 %v13817_v7  ;;  %v17786_v62 = vld [vmem:[#allocation71_spill] sm:$0xff]  ;;  %v17787_v7 = vld [vmem:[#allocation69_spill] sm:$0xff] }
 0x54a   :  { %5704 = vmatprep.mubr.bf16.mxu0 %v13818_v6  ;;  %v17788_v41 = vpack.c.bf16 %v17786_v62, %v17787_v7  ;;  %v17789_v6 = vld [vmem:[#allocation70_spill] sm:$0xff]  ;;  %v17820_v62 = vld [vmem:[#allocation88_spill] sm:$0xff] }
 0x54b   :  { %7044 = vmatpush1.bf16.msra.mxu1 %v17761_v3  ;;  %v13832_v3 = vld [vmem:[#allocation11 + $0x8e4] ss:$24 sps:$4 sm:$0xff]   ;;  %v17791_v44 = vpack.c.bf16 %v17789_v6, %v17790_v48 }
 0x54c   :  { %7045 = vmatprep.subr.bf16.mxu1 %v17764_v1  ;;  %5986 = vmatpush1.bf16.msra.mxu0 %v13819_v63  ;;  %v17792_v1 = vld [vmem:[#allocation75_spill] sm:$0xff]  ;;  %v17793_v63 = vld [vmem:[#allocation73_spill] sm:$0xff]  ;;  %v17825_v48 = vld [vmem:[#allocation94_spill] sm:$0xff] }
 0x54d   :  { %5987 = vmatprep.subr.bf16.mxu0 %v13820_v18  ;;  %v17794_v18 = vpack.c.bf16 %v17792_v1, %v17793_v63  ;;  %v17828_v63 = vld [vmem:[#allocation99_spill] sm:$0xff] }
 0x54f   :  { %7046 = vmatpush1.bf16.msra.mxu1 %v17767_v40  ;;  %v17795_v40 = vld [vmem:[#allocation74_spill] sm:$0xff] }
 0x550   :  { %7047 = vmatprep.subr.bf16.mxu1 %v17770_v33  ;;  %5988 = vmatpush1.bf16.msra.mxu0 %v13821_v20  ;;  %v17797_v27 = vpack.c.bf16 %v17795_v40, %v17796_v49  ;;  %v13835_v33 = vld [vmem:[#allocation5 + $0x1bc] ss:$24 sps:$4 sm:$0xff]   ;;  %v17798_v20 = vld [vmem:[#allocation79_spill] sm:$0xff]  ;;  %v17831_v40 = vld [vmem:[#allocation98_spill] sm:$0xff] }
 0x551   :  { %5705 = vmatmul.mubr.bf16.gmra.mrb[152].mxu0 %v13822_v11  ;;  %5989 = vmatprep.subr.bf16.mxu0 %v13823_v23  ;;  %v17799_v11 = vld [vmem:[#allocation77_spill] sm:$0xff]  ;;  %v17832_v49 = vld [vmem:[#allocation96_spill] sm:$0xff] }
 0x552   :  { %5714 = vmatprep.mubr.bf16.mxu0 %v13824_v15  ;;  %v17800_v23 = vpack.c.bf16 %v17798_v20, %v17799_v11  ;;  %v17804_v15 = vld [vmem:[#allocation83_spill] sm:$0xff]  ;;  %v17835_v11 = vld [vmem:[#allocation101_spill] sm:$0xff] }
 0x553   :  { %7048 = vmatpush1.bf16.msra.mxu1 %v17773_v17  ;;  %v17803_v17 = vpack.c.bf16 %v17801_v26, %v17802_v30  ;;  %v17806_v56 = vpack.c.bf16 %v17804_v15, %v17805_v4  ;;  %v17834_v20 = vld [vmem:[#allocation103_spill] sm:$0xff]  ;;  %v17837_v26 = vld [vmem:[#allocation102_spill] sm:$0xff]  ;;  %v17838_v30 = vld [vmem:[#allocation100_spill] sm:$0xff] }
 0x554   :  { %7049 = vmatprep.subr.bf16.mxu1 %v17776_v57  ;;  %5990 = vmatpush1.bf16.msra.mxu0 %v13825_v9  ;;  %v13836_v57 = vld [vmem:[#allocation5 + $0x1b8] ss:$24 sps:$4 sm:$0xff]   ;;  %v17807_v9 = vld [vmem:[#allocation82_spill] sm:$0xff] }
 0x555   :  { %5991 = vmatprep.subr.bf16.mxu0 %v13826_v60  ;;  %v17808_v60 = vld [vmem:[#allocation80_spill] sm:$0xff]  ;;  %v17840_v15 = vld [vmem:[#allocation107_spill] sm:$0xff]  ;;  %v17841_v4 = vld [vmem:[#allocation105_spill] sm:$0xff] }
 0x556   :  { %v17809_v36 = vpack.c.bf16 %v17807_v9, %v17808_v60  ;;  %v17843_v9 = vld [vmem:[#allocation106_spill] sm:$0xff]  ;;  %v17844_v60 = vld [vmem:[#allocation104_spill] sm:$0xff] }
 0x557   :  { %7050 = vmatpush1.bf16.msra.mxu1 %v17779_v12  ;;  %v17810_v12 = vld [vmem:[#allocation87_spill] sm:$0xff] }
 0x558   :  { %7051 = vmatprep.subr.bf16.mxu1 %v17782_v24  ;;  %5992 = vmatpush1.bf16.msra.mxu0 %v13827_v47  ;;  %v17812_v29 = vpack.c.bf16 %v17810_v12, %v17811_v16  ;;  %v17813_v24 = vld [vmem:[#allocation86_spill] sm:$0xff]  ;;  %v17814_v47 = vld [vmem:[#allocation84_spill] sm:$0xff]  ;;  %v17846_v12 = vld [vmem:[#allocation111_spill] sm:$0xff] }
 0x559   :  { %5715 = vmatmul.mubr.bf16.gmra.mrb[156].mxu0 %v13828_v59  ;;  %5993 = vmatprep.subr.bf16.mxu0 %v13829_v28  ;;  %v17815_v59 = vpack.c.bf16 %v17813_v24, %v17814_v47  ;;  %v17816_v28 = vld [vmem:[#allocation91_spill] sm:$0xff]  ;;  %v17847_v16 = vld [vmem:[#allocation109_spill] sm:$0xff]  ;;  %v17849_v24 = vld [vmem:[#allocation110_spill] sm:$0xff] }
 0x55a   :  { %5724 = vmatprep.mubr.bf16.mxu0 %v13830_v22  ;;  %v17818_v10 = vpack.c.bf16 %v17816_v28, %v17817_v0  ;;  %v17819_v22 = vld [vmem:[#allocation90_spill] sm:$0xff]  ;;  %v17850_v47 = vld [vmem:[#allocation108_spill] sm:$0xff]  ;;  %v17852_v28 = vld [vmem:[#allocation115_spill] sm:$0xff] }
 0x55b   :  { %7052 = vmatpush1.bf16.msra.mxu1 %v17785_v38  ;;  %v13838_v38 = vld [vmem:[#allocation5 + $0x1e8] ss:$24 sps:$4 sm:$0xff]   ;;  %v17821_v7 = vpack.c.bf16 %v17819_v22, %v17820_v62  ;;  %v17856_v62 = vld [vmem:[#allocation112_spill] sm:$0xff] }
 0x55c   :  { %7053 = vmatprep.subr.bf16.mxu1 %v17788_v41  ;;  %5994 = vmatpush1.bf16.msra.mxu0 %v13831_v32  ;;  %v13839_v41 = vld [vmem:[#allocation5 + $0x21c] ss:$24 sps:$4 sm:$0xff]   ;;  %v17822_v32 = vld [vmem:[#allocation95_spill] sm:$0xff]  ;;  %v17855_v22 = vld [vmem:[#allocation114_spill] sm:$0xff] }
 0x55d   :  { %5995 = vmatprep.subr.bf16.mxu0 %v13832_v3  ;;  %v17823_v3 = vld [vmem:[#allocation93_spill] sm:$0xff] }
 0x55e   :  { %v17824_v6 = vpack.c.bf16 %v17822_v32, %v17823_v3  ;;  %v17853_v0 = vld [vmem:[#allocation113_spill] sm:$0xff]  ;;  %v17858_v32 = vld [vmem:[#allocation119_spill] sm:$0xff] }
 0x55f   :  { %7054 = vmatpush1.bf16.msra.mxu1 %v17791_v44  ;;  %v17826_v44 = vld [vmem:[#allocation92_spill] sm:$0xff]  ;;  %v17859_v3 = vld [vmem:[#allocation117_spill] sm:$0xff] }
 0x560   :  { %7055 = vmatprep.subr.bf16.mxu1 %v17794_v18  ;;  %5996 = vmatpush1.bf16.msra.mxu0 %v13833_v45  ;;  %v17827_v1 = vpack.c.bf16 %v17825_v48, %v17826_v44  ;;  %v17829_v18 = vld [vmem:[#allocation97_spill] sm:$0xff]  ;;  %v17861_v48 = vld [vmem:[#allocation118_spill] sm:$0xff]  ;;  %v17862_v44 = vld [vmem:[#allocation116_spill] sm:$0xff] }
 0x561   :  { %5725 = vmatmul.mubr.bf16.gmra.mrb[160].mxu0 %v13834_v39  ;;  %v17830_v45 = vpack.c.bf16 %v17828_v63, %v17829_v18  ;;  %v13840_v39 = vld [vmem:[#allocation5 + $0x218] ss:$24 sps:$4 sm:$0xff]  }
 0x562   :  { %5734 = vmatprep.mubr.bf16.mxu0 %v13835_v33  ;;  %v13841_v33 = vld [vmem:[#allocation5 + $0x24c] ss:$24 sps:$4 sm:$0xff]   ;;  %v17865_v18 = vld [vmem:[#allocation121_spill] sm:$0xff] }
 0x563   :  { %7056 = vmatpush1.bf16.msra.mxu1 %v17797_v27  ;;  %v17833_v27 = vpack.c.bf16 %v17831_v40, %v17832_v49  ;;  %v17864_v63 = vld [vmem:[#allocation123_spill] sm:$0xff]  ;;  %v17867_v40 = vld [vmem:[#allocation122_spill] sm:$0xff]  ;;  %v17868_v49 = vld [vmem:[#allocation120_spill] sm:$0xff] }
 0x564   :  { %7057 = vmatprep.subr.bf16.mxu1 %v17800_v23  ;;  %v17836_v23 = vpack.c.bf16 %v17834_v20, %v17835_v11  ;;  %v17870_v20 = vld [vmem:[#allocation127_spill] sm:$0xff]  ;;  %v17871_v11 = vld [vmem:[#allocation125_spill] sm:$0xff] }
 0x567   :  { %7058 = vmatpush1.bf16.msra.mxu1 %v17803_v17  ;;  %v17839_v17 = vpack.c.bf16 %v17837_v26, %v17838_v30  ;;  %v17873_v26 = vld [vmem:[#allocation126_spill] sm:$0xff]  ;;  %v17874_v30 = vld [vmem:[#allocation124_spill] sm:$0xff] }
 0x568   :  { %7059 = vmatprep.subr.bf16.mxu1 %v17806_v56  ;;  %v17842_v56 = vpack.c.bf16 %v17840_v15, %v17841_v4  ;;  %v17876_v15 = vld [vmem:[#allocation133_spill] sm:$0xff]  ;;  %v17877_v4 = vld [vmem:[#allocation130_spill] sm:$0xff] }
 0x569   :  { %5735 = vmatmul.mubr.bf16.gmra.mrb[164].mxu0 %v13836_v57  ;;  %v13842_v57 = vld [vmem:[#allocation5 + $0x248] ss:$24 sps:$4 sm:$0xff]  }
 0x56a   :  { %5744 = vmatprep.mubr.bf16.mxu0 %v13837_v14  ;;  %v13843_v14 = vld [vmem:[#allocation5 + $0x27c] ss:$24 sps:$4 sm:$0xff]  }
 0x56b   :  { %7060 = vmatpush1.bf16.msra.mxu1 %v17809_v36  ;;  %v17845_v36 = vpack.c.bf16 %v17843_v9, %v17844_v60  ;;  %v17879_v9 = vld [vmem:[#allocation132_spill] sm:$0xff]  ;;  %v17880_v60 = vld [vmem:[#allocation129_spill] sm:$0xff] }
 0x56c   :  { %7061 = vmatprep.subr.bf16.mxu1 %v17812_v29  ;;  %v17848_v29 = vpack.c.bf16 %v17846_v12, %v17847_v16  ;;  %v17882_v12 = vld [vmem:[#allocation141_spill] sm:$0xff] }
 0x56d   :  { %v17883_v16 = vld [vmem:[#allocation137_spill] sm:$0xff] }
 0x56f   :  { %7062 = vmatpush1.bf16.msra.mxu1 %v17815_v59  ;;  %v17851_v59 = vpack.c.bf16 %v17849_v24, %v17850_v47  ;;  %v17885_v24 = vld [vmem:[#allocation139_spill] sm:$0xff] }
 0x570   :  { %7063 = vmatprep.subr.bf16.mxu1 %v17818_v10  ;;  %v17854_v10 = vpack.c.bf16 %v17852_v28, %v17853_v0  ;;  %v17886_v47 = vld [vmem:[#allocation135_spill] sm:$0xff]  ;;  %v17888_v28 = vld [vmem:[#allocation149_spill] sm:$0xff] }
 0x571   :  { %5745 = vmatmul.mubr.bf16.gmra.mrb[168].mxu0 %v13838_v38  ;;  %v13844_v38 = vld [vmem:[#allocation5 + $0x278] ss:$24 sps:$4 sm:$0xff]  }
 0x572   :  { %5754 = vmatprep.mubr.bf16.mxu0 %v13839_v41  ;;  %v13845_v41 = vld [vmem:[#allocation5 + $0x2ac] ss:$24 sps:$4 sm:$0xff]   ;;  %v17889_v0 = vld [vmem:[#allocation145_spill] sm:$0xff] }
 0x573   :  { %7064 = vmatpush1.bf16.msra.mxu1 %v17821_v7  ;;  %v17857_v7 = vpack.c.bf16 %v17855_v22, %v17856_v62  ;;  %v13850_v22 = vld [vmem:[#allocation5 + $0x308] ss:$24 sps:$4 sm:$0xff]  }
 0x574   :  { %7065 = vmatprep.subr.bf16.mxu1 %v17824_v6  ;;  %v17860_v6 = vpack.c.bf16 %v17858_v32, %v17859_v3  ;;  %v13851_v3 = vld [vmem:[#allocation5 + $0x33c] ss:$24 sps:$4 sm:$0xff]  }
 0x577   :  { %7066 = vmatpush1.bf16.msra.mxu1 %v17827_v1  ;;  %v17863_v1 = vpack.c.bf16 %v17861_v48, %v17862_v44  ;;  %v17894_v48 = vld [vmem:[#allocation157_spill] sm:$0xff] }
 0x578   :  { %7076 = vmatprep.subr.bf16.mxu1 %v17830_v45  ;;  %v17866_v45 = vpack.c.bf16 %v17864_v63, %v17865_v18  ;;  %v17895_v44 = vld [vmem:[#allocation153_spill] sm:$0xff]  ;;  %v17897_v18 = vld [vmem:[#allocation155_spill] sm:$0xff] }
 0x579   :  { %5755 = vmatmul.mubr.bf16.gmra.mrb[172].mxu0 %v13840_v39  ;;  %v13846_v39 = vld [vmem:[#allocation5 + $0x2a8] ss:$24 sps:$4 sm:$0xff]  }
 0x57a   :  { %10530 = vmatmul.mubr.msk.bf16.vlgmr.msra.gmra.mrb[244].mxu1 %vm15889_vm4, %v15884_v8  ;;  %5764 = vmatprep.mubr.bf16.mxu0 %v13841_v33  ;;  %v13847_v33 = vld [vmem:[#allocation5 + $0x2dc] ss:$24 sps:$4 sm:$0xff]  }
 0x57b   :  { %7077 = vmatpush1.bf16.msra.mxu1 %v17833_v27  ;;  %10533 = vmatprep.mubr.msk.bf16.mxu1 %vm15905_vm5, %v15897_v58  ;;  %v17869_v27 = vpack.c.bf16 %v17867_v40, %v17868_v49  ;;  %v17900_v40 = vld [vmem:[#allocation165_spill] sm:$0xff] }
 0x57c   :  { %7078 = vmatprep.subr.bf16.mxu1 %v17836_v23  ;;  %v17872_v23 = vpack.c.bf16 %v17870_v20, %v17871_v11  ;;  %v17901_v49 = vld [vmem:[#allocation161_spill] sm:$0xff] }
 0x57d   :  { %v13852_v20 = vld [vmem:[#allocation5 + $0x338] ss:$24 sps:$4 sm:$0xff]   ;;  %v13878_v58 = vld [vmem:[#allocation5 + $0x5a8] ss:$24 sps:$4 sm:$0xff]  }
 0x57f   :  { %7079 = vmatpush1.bf16.msra.mxu1 %v17839_v17  ;;  %v17875_v17 = vpack.c.bf16 %v17873_v26, %v17874_v30  ;;  %v17904_v26 = vld [vmem:[#allocation159_spill] sm:$0xff] }
 0x580   :  { %7080 = vmatprep.subr.bf16.mxu1 %v17842_v56  ;;  %v17878_v56 = vpack.c.bf16 %v17876_v15, %v17877_v4  ;;  %v17906_v4 = vpack.c.bf16 %v15855_v55, %v15822_v21  ;;  %v13855_v55 = vld [vmem:[#allocation5 + $0x39c] ss:$24 sps:$4 sm:$0xff]  }
 0x581   :  { %5765 = vmatmul.mubr.bf16.gmra.mrb[176].mxu0 %v13842_v57  ;;  %v13848_v57 = vld [vmem:[#allocation5 + $0x2d8] ss:$24 sps:$4 sm:$0xff]  }
 0x582   :  { %5774 = vmatprep.mubr.bf16.mxu0 %v13843_v14  ;;  %v13849_v14 = vld [vmem:[#allocation5 + $0x30c] ss:$24 sps:$4 sm:$0xff]  }
 0x583   :  { %7081 = vmatpush1.bf16.msra.mxu1 %v17845_v36  ;;  %v17881_v36 = vpack.c.bf16 %v17879_v9, %v17880_v60  ;;  %v17908_v9 = vpack.c.bf16 %v15901_v42, %v15880_v51  ;;  %v13856_v51 = vld [vmem:[#allocation5 + $0x398] ss:$24 sps:$4 sm:$0xff]   ;;  %v13857_v42 = vld [vmem:[#allocation5 + $0x3cc] ss:$24 sps:$4 sm:$0xff]  }
 0x584   :  { %7082 = vmatprep.subr.bf16.mxu1 %v17848_v29  ;;  %v17884_v29 = vpack.c.bf16 %v17882_v12, %v17883_v16  ;;  %v17909_v12 = vld [vmem:[#allocation168_spill] sm:$0xff] }
 0x585   :  { %v17910_v21 = vpack.c.bf16 %v15887_v25, %v17909_v12 }
 0x587   :  { %7083 = vmatpush1.bf16.msra.mxu1 %v17851_v59  ;;  %v17887_v59 = vpack.c.bf16 %v17885_v24, %v17886_v47 }
 0x588   :  { %7084 = vmatprep.subr.bf16.mxu1 %v17854_v10  ;;  %v17890_v10 = vpack.c.bf16 %v17888_v28, %v17889_v0 }
 0x589   :  { %5775 = vmatmul.mubr.bf16.gmra.mrb[180].mxu0 %v13844_v38  ;;  %v16216_v38 = vpop.f32.mrb[128].mxu1 }
 0x58a   :  { %5784 = vmatprep.mubr.bf16.mxu0 %v13845_v41  ;;  %v16218_v62 = vpop.f32.mrb[129].mxu1  ;;  %v17892_v41 = vld [vmem:[#allocation143_spill] sm:$0xff] }
 0x58b   :  { %7085 = vmatpush1.bf16.msra.mxu1 %v17857_v7  ;;  %v17891_v7 = vld [vmem:[#allocation147_spill] sm:$0xff] }
 0x58c   :  { %7086 = vmatprep.subr.bf16.mxu1 %v17860_v6  ;;  %v17893_v32 = vpack.c.bf16 %v17891_v7, %v17892_v41  ;;  %v16223_v6 = vpop.f32.mrb[130].mxu1  ;;  %v13863_v41 = vld [vmem:[#allocation5 + $0x45c] ss:$24 sps:$4 sm:$0xff]  }
 0x58d   :  { %v16228_v63 = vpop.f32.mrb[131].mxu1 }
 0x58f   :  { %7087 = vmatpush1.bf16.msra.mxu1 %v17863_v1  ;;  %v17896_v1 = vpack.c.bf16 %v17894_v48, %v17895_v44  ;;  %v13864_v44 = vld [vmem:[#allocation5 + $0x458] ss:$24 sps:$4 sm:$0xff]  }
 0x590   :  { %7088 = vmatprep.subr.bf16.mxu1 %v17866_v45  ;;  %v17898_v45 = vld [vmem:[#allocation151_spill] sm:$0xff] }
 0x591   :  { %5785 = vmatmul.mubr.bf16.gmra.mrb[184].mxu0 %v13846_v39  ;;  %v17899_v39 = vpack.c.bf16 %v17897_v18, %v17898_v45  ;;  %v13865_v18 = vld [vmem:[#allocation5 + $0x48c] ss:$24 sps:$4 sm:$0xff]  }
 0x592   :  { %5794 = vmatprep.mubr.bf16.mxu0 %v13847_v33  ;;  %v16236_v33 = vpop.f32.mrb[132].mxu1 }
 0x593   :  { %7089 = vmatpush1.bf16.msra.mxu1 %v17869_v27  ;;  %v17902_v27 = vpack.c.bf16 %v17900_v40, %v17901_v49  ;;  %v16238_v11 = vpop.f32.mrb[133].mxu1  ;;  %v13866_v49 = vld [vmem:[#allocation5 + $0x488] ss:$24 sps:$4 sm:$0xff]  }
 0x594   :  { %7090 = vmatprep.subr.bf16.mxu1 %v17872_v23  ;;  %v17903_v23 = vld [vmem:[#allocation163_spill] sm:$0xff]  ;;  %v16243_v15 = vpop.f32.mrb[134].mxu1 }
 0x595   :  { %v17905_v30 = vpack.c.bf16 %v17903_v23, %v17904_v26 }
 0x597   :  { %7091 = vmatpush1.bf16.msra.mxu1 %v17875_v17  ;;  %v13853_v17 = vld [vmem:[#allocation5 + $0x36c] ss:$24 sps:$4 sm:$0xff]  }
 0x598   :  { %7092 = vmatprep.subr.bf16.mxu1 %v17878_v56  ;;  %v16248_v56 = vpop.f32.mrb[135].mxu1 }
 0x599   :  { %5795 = vmatmul.mubr.bf16.gmra.mrb[188].mxu0 %v13848_v57  ;;  %v17907_v57 = vpack.c.bf16 %v15835_v35, %v15817_v52  ;;  %v16256_v60 = vpop.f32.mrb[136].mxu1 }
 0x59a   :  { %5804 = vmatprep.mubr.bf16.mxu0 %v13849_v14  ;;  %v16258_v14 = vpop.f32.mrb[137].mxu1 }
 0x59b   :  { %7093 = vmatpush1.bf16.msra.mxu1 %v17881_v36  ;;  %v13854_v36 = vld [vmem:[#allocation5 + $0x368] ss:$24 sps:$4 sm:$0xff]   ;;  %v16263_v16 = vpop.f32.mrb[138].mxu1 }
 0x59c   :  { %7094 = vmatprep.subr.bf16.mxu1 %v17884_v29  ;;  %v16268_v35 = vpop.f32.mrb[139].mxu1 }
 0x59d   :  { %v16273_v52 = vpop.f32.mrb[140].mxu1 }
 0x59e   :  { %v16275_v25 = vpop.f32.mrb[141].mxu1 }
 0x59f   :  { %7095 = vmatpush1.bf16.msra.mxu1 %v17887_v59  ;;  %v16280_v19 = vpop.f32.mrb[142].mxu1  ;;  %v13860_v59 = vld [vmem:[#allocation5 + $0x3f8] ss:$24 sps:$4 sm:$0xff]  }
 0x5a0   :  { %7096 = vmatprep.subr.bf16.mxu1 %v17890_v10  ;;  %v16285_v53 = vpop.f32.mrb[143].mxu1 }
 0x5a1   :  { %5805 = vmatmul.mubr.bf16.gmra.mrb[192].mxu0 %v13850_v22  ;;  %v16287_v54 = vpop.f32.mrb[144].mxu1  ;;  %v13862_v22 = vld [vmem:[#allocation5 + $0x428] ss:$24 sps:$4 sm:$0xff]  }
 0x5a2   :  { %5814 = vmatprep.mubr.bf16.mxu0 %v13851_v3  ;;  %v16289_v31 = vpop.f32.mrb[145].mxu1 }
 0x5a3   :  { %7097 = vmatpush1.bf16.msra.mxu1 %v17893_v32  ;;  %v16291_v29 = vpop.f32.mrb[146].mxu1 }
 0x5a4   :  { %7098 = vmatprep.subr.bf16.mxu1 %v17896_v1  ;;  %v16293_v24 = vpop.f32.mrb[147].mxu1 }
 0x5a5   :  { %v16295_v47 = vpop.f32.mrb[148].mxu1 }
 0x5a6   :  { %v16297_v43 = vpop.f32.mrb[149].mxu1 }
 0x5a7   :  { %7099 = vmatpush1.bf16.msra.mxu1 %v17899_v39  ;;  %v16299_v28 = vpop.f32.mrb[150].mxu1 }
 0x5a8   :  { %7100 = vmatprep.subr.bf16.mxu1 %v17902_v27  ;;  %v16301_v0 = vpop.f32.mrb[151].mxu1 }
 0x5a9   :  { %5815 = vmatmul.mubr.bf16.gmra.mrb[196].mxu0 %v13852_v20  ;;  %v16303_v10 = vpop.f32.mrb[152].mxu1  ;;  %v13867_v20 = vld [vmem:[#allocation5 + $0x4bc] ss:$24 sps:$4 sm:$0xff]  }
 0x5aa   :  { %5824 = vmatprep.mubr.bf16.mxu0 %v13853_v17  ;;  %v16305_v7 = vpop.f32.mrb[153].mxu1  ;;  %v13868_v17 = vld [vmem:[#allocation5 + $0x4b8] ss:$24 sps:$4 sm:$0xff]  }
 0x5ab   :  { %7101 = vmatpush1.bf16.msra.mxu1 %v17905_v30  ;;  %v16307_v32 = vpop.f32.mrb[154].mxu1 }
 0x5ac   :  { %7102 = vmatprep.subr.bf16.mxu1 %v17906_v4  ;;  %v16309_v3 = vpop.f32.mrb[155].mxu1 }
 0x5ad   :  { %v16311_v48 = vpop.f32.mrb[156].mxu1 }
 0x5ae   :  { %v16313_v1 = vpop.f32.mrb[157].mxu1 }
 0x5af   :  { %7103 = vmatpush1.bf16.msra.mxu1 %v17907_v57  ;;  %v16315_v45 = vpop.f32.mrb[158].mxu1  ;;  %v13869_v57 = vld [vmem:[#allocation5 + $0x4ec] ss:$24 sps:$4 sm:$0xff]  }
 0x5b0   :  { %7104 = vmatprep.subr.bf16.mxu1 %v17908_v9  ;;  %v16317_v39 = vpop.f32.mrb[159].mxu1 }
 0x5b1   :  { %5825 = vmatmul.mubr.bf16.gmra.mrb[200].mxu0 %v13854_v36  ;;  %v16319_v40 = vpop.f32.mrb[160].mxu1 }
 0x5b2   :  { %5834 = vmatprep.mubr.bf16.mxu0 %v13855_v55  ;;  %v16321_v27 = vpop.f32.mrb[161].mxu1 }
 0x5b3   :  { %7105 = vmatpush1.bf16.msra.mxu1 %v17910_v21  ;;  %v16323_v23 = vpop.f32.mrb[162].mxu1  ;;  %v13870_v21 = vld [vmem:[#allocation5 + $0x4e8] ss:$24 sps:$4 sm:$0xff]  }
 0x5b4   :  { %7106 = vmatprep.subr.bf16.mxu1 %v6950_v34  ;;  %v13859_v34 = vld [vmem:[#allocation5 + $0x3fc] ss:$24 sps:$4 sm:$0xff]   ;;  %v16325_v26 = vpop.f32.mrb[163].mxu1 }
 0x5b5   :  { %v16327_v30 = vpop.f32.mrb[164].mxu1 }
 0x5b6   :  { %v16329_v4 = vpop.f32.mrb[165].mxu1 }
 0x5b7   :  { %7107 = vmatpush1.bf16.msra.mxu1 %v6949_v37  ;;  %v13858_v37 = vld [vmem:[#allocation5 + $0x3c8] ss:$24 sps:$4 sm:$0xff]   ;;  %v16331_v9 = vpop.f32.mrb[166].mxu1 }
 0x5b8   :  { %v16333_v36 = vpop.f32.mrb[167].mxu1 }
 0x5b9   :  { %5835 = vmatmul.mubr.bf16.gmra.mrb[204].mxu0 %v13856_v51  ;;  %v16335_v12 = vpop.f32.mrb[168].mxu1  ;;  %v13871_v51 = vld [vmem:[#allocation5 + $0x51c] ss:$24 sps:$4 sm:$0xff]  }
 0x5ba   :  { %10536 = vmatmul.mubr.msk.bf16.vlgmr.msra.gmra.mrb[248].mxu1 %vm16041_vm7, %v16036_v2  ;;  %5844 = vmatprep.mubr.bf16.mxu0 %v13857_v42  ;;  %v16337_v55 = vpop.f32.mrb[169].mxu1 }
 0x5bb   :  { %10539 = vmatprep.mubr.msk.bf16.mxu1 %vm15847_vm1, %v15833_v50  ;;  %v13861_v50 = vld [vmem:[#allocation5 + $0x42c] ss:$24 sps:$4 sm:$0xff]   ;;  %v16339_v42 = vpop.f32.mrb[170].mxu1 }
 0x5c1   :  { %5845 = vmatmul.mubr.bf16.gmra.mrb[208].mxu0 %v13858_v37  ;;  %v16341_v37 = vpop.f32.mrb[171].mxu1 }
 0x5c2   :  { %5854 = vmatprep.mubr.bf16.mxu0 %v13859_v34  ;;  %v16343_v34 = vpop.f32.mrb[172].mxu1 }
 0x5c9   :  { %5855 = vmatmul.mubr.bf16.gmra.mrb[212].mxu0 %v13860_v59  ;;  %v13872_v59 = vld [vmem:[#allocation5 + $0x518] ss:$24 sps:$4 sm:$0xff]  }
 0x5ca   :  { %5864 = vmatprep.mubr.bf16.mxu0 %v13861_v50  ;;  %v16345_v50 = vpop.f32.mrb[173].mxu1 }
 0x5d1   :  { %5865 = vmatmul.mubr.bf16.gmra.mrb[216].mxu0 %v13862_v22  ;;  %v13873_v22 = vld [vmem:[#allocation5 + $0x54c] ss:$24 sps:$4 sm:$0xff]  }
 0x5d2   :  { %5874 = vmatprep.mubr.bf16.mxu0 %v13863_v41  ;;  %v16347_v41 = vpop.f32.mrb[174].mxu1 }
 0x5d9   :  { %5875 = vmatmul.mubr.bf16.gmra.mrb[220].mxu0 %v13864_v44  ;;  %v16349_v44 = vpop.f32.mrb[175].mxu1 }
 0x5da   :  { %5884 = vmatprep.mubr.bf16.mxu0 %v13865_v18  ;;  %v16351_v18 = vpop.f32.mrb[176].mxu1 }
 0x5e1   :  { %5885 = vmatmul.mubr.bf16.gmra.mrb[224].mxu0 %v13866_v49  ;;  %v13874_v49 = vld [vmem:[#allocation5 + $0x548] ss:$24 sps:$4 sm:$0xff]  }
 0x5e2   :  { %5894 = vmatprep.mubr.bf16.mxu0 %v13867_v20  ;;  %v16353_v20 = vpop.f32.mrb[177].mxu1 }
 0x5e3   :  { %17911 = vst [vmem:[#allocation140_spill] sm:$0xff] %v16353_v20 }
 0x5e9   :  { %5895 = vmatmul.mubr.bf16.gmra.mrb[228].mxu0 %v13868_v17  ;;  %v13875_v17 = vld [vmem:[#allocation5 + $0x57c] ss:$24 sps:$4 sm:$0xff]  }
 0x5ea   :  { %5904 = vmatprep.mubr.bf16.mxu0 %v13869_v57  ;;  %v16355_v57 = vpop.f32.mrb[178].mxu1 }
 0x5eb   :  { %17912 = vst [vmem:[#allocation136_spill] sm:$0xff] %v16355_v57 }
 0x5f1   :  { %5905 = vmatmul.mubr.bf16.gmra.mrb[232].mxu0 %v13870_v21  ;;  %v16357_v21 = vpop.f32.mrb[179].mxu1 }
 0x5f2   :  { %5914 = vmatprep.mubr.bf16.mxu0 %v13871_v51  ;;  %17913 = vst [vmem:[#allocation138_spill] sm:$0xff] %v16357_v21  ;;  %v16359_v51 = vpop.f32.mrb[180].mxu1 }
 0x5f3   :  { %17914 = vst [vmem:[#allocation134_spill] sm:$0xff] %v16359_v51 }
 0x5f9   :  { %5915 = vmatmul.mubr.bf16.gmra.mrb[236].mxu0 %v13872_v59  ;;  %v13876_v59 = vld [vmem:[#allocation5 + $0x578] ss:$24 sps:$4 sm:$0xff]  }
 0x5fa   :  { %5924 = vmatprep.mubr.bf16.mxu0 %v13873_v22  ;;  %v16361_v22 = vpop.f32.mrb[181].mxu1 }
 0x5fb   :  { %17915 = vst [vmem:[#allocation148_spill] sm:$0xff] %v16361_v22  ;;  %v16363_v2 = vpop.f32.mrb[182].mxu1 }
 0x5fc   :  { %17916 = vst [vmem:[#allocation144_spill] sm:$0xff] %v16363_v2  ;;  %v16365_v5 = vpop.f32.mrb[183].mxu1  ;;  %v13880_v2 = vld [vmem:[#allocation5 + $0x5d8] ss:$24 sps:$4 sm:$0xff]  }
 0x5fd   :  { %17917 = vst [vmem:[#allocation146_spill] sm:$0xff] %v16365_v5  ;;  %v13881_v5 = vld [vmem:[#allocation13] sm:$0x3f] }
 0x601   :  { %5925 = vmatmul.mubr.bf16.gmra.mrb[240].mxu0 %v13874_v49  ;;  %v16367_v49 = vpop.f32.mrb[184].mxu1 }
 0x602   :  { %5934 = vmatprep.mubr.bf16.mxu0 %v13875_v17  ;;  %17918 = vst [vmem:[#allocation142_spill] sm:$0xff] %v16367_v49  ;;  %v16369_v17 = vpop.f32.mrb[185].mxu1 }
 0x603   :  { %17919 = vst [vmem:[#allocation156_spill] sm:$0xff] %v16369_v17  ;;  %v16371_v8 = vpop.f32.mrb[186].mxu1 }
 0x604   :  { %17920 = vst [vmem:[#allocation152_spill] sm:$0xff] %v16371_v8  ;;  %v16373_v51 = vpop.f32.mrb[187].mxu1 }
 0x605   :  { %17921 = vst [vmem:[#allocation154_spill] sm:$0xff] %v16373_v51  ;;  %v16377_v22 = vpop.f32.mrb[188].mxu1 }
 0x606   :  { %17922 = vst [vmem:[#allocation150_spill] sm:$0xff] %v16377_v22 }
 0x609   :  { %5935 = vmatmul.mubr.bf16.gmra.mrb[244].mxu0 %v13876_v59  ;;  %v729_v59 = vsub.s32 4, %v14920_v61 }
 0x60a   :  { %5944 = vmatprep.mubr.bf16.mxu0 %v13877_v13  ;;  %v733_v13 = vsub.s32 5, %v14920_v61 }
 0x60b   :  { %v16379_v49 = vrot.slane %v13881_v5, %v729_v59 }
 0x60c   :  { %v16383_v17 = vrot.slane %v13881_v5, %v733_v13 }
 0x611   :  { %5945 = vmatmul.mubr.bf16.gmra.mrb[248].mxu0 %v13878_v58  ;;  %v16381_v58 = vpop.f32.mrb[189].mxu1 }
 0x612   :  { %5954 = vmatprep.mubr.bf16.mxu0 %v13879_v46  ;;  %17923 = vst [vmem:[#allocation164_spill] sm:$0xff] %v16381_v58  ;;  %v13882_v46 = vld [vmem:[#allocation5 + $0x14] ss:$24 sps:$4 sm:$0xff]   ;;  %v16385_v8 = vpop.f32.mrb[190].mxu1 }
 0x613   :  { %17924 = vst [vmem:[#allocation160_spill] sm:$0xff] %v16385_v8  ;;  %v16387_v51 = vpop.f32.mrb[191].mxu1  ;;  %v13883_v8 = vld [vmem:[#allocation5 + $0x10] ss:$24 sps:$4 sm:$0xff]  }
 0x614   :  { %17925 = vst [vmem:[#allocation162_spill] sm:$0xff] %v16387_v51  ;;  %v16393_v5 = vpop.f32.mrb[192].mxu1 }
 0x619   :  { %5955 = vmatmul.mubr.bf16.gmra.mrb[252].mxu0 %v13880_v2 }
 0x61a   :  { %5997 = vmatprep.mubr.bf16.mxu0 %v13882_v46 }
 0x61c   :  { %v5696_v21 = vpop.f32.mrb[148].mxu0 }
 0x61d   :  { %v11262_v61 = vadd.f32 %v5696_v21, %v16379_v49  ;;  %v5698_v57 = vpop.f32.mrb[149].mxu0  ;;  %v16398_v21 = vpop.f32.mrb[193].mxu1 }
 0x61e   :  { %v11264_v22 = vadd.f32 %v5698_v57, %v16383_v17  ;;  %v5700_v2 = vpop.f32.mrb[150].mxu0 }
 0x61f   :  { %v11266_v59 = vadd.f32 %v5700_v2, %v16379_v49  ;;  %v11263_v20 = vadd.f32 %v11262_v61, %v16216_v38  ;;  %v5702_v58 = vpop.f32.mrb[151].mxu0  ;;  %v13884_v2 = vld [vmem:[#allocation5 + $0x44] ss:$24 sps:$4 sm:$0xff]   ;;  %v16401_v38 = vpop.f32.mrb[194].mxu1 }
 0x620   :  { %v11268_v13 = vadd.f32 %v5702_v58, %v16383_v17  ;;  %v11265_v46 = vadd.f32 %v11264_v22, %v16218_v62  ;;  %v16403_v61 = vpop.f32.mrb[195].mxu1 }
 0x621   :  { %13416 = vtanh.f32 %v11263_v20  ;;  %v11267_v51 = vadd.f32 %v11266_v59, %v16223_v6  ;;  %5998 = vmatmul.mubr.bf16.vlgmr.msra.gmra.mrb[128].mxu0 %v13883_v8 }
 0x622   :  { %13418 = vtanh.f32 %v11265_v46  ;;  %v11269_v57 = vadd.f32 %v11268_v13, %v16228_v63  ;;  %6007 = vmatprep.mubr.bf16.mxu0 %v13884_v2  ;;  %v16409_v13 = vpop.f32.mrb[196].mxu1  ;;  %v13885_v2 = vld [vmem:[#allocation5 + $0x40] ss:$24 sps:$4 sm:$0xff]  }
 0x623   :  { %13420 = vtanh.f32 %v11267_v51  ;;  %17926 = vst [vmem:[#allocation158_spill] sm:$0xff] %v16409_v13  ;;  %v13887_v13 = vld [vmem:[#allocation5 + $0x70] ss:$24 sps:$4 sm:$0xff]  }
 0x624   :  { %13422 = vtanh.f32 %v11269_v57  ;;  %v5706_v58 = vpop.f32.mrb[152].mxu0 }
 0x625   :  { %v11270_v62 = vadd.f32 %v5706_v58, %v16379_v49  ;;  %v5708_v20 = vpop.f32.mrb[153].mxu0  ;;  %v16414_v58 = vpop.f32.mrb[197].mxu1 }
 0x626   :  { %v11272_v6 = vadd.f32 %v5708_v20, %v16383_v17  ;;  %v5710_v8 = vpop.f32.mrb[154].mxu0  ;;  %17927 = vst [vmem:[#allocation167_spill] sm:$0xff] %v16414_v58 }
 0x627   :  { %v11274_v22 = vadd.f32 %v5710_v8, %v16379_v49  ;;  %v11271_v59 = vadd.f32 %v11270_v62, %v16236_v33  ;;  %v5712_v63 = vpop.f32.mrb[155].mxu0  ;;  %v13886_v8 = vld [vmem:[#allocation5 + $0x74] ss:$24 sps:$4 sm:$0xff]   ;;  %v16417_v33 = vpop.f32.mrb[198].mxu1 }
 0x628   :  { %v11276_v46 = vadd.f32 %v5712_v63, %v16383_v17  ;;  %v11273_v51 = vadd.f32 %v11272_v6, %v16238_v11  ;;  %17928 = vst [vmem:[#allocation166_spill] sm:$0xff] %v16417_v33  ;;  %v16421_v63 = vpop.f32.mrb[199].mxu1 }
 0x629   :  { %13424 = vtanh.f32 %v11271_v59  ;;  %v11275_v57 = vadd.f32 %v11274_v22, %v16243_v15  ;;  %6008 = vmatmul.mubr.bf16.gmra.mrb[132].mxu0 %v13885_v2  ;;  %17930 = vst [vmem:[#allocation35_spill] sm:$0xff] %v16421_v63 }
 0x62a   :  { %13426 = vtanh.f32 %v11273_v51  ;;  %v11277_v20 = vadd.f32 %v11276_v46, %v16248_v56  ;;  %6017 = vmatprep.mubr.bf16.mxu0 %v13886_v8 }
 0x62b   :  { %v16419_v62 = vpop.eup %13416  ;;  %13428 = vtanh.f32 %v11275_v57 }
 0x62c   :  { %17929 = vst [vmem:[#allocation31_spill] sm:$0xff] %v16419_v62  ;;  %v16423_v11 = vpop.eup %13418  ;;  %13430 = vtanh.f32 %v11277_v20  ;;  %v5716_v15 = vpop.f32.mrb[156].mxu0 }
 0x62d   :  { %17931 = vst [vmem:[#allocation33_spill] sm:$0xff] %v16423_v11  ;;  %v16425_v6 = vpop.eup %13420  ;;  %v11278_v22 = vadd.f32 %v5716_v15, %v16379_v49  ;;  %v5718_v59 = vpop.f32.mrb[157].mxu0 }
 0x62e   :  { %17932 = vst [vmem:[#allocation34_spill] sm:$0xff] %v16425_v6  ;;  %v16428_v51 = vpop.eup %13422  ;;  %v11280_v56 = vadd.f32 %v5718_v59, %v16383_v17  ;;  %v5720_v46 = vpop.f32.mrb[158].mxu0 }
 0x62f   :  { %17933 = vst [vmem:[#allocation32_spill] sm:$0xff] %v16428_v51  ;;  %v11282_v57 = vadd.f32 %v5720_v46, %v16379_v49  ;;  %v11279_v8 = vadd.f32 %v11278_v22, %v16256_v60  ;;  %v5722_v63 = vpop.f32.mrb[159].mxu0  ;;  %v16435_v20 = vpop.f32.mrb[200].mxu1  ;;  %v13888_v22 = vld [vmem:[#allocation5 + $0xa4] ss:$24 sps:$4 sm:$0xff]  }
 0x630   :  { %v11284_v15 = vadd.f32 %v5722_v63, %v16383_v17  ;;  %v11281_v58 = vadd.f32 %v11280_v56, %v16258_v14  ;;  %v16442_v2 = vpop.f32.mrb[201].mxu1  ;;  %v13889_v51 = vld [vmem:[#allocation5 + $0xa0] ss:$24 sps:$4 sm:$0xff]  }
 0x631   :  { %13432 = vtanh.f32 %v11279_v8  ;;  %v11283_v59 = vadd.f32 %v11282_v57, %v16263_v16  ;;  %6018 = vmatmul.mubr.bf16.gmra.mrb[136].mxu0 %v13887_v13  ;;  %v16445_v46 = vpop.f32.mrb[202].mxu1 }
 0x632   :  { %13434 = vtanh.f32 %v11281_v58  ;;  %v11285_v60 = vadd.f32 %v11284_v15, %v16268_v35  ;;  %6027 = vmatprep.mubr.bf16.mxu0 %v13888_v22  ;;  %v16449_v63 = vpop.f32.mrb[203].mxu1 }
 0x633   :  { %v16447_v62 = vpop.eup %13424  ;;  %13436 = vtanh.f32 %v11283_v59 }
 0x634   :  { %17934 = vst [vmem:[#allocation39_spill] sm:$0xff] %v16447_v62  ;;  %v16451_v14 = vpop.eup %13426  ;;  %13438 = vtanh.f32 %v11285_v60  ;;  %v5726_v16 = vpop.f32.mrb[160].mxu0 }
 0x635   :  { %17935 = vst [vmem:[#allocation37_spill] sm:$0xff] %v16451_v14  ;;  %v16453_v56 = vpop.eup %13428  ;;  %v11286_v13 = vadd.f32 %v5726_v16, %v16379_v49  ;;  %v5728_v58 = vpop.f32.mrb[161].mxu0 }
 0x636   :  { %17936 = vst [vmem:[#allocation38_spill] sm:$0xff] %v16453_v56  ;;  %v16456_v57 = vpop.eup %13430  ;;  %v11288_v35 = vadd.f32 %v5728_v58, %v16383_v17  ;;  %v5730_v8 = vpop.f32.mrb[162].mxu0 }
 0x637   :  { %17937 = vst [vmem:[#allocation36_spill] sm:$0xff] %v16456_v57  ;;  %v11290_v59 = vadd.f32 %v5730_v8, %v16379_v49  ;;  %v11287_v22 = vadd.f32 %v11286_v13, %v16273_v52  ;;  %v5732_v33 = vpop.f32.mrb[163].mxu0  ;;  %v16463_v60 = vpop.f32.mrb[204].mxu1  ;;  %v13890_v13 = vld [vmem:[#allocation5 + $0xd4] ss:$24 sps:$4 sm:$0xff]  }
 0x638   :  { %v11292_v16 = vadd.f32 %v5732_v33, %v16383_v17  ;;  %v11289_v11 = vadd.f32 %v11288_v35, %v16275_v25  ;;  %v16470_v15 = vpop.f32.mrb[205].mxu1  ;;  %v13891_v57 = vld [vmem:[#allocation5 + $0xd0] ss:$24 sps:$4 sm:$0xff]  }
 0x639   :  { %13440 = vtanh.f32 %v11287_v22  ;;  %v11291_v58 = vadd.f32 %v11290_v59, %v16280_v19  ;;  %6028 = vmatmul.mubr.bf16.gmra.mrb[140].mxu0 %v13889_v51  ;;  %v16473_v8 = vpop.f32.mrb[206].mxu1 }
 0x63a   :  { %13442 = vtanh.f32 %v11289_v11  ;;  %v11293_v52 = vadd.f32 %v11292_v16, %v16285_v53  ;;  %6037 = vmatprep.mubr.bf16.mxu0 %v13890_v13  ;;  %v16477_v33 = vpop.f32.mrb[207].mxu1 }
 0x63b   :  { %v16475_v62 = vpop.eup %13432  ;;  %13444 = vtanh.f32 %v11291_v58 }
 0x63c   :  { %17938 = vst [vmem:[#allocation43_spill] sm:$0xff] %v16475_v62  ;;  %v16479_v25 = vpop.eup %13434  ;;  %13446 = vtanh.f32 %v11293_v52  ;;  %v5736_v19 = vpop.f32.mrb[164].mxu0 }
 0x63d   :  { %17939 = vst [vmem:[#allocation41_spill] sm:$0xff] %v16479_v25  ;;  %v16481_v35 = vpop.eup %13436  ;;  %v11294_v51 = vadd.f32 %v5736_v19, %v16379_v49  ;;  %v5738_v11 = vpop.f32.mrb[165].mxu0 }
 0x63e   :  { %17940 = vst [vmem:[#allocation42_spill] sm:$0xff] %v16481_v35  ;;  %v16484_v59 = vpop.eup %13438  ;;  %v11296_v53 = vadd.f32 %v5738_v11, %v16383_v17  ;;  %v5740_v22 = vpop.f32.mrb[166].mxu0 }
 0x63f   :  { %17941 = vst [vmem:[#allocation40_spill] sm:$0xff] %v16484_v59  ;;  %v11298_v58 = vadd.f32 %v5740_v22, %v16379_v49  ;;  %v11295_v13 = vadd.f32 %v11294_v51, %v16287_v54  ;;  %v5742_v6 = vpop.f32.mrb[167].mxu0  ;;  %v16491_v52 = vpop.f32.mrb[208].mxu1 }
 0x640   :  { %v11300_v19 = vadd.f32 %v5742_v6, %v16383_v17  ;;  %v11297_v14 = vadd.f32 %v11296_v53, %v16289_v31  ;;  %v16498_v16 = vpop.f32.mrb[209].mxu1 }
 0x641   :  { %13448 = vtanh.f32 %v11295_v13  ;;  %v11299_v11 = vadd.f32 %v11298_v58, %v16291_v29  ;;  %6038 = vmatmul.mubr.bf16.gmra.mrb[144].mxu0 %v13891_v57  ;;  %v16501_v51 = vpop.f32.mrb[210].mxu1 }
 0x642   :  { %13450 = vtanh.f32 %v11297_v14  ;;  %v11301_v54 = vadd.f32 %v11300_v19, %v16293_v24  ;;  %v16505_v56 = vpop.f32.mrb[211].mxu1 }
 0x643   :  { %v16503_v22 = vpop.eup %13440  ;;  %13452 = vtanh.f32 %v11299_v11 }
 0x644   :  { %17942 = vst [vmem:[#allocation47_spill] sm:$0xff] %v16503_v22  ;;  %v16507_v6 = vpop.eup %13442  ;;  %13454 = vtanh.f32 %v11301_v54  ;;  %v5746_v31 = vpop.f32.mrb[168].mxu0 }
 0x645   :  { %17943 = vst [vmem:[#allocation45_spill] sm:$0xff] %v16507_v6  ;;  %v16509_v53 = vpop.eup %13444  ;;  %v11302_v29 = vadd.f32 %v5746_v31, %v16379_v49  ;;  %v5748_v57 = vpop.f32.mrb[169].mxu0 }
 0x646   :  { %17944 = vst [vmem:[#allocation46_spill] sm:$0xff] %v16509_v53  ;;  %v16512_v58 = vpop.eup %13446  ;;  %v11304_v24 = vadd.f32 %v5748_v57, %v16383_v17  ;;  %v5750_v14 = vpop.f32.mrb[170].mxu0 }
 0x647   :  { %17945 = vst [vmem:[#allocation44_spill] sm:$0xff] %v16512_v58  ;;  %v11306_v19 = vadd.f32 %v5750_v14, %v16379_v49  ;;  %v11303_v11 = vadd.f32 %v11302_v29, %v16295_v47  ;;  %v5752_v62 = vpop.f32.mrb[171].mxu0  ;;  %v16519_v54 = vpop.f32.mrb[212].mxu1 }
 0x648   :  { %v11308_v31 = vadd.f32 %v5752_v62, %v16383_v17  ;;  %v11305_v25 = vadd.f32 %v11304_v24, %v16297_v43  ;;  %v16526_v59 = vpop.f32.mrb[213].mxu1 }
 0x649   :  { %13456 = vtanh.f32 %v11303_v11  ;;  %v11307_v57 = vadd.f32 %v11306_v19, %v16299_v28  ;;  %v16529_v13 = vpop.f32.mrb[214].mxu1 }
 0x64a   :  { %13458 = vtanh.f32 %v11305_v25  ;;  %v11309_v14 = vadd.f32 %v11308_v31, %v16301_v0  ;;  %v16533_v29 = vpop.f32.mrb[215].mxu1 }
 0x64b   :  { %v16531_v47 = vpop.eup %13448  ;;  %13460 = vtanh.f32 %v11307_v57 }
 0x64c   :  { %17946 = vst [vmem:[#allocation51_spill] sm:$0xff] %v16531_v47  ;;  %v16535_v35 = vpop.eup %13450  ;;  %13462 = vtanh.f32 %v11309_v14  ;;  %v5756_v62 = vpop.f32.mrb[172].mxu0 }
 0x64d   :  { %17947 = vst [vmem:[#allocation49_spill] sm:$0xff] %v16535_v35  ;;  %v16537_v43 = vpop.eup %13452  ;;  %v11310_v28 = vadd.f32 %v5756_v62, %v16379_v49  ;;  %v5758_v24 = vpop.f32.mrb[173].mxu0 }
 0x64e   :  { %17948 = vst [vmem:[#allocation50_spill] sm:$0xff] %v16537_v43  ;;  %v16540_v19 = vpop.eup %13454  ;;  %v11312_v0 = vadd.f32 %v5758_v24, %v16383_v17  ;;  %v5760_v25 = vpop.f32.mrb[174].mxu0 }
 0x64f   :  { %17949 = vst [vmem:[#allocation48_spill] sm:$0xff] %v16540_v19  ;;  %v11314_v31 = vadd.f32 %v5760_v25, %v16379_v49  ;;  %v11311_v57 = vadd.f32 %v11310_v28, %v16303_v10  ;;  %v5762_v22 = vpop.f32.mrb[175].mxu0  ;;  %v16547_v14 = vpop.f32.mrb[216].mxu1 }
 0x650   :  { %v11316_v62 = vadd.f32 %v5762_v22, %v16383_v17  ;;  %v11313_v6 = vadd.f32 %v11312_v0, %v16305_v7  ;;  %v16554_v58 = vpop.f32.mrb[217].mxu1 }
 0x651   :  { %13464 = vtanh.f32 %v11311_v57  ;;  %v11315_v24 = vadd.f32 %v11314_v31, %v16307_v32  ;;  %v16557_v11 = vpop.f32.mrb[218].mxu1 }
 0x652   :  { %13466 = vtanh.f32 %v11313_v6  ;;  %v11317_v25 = vadd.f32 %v11316_v62, %v16309_v3  ;;  %v16561_v28 = vpop.f32.mrb[219].mxu1 }
 0x653   :  { %v16559_v10 = vpop.eup %13456  ;;  %13468 = vtanh.f32 %v11315_v24 }
 0x654   :  { %17950 = vst [vmem:[#allocation55_spill] sm:$0xff] %v16559_v10  ;;  %v16563_v53 = vpop.eup %13458  ;;  %13470 = vtanh.f32 %v11317_v25  ;;  %v5766_v22 = vpop.f32.mrb[176].mxu0 }
 0x655   :  { %17951 = vst [vmem:[#allocation53_spill] sm:$0xff] %v16563_v53  ;;  %v16565_v7 = vpop.eup %13460  ;;  %v11318_v32 = vadd.f32 %v5766_v22, %v16379_v49  ;;  %v5768_v0 = vpop.f32.mrb[177].mxu0 }
 0x656   :  { %17952 = vst [vmem:[#allocation54_spill] sm:$0xff] %v16565_v7  ;;  %v16568_v31 = vpop.eup %13462  ;;  %v11320_v3 = vadd.f32 %v5768_v0, %v16383_v17  ;;  %v5770_v6 = vpop.f32.mrb[178].mxu0 }
 0x657   :  { %17953 = vst [vmem:[#allocation52_spill] sm:$0xff] %v16568_v31  ;;  %v11322_v62 = vadd.f32 %v5770_v6, %v16379_v49  ;;  %v11319_v24 = vadd.f32 %v11318_v32, %v16311_v48  ;;  %v5772_v47 = vpop.f32.mrb[179].mxu0  ;;  %v16575_v25 = vpop.f32.mrb[220].mxu1 }
 0x658   :  { %v11324_v22 = vadd.f32 %v5772_v47, %v16383_v17  ;;  %v11321_v35 = vadd.f32 %v11320_v3, %v16313_v1  ;;  %v16582_v19 = vpop.f32.mrb[221].mxu1 }
 0x659   :  { %13472 = vtanh.f32 %v11319_v24  ;;  %v11323_v0 = vadd.f32 %v11322_v62, %v16315_v45  ;;  %v16585_v57 = vpop.f32.mrb[222].mxu1 }
 0x65a   :  { %13474 = vtanh.f32 %v11321_v35  ;;  %v11325_v6 = vadd.f32 %v11324_v22, %v16317_v39  ;;  %v16589_v32 = vpop.f32.mrb[223].mxu1 }
 0x65b   :  { %v16587_v48 = vpop.eup %13464  ;;  %13476 = vtanh.f32 %v11323_v0 }
 0x65c   :  { %17954 = vst [vmem:[#allocation59_spill] sm:$0xff] %v16587_v48  ;;  %v16591_v43 = vpop.eup %13466  ;;  %13478 = vtanh.f32 %v11325_v6  ;;  %v5776_v47 = vpop.f32.mrb[180].mxu0 }
 0x65d   :  { %17955 = vst [vmem:[#allocation57_spill] sm:$0xff] %v16591_v43  ;;  %v16593_v1 = vpop.eup %13468  ;;  %v11326_v45 = vadd.f32 %v5776_v47, %v16379_v49  ;;  %v5778_v3 = vpop.f32.mrb[181].mxu0 }
 0x65e   :  { %17956 = vst [vmem:[#allocation58_spill] sm:$0xff] %v16593_v1  ;;  %v16596_v62 = vpop.eup %13470  ;;  %v11328_v39 = vadd.f32 %v5778_v3, %v16383_v17  ;;  %v5780_v35 = vpop.f32.mrb[182].mxu0 }
 0x65f   :  { %17957 = vst [vmem:[#allocation56_spill] sm:$0xff] %v16596_v62  ;;  %v11330_v22 = vadd.f32 %v5780_v35, %v16379_v49  ;;  %v11327_v0 = vadd.f32 %v11326_v45, %v16319_v40  ;;  %v5782_v10 = vpop.f32.mrb[183].mxu0  ;;  %v16603_v6 = vpop.f32.mrb[224].mxu1 }
 0x660   :  { %v11332_v47 = vadd.f32 %v5782_v10, %v16383_v17  ;;  %v11329_v53 = vadd.f32 %v11328_v39, %v16321_v27  ;;  %v16610_v31 = vpop.f32.mrb[225].mxu1 }
 0x661   :  { %13480 = vtanh.f32 %v11327_v0  ;;  %v11331_v3 = vadd.f32 %v11330_v22, %v16323_v23  ;;  %v16613_v24 = vpop.f32.mrb[226].mxu1 }
 0x662   :  { %13482 = vtanh.f32 %v11329_v53  ;;  %v11333_v35 = vadd.f32 %v11332_v47, %v16325_v26  ;;  %v16617_v45 = vpop.f32.mrb[227].mxu1 }
 0x663   :  { %v16615_v40 = vpop.eup %13472  ;;  %13484 = vtanh.f32 %v11331_v3 }
 0x664   :  { %17958 = vst [vmem:[#allocation63_spill] sm:$0xff] %v16615_v40  ;;  %v16619_v7 = vpop.eup %13474  ;;  %13486 = vtanh.f32 %v11333_v35  ;;  %v5786_v10 = vpop.f32.mrb[184].mxu0 }
 0x665   :  { %17959 = vst [vmem:[#allocation61_spill] sm:$0xff] %v16619_v7  ;;  %v16621_v27 = vpop.eup %13476  ;;  %v11334_v23 = vadd.f32 %v5786_v10, %v16379_v49  ;;  %v5788_v39 = vpop.f32.mrb[185].mxu0 }
 0x666   :  { %17960 = vst [vmem:[#allocation62_spill] sm:$0xff] %v16621_v27  ;;  %v16624_v22 = vpop.eup %13478  ;;  %v11336_v26 = vadd.f32 %v5788_v39, %v16383_v17  ;;  %v5790_v53 = vpop.f32.mrb[186].mxu0 }
 0x667   :  { %17961 = vst [vmem:[#allocation60_spill] sm:$0xff] %v16624_v22  ;;  %v11338_v47 = vadd.f32 %v5790_v53, %v16379_v49  ;;  %v11335_v3 = vadd.f32 %v11334_v23, %v16327_v30  ;;  %v5792_v48 = vpop.f32.mrb[187].mxu0  ;;  %v16631_v35 = vpop.f32.mrb[228].mxu1 }
 0x668   :  { %v11340_v10 = vadd.f32 %v5792_v48, %v16383_v17  ;;  %v11337_v43 = vadd.f32 %v11336_v26, %v16329_v4  ;;  %v16638_v62 = vpop.f32.mrb[229].mxu1 }
 0x669   :  { %13488 = vtanh.f32 %v11335_v3  ;;  %v11339_v39 = vadd.f32 %v11338_v47, %v16331_v9  ;;  %v16641_v0 = vpop.f32.mrb[230].mxu1 }
 0x66a   :  { %13490 = vtanh.f32 %v11337_v43  ;;  %v11341_v53 = vadd.f32 %v11340_v10, %v16333_v36  ;;  %v16645_v23 = vpop.f32.mrb[231].mxu1 }
 0x66b   :  { %v16643_v30 = vpop.eup %13480  ;;  %13492 = vtanh.f32 %v11339_v39 }
 0x66c   :  { %17962 = vst [vmem:[#allocation67_spill] sm:$0xff] %v16643_v30  ;;  %v16647_v1 = vpop.eup %13482  ;;  %13494 = vtanh.f32 %v11341_v53  ;;  %v5796_v48 = vpop.f32.mrb[188].mxu0 }
 0x66d   :  { %17963 = vst [vmem:[#allocation65_spill] sm:$0xff] %v16647_v1  ;;  %v16649_v4 = vpop.eup %13484  ;;  %v11342_v9 = vadd.f32 %v5796_v48, %v16379_v49  ;;  %v5798_v26 = vpop.f32.mrb[189].mxu0 }
 0x66e   :  { %17964 = vst [vmem:[#allocation66_spill] sm:$0xff] %v16649_v4  ;;  %v16652_v47 = vpop.eup %13486  ;;  %v11344_v36 = vadd.f32 %v5798_v26, %v16383_v17  ;;  %v5800_v43 = vpop.f32.mrb[190].mxu0 }
 0x66f   :  { %17965 = vst [vmem:[#allocation64_spill] sm:$0xff] %v16652_v47  ;;  %v11346_v10 = vadd.f32 %v5800_v43, %v16379_v49  ;;  %v11343_v39 = vadd.f32 %v11342_v9, %v16335_v12  ;;  %v5802_v40 = vpop.f32.mrb[191].mxu0  ;;  %v16659_v53 = vpop.f32.mrb[232].mxu1 }
 0x670   :  { %v11348_v48 = vadd.f32 %v5802_v40, %v16383_v17  ;;  %v11345_v7 = vadd.f32 %v11344_v36, %v16337_v55  ;;  %v16666_v22 = vpop.f32.mrb[233].mxu1 }
 0x671   :  { %13496 = vtanh.f32 %v11343_v39  ;;  %v11347_v26 = vadd.f32 %v11346_v10, %v16339_v42  ;;  %v16669_v3 = vpop.f32.mrb[234].mxu1 }
 0x672   :  { %13498 = vtanh.f32 %v11345_v7  ;;  %v11349_v43 = vadd.f32 %v11348_v48, %v16341_v37  ;;  %v16673_v9 = vpop.f32.mrb[235].mxu1 }
 0x673   :  { %v16671_v12 = vpop.eup %13488  ;;  %13500 = vtanh.f32 %v11347_v26 }
 0x674   :  { %17966 = vst [vmem:[#allocation71_spill] sm:$0xff] %v16671_v12  ;;  %v16675_v27 = vpop.eup %13490  ;;  %13502 = vtanh.f32 %v11349_v43  ;;  %v5806_v40 = vpop.f32.mrb[192].mxu0 }
 0x675   :  { %17967 = vst [vmem:[#allocation69_spill] sm:$0xff] %v16675_v27  ;;  %v16677_v55 = vpop.eup %13492  ;;  %v11350_v42 = vadd.f32 %v5806_v40, %v16379_v49  ;;  %v5808_v36 = vpop.f32.mrb[193].mxu0 }
 0x676   :  { %17968 = vst [vmem:[#allocation70_spill] sm:$0xff] %v16677_v55  ;;  %v16680_v10 = vpop.eup %13494  ;;  %v11352_v37 = vadd.f32 %v5808_v36, %v16383_v17  ;;  %v5810_v7 = vpop.f32.mrb[194].mxu0 }
 0x677   :  { %v11354_v48 = vadd.f32 %v5810_v7, %v16379_v49  ;;  %v11351_v26 = vadd.f32 %v11350_v42, %v16343_v34  ;;  %v5812_v30 = vpop.f32.mrb[195].mxu0 }
 0x678   :  { %v11356_v4 = vadd.f32 %v5812_v30, %v16383_v17  ;;  %v11353_v40 = vadd.f32 %v11352_v37, %v16345_v50 }
 0x679   :  { %13504 = vtanh.f32 %v11351_v26  ;;  %v11355_v1 = vadd.f32 %v11354_v48, %v16347_v41 }
 0x67a   :  { %13506 = vtanh.f32 %v11353_v40  ;;  %v11357_v36 = vadd.f32 %v11356_v4, %v16349_v44  ;;  %v17973_v40 = vld [vmem:[#allocation140_spill] sm:$0xff] }
 0x67b   :  { %v16693_v47 = vpop.eup %13496  ;;  %13508 = vtanh.f32 %v11355_v1 }
 0x67c   :  { %17969 = vst [vmem:[#allocation68_spill] sm:$0xff] %v16693_v47  ;;  %v16695_v7 = vpop.eup %13498  ;;  %13510 = vtanh.f32 %v11357_v36  ;;  %v5816_v34 = vpop.f32.mrb[196].mxu0  ;;  %v17982_v47 = vld [vmem:[#allocation144_spill] sm:$0xff] }
 0x67d   :  { %17970 = vst [vmem:[#allocation75_spill] sm:$0xff] %v16695_v7  ;;  %v16697_v42 = vpop.eup %13500  ;;  %v11358_v39 = vadd.f32 %v5816_v34, %v16379_v49  ;;  %v5818_v30 = vpop.f32.mrb[197].mxu0  ;;  %v17974_v34 = vld [vmem:[#allocation136_spill] sm:$0xff] }
 0x67e   :  { %17971 = vst [vmem:[#allocation73_spill] sm:$0xff] %v16697_v42  ;;  %v16700_v43 = vpop.eup %13502  ;;  %v11360_v50 = vadd.f32 %v5818_v30, %v16383_v17  ;;  %v5820_v41 = vpop.f32.mrb[198].mxu0  ;;  %v17975_v30 = vld [vmem:[#allocation138_spill] sm:$0xff] }
 0x67f   :  { %17972 = vst [vmem:[#allocation74_spill] sm:$0xff] %v16700_v43  ;;  %v11362_v4 = vadd.f32 %v5820_v41, %v16379_v49  ;;  %v11359_v1 = vadd.f32 %v11358_v39, %v16351_v18  ;;  %v5822_v37 = vpop.f32.mrb[199].mxu0 }
 0x680   :  { %v11364_v26 = vadd.f32 %v5822_v37, %v16383_v17  ;;  %v11361_v36 = vadd.f32 %v11360_v50, %v17973_v40 }
 0x681   :  { %13512 = vtanh.f32 %v11359_v1  ;;  %v11363_v12 = vadd.f32 %v11362_v4, %v17974_v34 }
 0x682   :  { %13514 = vtanh.f32 %v11361_v36  ;;  %v11365_v55 = vadd.f32 %v11364_v26, %v17975_v30  ;;  %v17981_v30 = vld [vmem:[#allocation148_spill] sm:$0xff] }
 0x683   :  { %v16713_v27 = vpop.eup %13504  ;;  %13516 = vtanh.f32 %v11363_v12  ;;  %v17980_v12 = vld [vmem:[#allocation134_spill] sm:$0xff] }
 0x684   :  { %17976 = vst [vmem:[#allocation72_spill] sm:$0xff] %v16713_v27  ;;  %v16715_v41 = vpop.eup %13506  ;;  %13518 = vtanh.f32 %v11365_v55  ;;  %v5826_v18 = vpop.f32.mrb[200].mxu0  ;;  %v17990_v27 = vld [vmem:[#allocation152_spill] sm:$0xff] }
 0x685   :  { %17977 = vst [vmem:[#allocation79_spill] sm:$0xff] %v16715_v41  ;;  %v16717_v39 = vpop.eup %13508  ;;  %v11366_v44 = vadd.f32 %v5826_v18, %v16379_v49  ;;  %v5828_v37 = vpop.f32.mrb[201].mxu0 }
 0x686   :  { %17978 = vst [vmem:[#allocation77_spill] sm:$0xff] %v16717_v39  ;;  %v16720_v48 = vpop.eup %13510  ;;  %v11368_v50 = vadd.f32 %v5828_v37, %v16383_v17  ;;  %v5830_v4 = vpop.f32.mrb[202].mxu0  ;;  %v17983_v37 = vld [vmem:[#allocation146_spill] sm:$0xff] }
 0x687   :  { %17979 = vst [vmem:[#allocation78_spill] sm:$0xff] %v16720_v48  ;;  %v11370_v26 = vadd.f32 %v5830_v4, %v16379_v49  ;;  %v11367_v40 = vadd.f32 %v11366_v44, %v17980_v12  ;;  %v5832_v36 = vpop.f32.mrb[203].mxu0 }
 0x688   :  { %v11372_v34 = vadd.f32 %v5832_v36, %v16383_v17  ;;  %v11369_v18 = vadd.f32 %v11368_v50, %v17981_v30 }
 0x689   :  { %13520 = vtanh.f32 %v11367_v40  ;;  %v11371_v42 = vadd.f32 %v11370_v26, %v17982_v47 }
 0x68a   :  { %13522 = vtanh.f32 %v11369_v18  ;;  %v11373_v7 = vadd.f32 %v11372_v34, %v17983_v37  ;;  %v17989_v37 = vld [vmem:[#allocation156_spill] sm:$0xff] }
 0x68b   :  { %v16733_v43 = vpop.eup %13512  ;;  %13524 = vtanh.f32 %v11371_v42  ;;  %v17988_v42 = vld [vmem:[#allocation142_spill] sm:$0xff] }
 0x68c   :  { %17984 = vst [vmem:[#allocation76_spill] sm:$0xff] %v16733_v43  ;;  %v16735_v4 = vpop.eup %13514  ;;  %13526 = vtanh.f32 %v11373_v7  ;;  %v5836_v44 = vpop.f32.mrb[204].mxu0  ;;  %v17996_v43 = vld [vmem:[#allocation160_spill] sm:$0xff] }
 0x68d   :  { %17985 = vst [vmem:[#allocation83_spill] sm:$0xff] %v16735_v4  ;;  %v16737_v12 = vpop.eup %13516  ;;  %v11374_v1 = vadd.f32 %v5836_v44, %v16379_v49  ;;  %v5838_v36 = vpop.f32.mrb[205].mxu0 }
 0x68e   :  { %17986 = vst [vmem:[#allocation81_spill] sm:$0xff] %v16737_v12  ;;  %v16740_v55 = vpop.eup %13518  ;;  %v11376_v50 = vadd.f32 %v5838_v36, %v16383_v17  ;;  %v5840_v47 = vpop.f32.mrb[206].mxu0  ;;  %v17991_v36 = vld [vmem:[#allocation154_spill] sm:$0xff] }
 0x68f   :  { %17987 = vst [vmem:[#allocation82_spill] sm:$0xff] %v16740_v55  ;;  %v11378_v40 = vadd.f32 %v5840_v47, %v16379_v49  ;;  %v11375_v34 = vadd.f32 %v11374_v1, %v17988_v42  ;;  %v5842_v30 = vpop.f32.mrb[207].mxu0 }
 0x690   :  { %v11380_v18 = vadd.f32 %v5842_v30, %v16383_v17  ;;  %v11377_v44 = vadd.f32 %v11376_v50, %v17989_v37 }
 0x691   :  { %13528 = vtanh.f32 %v11375_v34  ;;  %v11379_v39 = vadd.f32 %v11378_v40, %v17990_v27 }
 0x692   :  { %13530 = vtanh.f32 %v11377_v44  ;;  %v11381_v41 = vadd.f32 %v11380_v18, %v17991_v36  ;;  %v17995_v36 = vld [vmem:[#allocation164_spill] sm:$0xff] }
 0x693   :  { %v16753_v48 = vpop.eup %13520  ;;  %13532 = vtanh.f32 %v11379_v39  ;;  %v17994_v39 = vld [vmem:[#allocation150_spill] sm:$0xff] }
 0x694   :  { %17992 = vst [vmem:[#allocation80_spill] sm:$0xff] %v16753_v48  ;;  %v16755_v47 = vpop.eup %13522  ;;  %13534 = vtanh.f32 %v11381_v41  ;;  %v5846_v1 = vpop.f32.mrb[208].mxu0 }
 0x695   :  { %v16757_v42 = vpop.eup %13524  ;;  %v11382_v26 = vadd.f32 %v5846_v1, %v16379_v49  ;;  %v5848_v30 = vpop.f32.mrb[209].mxu0 }
 0x696   :  { %17993 = vst [vmem:[#allocation87_spill] sm:$0xff] %v16757_v42  ;;  %v16760_v7 = vpop.eup %13526  ;;  %v11384_v50 = vadd.f32 %v5848_v30, %v16383_v17  ;;  %v5850_v27 = vpop.f32.mrb[210].mxu0  ;;  %v17997_v30 = vld [vmem:[#allocation162_spill] sm:$0xff]  ;;  %v6756_v42 = vld [vmem:[#allocation2 + $0x8] sm:$0xff] }
 0x697   :  { %v11386_v34 = vadd.f32 %v5850_v27, %v16379_v49  ;;  %v11383_v18 = vadd.f32 %v11382_v26, %v17994_v39  ;;  %v5852_v37 = vpop.f32.mrb[211].mxu0 }
 0x698   :  { %v11388_v44 = vadd.f32 %v5852_v37, %v16383_v17  ;;  %v11385_v1 = vadd.f32 %v11384_v50, %v17995_v36 }
 0x699   :  { %13536 = vtanh.f32 %v11383_v18  ;;  %v11387_v12 = vadd.f32 %v11386_v34, %v17996_v43 }
 0x69a   :  { %13538 = vtanh.f32 %v11385_v1  ;;  %v11389_v4 = vadd.f32 %v11388_v44, %v17997_v30  ;;  %v6987_v30 = vpop.f32.mrb[236].mxu1 }
 0x69b   :  { %v16773_v55 = vpop.eup %13528  ;;  %13540 = vtanh.f32 %v11387_v12 }
 0x69c   :  { %17998 = vst [vmem:[#allocation85_spill] sm:$0xff] %v16773_v55  ;;  %v16775_v27 = vpop.eup %13530  ;;  %13542 = vtanh.f32 %v11389_v4  ;;  %v5856_v26 = vpop.f32.mrb[212].mxu0  ;;  %v18006_v55 = vld [vmem:[#allocation167_spill] sm:$0xff] }
 0x69d   :  { %17999 = vst [vmem:[#allocation86_spill] sm:$0xff] %v16775_v27  ;;  %v16777_v39 = vpop.eup %13532  ;;  %v11390_v40 = vadd.f32 %v5856_v26, %v16379_v49  ;;  %v5858_v37 = vpop.f32.mrb[213].mxu0 }
 0x69e   :  { %18000 = vst [vmem:[#allocation84_spill] sm:$0xff] %v16777_v39  ;;  %v16780_v41 = vpop.eup %13534  ;;  %v11392_v50 = vadd.f32 %v5858_v37, %v16383_v17  ;;  %v5860_v43 = vpop.f32.mrb[214].mxu0 }
 0x69f   :  { %18001 = vst [vmem:[#allocation91_spill] sm:$0xff] %v16780_v41  ;;  %v11394_v18 = vadd.f32 %v5860_v43, %v16379_v49  ;;  %v11391_v12 = vadd.f32 %v11390_v40, %v16393_v5  ;;  %v5862_v44 = vpop.f32.mrb[215].mxu0 }
 0x6a0   :  { %v11396_v36 = vadd.f32 %v5862_v44, %v16383_v17  ;;  %v11393_v1 = vadd.f32 %v11392_v50, %v16398_v21 }
 0x6a1   :  { %13544 = vtanh.f32 %v11391_v12  ;;  %v11395_v26 = vadd.f32 %v11394_v18, %v16401_v38  ;;  %v18005_v12 = vld [vmem:[#allocation158_spill] sm:$0xff] }
 0x6a2   :  { %13546 = vtanh.f32 %v11393_v1  ;;  %v11397_v37 = vadd.f32 %v11396_v36, %v16403_v61  ;;  %v18008_v61 = vld [vmem:[#allocation35_spill] sm:$0xff] }
 0x6a3   :  { %v16793_v34 = vpop.eup %13536  ;;  %13548 = vtanh.f32 %v11395_v26  ;;  %v6989_v26 = vpop.f32.mrb[237].mxu1 }
 0x6a4   :  { %18002 = vst [vmem:[#allocation89_spill] sm:$0xff] %v16793_v34  ;;  %v16795_v43 = vpop.eup %13538  ;;  %13550 = vtanh.f32 %v11397_v37  ;;  %v5866_v5 = vpop.f32.mrb[216].mxu0 }
 0x6a5   :  { %18003 = vst [vmem:[#allocation90_spill] sm:$0xff] %v16795_v43  ;;  %v16797_v40 = vpop.eup %13540  ;;  %v11398_v44 = vadd.f32 %v5866_v5, %v16379_v49  ;;  %v5868_v4 = vpop.f32.mrb[217].mxu0 }
 0x6a6   :  { %18004 = vst [vmem:[#allocation88_spill] sm:$0xff] %v16797_v40  ;;  %v16800_v21 = vpop.eup %13542  ;;  %v11400_v50 = vadd.f32 %v5868_v4, %v16383_v17  ;;  %v5870_v38 = vpop.f32.mrb[218].mxu0  ;;  %v18007_v4 = vld [vmem:[#allocation166_spill] sm:$0xff] }
 0x6a7   :  { %v11402_v18 = vadd.f32 %v5870_v38, %v16379_v49  ;;  %v11399_v36 = vadd.f32 %v11398_v44, %v18005_v12  ;;  %v5872_v1 = vpop.f32.mrb[219].mxu0  ;;  %v6991_v27 = vpop.f32.mrb[238].mxu1  ;;  %v6755_v38 = vld [vmem:[#allocation2] sm:$0xff] }
 0x6a8   :  { %v11404_v5 = vadd.f32 %v5872_v1, %v16383_v17  ;;  %v11401_v39 = vadd.f32 %v11400_v50, %v18006_v55  ;;  %v6992_v48 = vpop.f32.mrb[239].mxu1 }
 0x6a9   :  { %13552 = vtanh.f32 %v11399_v36  ;;  %v11403_v41 = vadd.f32 %v11402_v18, %v18007_v4  ;;  %v7028_v40 = vpop.f32.mrb[240].mxu1 }
 0x6aa   :  { %13554 = vtanh.f32 %v11401_v39  ;;  %v11405_v34 = vadd.f32 %v11404_v5, %v18008_v61  ;;  %v7029_v12 = vadd.f32 %v7028_v40, %v6987_v30  ;;  %v7030_v37 = vpop.f32.mrb[241].mxu1 }
 0x6ab   :  { %v16813_v44 = vpop.eup %13544  ;;  %13556 = vtanh.f32 %v11403_v41  ;;  %v7031_v27 = vadd.f32 %v7030_v37, %v6989_v26  ;;  %v7032_v50 = vpop.f32.mrb[242].mxu1 }
 0x6ac   :  { %v16815_v43 = vpop.eup %13546  ;;  %13558 = vtanh.f32 %v11405_v34  ;;  %v5876_v55 = vpop.f32.mrb[220].mxu0  ;;  %v7199_v61 = vadd.f32 %v7029_v12, %v6755_v38 }
 0x6ad   :  { %v16817_v36 = vpop.eup %13548  ;;  %v11406_v48 = vadd.f32 %v5876_v55, %v16379_v49  ;;  %v5878_v39 = vpop.f32.mrb[221].mxu0  ;;  %v7200_v40 = vadd.f32 %v7031_v27, %v6756_v42 }
 0x6ae   :  { %v7033_v18 = vpop.f32.mrb[243].mxu1  ;;  %v16820_v1 = vpop.eup %13550  ;;  %v11408_v41 = vadd.f32 %v5878_v39, %v16383_v17  ;;  %7205 = vst [vmem:[#allocation2] sm:$0xff] %v7199_v61 }
 0x6af   :  { %v5880_v30 = vpop.f32.mrb[222].mxu0  ;;  %v11407_v26 = vadd.f32 %v11406_v48, %v16435_v20  ;;  %7206 = vst [vmem:[#allocation2 + $0x8] sm:$0xff] %v7200_v40 }
 0x6b0   :  { %v11410_v34 = vadd.f32 %v5880_v30, %v16379_v49  ;;  %v5882_v37 = vpop.f32.mrb[223].mxu0  ;;  %v11409_v12 = vadd.f32 %v11408_v41, %v16442_v2 }
 0x6b1   :  { %v11412_v38 = vadd.f32 %v5882_v37, %v16383_v17  ;;  %13560 = vtanh.f32 %v11407_v26 }
 0x6b2   :  { %v11411_v42 = vadd.f32 %v11410_v34, %v16445_v46  ;;  %13562 = vtanh.f32 %v11409_v12 }
 0x6b3   :  { %v11413_v55 = vadd.f32 %v11412_v38, %v16449_v63  ;;  %v16833_v27 = vpop.eup %13552 }
 0x6b4   :  { %13564 = vtanh.f32 %v11411_v42  ;;  %v16835_v20 = vpop.eup %13554  ;;  %v5886_v50 = vpop.f32.mrb[224].mxu0 }
 0x6b5   :  { %13566 = vtanh.f32 %v11413_v55  ;;  %v16837_v48 = vpop.eup %13556  ;;  %v11414_v39 = vadd.f32 %v5886_v50, %v16379_v49  ;;  %v5888_v61 = vpop.f32.mrb[225].mxu0 }
 0x6b6   :  { %v16840_v2 = vpop.eup %13558  ;;  %v11416_v18 = vadd.f32 %v5888_v61, %v16383_v17  ;;  %v5890_v46 = vpop.f32.mrb[226].mxu0 }
 0x6b7   :  { %v11418_v41 = vadd.f32 %v5890_v46, %v16379_v49  ;;  %v11415_v30 = vadd.f32 %v11414_v39, %v16463_v60  ;;  %v5892_v40 = vpop.f32.mrb[227].mxu0 }
 0x6b8   :  { %v11420_v26 = vadd.f32 %v5892_v40, %v16383_v17  ;;  %v11417_v37 = vadd.f32 %v11416_v18, %v16470_v15 }
 0x6b9   :  { %13568 = vtanh.f32 %v11415_v30  ;;  %v11419_v38 = vadd.f32 %v11418_v41, %v16473_v8 }
 0x6ba   :  { %13570 = vtanh.f32 %v11417_v37  ;;  %v11421_v12 = vadd.f32 %v11420_v26, %v16477_v33 }
 0x6bb   :  { %v16853_v42 = vpop.eup %13560  ;;  %13572 = vtanh.f32 %v11419_v38 }
 0x6bc   :  { %v16855_v55 = vpop.eup %13562  ;;  %13574 = vtanh.f32 %v11421_v12  ;;  %v5896_v60 = vpop.f32.mrb[228].mxu0 }
 0x6bd   :  { %v11422_v39 = vadd.f32 %v5896_v60, %v16379_v49  ;;  %v5898_v61 = vpop.f32.mrb[229].mxu0 }
 0x6be   :  { %v16857_v50 = vpop.eup %13564  ;;  %v11424_v15 = vadd.f32 %v5898_v61, %v16383_v17  ;;  %v5900_v8 = vpop.f32.mrb[230].mxu0 }
 0x6bf   :  { %v16860_v46 = vpop.eup %13566  ;;  %v11426_v18 = vadd.f32 %v5900_v8, %v16379_v49  ;;  %v11423_v41 = vadd.f32 %v11422_v39, %v16491_v52  ;;  %v5902_v30 = vpop.f32.mrb[231].mxu0 }
 0x6c0   :  { %v11428_v26 = vadd.f32 %v5902_v30, %v16383_v17  ;;  %v11425_v37 = vadd.f32 %v11424_v15, %v16498_v16 }
 0x6c1   :  { %13576 = vtanh.f32 %v11423_v41  ;;  %v11427_v38 = vadd.f32 %v11426_v18, %v16501_v51 }
 0x6c2   :  { %13578 = vtanh.f32 %v11425_v37  ;;  %v11429_v12 = vadd.f32 %v11428_v26, %v16505_v56 }
 0x6c3   :  { %v16873_v60 = vpop.eup %13568  ;;  %13580 = vtanh.f32 %v11427_v38 }
 0x6c4   :  { %v16875_v61 = vpop.eup %13570  ;;  %13582 = vtanh.f32 %v11429_v12  ;;  %v5906_v52 = vpop.f32.mrb[232].mxu0 }
 0x6c5   :  { %v16877_v39 = vpop.eup %13572  ;;  %v11430_v8 = vadd.f32 %v5906_v52, %v16379_v49  ;;  %v5908_v30 = vpop.f32.mrb[233].mxu0 }
 0x6c6   :  { %v16880_v33 = vpop.eup %13574  ;;  %v11432_v16 = vadd.f32 %v5908_v30, %v16383_v17  ;;  %v5910_v51 = vpop.f32.mrb[234].mxu0 }
 0x6c7   :  { %v11434_v15 = vadd.f32 %v5910_v51, %v16379_v49  ;;  %v11431_v18 = vadd.f32 %v11430_v8, %v16519_v54  ;;  %v5912_v41 = vpop.f32.mrb[235].mxu0 }
 0x6c8   :  { %v11436_v37 = vadd.f32 %v5912_v41, %v16383_v17  ;;  %v11433_v38 = vadd.f32 %v11432_v16, %v16526_v59 }
 0x6c9   :  { %13584 = vtanh.f32 %v11431_v18  ;;  %v11435_v12 = vadd.f32 %v11434_v15, %v16529_v13 }
 0x6ca   :  { %13586 = vtanh.f32 %v11433_v38  ;;  %v11437_v52 = vadd.f32 %v11436_v37, %v16533_v29 }
 0x6cb   :  { %v16893_v30 = vpop.eup %13576  ;;  %13588 = vtanh.f32 %v11435_v12 }
 0x6cc   :  { %v16895_v51 = vpop.eup %13578  ;;  %13590 = vtanh.f32 %v11437_v52  ;;  %v5916_v54 = vpop.f32.mrb[236].mxu0 }
 0x6cd   :  { %v16897_v8 = vpop.eup %13580  ;;  %v11438_v56 = vadd.f32 %v5916_v54, %v16379_v49  ;;  %v5918_v41 = vpop.f32.mrb[237].mxu0 }
 0x6ce   :  { %v16900_v26 = vpop.eup %13582  ;;  %v11440_v59 = vadd.f32 %v5918_v41, %v16383_v17  ;;  %v5920_v13 = vpop.f32.mrb[238].mxu0 }
 0x6cf   :  { %v11442_v16 = vadd.f32 %v5920_v13, %v16379_v49  ;;  %v11439_v15 = vadd.f32 %v11438_v56, %v16547_v14  ;;  %v5922_v18 = vpop.f32.mrb[239].mxu0 }
 0x6d0   :  { %v11444_v38 = vadd.f32 %v5922_v18, %v16383_v17  ;;  %v11441_v12 = vadd.f32 %v11440_v59, %v16554_v58 }
 0x6d1   :  { %13592 = vtanh.f32 %v11439_v15  ;;  %v11443_v52 = vadd.f32 %v11442_v16, %v16557_v11 }
 0x6d2   :  { %13594 = vtanh.f32 %v11441_v12  ;;  %v11445_v54 = vadd.f32 %v11444_v38, %v16561_v28 }
 0x6d3   :  { %v16913_v41 = vpop.eup %13584  ;;  %13596 = vtanh.f32 %v11443_v52 }
 0x6d4   :  { %v16915_v13 = vpop.eup %13586  ;;  %13598 = vtanh.f32 %v11445_v54  ;;  %v5926_v14 = vpop.f32.mrb[240].mxu0 }
 0x6d5   :  { %v16917_v56 = vpop.eup %13588  ;;  %v11446_v29 = vadd.f32 %v5926_v14, %v16379_v49  ;;  %v5928_v18 = vpop.f32.mrb[241].mxu0 }
 0x6d6   :  { %v16920_v37 = vpop.eup %13590  ;;  %v11448_v58 = vadd.f32 %v5928_v18, %v16383_v17  ;;  %v5930_v11 = vpop.f32.mrb[242].mxu0 }
 0x6d7   :  { %v11450_v59 = vadd.f32 %v5930_v11, %v16379_v49  ;;  %v11447_v16 = vadd.f32 %v11446_v29, %v16575_v25  ;;  %v5932_v15 = vpop.f32.mrb[243].mxu0 }
 0x6d8   :  { %v11452_v12 = vadd.f32 %v5932_v15, %v16383_v17  ;;  %v11449_v52 = vadd.f32 %v11448_v58, %v16582_v19 }
 0x6d9   :  { %13600 = vtanh.f32 %v11447_v16  ;;  %v11451_v54 = vadd.f32 %v11450_v59, %v16585_v57 }
 0x6da   :  { %13602 = vtanh.f32 %v11449_v52  ;;  %v11453_v14 = vadd.f32 %v11452_v12, %v16589_v32 }
 0x6db   :  { %v16933_v18 = vpop.eup %13592  ;;  %13604 = vtanh.f32 %v11451_v54 }
 0x6dc   :  { %v16935_v11 = vpop.eup %13594  ;;  %13606 = vtanh.f32 %v11453_v14  ;;  %v5936_v25 = vpop.f32.mrb[244].mxu0 }
 0x6dd   :  { %v16937_v29 = vpop.eup %13596  ;;  %v11454_v28 = vadd.f32 %v5936_v25, %v16379_v49  ;;  %v5938_v15 = vpop.f32.mrb[245].mxu0 }
 0x6de   :  { %v16940_v38 = vpop.eup %13598  ;;  %v11456_v19 = vadd.f32 %v5938_v15, %v16383_v17  ;;  %v5940_v57 = vpop.f32.mrb[246].mxu0 }
 0x6df   :  { %v11458_v58 = vadd.f32 %v5940_v57, %v16379_v49  ;;  %v11455_v59 = vadd.f32 %v11454_v28, %v16603_v6  ;;  %v5942_v16 = vpop.f32.mrb[247].mxu0 }
 0x6e0   :  { %v11460_v52 = vadd.f32 %v5942_v16, %v16383_v17  ;;  %v11457_v54 = vadd.f32 %v11456_v19, %v16610_v31 }
 0x6e1   :  { %13608 = vtanh.f32 %v11455_v59  ;;  %v11459_v14 = vadd.f32 %v11458_v58, %v16613_v24 }
 0x6e2   :  { %13610 = vtanh.f32 %v11457_v54  ;;  %v11461_v25 = vadd.f32 %v11460_v52, %v16617_v45 }
 0x6e3   :  { %v16953_v15 = vpop.eup %13600  ;;  %13612 = vtanh.f32 %v11459_v14 }
 0x6e4   :  { %v16955_v57 = vpop.eup %13602  ;;  %13614 = vtanh.f32 %v11461_v25  ;;  %v5946_v6 = vpop.f32.mrb[248].mxu0 }
 0x6e5   :  { %v16957_v28 = vpop.eup %13604  ;;  %v11462_v32 = vadd.f32 %v5946_v6, %v16379_v49  ;;  %v5948_v16 = vpop.f32.mrb[249].mxu0 }
 0x6e6   :  { %v16960_v12 = vpop.eup %13606  ;;  %v11464_v31 = vadd.f32 %v5948_v16, %v16383_v17  ;;  %v5950_v24 = vpop.f32.mrb[250].mxu0 }
 0x6e7   :  { %v11466_v19 = vadd.f32 %v5950_v24, %v16379_v49  ;;  %v11463_v58 = vadd.f32 %v11462_v32, %v16631_v35  ;;  %v5952_v59 = vpop.f32.mrb[251].mxu0 }
 0x6e8   :  { %v11468_v54 = vadd.f32 %v5952_v59, %v16383_v17  ;;  %v11465_v14 = vadd.f32 %v11464_v31, %v16638_v62 }
 0x6e9   :  { %13616 = vtanh.f32 %v11463_v58  ;;  %v11467_v25 = vadd.f32 %v11466_v19, %v16641_v0 }
 0x6ea   :  { %13618 = vtanh.f32 %v11465_v14  ;;  %v11469_v6 = vadd.f32 %v11468_v54, %v16645_v23 }
 0x6eb   :  { %v16973_v16 = vpop.eup %13608  ;;  %13620 = vtanh.f32 %v11467_v25 }
 0x6ec   :  { %v16975_v24 = vpop.eup %13610  ;;  %13622 = vtanh.f32 %v11469_v6  ;;  %v5956_v35 = vpop.f32.mrb[252].mxu0 }
 0x6ed   :  { %v16977_v32 = vpop.eup %13612  ;;  %v11470_v45 = vadd.f32 %v5956_v35, %v16379_v49  ;;  %v5958_v59 = vpop.f32.mrb[253].mxu0 }
 0x6ee   :  { %v16980_v52 = vpop.eup %13614  ;;  %v11472_v62 = vadd.f32 %v5958_v59, %v16383_v17  ;;  %v5960_v0 = vpop.f32.mrb[254].mxu0 }
 0x6ef   :  { %v11474_v31 = vadd.f32 %v5960_v0, %v16379_v49  ;;  %v11471_v19 = vadd.f32 %v11470_v45, %v16659_v53  ;;  %v5962_v58 = vpop.f32.mrb[255].mxu0 }
 0x6f0   :  { %v11476_v14 = vadd.f32 %v5962_v58, %v16383_v17  ;;  %v11473_v25 = vadd.f32 %v11472_v62, %v16666_v22 }
 0x6f1   :  { %13624 = vtanh.f32 %v11471_v19  ;;  %v11475_v6 = vadd.f32 %v11474_v31, %v16669_v3 }
 0x6f2   :  { %13626 = vtanh.f32 %v11473_v25  ;;  %v11477_v35 = vadd.f32 %v11476_v14, %v16673_v9 }
 0x6f3   :  { %v16993_v59 = vpop.eup %13616  ;;  %13628 = vtanh.f32 %v11475_v6 }
 0x6f4   :  { %18009 = vst [vmem:[#allocation95_spill] sm:$0xff] %v16993_v59  ;;  %v16995_v0 = vpop.eup %13618  ;;  %13630 = vtanh.f32 %v11477_v35  ;;  %v5999_v53 = vpop.f32.mrb[128].mxu0 }
 0x6f5   :  { %18010 = vst [vmem:[#allocation93_spill] sm:$0xff] %v16995_v0  ;;  %v16997_v45 = vpop.eup %13620  ;;  %v11242_v23 = vadd.f32 %v5999_v53, %v16379_v49  ;;  %v6001_v58 = vpop.f32.mrb[129].mxu0 }
 0x6f6   :  { %18011 = vst [vmem:[#allocation94_spill] sm:$0xff] %v16997_v45  ;;  %v17000_v54 = vpop.eup %13622  ;;  %v11243_v22 = vadd.f32 %v6001_v58, %v16383_v17  ;;  %v6003_v3 = vpop.f32.mrb[130].mxu0 }
 0x6f7   :  { %18012 = vst [vmem:[#allocation92_spill] sm:$0xff] %v17000_v54  ;;  %13632 = vtanh.f32 %v11242_v23  ;;  %v11244_v62 = vadd.f32 %v6003_v3, %v16379_v49  ;;  %v6005_v31 = vpop.f32.mrb[131].mxu0 }
 0x6f8   :  { %13634 = vtanh.f32 %v11243_v22  ;;  %v11245_v14 = vadd.f32 %v6005_v31, %v16383_v17 }
 0x6f9   :  { %13636 = vtanh.f32 %v11244_v62 }
 0x6fa   :  { %13638 = vtanh.f32 %v11245_v14 }
 0x6fb   :  { %v17009_v25 = vpop.eup %13624 }
 0x6fc   :  { %18013 = vst [vmem:[#allocation99_spill] sm:$0xff] %v17009_v25  ;;  %v17011_v6 = vpop.eup %13626  ;;  %v6009_v35 = vpop.f32.mrb[132].mxu0 }
 0x6fd   :  { %18014 = vst [vmem:[#allocation97_spill] sm:$0xff] %v17011_v6  ;;  %v17013_v53 = vpop.eup %13628  ;;  %v11246_v23 = vadd.f32 %v6009_v35, %v16379_v49  ;;  %v6011_v58 = vpop.f32.mrb[133].mxu0 }
 0x6fe   :  { %18015 = vst [vmem:[#allocation98_spill] sm:$0xff] %v17013_v53  ;;  %v17016_v3 = vpop.eup %13630  ;;  %v11247_v9 = vadd.f32 %v6011_v58, %v16383_v17  ;;  %v6013_v19 = vpop.f32.mrb[134].mxu0 }
 0x6ff   :  { %18016 = vst [vmem:[#allocation96_spill] sm:$0xff] %v17016_v3  ;;  %13640 = vtanh.f32 %v11246_v23  ;;  %v11248_v62 = vadd.f32 %v6013_v19, %v16379_v49  ;;  %v6015_v31 = vpop.f32.mrb[135].mxu0 }
 0x700   :  { %13642 = vtanh.f32 %v11247_v9  ;;  %v11249_v40 = vadd.f32 %v6015_v31, %v16383_v17 }
 0x701   :  { %v13633_v35 = vpop.eup %13632  ;;  %13644 = vtanh.f32 %v11248_v62 }
 0x702   :  { %v13635_v63 = vpop.eup %13634  ;;  %13646 = vtanh.f32 %v11249_v40 }
 0x703   :  { %v13637_v34 = vpop.eup %13636 }
 0x704   :  { %v13639_v58 = vpop.eup %13638  ;;  %v6019_v5 = vpop.f32.mrb[136].mxu0  ;;  %v6765_v4 = vpack.c.bf16 %v13637_v34, %v13633_v35 }
 0x705   :  { %v11250_v22 = vadd.f32 %v6019_v5, %v16379_v49  ;;  %v6021_v23 = vpop.f32.mrb[137].mxu0  ;;  %v6766_v25 = vpack.c.bf16 %v13639_v58, %v13635_v63 }
 0x706   :  { %v11251_v19 = vadd.f32 %v6021_v23, %v16383_v17  ;;  %v6023_v53 = vpop.f32.mrb[138].mxu0 }
 0x707   :  { %13648 = vtanh.f32 %v11250_v22  ;;  %v11252_v9 = vadd.f32 %v6023_v53, %v16379_v49  ;;  %v6025_v14 = vpop.f32.mrb[139].mxu0  ;;  %7117 = vmatprep.subr.bf16.mxu1 %v6766_v25 }
 0x708   :  { %13650 = vtanh.f32 %v11251_v19  ;;  %v11253_v62 = vadd.f32 %v6025_v14, %v16383_v17  ;;  %7118 = vmatpush1.bf16.msra.mxu1 %v6765_v4 }
 0x709   :  { %v13641_v40 = vpop.eup %13640  ;;  %13652 = vtanh.f32 %v11252_v9 }
 0x70a   :  { %v13643_v31 = vpop.eup %13642  ;;  %13654 = vtanh.f32 %v11253_v62 }
 0x70b   :  { %v13645_v34 = vpop.eup %13644 }
 0x70c   :  { %v13647_v5 = vpop.eup %13646  ;;  %v6029_v35 = vpop.f32.mrb[140].mxu0  ;;  %v6771_v63 = vpack.c.bf16 %v13645_v34, %v13641_v40 }
 0x70d   :  { %v11254_v58 = vadd.f32 %v6029_v35, %v16379_v49  ;;  %v6031_v23 = vpop.f32.mrb[141].mxu0  ;;  %v6772_v22 = vpack.c.bf16 %v13647_v5, %v13643_v31 }
 0x70e   :  { %v11255_v53 = vadd.f32 %v6031_v23, %v16383_v17  ;;  %v6033_v6 = vpop.f32.mrb[142].mxu0 }
 0x70f   :  { %13656 = vtanh.f32 %v11254_v58  ;;  %v11256_v25 = vadd.f32 %v6033_v6, %v16379_v49  ;;  %v6035_v14 = vpop.f32.mrb[143].mxu0  ;;  %7119 = vmatprep.subr.bf16.mxu1 %v6772_v22 }
 0x710   :  { %13658 = vtanh.f32 %v11255_v53  ;;  %v11257_v4 = vadd.f32 %v6035_v14, %v16383_v17  ;;  %7120 = vmatpush1.bf16.msra.mxu1 %v6771_v63  ;;  %v7069_v63 = vpop.f32.mrb[244].mxu1 }
 0x711   :  { %v13649_v19 = vpop.eup %13648  ;;  %13660 = vtanh.f32 %v11256_v25  ;;  %v7071_v14 = vpop.f32.mrb[245].mxu1 }
 0x712   :  { %v13651_v9 = vpop.eup %13650  ;;  %13662 = vtanh.f32 %v11257_v4 }
 0x713   :  { %v13653_v62 = vpop.eup %13652 }
 0x714   :  { %v13655_v40 = vpop.eup %13654  ;;  %v6039_v34 = vpop.f32.mrb[144].mxu0  ;;  %v6777_v31 = vpack.c.bf16 %v13653_v62, %v13649_v19 }
 0x715   :  { %v11258_v5 = vadd.f32 %v6039_v34, %v16379_v49  ;;  %v6041_v35 = vpop.f32.mrb[145].mxu0  ;;  %v6778_v58 = vpack.c.bf16 %v13655_v40, %v13651_v9  ;;  %v7073_v19 = vpop.f32.mrb[246].mxu1  ;;  %v6757_v34 = vld [vmem:[#allocation2 + $0x10] sm:$0xff] }
 0x716   :  { %v11259_v6 = vadd.f32 %v6041_v35, %v16383_v17  ;;  %v6043_v23 = vpop.f32.mrb[146].mxu0  ;;  %v7074_v9 = vpop.f32.mrb[247].mxu1 }
 0x717   :  { %13664 = vtanh.f32 %v11258_v5  ;;  %v11260_v22 = vadd.f32 %v6043_v23, %v16379_v49  ;;  %v6045_v53 = vpop.f32.mrb[147].mxu0  ;;  %7121 = vmatprep.subr.bf16.mxu1 %v6778_v58  ;;  %v7110_v35 = vpop.f32.mrb[248].mxu1  ;;  %v6758_v23 = vld [vmem:[#allocation2 + $0x18] sm:$0xff] }
 0x718   :  { %13666 = vtanh.f32 %v11259_v6  ;;  %v11261_v25 = vadd.f32 %v6045_v53, %v16383_v17  ;;  %7122 = vmatpush1.bf16.msra.mxu1 %v6777_v31  ;;  %v7111_v49 = vadd.f32 %v7110_v35, %v7069_v63  ;;  %v7112_v58 = vpop.f32.mrb[249].mxu1  ;;  %v18017_v63 = vld [vmem:[#allocation32_spill] sm:$0xff]  ;;  %v18026_v35 = vld [vmem:[#allocation38_spill] sm:$0xff] }
 0x719   :  { %v13657_v4 = vpop.eup %13656  ;;  %13668 = vtanh.f32 %v11260_v22  ;;  %v7113_v6 = vadd.f32 %v7112_v58, %v7071_v14  ;;  %v7114_v45 = vpop.f32.mrb[250].mxu1  ;;  %v18021_v14 = vld [vmem:[#allocation31_spill] sm:$0xff]  ;;  %v18030_v58 = vld [vmem:[#allocation41_spill] sm:$0xff] }
 0x71a   :  { %v13659_v62 = vpop.eup %13658  ;;  %13670 = vtanh.f32 %v11261_v25  ;;  %v7201_v17 = vadd.f32 %v7111_v49, %v6757_v34  ;;  %v7115_v31 = vpop.f32.mrb[251].mxu1  ;;  %v18020_v45 = vld [vmem:[#allocation34_spill] sm:$0xff] }
 0x71b   :  { %v13661_v40 = vpop.eup %13660  ;;  %v7202_v53 = vadd.f32 %v7113_v6, %v6758_v23  ;;  %v18029_v23 = vld [vmem:[#allocation40_spill] sm:$0xff]  ;;  %v18033_v6 = vld [vmem:[#allocation43_spill] sm:$0xff] }
 0x71c   :  { %v13663_v5 = vpop.eup %13662  ;;  %v6783_v3 = vpack.c.bf16 %v13661_v40, %v13657_v4  ;;  %7207 = vst [vmem:[#allocation2 + $0x10] sm:$0xff] %v7201_v17  ;;  %v18018_v4 = vld [vmem:[#allocation33_spill] sm:$0xff]  ;;  %v18022_v40 = vpack.c.bf16 %v18020_v45, %v18021_v14  ;;  %v18035_v31 = vld [vmem:[#allocation44_spill] sm:$0xff]  ;;  %v18044_v45 = vld [vmem:[#allocation50_spill] sm:$0xff] }
 0x71d   :  { %v6784_v59 = vpack.c.bf16 %v13663_v5, %v13659_v62  ;;  %7208 = vst [vmem:[#allocation2 + $0x18] sm:$0xff] %v7202_v53  ;;  %v18019_v62 = vpack.c.bf16 %v18017_v63, %v18018_v4  ;;  %v18027_v5 = vld [vmem:[#allocation39_spill] sm:$0xff]  ;;  %v18036_v53 = vld [vmem:[#allocation45_spill] sm:$0xff]  ;;  %v18041_v63 = vld [vmem:[#allocation48_spill] sm:$0xff] }
 0x71e   :  { %v18028_v49 = vpack.c.bf16 %v18026_v35, %v18027_v5  ;;  %v18042_v4 = vld [vmem:[#allocation49_spill] sm:$0xff]  ;;  %v18045_v14 = vld [vmem:[#allocation51_spill] sm:$0xff]  ;;  %v18050_v35 = vld [vmem:[#allocation54_spill] sm:$0xff] }
 0x71f   :  { %7123 = vmatprep.subr.bf16.mxu1 %v6784_v59  ;;  %v18023_v59 = vld [vmem:[#allocation36_spill] sm:$0xff]  ;;  %v18051_v5 = vld [vmem:[#allocation55_spill] sm:$0xff] }
 0x720   :  { %7124 = vmatpush1.bf16.msra.mxu1 %v6783_v3  ;;  %v18024_v3 = vld [vmem:[#allocation37_spill] sm:$0xff] }
 0x721   :  { %v13665_v22 = vpop.eup %13664  ;;  %v18025_v34 = vpack.c.bf16 %v18023_v59, %v18024_v3  ;;  %v18047_v59 = vld [vmem:[#allocation52_spill] sm:$0xff]  ;;  %v18048_v3 = vld [vmem:[#allocation53_spill] sm:$0xff] }
 0x722   :  { %v13667_v25 = vpop.eup %13666 }
 0x723   :  { %v13669_v19 = vpop.eup %13668 }
 0x724   :  { %v13671_v9 = vpop.eup %13670  ;;  %v6789_v0 = vpack.c.bf16 %v13669_v19, %v13665_v22  ;;  %v18037_v22 = vpack.c.bf16 %v18035_v31, %v18036_v53  ;;  %v18039_v19 = vld [vmem:[#allocation47_spill] sm:$0xff]  ;;  %v18059_v31 = vld [vmem:[#allocation60_spill] sm:$0xff]  ;;  %v18060_v53 = vld [vmem:[#allocation61_spill] sm:$0xff] }
 0x725   :  { %v6790_v54 = vpack.c.bf16 %v13671_v9, %v13667_v25  ;;  %v18038_v25 = vld [vmem:[#allocation46_spill] sm:$0xff] }
 0x726   :  { %v18040_v9 = vpack.c.bf16 %v18038_v25, %v18039_v19  ;;  %v18062_v25 = vld [vmem:[#allocation62_spill] sm:$0xff]  ;;  %v18063_v19 = vld [vmem:[#allocation63_spill] sm:$0xff] }
 0x727   :  { %7125 = vmatprep.subr.bf16.mxu1 %v6790_v54  ;;  %v18031_v54 = vpack.c.bf16 %v18029_v23, %v18030_v58  ;;  %v18053_v23 = vld [vmem:[#allocation56_spill] sm:$0xff]  ;;  %v18054_v58 = vld [vmem:[#allocation57_spill] sm:$0xff] }
 0x728   :  { %7126 = vmatpush1.bf16.msra.mxu1 %v6789_v0  ;;  %v18032_v0 = vld [vmem:[#allocation42_spill] sm:$0xff] }
 0x729   :  { %7127 = vmatprep.subr.bf16.mxu1 %v18019_v62  ;;  %v18034_v17 = vpack.c.bf16 %v18032_v0, %v18033_v6  ;;  %v18043_v62 = vpack.c.bf16 %v18041_v63, %v18042_v4  ;;  %v18056_v0 = vld [vmem:[#allocation58_spill] sm:$0xff]  ;;  %v18057_v6 = vld [vmem:[#allocation59_spill] sm:$0xff]  ;;  %v18065_v63 = vld [vmem:[#allocation64_spill] sm:$0xff] }
 0x72a   :  { %v18066_v4 = vld [vmem:[#allocation65_spill] sm:$0xff] }
 0x72c   :  { %7128 = vmatpush1.bf16.msra.mxu1 %v18022_v40  ;;  %v18046_v40 = vpack.c.bf16 %v18044_v45, %v18045_v14  ;;  %v18068_v45 = vld [vmem:[#allocation66_spill] sm:$0xff]  ;;  %v18069_v14 = vld [vmem:[#allocation67_spill] sm:$0xff] }
 0x72d   :  { %7129 = vmatprep.subr.bf16.mxu1 %v18025_v34  ;;  %v18049_v34 = vpack.c.bf16 %v18047_v59, %v18048_v3  ;;  %v18071_v59 = vld [vmem:[#allocation69_spill] sm:$0xff] }
 0x72e   :  { %v18072_v3 = vpack.c.bf16 %v16680_v10, %v18071_v59  ;;  %v18087_v10 = vld [vmem:[#allocation77_spill] sm:$0xff]  ;;  %v18096_v59 = vld [vmem:[#allocation76_spill] sm:$0xff] }
 0x730   :  { %7130 = vmatpush1.bf16.msra.mxu1 %v18028_v49  ;;  %v18052_v49 = vpack.c.bf16 %v18050_v35, %v18051_v5  ;;  %v18074_v35 = vld [vmem:[#allocation71_spill] sm:$0xff] }
 0x731   :  { %7131 = vmatprep.subr.bf16.mxu1 %v18031_v54  ;;  %v18055_v54 = vpack.c.bf16 %v18053_v23, %v18054_v58  ;;  %v18077_v23 = vld [vmem:[#allocation75_spill] sm:$0xff] }
 0x734   :  { %7132 = vmatpush1.bf16.msra.mxu1 %v18034_v17  ;;  %v18058_v17 = vpack.c.bf16 %v18056_v0, %v18057_v6  ;;  %v18080_v0 = vld [vmem:[#allocation68_spill] sm:$0xff] }
 0x735   :  { %7133 = vmatprep.subr.bf16.mxu1 %v18037_v22  ;;  %v18061_v22 = vpack.c.bf16 %v18059_v31, %v18060_v53  ;;  %v18083_v31 = vld [vmem:[#allocation79_spill] sm:$0xff] }
 0x738   :  { %7134 = vmatpush1.bf16.msra.mxu1 %v18040_v9  ;;  %v18064_v9 = vpack.c.bf16 %v18062_v25, %v18063_v19  ;;  %v18088_v19 = vld [vmem:[#allocation72_spill] sm:$0xff]  ;;  %v18111_v25 = vld [vmem:[#allocation89_spill] sm:$0xff] }
 0x739   :  { %7135 = vmatprep.subr.bf16.mxu1 %v18043_v62  ;;  %v18067_v62 = vpack.c.bf16 %v18065_v63, %v18066_v4  ;;  %v18090_v63 = vld [vmem:[#allocation171_spill] sm:$0xff] }
 0x73c   :  { %7136 = vmatpush1.bf16.msra.mxu1 %v18046_v40  ;;  %v18070_v40 = vpack.c.bf16 %v18068_v45, %v18069_v14  ;;  %v18093_v45 = vld [vmem:[#allocation83_spill] sm:$0xff] }
 0x73d   :  { %7137 = vmatprep.subr.bf16.mxu1 %v18049_v34  ;;  %v18073_v34 = vld [vmem:[#allocation70_spill] sm:$0xff] }
 0x73e   :  { %v18075_v5 = vpack.c.bf16 %v18073_v34, %v18074_v35  ;;  %v18098_v34 = vpack.c.bf16 %v16760_v7, %v16755_v47  ;;  %v18099_v35 = vld [vmem:[#allocation87_spill] sm:$0xff]  ;;  %v18113_v47 = vpack.c.bf16 %v16820_v1, %v16815_v43  ;;  %v18118_v43 = vpack.c.bf16 %v16857_v50, %v16853_v42 }
 0x73f   :  { %v18121_v1 = vpack.c.bf16 %v16900_v26, %v16895_v51  ;;  %v18126_v42 = vpack.c.bf16 %v16937_v29, %v16933_v18  ;;  %v18128_v50 = vpack.c.bf16 %v16957_v28, %v16953_v15  ;;  %v18134_v26 = vld [vmem:[#allocation94_spill] sm:$0xff]  ;;  %v18143_v18 = vld [vmem:[#allocation131_spill] sm:$0xff] }
 0x740   :  { %7138 = vmatpush1.bf16.msra.mxu1 %v18052_v49  ;;  %v18076_v49 = vld [vmem:[#allocation74_spill] sm:$0xff]  ;;  %v6759_v28 = vld [vmem:[#allocation2 + $0x20] sm:$0xff] }
 0x741   :  { %7139 = vmatprep.subr.bf16.mxu1 %v18055_v54  ;;  %v18078_v58 = vpack.c.bf16 %v18076_v49, %v18077_v23  ;;  %v18079_v54 = vld [vmem:[#allocation73_spill] sm:$0xff]  ;;  %v18102_v23 = vld [vmem:[#allocation91_spill] sm:$0xff] }
 0x742   :  { %v18081_v6 = vpack.c.bf16 %v18079_v54, %v18080_v0  ;;  %v18105_v0 = vld [vmem:[#allocation84_spill] sm:$0xff] }
 0x744   :  { %7140 = vmatpush1.bf16.msra.mxu1 %v18058_v17  ;;  %v18082_v17 = vld [vmem:[#allocation78_spill] sm:$0xff] }
 0x745   :  { %7141 = vmatprep.subr.bf16.mxu1 %v18061_v22  ;;  %v18084_v53 = vpack.c.bf16 %v18082_v17, %v18083_v31  ;;  %v18085_v22 = vld [vmem:[#allocation169_spill] sm:$0xff]  ;;  %v18108_v31 = vld [vmem:[#allocation90_spill] sm:$0xff] }
 0x748   :  { %7142 = vmatpush1.bf16.msra.mxu1 %v18064_v9  ;;  %v18089_v9 = vpack.c.bf16 %v18087_v10, %v18088_v19  ;;  %v18114_v10 = vpack.c.bf16 %v16817_v36, %v16813_v44  ;;  %v18115_v19 = vpack.c.bf16 %v16840_v2, %v16835_v20  ;;  %v18119_v44 = vpack.c.bf16 %v16880_v33, %v16875_v61  ;;  %v18132_v61 = vld [vmem:[#allocation93_spill] sm:$0xff] }
 0x749   :  { %7143 = vmatprep.subr.bf16.mxu1 %v18067_v62  ;;  %v18092_v62 = vld [vmem:[#allocation82_spill] sm:$0xff]  ;;  %v18120_v36 = vpack.c.bf16 %v16877_v39, %v16873_v60  ;;  %v18123_v20 = vpack.c.bf16 %v16920_v37, %v16915_v13  ;;  %v18125_v2 = vpack.c.bf16 %v16940_v38, %v16935_v11  ;;  %v18130_v33 = vpack.c.bf16 %v16977_v32, %v16973_v16  ;;  %v18131_v60 = vld [vmem:[#allocation92_spill] sm:$0xff]  ;;  %v18138_v37 = vld [vmem:[#allocation97_spill] sm:$0xff] }
 0x74a   :  { %v18094_v14 = vpack.c.bf16 %v18092_v62, %v18093_v45  ;;  %v18133_v39 = vpack.c.bf16 %v18131_v60, %v18132_v61  ;;  %v18140_v13 = vld [vmem:[#allocation98_spill] sm:$0xff] }
 0x74c   :  { %7144 = vmatpush1.bf16.msra.mxu1 %v18070_v40  ;;  %v18095_v40 = vld [vmem:[#allocation81_spill] sm:$0xff] }
 0x74d   :  { %7145 = vmatprep.subr.bf16.mxu1 %v18072_v3  ;;  %v18097_v3 = vpack.c.bf16 %v18095_v40, %v18096_v59 }
 0x750   :  { %7146 = vmatpush1.bf16.msra.mxu1 %v18075_v5  ;;  %v18100_v5 = vld [vmem:[#allocation80_spill] sm:$0xff] }
 0x751   :  { %7147 = vmatprep.subr.bf16.mxu1 %v18078_v58  ;;  %v18101_v49 = vpack.c.bf16 %v18099_v35, %v18100_v5  ;;  %v18103_v58 = vld [vmem:[#allocation86_spill] sm:$0xff] }
 0x752   :  { %v18104_v54 = vpack.c.bf16 %v18102_v23, %v18103_v58 }
 0x754   :  { %7148 = vmatpush1.bf16.msra.mxu1 %v18081_v6  ;;  %v18106_v6 = vld [vmem:[#allocation85_spill] sm:$0xff] }
 0x755   :  { %7158 = vmatprep.subr.bf16.mxu1 %v18084_v53  ;;  %v18107_v17 = vpack.c.bf16 %v18105_v0, %v18106_v6  ;;  %v18109_v53 = vpack.c.bf16 %v16800_v21, %v18108_v31  ;;  %v18116_v21 = vpack.c.bf16 %v16837_v48, %v16833_v27  ;;  %v18122_v27 = vpack.c.bf16 %v16897_v8, %v16893_v30  ;;  %v18135_v30 = vld [vmem:[#allocation95_spill] sm:$0xff]  ;;  %v18137_v8 = vld [vmem:[#allocation96_spill] sm:$0xff] }
 0x756   :  { %v18124_v48 = vpack.c.bf16 %v16917_v56, %v16913_v41  ;;  %v18136_v51 = vpack.c.bf16 %v18134_v26, %v18135_v30  ;;  %v18139_v41 = vpack.c.bf16 %v18137_v8, %v18138_v37  ;;  %v18141_v56 = vld [vmem:[#allocation99_spill] sm:$0xff] }
 0x757   :  { %10542 = vmatmul.mubr.msk.bf16.vlgmr.msra.gmra.mrb[252].mxu1 %vm15889_vm4, %v18085_v22  ;;  %v18110_v22 = vld [vmem:[#allocation88_spill] sm:$0xff]  ;;  %v18142_v38 = vpack.c.bf16 %v18140_v13, %v18141_v56 }
 0x758   :  { %7159 = vmatpush1.bf16.msra.mxu1 %v18089_v9  ;;  %10545 = vmatprep.mubr.msk.bf16.mxu1 %vm15905_vm5, %v18090_v63  ;;  %v18112_v7 = vpack.c.bf16 %v18110_v22, %v18111_v25  ;;  %v18117_v9 = vpack.c.bf16 %v16860_v46, %v16855_v55  ;;  %v18127_v55 = vpack.c.bf16 %v16960_v12, %v16955_v57 }
 0x759   :  { %7160 = vmatprep.subr.bf16.mxu1 %v18094_v14  ;;  %v18129_v46 = vpack.c.bf16 %v16980_v52, %v16975_v24  ;;  %v6760_v24 = vld [vmem:[#allocation2 + $0x28] sm:$0xff] }
 0x75c   :  { %7161 = vmatpush1.bf16.msra.mxu1 %v18097_v3 }
 0x75d   :  { %7162 = vmatprep.subr.bf16.mxu1 %v18098_v34 }
 0x760   :  { %7163 = vmatpush1.bf16.msra.mxu1 %v18101_v49 }
 0x761   :  { %7164 = vmatprep.subr.bf16.mxu1 %v18104_v54 }
 0x764   :  { %7165 = vmatpush1.bf16.msra.mxu1 %v18107_v17 }
 0x765   :  { %7166 = vmatprep.subr.bf16.mxu1 %v18109_v53 }
 0x768   :  { %7167 = vmatpush1.bf16.msra.mxu1 %v18112_v7 }
 0x769   :  { %7168 = vmatprep.subr.bf16.mxu1 %v18113_v47 }
 0x76c   :  { %7169 = vmatpush1.bf16.msra.mxu1 %v18114_v10 }
 0x76d   :  { %7170 = vmatprep.subr.bf16.mxu1 %v18115_v19 }
 0x770   :  { %7171 = vmatpush1.bf16.msra.mxu1 %v18116_v21 }
 0x771   :  { %7172 = vmatprep.subr.bf16.mxu1 %v18117_v9 }
 0x774   :  { %7173 = vmatpush1.bf16.msra.mxu1 %v18118_v43 }
 0x775   :  { %7174 = vmatprep.subr.bf16.mxu1 %v18119_v44 }
 0x778   :  { %7175 = vmatpush1.bf16.msra.mxu1 %v18120_v36 }
 0x779   :  { %7176 = vmatprep.subr.bf16.mxu1 %v18121_v1 }
 0x77c   :  { %7177 = vmatpush1.bf16.msra.mxu1 %v18122_v27 }
 0x77d   :  { %7178 = vmatprep.subr.bf16.mxu1 %v18123_v20 }
 0x780   :  { %7179 = vmatpush1.bf16.msra.mxu1 %v18124_v48 }
 0x781   :  { %7180 = vmatprep.subr.bf16.mxu1 %v18125_v2 }
 0x784   :  { %7181 = vmatpush1.bf16.msra.mxu1 %v18126_v42 }
 0x785   :  { %7182 = vmatprep.subr.bf16.mxu1 %v18127_v55 }
 0x788   :  { %7183 = vmatpush1.bf16.msra.mxu1 %v18128_v50 }
 0x789   :  { %7184 = vmatprep.subr.bf16.mxu1 %v18129_v46 }
 0x78c   :  { %7185 = vmatpush1.bf16.msra.mxu1 %v18130_v33 }
 0x78d   :  { %7186 = vmatprep.subr.bf16.mxu1 %v18133_v39 }
 0x790   :  { %7187 = vmatpush1.bf16.msra.mxu1 %v18136_v51 }
 0x791   :  { %7188 = vmatprep.subr.bf16.mxu1 %v18139_v41 }
 0x794   :  { %7189 = vmatpush1.bf16.msra.mxu1 %v18142_v38 }
 0x797   :  { %10548 = vmatmul.mubr.msk.bf16.vlgmr.msra.gmra.mrb[0].mxu1 %vm16041_vm7, %v18143_v18 }
 0x82a   :  { %v7151_v29 = vpop.f32.mrb[252].mxu1 }
 0x82b   :  { %v7153_v12 = vpop.f32.mrb[253].mxu1 }
 0x82c   :  { %v7155_v15 = vpop.f32.mrb[254].mxu1 }
 0x82d   :  { %v7156_v57 = vpop.f32.mrb[255].mxu1 }
 0x86a   :  { %v7192_v52 = vpop.f32.mrb[0].mxu1 }
 0x86b   :  { %v7193_v16 = vadd.f32 %v7192_v52, %v7151_v29  ;;  %v7194_v32 = vpop.f32.mrb[1].mxu1 }
 0x86c   :  { %v7195_v63 = vadd.f32 %v7194_v32, %v7153_v12  ;;  %v7196_v4 = vpop.f32.mrb[2].mxu1 }
 0x86d   :  { %v7203_v62 = vadd.f32 %v7193_v16, %v6759_v28  ;;  %v7197_v45 = vpop.f32.mrb[3].mxu1 }
 0x86e   :  { %v7204_v14 = vadd.f32 %v7195_v63, %v6760_v24 }
 0x86f   :  { %7209 = vst [vmem:[#allocation2 + $0x20] sm:$0xff] %v7203_v62 }
 0x870   :  { %7210 = vst [vmem:[#allocation2 + $0x28] sm:$0xff] %v7204_v14 }
 0x871 PF:  { %v13892_v40 = vld [vmem:[#allocation14 + $0x4] ss:$24 sps:$4 sm:$0xff]   ;;  %v13896_v3 = vld [vmem:[#allocation14] ss:$24 sps:$4 sm:$0xff]   ;;  %v13898_v35 = vld [vmem:[#allocation14 + $0x34] ss:$24 sps:$4 sm:$0xff]  }
 0x872   :  { %v13894_v59 = vld [vmem:[#allocation14 + $0x304] ss:$24 sps:$4 sm:$0xff]   ;;  %8986 = vmatprep.subr.bf16.mxu1 %v13892_v40  ;;  %v13897_v34 = vld [vmem:[#allocation14 + $0x300] ss:$24 sps:$4 sm:$0xff]   ;;  %v13900_v5 = vld [vmem:[#allocation14 + $0x334] ss:$24 sps:$4 sm:$0xff]  }
 0x873   :  { %9027 = vmatprep.subr.bf16.mxu0 %v13894_v59  ;;  %8987 = vmatpush1.bf16.msra.mxu1 %v13896_v3  ;;  %v13902_v49 = vld [vmem:[#allocation14 + $0x30] ss:$24 sps:$4 sm:$0xff]   ;;  %v13904_v58 = vld [vmem:[#allocation14 + $0x64] ss:$24 sps:$4 sm:$0xff]   ;;  %v13908_v0 = vld [vmem:[#allocation14 + $0x60] ss:$24 sps:$4 sm:$0xff]  }
 0x874   :  { %9028 = vmatpush1.bf16.msra.mxu0 %v13897_v34  ;;  %8988 = vmatprep.subr.bf16.mxu1 %v13898_v35  ;;  %v13903_v23 = vld [vmem:[#allocation14 + $0x330] ss:$24 sps:$4 sm:$0xff]   ;;  %v13906_v54 = vld [vmem:[#allocation14 + $0x364] ss:$24 sps:$4 sm:$0xff]   ;;  %v13909_v6 = vld [vmem:[#allocation14 + $0x360] ss:$24 sps:$4 sm:$0xff]  }
 0x875   :  { %9029 = vmatprep.subr.bf16.mxu0 %v13900_v5  ;;  %v13910_v17 = vld [vmem:[#allocation14 + $0x94] ss:$24 sps:$4 sm:$0xff]   ;;  %v13914_v53 = vld [vmem:[#allocation14 + $0x90] ss:$24 sps:$4 sm:$0xff]   ;;  %v13916_v25 = vld [vmem:[#allocation14 + $0xc4] ss:$24 sps:$4 sm:$0xff]  }
 0x876   :  { %v13912_v31 = vld [vmem:[#allocation14 + $0x394] ss:$24 sps:$4 sm:$0xff]   ;;  %v13915_v22 = vld [vmem:[#allocation14 + $0x390] ss:$24 sps:$4 sm:$0xff]   ;;  %v13918_v7 = vld [vmem:[#allocation14 + $0x3c4] ss:$24 sps:$4 sm:$0xff]  }
 0x877   :  { %8989 = vmatpush1.bf16.msra.mxu1 %v13902_v49  ;;  %v13920_v47 = vld [vmem:[#allocation14 + $0xc0] ss:$24 sps:$4 sm:$0xff]   ;;  %v13922_v19 = vld [vmem:[#allocation14 + $0xf4] ss:$24 sps:$4 sm:$0xff]   ;;  %v13926_v9 = vld [vmem:[#allocation14 + $0xf0] ss:$24 sps:$4 sm:$0xff]  }
 0x878   :  { %9030 = vmatpush1.bf16.msra.mxu0 %v13903_v23  ;;  %8990 = vmatprep.subr.bf16.mxu1 %v13904_v58  ;;  %v13921_v10 = vld [vmem:[#allocation14 + $0x3c0] ss:$24 sps:$4 sm:$0xff]   ;;  %v13924_v21 = vld [vmem:[#allocation14 + $0x3f4] ss:$24 sps:$4 sm:$0xff]   ;;  %v13927_v43 = vld [vmem:[#allocation14 + $0x3f0] ss:$24 sps:$4 sm:$0xff]  }
 0x879   :  { %9031 = vmatprep.subr.bf16.mxu0 %v13906_v54  ;;  %v13928_v44 = vld [vmem:[#allocation14 + $0x124] ss:$24 sps:$4 sm:$0xff]   ;;  %v13932_v1 = vld [vmem:[#allocation14 + $0x120] ss:$24 sps:$4 sm:$0xff]   ;;  %v13934_v20 = vld [vmem:[#allocation14 + $0x154] ss:$24 sps:$4 sm:$0xff]  }
 0x87a   :  { %v13930_v36 = vld [vmem:[#allocation14 + $0x424] ss:$24 sps:$4 sm:$0xff]   ;;  %v13933_v27 = vld [vmem:[#allocation14 + $0x420] ss:$24 sps:$4 sm:$0xff]   ;;  %v13936_v48 = vld [vmem:[#allocation14 + $0x454] ss:$24 sps:$4 sm:$0xff]  }
 0x87b   :  { %8991 = vmatpush1.bf16.msra.mxu1 %v13908_v0  ;;  %v13938_v2 = vld [vmem:[#allocation14 + $0x150] ss:$24 sps:$4 sm:$0xff]   ;;  %v13940_v55 = vld [vmem:[#allocation14 + $0x184] ss:$24 sps:$4 sm:$0xff]   ;;  %v13944_v46 = vld [vmem:[#allocation14 + $0x180] ss:$24 sps:$4 sm:$0xff]  }
 0x87c   :  { %9032 = vmatpush1.bf16.msra.mxu0 %v13909_v6  ;;  %8992 = vmatprep.subr.bf16.mxu1 %v13910_v17  ;;  %v13939_v42 = vld [vmem:[#allocation14 + $0x450] ss:$24 sps:$4 sm:$0xff]   ;;  %v13942_v50 = vld [vmem:[#allocation14 + $0x484] ss:$24 sps:$4 sm:$0xff]   ;;  %v13945_v33 = vld [vmem:[#allocation14 + $0x480] ss:$24 sps:$4 sm:$0xff]  }
 0x87d   :  { %9033 = vmatprep.subr.bf16.mxu0 %v13912_v31  ;;  %v13946_v60 = vld [vmem:[#allocation14 + $0x1b4] ss:$24 sps:$4 sm:$0xff]   ;;  %v13950_v39 = vld [vmem:[#allocation14 + $0x1b0] ss:$24 sps:$4 sm:$0xff]   ;;  %v13952_v30 = vld [vmem:[#allocation14 + $0x1e4] ss:$24 sps:$4 sm:$0xff]  }
 0x87e   :  { %v13948_v61 = vld [vmem:[#allocation14 + $0x4b4] ss:$24 sps:$4 sm:$0xff]   ;;  %v13951_v26 = vld [vmem:[#allocation14 + $0x4b0] ss:$24 sps:$4 sm:$0xff]   ;;  %v13954_v51 = vld [vmem:[#allocation14 + $0x4e4] ss:$24 sps:$4 sm:$0xff]  }
 0x87f   :  { %8993 = vmatpush1.bf16.msra.mxu1 %v13914_v53  ;;  %v13956_v8 = vld [vmem:[#allocation14 + $0x1e0] ss:$24 sps:$4 sm:$0xff]   ;;  %v13958_v41 = vld [vmem:[#allocation14 + $0x214] ss:$24 sps:$4 sm:$0xff]   ;;  %v13962_v11 = vld [vmem:[#allocation14 + $0x210] ss:$24 sps:$4 sm:$0xff]  }
 0x880   :  { %9034 = vmatpush1.bf16.msra.mxu0 %v13915_v22  ;;  %8994 = vmatprep.subr.bf16.mxu1 %v13916_v25  ;;  %v13957_v37 = vld [vmem:[#allocation14 + $0x4e0] ss:$24 sps:$4 sm:$0xff]   ;;  %v13960_v13 = vld [vmem:[#allocation14 + $0x514] ss:$24 sps:$4 sm:$0xff]   ;;  %v13963_v29 = vld [vmem:[#allocation14 + $0x510] ss:$24 sps:$4 sm:$0xff]  }
 0x881   :  { %9035 = vmatprep.subr.bf16.mxu0 %v13918_v7  ;;  %v7215_v56 = vld [vmem:[#allocation2 + $0x8] sm:$0xff]  ;;  %v7217_v18 = vld [vmem:[#allocation2 + $0x18] sm:$0xff]  ;;  %v7214_v5 = vld [vmem:[#allocation2] sm:$0xff]  ;;  %s14674_s0 = smov [#allocation23]  }
 0x882   :  { %v17208_v38 = vpack.c.bf16 %v7215_v56, %v7215_v56  ;;  %v17210_v12 = vpack.c.bf16 %v7217_v18, %v7217_v18  ;;  %v13964_v15 = vld [vmem:[#allocation14 + $0x244] ss:$24 sps:$4 sm:$0xff]   ;;  %v13968_v28 = vld [vmem:[#allocation14 + $0x240] ss:$24 sps:$4 sm:$0xff]   ;;  %v13970_v16 = vld [vmem:[#allocation14 + $0x274] ss:$24 sps:$4 sm:$0xff]   ;;  %v17214_v0 = vpack.c.bf16 %v7214_v5, %v7214_v5 }
 0x883   :  { %8995 = vmatpush1.bf16.msra.mxu1 %v13920_v47  ;;  %v13966_v57 = vld [vmem:[#allocation14 + $0x544] ss:$24 sps:$4 sm:$0xff]   ;;  %v13969_v52 = vld [vmem:[#allocation14 + $0x540] ss:$24 sps:$4 sm:$0xff]   ;;  %v13972_v24 = vld [vmem:[#allocation14 + $0x574] ss:$24 sps:$4 sm:$0xff]  }
 0x884   :  { %9036 = vmatpush1.bf16.msra.mxu0 %v13921_v10  ;;  %8996 = vmatprep.subr.bf16.mxu1 %v13922_v19  ;;  %v13974_v32 = vld [vmem:[#allocation14 + $0x270] ss:$24 sps:$4 sm:$0xff]   ;;  %v13976_v4 = vld [vmem:[#allocation14 + $0x2a4] ss:$24 sps:$4 sm:$0xff]   ;;  %v13980_v45 = vld [vmem:[#allocation14 + $0x2a0] ss:$24 sps:$4 sm:$0xff]  }
 0x885   :  { %9037 = vmatprep.subr.bf16.mxu0 %v13924_v21  ;;  %9018 = vmatprep.mubr.bf16.mxu1 %v17208_v38  ;;  %v13975_v63 = vld [vmem:[#allocation14 + $0x570] ss:$24 sps:$4 sm:$0xff]   ;;  %v13978_v62 = vld [vmem:[#allocation14 + $0x5a4] ss:$24 sps:$4 sm:$0xff]   ;;  %v13981_v14 = vld [vmem:[#allocation14 + $0x5a0] ss:$24 sps:$4 sm:$0xff]  }
 0x886   :  { %9059 = vmatprep.mubr.bf16.mxu0 %v17210_v12  ;;  %v13982_v40 = vld [vmem:[#allocation14 + $0x2d4] ss:$24 sps:$4 sm:$0xff]   ;;  %v13986_v3 = vld [vmem:[#allocation14 + $0x2d0] ss:$24 sps:$4 sm:$0xff]   ;;  %v13990_v35 = vld [vmem:[#allocation14 + $0x604] ss:$24 sps:$4 sm:$0xff]  }
 0x887   :  { %8997 = vmatpush1.bf16.msra.mxu1 %v13926_v9  ;;  %v13984_v59 = vld [vmem:[#allocation14 + $0x5d4] ss:$24 sps:$4 sm:$0xff]   ;;  %v13987_v34 = vld [vmem:[#allocation14 + $0x5d0] ss:$24 sps:$4 sm:$0xff]   ;;  %v13988_v58 = vld [vmem:[#allocation14 + $0x600] ss:$24 sps:$4 sm:$0xff]  }
 0x888   :  { %9038 = vmatpush1.bf16.msra.mxu0 %v13927_v43  ;;  %8998 = vmatprep.subr.bf16.mxu1 %v13928_v44  ;;  %v7216_v49 = vld [vmem:[#allocation2 + $0x10] sm:$0xff]  ;;  %v13993_v23 = vld [vmem:[#allocation14 + $0xc] ss:$24 sps:$4 sm:$0xff]   ;;  %v13991_v54 = vld [vmem:[#allocation14 + $0x8] ss:$24 sps:$4 sm:$0xff]   ;;  %s9998_s27 = sshll.u32 %s14674_s0, 4  ;;  %s9999_s27 = int_to_ptr.vmem [resolvable:$true] %s9998_s27 }
 0x889   :  { %9039 = vmatprep.subr.bf16.mxu0 %v13930_v36  ;;  %v17216_v6 = vpack.c.bf16 %v7216_v49, %v7216_v49  ;;  %v13996_v17 = vld [vmem:[#allocation14 + $0x634] ss:$24 sps:$4 sm:$0xff]   ;;  %v13994_v53 = vld [vmem:[#allocation14 + $0x630] ss:$24 sps:$4 sm:$0xff]   ;;  %v14002_v25 = vld [vmem:[#allocation14 + $0x664] ss:$24 sps:$4 sm:$0xff]   ;;  %p14627_p5 = scmp.lt.s32.totalorder %s9999_s27, %s9999_s27 }
 0x88a   :  { %v13999_v31 = vld [vmem:[#allocation14 + $0x3c] ss:$24 sps:$4 sm:$0xff]   ;;  %v13997_v22 = vld [vmem:[#allocation14 + $0x38] ss:$24 sps:$4 sm:$0xff]   ;;  %v14005_v7 = vld [vmem:[#allocation14 + $0x6c] ss:$24 sps:$4 sm:$0xff]  }
 0x88b   :  { %8999 = vmatpush1.bf16.msra.mxu1 %v13932_v1  ;;  %v14000_v47 = vld [vmem:[#allocation14 + $0x660] ss:$24 sps:$4 sm:$0xff]   ;;  %v14008_v19 = vld [vmem:[#allocation14 + $0x694] ss:$24 sps:$4 sm:$0xff]   ;;  %v14006_v9 = vld [vmem:[#allocation14 + $0x690] ss:$24 sps:$4 sm:$0xff]  }
 0x88c   :  { %9040 = vmatpush1.bf16.msra.mxu0 %v13933_v27  ;;  %9000 = vmatprep.subr.bf16.mxu1 %v13934_v20  ;;  %v14003_v10 = vld [vmem:[#allocation14 + $0x68] ss:$24 sps:$4 sm:$0xff]   ;;  %v14011_v21 = vld [vmem:[#allocation14 + $0x9c] ss:$24 sps:$4 sm:$0xff]   ;;  %v14009_v43 = vld [vmem:[#allocation14 + $0x98] ss:$24 sps:$4 sm:$0xff]  }
 0x88d   :  { %9041 = vmatprep.subr.bf16.mxu0 %v13936_v48  ;;  %v14014_v44 = vld [vmem:[#allocation14 + $0x6c4] ss:$24 sps:$4 sm:$0xff]   ;;  %v14012_v1 = vld [vmem:[#allocation14 + $0x6c0] ss:$24 sps:$4 sm:$0xff]   ;;  %v14020_v20 = vld [vmem:[#allocation14 + $0x6f4] ss:$24 sps:$4 sm:$0xff]  }
 0x88e   :  { %v14017_v36 = vld [vmem:[#allocation14 + $0xcc] ss:$24 sps:$4 sm:$0xff]   ;;  %v14015_v27 = vld [vmem:[#allocation14 + $0xc8] ss:$24 sps:$4 sm:$0xff]   ;;  %v14023_v48 = vld [vmem:[#allocation14 + $0xfc] ss:$24 sps:$4 sm:$0xff]  }
 0x88f   :  { %9001 = vmatpush1.bf16.msra.mxu1 %v13938_v2  ;;  %v14018_v2 = vld [vmem:[#allocation14 + $0x6f0] ss:$24 sps:$4 sm:$0xff]   ;;  %v14044_v56 = vld [vmem:[#allocation14 + $0x7b4] ss:$24 sps:$4 sm:$0xff]   ;;  %v14072_v49 = vld [vmem:[#allocation14 + $0x8a0] ss:$24 sps:$4 sm:$0xff]  }
 0x890   :  { %9042 = vmatpush1.bf16.msra.mxu0 %v13939_v42  ;;  %9002 = vmatprep.subr.bf16.mxu1 %v13940_v55  ;;  %v14021_v42 = vld [vmem:[#allocation14 + $0xf8] ss:$24 sps:$4 sm:$0xff]   ;;  %v14026_v55 = vld [vmem:[#allocation14 + $0x724] ss:$24 sps:$4 sm:$0xff]   ;;  %s14622_s5 = scalar_lea.vmem %s9999_s27, 128 }
 0x891   :  { %9043 = vmatprep.subr.bf16.mxu0 %v13942_v50  ;;  %v14029_v50 = vld [vmem:[#allocation14 + $0x12c] ss:$24 sps:$4 sm:$0xff]   ;;  %v14047_v18 = vld [vmem:[#allocation14 + $0x1bc] ss:$24 sps:$4 sm:$0xff]   ;;  %p14623_p4 = scmp.ne.s32.totalorder %s9999_s27, %s14622_s5  ;;  %p14628_p6 = scmp.lt.s32.totalorder %s14622_s5, %s14622_s5 }
 0x892   :  { %v14077_v5 = vld [vmem:[#allocation14 + $0x2ac] ss:$24 sps:$4 sm:$0xff]  }
 0x893   :  { %9003 = vmatpush1.bf16.msra.mxu1 %v13944_v46  ;;  %v7219_v46 = vld [vmem:[#allocation2 + $0x28] sm:$0xff]  ;;  %p14629_p7 = por %p14628_p6, %p14627_p5 }
 0x894   :  { %9044 = vmatpush1.bf16.msra.mxu0 %v13945_v33  ;;  %9004 = vmatprep.subr.bf16.mxu1 %v13946_v60  ;;  %v17221_v33 = vpack.c.bf16 %v7219_v46, %v7219_v46  ;;  %v14024_v60 = vld [vmem:[#allocation14 + $0x720] ss:$24 sps:$4 sm:$0xff]  }
 0x895   :  { %9045 = vmatprep.subr.bf16.mxu0 %v13948_v61  ;;  %v14027_v61 = vld [vmem:[#allocation14 + $0x128] ss:$24 sps:$4 sm:$0xff]   ;;  %p14630_p8 = pnand %p14629_p7, %p14623_p4 }
 0x896   :  { %v14108_v46 = vld [vmem:[#allocation14 + $0x3c8] ss:$24 sps:$4 sm:$0xff]  }
 0x897   :  { %9005 = vmatpush1.bf16.msra.mxu1 %v13950_v39  ;;  %v14032_v39 = vld [vmem:[#allocation14 + $0x754] ss:$24 sps:$4 sm:$0xff]  }
 0x898   :  { %9046 = vmatpush1.bf16.msra.mxu0 %v13951_v26  ;;  %9006 = vmatprep.subr.bf16.mxu1 %v13952_v30  ;;  %v14035_v26 = vld [vmem:[#allocation14 + $0x15c] ss:$24 sps:$4 sm:$0xff]   ;;  %v14030_v30 = vld [vmem:[#allocation14 + $0x750] ss:$24 sps:$4 sm:$0xff]  }
 0x899   :  { %9047 = vmatprep.subr.bf16.mxu0 %v13954_v51  ;;  %v14033_v51 = vld [vmem:[#allocation14 + $0x158] ss:$24 sps:$4 sm:$0xff]  }
 0x89b   :  { %9007 = vmatpush1.bf16.msra.mxu1 %v13956_v8  ;;  %v14038_v8 = vld [vmem:[#allocation14 + $0x784] ss:$24 sps:$4 sm:$0xff]  }
 0x89c   :  { %9048 = vmatpush1.bf16.msra.mxu0 %v13957_v37  ;;  %9008 = vmatprep.subr.bf16.mxu1 %v13958_v41  ;;  %v14041_v37 = vld [vmem:[#allocation14 + $0x18c] ss:$24 sps:$4 sm:$0xff]   ;;  %v14036_v41 = vld [vmem:[#allocation14 + $0x780] ss:$24 sps:$4 sm:$0xff]  }
 0x89d   :  { %9049 = vmatprep.subr.bf16.mxu0 %v13960_v13  ;;  %v14039_v13 = vld [vmem:[#allocation14 + $0x188] ss:$24 sps:$4 sm:$0xff]  }
 0x89f   :  { %9009 = vmatpush1.bf16.msra.mxu1 %v13962_v11  ;;  %v14042_v11 = vld [vmem:[#allocation14 + $0x7b0] ss:$24 sps:$4 sm:$0xff]  }
 0x8a0   :  { %9050 = vmatpush1.bf16.msra.mxu0 %v13963_v29  ;;  %9010 = vmatprep.subr.bf16.mxu1 %v13964_v15  ;;  %v14045_v29 = vld [vmem:[#allocation14 + $0x1b8] ss:$24 sps:$4 sm:$0xff]   ;;  %v14050_v15 = vld [vmem:[#allocation14 + $0x7e4] ss:$24 sps:$4 sm:$0xff]  }
 0x8a1   :  { %9051 = vmatprep.subr.bf16.mxu0 %v13966_v57  ;;  %v14053_v57 = vld [vmem:[#allocation14 + $0x1ec] ss:$24 sps:$4 sm:$0xff]  }
 0x8a3   :  { %9011 = vmatpush1.bf16.msra.mxu1 %v13968_v28  ;;  %v14048_v28 = vld [vmem:[#allocation14 + $0x7e0] ss:$24 sps:$4 sm:$0xff]  }
 0x8a4   :  { %9052 = vmatpush1.bf16.msra.mxu0 %v13969_v52  ;;  %9012 = vmatprep.subr.bf16.mxu1 %v13970_v16  ;;  %v14051_v52 = vld [vmem:[#allocation14 + $0x1e8] ss:$24 sps:$4 sm:$0xff]   ;;  %v14056_v16 = vld [vmem:[#allocation14 + $0x814] ss:$24 sps:$4 sm:$0xff]  }
 0x8a5   :  { %9053 = vmatprep.subr.bf16.mxu0 %v13972_v24  ;;  %v14059_v24 = vld [vmem:[#allocation14 + $0x21c] ss:$24 sps:$4 sm:$0xff]  }
 0x8a7   :  { %9013 = vmatpush1.bf16.msra.mxu1 %v13974_v32  ;;  %v14054_v32 = vld [vmem:[#allocation14 + $0x810] ss:$24 sps:$4 sm:$0xff]  }
 0x8a8   :  { %9054 = vmatpush1.bf16.msra.mxu0 %v13975_v63  ;;  %9014 = vmatprep.subr.bf16.mxu1 %v13976_v4  ;;  %v14057_v63 = vld [vmem:[#allocation14 + $0x218] ss:$24 sps:$4 sm:$0xff]   ;;  %v14062_v4 = vld [vmem:[#allocation14 + $0x844] ss:$24 sps:$4 sm:$0xff]  }
 0x8a9   :  { %9055 = vmatprep.subr.bf16.mxu0 %v13978_v62  ;;  %v14065_v62 = vld [vmem:[#allocation14 + $0x24c] ss:$24 sps:$4 sm:$0xff]  }
 0x8ab   :  { %9015 = vmatpush1.bf16.msra.mxu1 %v13980_v45  ;;  %v14060_v45 = vld [vmem:[#allocation14 + $0x840] ss:$24 sps:$4 sm:$0xff]  }
 0x8ac   :  { %9056 = vmatpush1.bf16.msra.mxu0 %v13981_v14  ;;  %9016 = vmatprep.subr.bf16.mxu1 %v13982_v40  ;;  %v14063_v14 = vld [vmem:[#allocation14 + $0x248] ss:$24 sps:$4 sm:$0xff]   ;;  %v14068_v40 = vld [vmem:[#allocation14 + $0x874] ss:$24 sps:$4 sm:$0xff]  }
 0x8ad   :  { %9057 = vmatprep.subr.bf16.mxu0 %v13984_v59  ;;  %v14071_v59 = vld [vmem:[#allocation14 + $0x27c] ss:$24 sps:$4 sm:$0xff]  }
 0x8af   :  { %9017 = vmatpush1.bf16.msra.mxu1 %v13986_v3  ;;  %v14066_v3 = vld [vmem:[#allocation14 + $0x870] ss:$24 sps:$4 sm:$0xff]  }
 0x8b0   :  { %9058 = vmatpush1.bf16.msra.mxu0 %v13987_v34  ;;  %9109 = vmatprep.subr.bf16.mxu1 %v13993_v23  ;;  %v14069_v34 = vld [vmem:[#allocation14 + $0x278] ss:$24 sps:$4 sm:$0xff]   ;;  %v14075_v23 = vld [vmem:[#allocation14 + $0x2a8] ss:$24 sps:$4 sm:$0xff]  }
 0x8b1   :  { %9068 = vmatprep.subr.bf16.mxu0 %v13990_v35  ;;  %v14074_v35 = vld [vmem:[#allocation14 + $0x8a4] ss:$24 sps:$4 sm:$0xff]  }
 0x8b2   :  { %9019 = vmatmul.mubr.bf16.vlgmr.msra.gmra.mrb[0].mxu1 %v17214_v0 }
 0x8b3   :  { %9060 = vmatmul.mubr.bf16.vlgmr.msra.gmra.mrb[0].mxu0 %v17216_v6  ;;  %9110 = vmatpush1.bf16.msra.mxu1 %v13991_v54  ;;  %v14083_v54 = vld [vmem:[#allocation14 + $0x2dc] ss:$24 sps:$4 sm:$0xff]  }
 0x8b4   :  { %9069 = vmatpush1.bf16.msra.mxu0 %v13988_v58  ;;  %9111 = vmatprep.subr.bf16.mxu1 %v13999_v31  ;;  %v14080_v58 = vld [vmem:[#allocation14 + $0x8d4] ss:$24 sps:$4 sm:$0xff]   ;;  %v14081_v31 = vld [vmem:[#allocation14 + $0x2d8] ss:$24 sps:$4 sm:$0xff]  }
 0x8b5   :  { %9070 = vmatprep.subr.bf16.mxu0 %v13996_v17  ;;  %9141 = vmatprep.mubr.bf16.mxu1 %v17208_v38  ;;  %v14078_v17 = vld [vmem:[#allocation14 + $0x8d0] ss:$24 sps:$4 sm:$0xff]  }
 0x8b6   :  { %9100 = vmatprep.mubr.bf16.mxu0 %v17221_v33 }
 0x8b7   :  { %9112 = vmatpush1.bf16.msra.mxu1 %v13997_v22  ;;  %v14086_v22 = vld [vmem:[#allocation14 + $0x30c] ss:$24 sps:$4 sm:$0xff]  }
 0x8b8   :  { %9071 = vmatpush1.bf16.msra.mxu0 %v13994_v53  ;;  %9113 = vmatprep.subr.bf16.mxu1 %v14005_v7  ;;  %v7218_v53 = vld [vmem:[#allocation2 + $0x20] sm:$0xff] }
 0x8b9   :  { %9072 = vmatprep.subr.bf16.mxu0 %v14002_v25  ;;  %v14089_v25 = vld [vmem:[#allocation14 + $0x14] ss:$24 sps:$4 sm:$0xff]   ;;  %v17224_v7 = vpack.c.bf16 %v7218_v53, %v7218_v53  ;;  %v14168_v53 = vld [vmem:[#allocation14 + $0x5a8] ss:$24 sps:$4 sm:$0xff]  }
 0x8bb   :  { %9114 = vmatpush1.bf16.msra.mxu1 %v14003_v10  ;;  %v14087_v10 = vld [vmem:[#allocation14 + $0x10] ss:$24 sps:$4 sm:$0xff]  }
 0x8bc   :  { %9073 = vmatpush1.bf16.msra.mxu0 %v14000_v47  ;;  %9115 = vmatprep.subr.bf16.mxu1 %v14011_v21  ;;  %v14084_v47 = vld [vmem:[#allocation14 + $0x308] ss:$24 sps:$4 sm:$0xff]   ;;  %v14095_v21 = vld [vmem:[#allocation14 + $0x44] ss:$24 sps:$4 sm:$0xff]  }
 0x8bd   :  { %9074 = vmatprep.subr.bf16.mxu0 %v14008_v19  ;;  %v14092_v19 = vld [vmem:[#allocation14 + $0x33c] ss:$24 sps:$4 sm:$0xff]  }
 0x8bf   :  { %9116 = vmatpush1.bf16.msra.mxu1 %v14009_v43  ;;  %v14093_v43 = vld [vmem:[#allocation14 + $0x40] ss:$24 sps:$4 sm:$0xff]  }
 0x8c0   :  { %9075 = vmatpush1.bf16.msra.mxu0 %v14006_v9  ;;  %9117 = vmatprep.subr.bf16.mxu1 %v14017_v36  ;;  %v14090_v9 = vld [vmem:[#allocation14 + $0x338] ss:$24 sps:$4 sm:$0xff]   ;;  %v14101_v36 = vld [vmem:[#allocation14 + $0x74] ss:$24 sps:$4 sm:$0xff]  }
 0x8c1   :  { %9076 = vmatprep.subr.bf16.mxu0 %v14014_v44  ;;  %v14098_v44 = vld [vmem:[#allocation14 + $0x36c] ss:$24 sps:$4 sm:$0xff]  }
 0x8c3   :  { %9118 = vmatpush1.bf16.msra.mxu1 %v14015_v27  ;;  %v14099_v27 = vld [vmem:[#allocation14 + $0x70] ss:$24 sps:$4 sm:$0xff]  }
 0x8c4   :  { %9077 = vmatpush1.bf16.msra.mxu0 %v14012_v1  ;;  %9119 = vmatprep.subr.bf16.mxu1 %v14023_v48  ;;  %v14096_v1 = vld [vmem:[#allocation14 + $0x368] ss:$24 sps:$4 sm:$0xff]   ;;  %v14107_v48 = vld [vmem:[#allocation14 + $0xa4] ss:$24 sps:$4 sm:$0xff]  }
 0x8c5   :  { %9078 = vmatprep.subr.bf16.mxu0 %v14020_v20  ;;  %v14104_v20 = vld [vmem:[#allocation14 + $0x39c] ss:$24 sps:$4 sm:$0xff]  }
 0x8c7   :  { %9120 = vmatpush1.bf16.msra.mxu1 %v14021_v42  ;;  %v14105_v42 = vld [vmem:[#allocation14 + $0xa0] ss:$24 sps:$4 sm:$0xff]  }
 0x8c8   :  { %9079 = vmatpush1.bf16.msra.mxu0 %v14018_v2  ;;  %9121 = vmatprep.subr.bf16.mxu1 %v14029_v50  ;;  %v14102_v2 = vld [vmem:[#allocation14 + $0x398] ss:$24 sps:$4 sm:$0xff]   ;;  %v14113_v50 = vld [vmem:[#allocation14 + $0xd4] ss:$24 sps:$4 sm:$0xff]  }
 0x8c9   :  { %9080 = vmatprep.subr.bf16.mxu0 %v14026_v55  ;;  %v14110_v55 = vld [vmem:[#allocation14 + $0x3cc] ss:$24 sps:$4 sm:$0xff]  }
 0x8cb   :  { %9122 = vmatpush1.bf16.msra.mxu1 %v14027_v61  ;;  %v14119_v61 = vld [vmem:[#allocation14 + $0x104] ss:$24 sps:$4 sm:$0xff]  }
 0x8cc   :  { %9081 = vmatpush1.bf16.msra.mxu0 %v14024_v60  ;;  %9123 = vmatprep.subr.bf16.mxu1 %v14035_v26  ;;  %v14116_v60 = vld [vmem:[#allocation14 + $0x3fc] ss:$24 sps:$4 sm:$0xff]   ;;  %v14117_v26 = vld [vmem:[#allocation14 + $0x100] ss:$24 sps:$4 sm:$0xff]  }
 0x8cd   :  { %9082 = vmatprep.subr.bf16.mxu0 %v14032_v39  ;;  %v14114_v39 = vld [vmem:[#allocation14 + $0x3f8] ss:$24 sps:$4 sm:$0xff]  }
 0x8cf   :  { %9124 = vmatpush1.bf16.msra.mxu1 %v14033_v51  ;;  %v14125_v51 = vld [vmem:[#allocation14 + $0x134] ss:$24 sps:$4 sm:$0xff]  }
 0x8d0   :  { %9083 = vmatpush1.bf16.msra.mxu0 %v14030_v30  ;;  %9125 = vmatprep.subr.bf16.mxu1 %v14041_v37  ;;  %v14122_v30 = vld [vmem:[#allocation14 + $0x42c] ss:$24 sps:$4 sm:$0xff]   ;;  %v14123_v37 = vld [vmem:[#allocation14 + $0x130] ss:$24 sps:$4 sm:$0xff]  }
 0x8d1   :  { %9084 = vmatprep.subr.bf16.mxu0 %v14038_v8  ;;  %v14120_v8 = vld [vmem:[#allocation14 + $0x428] ss:$24 sps:$4 sm:$0xff]  }
 0x8d3   :  { %9126 = vmatpush1.bf16.msra.mxu1 %v14039_v13  ;;  %v14131_v13 = vld [vmem:[#allocation14 + $0x164] ss:$24 sps:$4 sm:$0xff]  }
 0x8d4   :  { %9085 = vmatpush1.bf16.msra.mxu0 %v14036_v41  ;;  %9127 = vmatprep.subr.bf16.mxu1 %v14047_v18  ;;  %v14128_v41 = vld [vmem:[#allocation14 + $0x45c] ss:$24 sps:$4 sm:$0xff]   ;;  %v14129_v18 = vld [vmem:[#allocation14 + $0x160] ss:$24 sps:$4 sm:$0xff]  }
 0x8d5   :  { %9086 = vmatprep.subr.bf16.mxu0 %v14044_v56  ;;  %v14126_v56 = vld [vmem:[#allocation14 + $0x458] ss:$24 sps:$4 sm:$0xff]  }
 0x8d7   :  { %9128 = vmatpush1.bf16.msra.mxu1 %v14045_v29  ;;  %v14137_v29 = vld [vmem:[#allocation14 + $0x194] ss:$24 sps:$4 sm:$0xff]  }
 0x8d8   :  { %9087 = vmatpush1.bf16.msra.mxu0 %v14042_v11  ;;  %9129 = vmatprep.subr.bf16.mxu1 %v14053_v57  ;;  %v14134_v11 = vld [vmem:[#allocation14 + $0x48c] ss:$24 sps:$4 sm:$0xff]   ;;  %v14135_v57 = vld [vmem:[#allocation14 + $0x190] ss:$24 sps:$4 sm:$0xff]  }
 0x8d9   :  { %9088 = vmatprep.subr.bf16.mxu0 %v14050_v15  ;;  %v14132_v15 = vld [vmem:[#allocation14 + $0x488] ss:$24 sps:$4 sm:$0xff]  }
 0x8db   :  { %9130 = vmatpush1.bf16.msra.mxu1 %v14051_v52  ;;  %v14143_v52 = vld [vmem:[#allocation14 + $0x1c4] ss:$24 sps:$4 sm:$0xff]  }
 0x8dc   :  { %9089 = vmatpush1.bf16.msra.mxu0 %v14048_v28  ;;  %9131 = vmatprep.subr.bf16.mxu1 %v14059_v24  ;;  %v14140_v28 = vld [vmem:[#allocation14 + $0x4bc] ss:$24 sps:$4 sm:$0xff]   ;;  %v14141_v24 = vld [vmem:[#allocation14 + $0x1c0] ss:$24 sps:$4 sm:$0xff]  }
 0x8dd   :  { %9090 = vmatprep.subr.bf16.mxu0 %v14056_v16  ;;  %v14138_v16 = vld [vmem:[#allocation14 + $0x4b8] ss:$24 sps:$4 sm:$0xff]  }
 0x8df   :  { %9132 = vmatpush1.bf16.msra.mxu1 %v14057_v63  ;;  %v14149_v63 = vld [vmem:[#allocation14 + $0x1f4] ss:$24 sps:$4 sm:$0xff]  }
 0x8e0   :  { %9091 = vmatpush1.bf16.msra.mxu0 %v14054_v32  ;;  %9133 = vmatprep.subr.bf16.mxu1 %v14065_v62  ;;  %v14146_v32 = vld [vmem:[#allocation14 + $0x4ec] ss:$24 sps:$4 sm:$0xff]   ;;  %v14147_v62 = vld [vmem:[#allocation14 + $0x1f0] ss:$24 sps:$4 sm:$0xff]  }
 0x8e1   :  { %9092 = vmatprep.subr.bf16.mxu0 %v14062_v4  ;;  %v14144_v4 = vld [vmem:[#allocation14 + $0x4e8] ss:$24 sps:$4 sm:$0xff]  }
 0x8e3   :  { %9134 = vmatpush1.bf16.msra.mxu1 %v14063_v14  ;;  %v14155_v14 = vld [vmem:[#allocation14 + $0x224] ss:$24 sps:$4 sm:$0xff]  }
 0x8e4   :  { %9093 = vmatpush1.bf16.msra.mxu0 %v14060_v45  ;;  %9135 = vmatprep.subr.bf16.mxu1 %v14071_v59  ;;  %v14152_v45 = vld [vmem:[#allocation14 + $0x51c] ss:$24 sps:$4 sm:$0xff]   ;;  %v14153_v59 = vld [vmem:[#allocation14 + $0x220] ss:$24 sps:$4 sm:$0xff]  }
 0x8e5   :  { %9094 = vmatprep.subr.bf16.mxu0 %v14068_v40  ;;  %v14150_v40 = vld [vmem:[#allocation14 + $0x518] ss:$24 sps:$4 sm:$0xff]  }
 0x8e7   :  { %9136 = vmatpush1.bf16.msra.mxu1 %v14069_v34  ;;  %v14161_v34 = vld [vmem:[#allocation14 + $0x254] ss:$24 sps:$4 sm:$0xff]  }
 0x8e8   :  { %9095 = vmatpush1.bf16.msra.mxu0 %v14066_v3  ;;  %9137 = vmatprep.subr.bf16.mxu1 %v14077_v5  ;;  %v14158_v3 = vld [vmem:[#allocation14 + $0x54c] ss:$24 sps:$4 sm:$0xff]   ;;  %v14159_v5 = vld [vmem:[#allocation14 + $0x250] ss:$24 sps:$4 sm:$0xff]  }
 0x8e9   :  { %9096 = vmatprep.subr.bf16.mxu0 %v14074_v35  ;;  %v14156_v35 = vld [vmem:[#allocation14 + $0x548] ss:$24 sps:$4 sm:$0xff]  }
 0x8eb   :  { %9138 = vmatpush1.bf16.msra.mxu1 %v14075_v23  ;;  %v14167_v23 = vld [vmem:[#allocation14 + $0x284] ss:$24 sps:$4 sm:$0xff]  }
 0x8ec   :  { %9097 = vmatpush1.bf16.msra.mxu0 %v14072_v49  ;;  %9139 = vmatprep.subr.bf16.mxu1 %v14083_v54  ;;  %v14164_v49 = vld [vmem:[#allocation14 + $0x57c] ss:$24 sps:$4 sm:$0xff]   ;;  %v14165_v54 = vld [vmem:[#allocation14 + $0x280] ss:$24 sps:$4 sm:$0xff]  }
 0x8ed   :  { %9098 = vmatprep.subr.bf16.mxu0 %v14080_v58  ;;  %v14162_v58 = vld [vmem:[#allocation14 + $0x578] ss:$24 sps:$4 sm:$0xff]  }
 0x8ef   :  { %9140 = vmatpush1.bf16.msra.mxu1 %v14081_v31  ;;  %v14173_v31 = vld [vmem:[#allocation14 + $0x2b4] ss:$24 sps:$4 sm:$0xff]  }
 0x8f0   :  { %9099 = vmatpush1.bf16.msra.mxu0 %v14078_v17  ;;  %9150 = vmatprep.subr.bf16.mxu1 %v14086_v22  ;;  %v14170_v17 = vld [vmem:[#allocation14 + $0x5ac] ss:$24 sps:$4 sm:$0xff]   ;;  %v14171_v22 = vld [vmem:[#allocation14 + $0x2b0] ss:$24 sps:$4 sm:$0xff]  }
 0x8f1   :  { %9232 = vmatprep.subr.bf16.mxu0 %v14089_v25  ;;  %v14176_v25 = vld [vmem:[#allocation14 + $0x5dc] ss:$24 sps:$4 sm:$0xff]  }
 0x8f2   :  { %9142 = vmatmul.mubr.bf16.vlgmr.msra.gmra.mrb[4].mxu1 %v17214_v0 }
 0x8f3   :  { %9101 = vmatmul.mubr.bf16.vlgmr.msra.gmra.mrb[0].mxu0 %v17224_v7  ;;  %9151 = vmatpush1.bf16.msra.mxu1 %v14084_v47  ;;  %v14179_v47 = vld [vmem:[#allocation14 + $0x2e4] ss:$24 sps:$4 sm:$0xff]  }
 0x8f4   :  { %9233 = vmatpush1.bf16.msra.mxu0 %v14087_v10  ;;  %9152 = vmatprep.subr.bf16.mxu1 %v14092_v19  ;;  %v14174_v10 = vld [vmem:[#allocation14 + $0x5d8] ss:$24 sps:$4 sm:$0xff]  }
 0x8f5   :  { %9234 = vmatprep.subr.bf16.mxu0 %v14095_v21  ;;  %9182 = vmatprep.mubr.bf16.mxu1 %v17210_v12  ;;  %v14177_v19 = vld [vmem:[#allocation14 + $0x2e0] ss:$24 sps:$4 sm:$0xff]   ;;  %v14182_v21 = vld [vmem:[#allocation14 + $0x60c] ss:$24 sps:$4 sm:$0xff]  }
 0x8f6   :  { %9264 = vmatprep.mubr.bf16.mxu0 %v17208_v38  ;;  %v14111_v38 = vld [vmem:[#allocation14 + $0xd0] ss:$24 sps:$4 sm:$0xff]  }
 0x8f7   :  { %9153 = vmatpush1.bf16.msra.mxu1 %v14090_v9  ;;  %v14185_v9 = vld [vmem:[#allocation14 + $0x314] ss:$24 sps:$4 sm:$0xff]  }
 0x8f8   :  { %9235 = vmatpush1.bf16.msra.mxu0 %v14093_v43  ;;  %9154 = vmatprep.subr.bf16.mxu1 %v14098_v44  ;;  %v14180_v43 = vld [vmem:[#allocation14 + $0x608] ss:$24 sps:$4 sm:$0xff]  }
 0x8f9   :  { %9236 = vmatprep.subr.bf16.mxu0 %v14101_v36  ;;  %v14183_v44 = vld [vmem:[#allocation14 + $0x310] ss:$24 sps:$4 sm:$0xff]   ;;  %v14188_v36 = vld [vmem:[#allocation14 + $0x63c] ss:$24 sps:$4 sm:$0xff]  }
 0x8fb   :  { %9155 = vmatpush1.bf16.msra.mxu1 %v14096_v1  ;;  %v14191_v1 = vld [vmem:[#allocation14 + $0x344] ss:$24 sps:$4 sm:$0xff]  }
 0x8fc   :  { %9237 = vmatpush1.bf16.msra.mxu0 %v14099_v27  ;;  %9156 = vmatprep.subr.bf16.mxu1 %v14104_v20  ;;  %v14186_v27 = vld [vmem:[#allocation14 + $0x638] ss:$24 sps:$4 sm:$0xff]  }
 0x8fd   :  { %9238 = vmatprep.subr.bf16.mxu0 %v14107_v48  ;;  %v14189_v20 = vld [vmem:[#allocation14 + $0x340] ss:$24 sps:$4 sm:$0xff]   ;;  %v14194_v48 = vld [vmem:[#allocation14 + $0x66c] ss:$24 sps:$4 sm:$0xff]  }
 0x8ff   :  { %9157 = vmatpush1.bf16.msra.mxu1 %v14102_v2  ;;  %v14197_v2 = vld [vmem:[#allocation14 + $0x374] ss:$24 sps:$4 sm:$0xff]  }
 0x900   :  { %9239 = vmatpush1.bf16.msra.mxu0 %v14105_v42  ;;  %9158 = vmatprep.subr.bf16.mxu1 %v14110_v55  ;;  %v14192_v42 = vld [vmem:[#allocation14 + $0x668] ss:$24 sps:$4 sm:$0xff]  }
 0x901   :  { %9240 = vmatprep.subr.bf16.mxu0 %v14113_v50  ;;  %v14195_v55 = vld [vmem:[#allocation14 + $0x370] ss:$24 sps:$4 sm:$0xff]   ;;  %v14200_v50 = vld [vmem:[#allocation14 + $0x69c] ss:$24 sps:$4 sm:$0xff]  }
 0x903   :  { %9159 = vmatpush1.bf16.msra.mxu1 %v14108_v46  ;;  %v14203_v46 = vld [vmem:[#allocation14 + $0x3a4] ss:$24 sps:$4 sm:$0xff]  }
 0x904   :  { %9241 = vmatpush1.bf16.msra.mxu0 %v14111_v38  ;;  %9160 = vmatprep.subr.bf16.mxu1 %v14116_v60  ;;  %v14201_v38 = vld [vmem:[#allocation14 + $0x3a0] ss:$24 sps:$4 sm:$0xff]   ;;  %v14206_v60 = vld [vmem:[#allocation14 + $0x6cc] ss:$24 sps:$4 sm:$0xff]  }
 0x905   :  { %9242 = vmatprep.subr.bf16.mxu0 %v14119_v61  ;;  %v14209_v61 = vld [vmem:[#allocation14 + $0x3d4] ss:$24 sps:$4 sm:$0xff]  }
 0x907   :  { %9161 = vmatpush1.bf16.msra.mxu1 %v14114_v39  ;;  %v14204_v39 = vld [vmem:[#allocation14 + $0x6c8] ss:$24 sps:$4 sm:$0xff]  }
 0x908   :  { %9243 = vmatpush1.bf16.msra.mxu0 %v14117_v26  ;;  %9162 = vmatprep.subr.bf16.mxu1 %v14122_v30  ;;  %v14207_v26 = vld [vmem:[#allocation14 + $0x3d0] ss:$24 sps:$4 sm:$0xff]   ;;  %v14212_v30 = vld [vmem:[#allocation14 + $0x6fc] ss:$24 sps:$4 sm:$0xff]  }
 0x909   :  { %9244 = vmatprep.subr.bf16.mxu0 %v14125_v51  ;;  %v14215_v51 = vld [vmem:[#allocation14 + $0x404] ss:$24 sps:$4 sm:$0xff]  }
 0x90b   :  { %9163 = vmatpush1.bf16.msra.mxu1 %v14120_v8  ;;  %v14213_v8 = vld [vmem:[#allocation14 + $0x400] ss:$24 sps:$4 sm:$0xff]  }
 0x90c   :  { %9245 = vmatpush1.bf16.msra.mxu0 %v14123_v37  ;;  %9164 = vmatprep.subr.bf16.mxu1 %v14128_v41  ;;  %v14218_v37 = vld [vmem:[#allocation14 + $0x72c] ss:$24 sps:$4 sm:$0xff]  }
 0x90d   :  { %9246 = vmatprep.subr.bf16.mxu0 %v14131_v13  ;;  %v14221_v41 = vld [vmem:[#allocation14 + $0x434] ss:$24 sps:$4 sm:$0xff]   ;;  %v14216_v13 = vld [vmem:[#allocation14 + $0x728] ss:$24 sps:$4 sm:$0xff]  }
 0x90f   :  { %9165 = vmatpush1.bf16.msra.mxu1 %v14126_v56  ;;  %v14219_v56 = vld [vmem:[#allocation14 + $0x430] ss:$24 sps:$4 sm:$0xff]  }
 0x910   :  { %9247 = vmatpush1.bf16.msra.mxu0 %v14129_v18  ;;  %9166 = vmatprep.subr.bf16.mxu1 %v14134_v11  ;;  %v14224_v18 = vld [vmem:[#allocation14 + $0x75c] ss:$24 sps:$4 sm:$0xff]  }
 0x911   :  { %9248 = vmatprep.subr.bf16.mxu0 %v14137_v29  ;;  %v14227_v11 = vld [vmem:[#allocation14 + $0x464] ss:$24 sps:$4 sm:$0xff]   ;;  %v14222_v29 = vld [vmem:[#allocation14 + $0x758] ss:$24 sps:$4 sm:$0xff]  }
 0x913   :  { %9167 = vmatpush1.bf16.msra.mxu1 %v14132_v15  ;;  %v14225_v15 = vld [vmem:[#allocation14 + $0x460] ss:$24 sps:$4 sm:$0xff]  }
 0x914   :  { %9249 = vmatpush1.bf16.msra.mxu0 %v14135_v57  ;;  %9168 = vmatprep.subr.bf16.mxu1 %v14140_v28  ;;  %v14230_v57 = vld [vmem:[#allocation14 + $0x78c] ss:$24 sps:$4 sm:$0xff]  }
 0x915   :  { %9250 = vmatprep.subr.bf16.mxu0 %v14143_v52  ;;  %v14233_v28 = vld [vmem:[#allocation14 + $0x494] ss:$24 sps:$4 sm:$0xff]   ;;  %v14228_v52 = vld [vmem:[#allocation14 + $0x788] ss:$24 sps:$4 sm:$0xff]  }
 0x917   :  { %9169 = vmatpush1.bf16.msra.mxu1 %v14138_v16  ;;  %v14231_v16 = vld [vmem:[#allocation14 + $0x490] ss:$24 sps:$4 sm:$0xff]  }
 0x918   :  { %9251 = vmatpush1.bf16.msra.mxu0 %v14141_v24  ;;  %9170 = vmatprep.subr.bf16.mxu1 %v14146_v32  ;;  %v14236_v24 = vld [vmem:[#allocation14 + $0x7bc] ss:$24 sps:$4 sm:$0xff]  }
 0x919   :  { %9252 = vmatprep.subr.bf16.mxu0 %v14149_v63  ;;  %v14239_v32 = vld [vmem:[#allocation14 + $0x4c4] ss:$24 sps:$4 sm:$0xff]   ;;  %v14234_v63 = vld [vmem:[#allocation14 + $0x7b8] ss:$24 sps:$4 sm:$0xff]  }
 0x91b   :  { %9171 = vmatpush1.bf16.msra.mxu1 %v14144_v4  ;;  %v14237_v4 = vld [vmem:[#allocation14 + $0x4c0] ss:$24 sps:$4 sm:$0xff]  }
 0x91c   :  { %9253 = vmatpush1.bf16.msra.mxu0 %v14147_v62  ;;  %9172 = vmatprep.subr.bf16.mxu1 %v14152_v45  ;;  %v14242_v62 = vld [vmem:[#allocation14 + $0x7ec] ss:$24 sps:$4 sm:$0xff]  }
 0x91d   :  { %9254 = vmatprep.subr.bf16.mxu0 %v14155_v14  ;;  %v14245_v45 = vld [vmem:[#allocation14 + $0x4f4] ss:$24 sps:$4 sm:$0xff]   ;;  %v14240_v14 = vld [vmem:[#allocation14 + $0x7e8] ss:$24 sps:$4 sm:$0xff]  }
 0x91f   :  { %9173 = vmatpush1.bf16.msra.mxu1 %v14150_v40  ;;  %v14243_v40 = vld [vmem:[#allocation14 + $0x4f0] ss:$24 sps:$4 sm:$0xff]  }
 0x920   :  { %9255 = vmatpush1.bf16.msra.mxu0 %v14153_v59  ;;  %9174 = vmatprep.subr.bf16.mxu1 %v14158_v3  ;;  %v14248_v59 = vld [vmem:[#allocation14 + $0x81c] ss:$24 sps:$4 sm:$0xff]  }
 0x921   :  { %9256 = vmatprep.subr.bf16.mxu0 %v14161_v34  ;;  %v14251_v3 = vld [vmem:[#allocation14 + $0x524] ss:$24 sps:$4 sm:$0xff]   ;;  %v14246_v34 = vld [vmem:[#allocation14 + $0x818] ss:$24 sps:$4 sm:$0xff]  }
 0x923   :  { %9175 = vmatpush1.bf16.msra.mxu1 %v14156_v35  ;;  %v14249_v35 = vld [vmem:[#allocation14 + $0x520] ss:$24 sps:$4 sm:$0xff]  }
 0x924   :  { %9257 = vmatpush1.bf16.msra.mxu0 %v14159_v5  ;;  %9176 = vmatprep.subr.bf16.mxu1 %v14164_v49  ;;  %v14254_v5 = vld [vmem:[#allocation14 + $0x84c] ss:$24 sps:$4 sm:$0xff]  }
 0x925   :  { %9258 = vmatprep.subr.bf16.mxu0 %v14167_v23  ;;  %v14257_v49 = vld [vmem:[#allocation14 + $0x554] ss:$24 sps:$4 sm:$0xff]   ;;  %v14252_v23 = vld [vmem:[#allocation14 + $0x848] ss:$24 sps:$4 sm:$0xff]  }
 0x927   :  { %9177 = vmatpush1.bf16.msra.mxu1 %v14162_v58  ;;  %v14255_v58 = vld [vmem:[#allocation14 + $0x550] ss:$24 sps:$4 sm:$0xff]  }
 0x928   :  { %9259 = vmatpush1.bf16.msra.mxu0 %v14165_v54  ;;  %9178 = vmatprep.subr.bf16.mxu1 %v14170_v17  ;;  %v14260_v54 = vld [vmem:[#allocation14 + $0x87c] ss:$24 sps:$4 sm:$0xff]  }
 0x929   :  { %9260 = vmatprep.subr.bf16.mxu0 %v14173_v31  ;;  %v14263_v17 = vld [vmem:[#allocation14 + $0x584] ss:$24 sps:$4 sm:$0xff]   ;;  %v14258_v31 = vld [vmem:[#allocation14 + $0x878] ss:$24 sps:$4 sm:$0xff]  }
 0x92b   :  { %9179 = vmatpush1.bf16.msra.mxu1 %v14168_v53  ;;  %v14261_v53 = vld [vmem:[#allocation14 + $0x580] ss:$24 sps:$4 sm:$0xff]  }
 0x92c   :  { %9261 = vmatpush1.bf16.msra.mxu0 %v14171_v22  ;;  %9180 = vmatprep.subr.bf16.mxu1 %v14176_v25  ;;  %v14266_v22 = vld [vmem:[#allocation14 + $0x8ac] ss:$24 sps:$4 sm:$0xff]  }
 0x92d   :  { %9262 = vmatprep.subr.bf16.mxu0 %v14179_v47  ;;  %v14269_v25 = vld [vmem:[#allocation14 + $0x5b4] ss:$24 sps:$4 sm:$0xff]   ;;  %v14264_v47 = vld [vmem:[#allocation14 + $0x8a8] ss:$24 sps:$4 sm:$0xff]  }
 0x92f   :  { %9181 = vmatpush1.bf16.msra.mxu1 %v14174_v10  ;;  %v14267_v10 = vld [vmem:[#allocation14 + $0x5b0] ss:$24 sps:$4 sm:$0xff]  }
 0x930   :  { %9263 = vmatpush1.bf16.msra.mxu0 %v14177_v19  ;;  %9191 = vmatprep.subr.bf16.mxu1 %v14182_v21  ;;  %v14272_v19 = vld [vmem:[#allocation14 + $0x8dc] ss:$24 sps:$4 sm:$0xff]  }
 0x931   :  { %9273 = vmatprep.subr.bf16.mxu0 %v14185_v9  ;;  %v14275_v21 = vld [vmem:[#allocation14 + $0x5e4] ss:$24 sps:$4 sm:$0xff]   ;;  %v14270_v9 = vld [vmem:[#allocation14 + $0x8d8] ss:$24 sps:$4 sm:$0xff]  }
 0x932   :  { %9183 = vmatmul.mubr.bf16.vlgmr.msra.gmra.mrb[4].mxu1 %v17216_v6 }
 0x933   :  { %9265 = vmatmul.mubr.bf16.vlgmr.msra.gmra.mrb[4].mxu0 %v17214_v0  ;;  %9192 = vmatpush1.bf16.msra.mxu1 %v14180_v43  ;;  %v14198_v0 = vld [vmem:[#allocation14 + $0x698] ss:$24 sps:$4 sm:$0xff]  }
 0x934   :  { %9274 = vmatpush1.bf16.msra.mxu0 %v14183_v44  ;;  %9193 = vmatprep.subr.bf16.mxu1 %v14188_v36  ;;  %v14273_v43 = vld [vmem:[#allocation14 + $0x5e0] ss:$24 sps:$4 sm:$0xff]   ;;  %v14278_v44 = vld [vmem:[#allocation14 + $0x614] ss:$24 sps:$4 sm:$0xff]   ;;  %v14276_v36 = vld [vmem:[#allocation14 + $0x610] ss:$24 sps:$4 sm:$0xff]  }
 0x935   :  { %9275 = vmatprep.subr.bf16.mxu0 %v14191_v1  ;;  %9223 = vmatprep.mubr.bf16.mxu1 %v17221_v33  ;;  %v14281_v1 = vld [vmem:[#allocation14 + $0x644] ss:$24 sps:$4 sm:$0xff]  }
 0x936   :  { %9305 = vmatprep.mubr.bf16.mxu0 %v17210_v12  ;;  %v14210_v12 = vld [vmem:[#allocation14 + $0x6f8] ss:$24 sps:$4 sm:$0xff]  }
 0x937   :  { %9194 = vmatpush1.bf16.msra.mxu1 %v14186_v27  ;;  %v14279_v27 = vld [vmem:[#allocation14 + $0x640] ss:$24 sps:$4 sm:$0xff]  }
 0x938   :  { %9276 = vmatpush1.bf16.msra.mxu0 %v14189_v20  ;;  %9195 = vmatprep.subr.bf16.mxu1 %v14194_v48  ;;  %v14284_v20 = vld [vmem:[#allocation14 + $0x674] ss:$24 sps:$4 sm:$0xff]   ;;  %v14282_v48 = vld [vmem:[#allocation14 + $0x670] ss:$24 sps:$4 sm:$0xff]  }
 0x939   :  { %9277 = vmatprep.subr.bf16.mxu0 %v14197_v2  ;;  %v14287_v2 = vld [vmem:[#allocation14 + $0x6a4] ss:$24 sps:$4 sm:$0xff]  }
 0x93b   :  { %9196 = vmatpush1.bf16.msra.mxu1 %v14192_v42  ;;  %v14285_v42 = vld [vmem:[#allocation14 + $0x6a0] ss:$24 sps:$4 sm:$0xff]  }
 0x93c   :  { %9278 = vmatpush1.bf16.msra.mxu0 %v14195_v55  ;;  %9197 = vmatprep.subr.bf16.mxu1 %v14200_v50  ;;  %v14290_v55 = vld [vmem:[#allocation14 + $0x6d4] ss:$24 sps:$4 sm:$0xff]   ;;  %v14288_v50 = vld [vmem:[#allocation14 + $0x6d0] ss:$24 sps:$4 sm:$0xff]  }
 0x93d   :  { %9279 = vmatprep.subr.bf16.mxu0 %v14203_v46  ;;  %v14293_v46 = vld [vmem:[#allocation14 + $0x704] ss:$24 sps:$4 sm:$0xff]  }
 0x93f   :  { %9198 = vmatpush1.bf16.msra.mxu1 %v14198_v0  ;;  %v14296_v0 = vld [vmem:[#allocation14 + $0x734] ss:$24 sps:$4 sm:$0xff]  }
 0x940   :  { %9280 = vmatpush1.bf16.msra.mxu0 %v14201_v38  ;;  %9199 = vmatprep.subr.bf16.mxu1 %v14206_v60  ;;  %v14294_v60 = vld [vmem:[#allocation14 + $0x730] ss:$24 sps:$4 sm:$0xff]  }
 0x941   :  { %9281 = vmatprep.subr.bf16.mxu0 %v14209_v61 }
 0x943   :  { %9200 = vmatpush1.bf16.msra.mxu1 %v14204_v39  ;;  %v14299_v39 = vld [vmem:[#allocation14 + $0x764] ss:$24 sps:$4 sm:$0xff]  }
 0x944   :  { %9282 = vmatpush1.bf16.msra.mxu0 %v14207_v26  ;;  %9201 = vmatprep.subr.bf16.mxu1 %v14212_v30  ;;  %v14297_v30 = vld [vmem:[#allocation14 + $0x760] ss:$24 sps:$4 sm:$0xff]  }
 0x945   :  { %9283 = vmatprep.subr.bf16.mxu0 %v14215_v51  ;;  %v14302_v51 = vld [vmem:[#allocation14 + $0x794] ss:$24 sps:$4 sm:$0xff]  }
 0x947   :  { %9202 = vmatpush1.bf16.msra.mxu1 %v14210_v12  ;;  %v14300_v12 = vld [vmem:[#allocation14 + $0x790] ss:$24 sps:$4 sm:$0xff]  }
 0x948   :  { %9284 = vmatpush1.bf16.msra.mxu0 %v14213_v8  ;;  %9203 = vmatprep.subr.bf16.mxu1 %v14218_v37  ;;  %v14305_v8 = vld [vmem:[#allocation14 + $0x7c4] ss:$24 sps:$4 sm:$0xff]   ;;  %v14303_v37 = vld [vmem:[#allocation14 + $0x7c0] ss:$24 sps:$4 sm:$0xff]  }
 0x949   :  { %9285 = vmatprep.subr.bf16.mxu0 %v14221_v41  ;;  %v14308_v41 = vld [vmem:[#allocation14 + $0x7f4] ss:$24 sps:$4 sm:$0xff]  }
 0x94b   :  { %9204 = vmatpush1.bf16.msra.mxu1 %v14216_v13  ;;  %v14306_v13 = vld [vmem:[#allocation14 + $0x7f0] ss:$24 sps:$4 sm:$0xff]  }
 0x94c   :  { %9286 = vmatpush1.bf16.msra.mxu0 %v14219_v56  ;;  %9205 = vmatprep.subr.bf16.mxu1 %v14224_v18  ;;  %v14311_v56 = vld [vmem:[#allocation14 + $0x824] ss:$24 sps:$4 sm:$0xff]   ;;  %v14309_v18 = vld [vmem:[#allocation14 + $0x820] ss:$24 sps:$4 sm:$0xff]  }
 0x94d   :  { %9287 = vmatprep.subr.bf16.mxu0 %v14227_v11  ;;  %v14314_v11 = vld [vmem:[#allocation14 + $0x854] ss:$24 sps:$4 sm:$0xff]  }
 0x94f   :  { %9206 = vmatpush1.bf16.msra.mxu1 %v14222_v29  ;;  %v14312_v29 = vld [vmem:[#allocation14 + $0x850] ss:$24 sps:$4 sm:$0xff]  }
 0x950   :  { %9288 = vmatpush1.bf16.msra.mxu0 %v14225_v15  ;;  %9207 = vmatprep.subr.bf16.mxu1 %v14230_v57  ;;  %v14317_v15 = vld [vmem:[#allocation14 + $0x884] ss:$24 sps:$4 sm:$0xff]   ;;  %v14315_v57 = vld [vmem:[#allocation14 + $0x880] ss:$24 sps:$4 sm:$0xff]  }
 0x951   :  { %9289 = vmatprep.subr.bf16.mxu0 %v14233_v28  ;;  %v14320_v28 = vld [vmem:[#allocation14 + $0x8b4] ss:$24 sps:$4 sm:$0xff]  }
 0x953   :  { %9208 = vmatpush1.bf16.msra.mxu1 %v14228_v52  ;;  %v14318_v52 = vld [vmem:[#allocation14 + $0x8b0] ss:$24 sps:$4 sm:$0xff]  }
 0x954   :  { %9290 = vmatpush1.bf16.msra.mxu0 %v14231_v16  ;;  %9209 = vmatprep.subr.bf16.mxu1 %v14236_v24  ;;  %v14323_v16 = vld [vmem:[#allocation14 + $0x8e4] ss:$24 sps:$4 sm:$0xff]   ;;  %v14321_v24 = vld [vmem:[#allocation14 + $0x8e0] ss:$24 sps:$4 sm:$0xff]  }
 0x955   :  { %9291 = vmatprep.subr.bf16.mxu0 %v14239_v32  ;;  %v7516_v32 = vlaneseq }
 0x957   :  { %9210 = vmatpush1.bf16.msra.mxu1 %v14234_v63  ;;  %v7517_v63 = vshrl.u32 %v7516_v32, 7  ;;  %v14329_v32 = vld [vmem:[#allocation20 + $0x10] sm:$0xff]  }
 0x958   :  { %9292 = vmatpush1.bf16.msra.mxu0 %v14237_v4  ;;  %9211 = vmatprep.subr.bf16.mxu1 %v14242_v62  ;;  %v7514_v62 = vld [vmem:[#allocation16] sm:$0x3f] }
 0x959   :  { %9293 = vmatprep.subr.bf16.mxu0 %v14245_v45  ;;  %v17238_v4 = vsub.s32 0, %v7517_v63  ;;  %v17240_v45 = vsub.s32 1, %v7517_v63 }
 0x95b   :  { %9212 = vmatpush1.bf16.msra.mxu1 %v14240_v14  ;;  %v7519_v14 = vrot.slane %v7514_v62, %v17238_v4 }
 0x95c   :  { %9294 = vmatpush1.bf16.msra.mxu0 %v14243_v40  ;;  %9213 = vmatprep.subr.bf16.mxu1 %v14248_v59  ;;  %v7523_v40 = vrot.slane %v7514_v62, %v17240_v45 }
 0x95d   :  { %9295 = vmatprep.subr.bf16.mxu0 %v14251_v3 }
 0x95f   :  { %9214 = vmatpush1.bf16.msra.mxu1 %v14246_v34 }
 0x960   :  { %9296 = vmatpush1.bf16.msra.mxu0 %v14249_v35  ;;  %9215 = vmatprep.subr.bf16.mxu1 %v14254_v5 }
 0x961   :  { %9297 = vmatprep.subr.bf16.mxu0 %v14257_v49 }
 0x963   :  { %9216 = vmatpush1.bf16.msra.mxu1 %v14252_v23 }
 0x964   :  { %9298 = vmatpush1.bf16.msra.mxu0 %v14255_v58  ;;  %9217 = vmatprep.subr.bf16.mxu1 %v14260_v54 }
 0x965   :  { %9299 = vmatprep.subr.bf16.mxu0 %v14263_v17 }
 0x967   :  { %9218 = vmatpush1.bf16.msra.mxu1 %v14258_v31 }
 0x968   :  { %9300 = vmatpush1.bf16.msra.mxu0 %v14261_v53  ;;  %9219 = vmatprep.subr.bf16.mxu1 %v14266_v22  ;;  %v17244_v53 = vsub.s32 2, %v7517_v63 }
 0x969   :  { %9301 = vmatprep.subr.bf16.mxu0 %v14269_v25  ;;  %v17247_v25 = vsub.s32 3, %v7517_v63 }
 0x96a   :  { %v7527_v22 = vrot.slane %v7514_v62, %v17244_v53 }
 0x96b   :  { %9220 = vmatpush1.bf16.msra.mxu1 %v14264_v47 }
 0x96c   :  { %9302 = vmatpush1.bf16.msra.mxu0 %v14267_v10  ;;  %9221 = vmatprep.subr.bf16.mxu1 %v14272_v19  ;;  %v7531_v10 = vrot.slane %v7514_v62, %v17247_v25  ;;  %v17250_v19 = vsub.s32 4, %v7517_v63 }
 0x96d   :  { %9303 = vmatprep.subr.bf16.mxu0 %v14275_v21  ;;  %v17252_v21 = vsub.s32 5, %v7517_v63  ;;  %v14330_v63 = vld [vmem:[#allocation20 + $0x58] sm:$0xff]  }
 0x96f   :  { %9222 = vmatpush1.bf16.msra.mxu1 %v14270_v9 }
 0x970   :  { %9304 = vmatpush1.bf16.msra.mxu0 %v14273_v43 }
 0x971   :  { %9314 = vmatprep.subr.bf16.mxu0 %v14278_v44 }
 0x972   :  { %9224 = vmatmul.mubr.bf16.vlgmr.msra.gmra.mrb[4].mxu1 %v17224_v7 }
 0x973   :  { %9306 = vmatmul.mubr.bf16.vlgmr.msra.gmra.mrb[4].mxu0 %v17216_v6  ;;  %v14291_v6 = vld [vmem:[#allocation14 + $0x700] ss:$24 sps:$4 sm:$0xff]  }
 0x974   :  { %9315 = vmatpush1.bf16.msra.mxu0 %v14276_v36  ;;  %9346 = vmatprep.mubr.bf16.mxu0 %v17221_v33  ;;  %v7535_v36 = vrot.slane %v7514_v62, %v17250_v19 }
 0x975   :  { %9316 = vmatprep.subr.bf16.mxu0 %v14281_v1  ;;  %v7539_v1 = vrot.slane %v7514_v62, %v17252_v21  ;;  %v14331_v62 = vld [vmem:[#allocation20 + $0x18] sm:$0xff]  }
 0x978   :  { %9317 = vmatpush1.bf16.msra.mxu0 %v14279_v27 }
 0x979   :  { %9318 = vmatprep.subr.bf16.mxu0 %v14284_v20 }
 0x97c   :  { %9319 = vmatpush1.bf16.msra.mxu0 %v14282_v48 }
 0x97d   :  { %9320 = vmatprep.subr.bf16.mxu0 %v14287_v2 }
 0x980   :  { %9321 = vmatpush1.bf16.msra.mxu0 %v14285_v42 }
 0x981   :  { %9322 = vmatprep.subr.bf16.mxu0 %v14290_v55 }
 0x984   :  { %9323 = vmatpush1.bf16.msra.mxu0 %v14288_v50 }
 0x985   :  { %9324 = vmatprep.subr.bf16.mxu0 %v14293_v46  ;;  %v9020_v38 = vpop.f32.mrb[0].mxu1 }
 0x986   :  { %v9022_v33 = vpop.f32.mrb[1].mxu1  ;;  %v9021_v59 = vadd.f32 %v9020_v38, %v7519_v14  ;;  %v14325_v38 = vld [vmem:[#allocation20] sm:$0xff]  }
 0x987   :  { %v9024_v61 = vpop.f32.mrb[2].mxu1  ;;  %v9023_v3 = vadd.f32 %v9022_v33, %v7523_v40  ;;  %v14326_v33 = vld [vmem:[#allocation20 + $0x48] sm:$0xff]   ;;  %v14332_v14 = vld [vmem:[#allocation20 + $0x60] sm:$0xff]  }
 0x988   :  { %9325 = vmatpush1.bf16.msra.mxu0 %v14291_v6  ;;  %v9025_v26 = vpop.f32.mrb[3].mxu1  ;;  %v14333_v40 = vld [vmem:[#allocation20 + $0x20] sm:$0xff]  }
 0x989   :  { %9326 = vmatprep.subr.bf16.mxu0 %v14296_v0  ;;  %v14324_v0 = vld [vmem:[#allocation20 + $0x40] sm:$0xff]  }
 0x98a   :  { %10888 = vmatprep.subr.bf16.mxu1 %v14324_v0 }
 0x98b   :  { %10889 = vmatpush3.bf16.msra.mxu1 %v14325_v38 }
 0x98c   :  { %9327 = vmatpush1.bf16.msra.mxu0 %v14294_v60  ;;  %v14327_v60 = vld [vmem:[#allocation20 + $0x8] sm:$0xff]   ;;  %10890 = vmatprep.subr.bf16.mxu1 %v14326_v33 }
 0x98d   :  { %9328 = vmatprep.subr.bf16.mxu0 %v14299_v39 }
 0x98f   :  { %10891 = vmatpush3.bf16.msra.mxu1 %v14327_v60 }
 0x990   :  { %9329 = vmatpush1.bf16.msra.mxu0 %v14297_v30 }
 0x991   :  { %9330 = vmatprep.subr.bf16.mxu0 %v14302_v51 }
 0x994   :  { %9331 = vmatpush1.bf16.msra.mxu0 %v14300_v12 }
 0x995   :  { %9332 = vmatprep.subr.bf16.mxu0 %v14305_v8 }
 0x998   :  { %9333 = vmatpush1.bf16.msra.mxu0 %v14303_v37 }
 0x999   :  { %9334 = vmatprep.subr.bf16.mxu0 %v14308_v41 }
 0x99c   :  { %9335 = vmatpush1.bf16.msra.mxu0 %v14306_v13 }
 0x99d   :  { %9336 = vmatprep.subr.bf16.mxu0 %v14311_v56 }
 0x9a0   :  { %9337 = vmatpush1.bf16.msra.mxu0 %v14309_v18 }
 0x9a1   :  { %9338 = vmatprep.subr.bf16.mxu0 %v14314_v11 }
 0x9a4   :  { %9339 = vmatpush1.bf16.msra.mxu0 %v14312_v29 }
 0x9a5   :  { %9340 = vmatprep.subr.bf16.mxu0 %v14317_v15 }
 0x9a8   :  { %9341 = vmatpush1.bf16.msra.mxu0 %v14315_v57 }
 0x9a9   :  { %9342 = vmatprep.subr.bf16.mxu0 %v14320_v28 }
 0x9ac   :  { %9343 = vmatpush1.bf16.msra.mxu0 %v14318_v52 }
 0x9ad   :  { %9344 = vmatprep.subr.bf16.mxu0 %v14323_v16 }
 0x9b0   :  { %9345 = vmatpush1.bf16.msra.mxu0 %v14321_v24  ;;  %v14328_v24 = vld [vmem:[#allocation20 + $0x50] sm:$0xff]  }
 0x9b1   :  { %10892 = vmatprep.subr.bf16.mxu1 %v14328_v24  ;;  %v14352_v24 = vld [vmem:[#allocation20 + $0xf0] sm:$0xff]  }
 0x9b2   :  { %10893 = vmatpush3.bf16.msra.mxu1 %v14329_v32 }
 0x9b3   :  { %9347 = vmatmul.mubr.bf16.vlgmr.msra.gmra.mrb[4].mxu0 %v17224_v7  ;;  %10894 = vmatprep.subr.bf16.mxu1 %v14330_v63 }
 0x9b6   :  { %10895 = vmatpush3.bf16.msra.mxu1 %v14331_v62 }
 0x9b7   :  { %10896 = vmatprep.subr.bf16.mxu1 %v14332_v14 }
 0x9ba   :  { %10897 = vmatpush3.bf16.msra.mxu1 %v14333_v40  ;;  %v14353_v40 = vld [vmem:[#allocation20 + $0xb0] sm:$0xff]  }
 0x9c6   :  { %v9102_v34 = vpop.f32.mrb[0].mxu0 }
 0x9c7   :  { %v12139_v35 = vadd.f32 %v9102_v34, %v9021_v59  ;;  %v9104_v5 = vpop.f32.mrb[1].mxu0  ;;  %v14334_v59 = vld [vmem:[#allocation20 + $0x68] sm:$0xff]   ;;  %v14336_v34 = vld [vmem:[#allocation20 + $0x70] sm:$0xff]  }
 0x9c8   :  { %v12141_v49 = vadd.f32 %v9104_v5, %v9023_v3  ;;  %v9106_v23 = vpop.f32.mrb[2].mxu0  ;;  %v14335_v3 = vld [vmem:[#allocation20 + $0x28] sm:$0xff]   ;;  %10898 = vmatprep.subr.bf16.mxu1 %v14334_v59  ;;  %v14338_v5 = vld [vmem:[#allocation20 + $0x78] sm:$0xff]  }
 0x9c9   :  { %v9107_v58 = vpop.f32.mrb[3].mxu0  ;;  %10899 = vmatpush3.bf16.msra.mxu1 %v14335_v3  ;;  %v14340_v23 = vld [vmem:[#allocation20 + $0xc0] sm:$0xff]   ;;  %v14355_v3 = vld [vmem:[#allocation20 + $0xb8] sm:$0xff]  }
 0x9ca   :  { %v9355_v9 = vadd.f32 %v12141_v49, %v12139_v35  ;;  %10900 = vmatprep.subr.bf16.mxu1 %v14336_v34 }
 0xa45   :  { %v9225_v7 = vpop.f32.mrb[4].mxu1 }
 0xa46   :  { %v9227_v54 = vpop.f32.mrb[5].mxu1  ;;  %v12142_v47 = vadd.f32 %v9225_v7, %v7527_v22 }
 0xa47   :  { %v9229_v17 = vpop.f32.mrb[6].mxu1  ;;  %v12143_v44 = vadd.f32 %v9227_v54, %v7531_v10 }
 0xa48   :  { %v9230_v31 = vpop.f32.mrb[7].mxu1  ;;  %v9356_v43 = vadd.f32 %v12142_v47, %v9355_v9  ;;  %v9392_v17 = vld [vmem:[#allocation17] sm:$0x3f] }
 0xa49   :  { %v17264_v31 = vld [vmem:[#allocation19] sm:$0x3f]  ;;  %v9397_v22 = vrot.slane %v9392_v17, %v17238_v4  ;;  %v9409_v10 = vrot.slane %v9392_v17, %v17247_v25 }
 0xa4a   :  { %v9357_v20 = vadd.f32 %v12143_v44, %v9356_v43  ;;  %v9413_v43 = vrot.slane %v9392_v17, %v17250_v19  ;;  %v9443_v63 = vrot.slane %v17264_v31, %v17244_v53  ;;  %v9455_v14 = vrot.slane %v17264_v31, %v17252_v21 }
 0xa86   :  { %v9348_v27 = vpop.f32.mrb[4].mxu0 }
 0xa87   :  { %v12144_v48 = vadd.f32 %v9348_v27, %v7535_v36  ;;  %v9350_v2 = vpop.f32.mrb[5].mxu0  ;;  %v9435_v36 = vrot.slane %v17264_v31, %v17238_v4 }
 0xa88   :  { %v12145_v42 = vadd.f32 %v9350_v2, %v7539_v1  ;;  %v9352_v55 = vpop.f32.mrb[6].mxu0 }
 0xa89   :  { %v9353_v50 = vpop.f32.mrb[7].mxu0  ;;  %v9358_v46 = vadd.f32 %v12144_v48, %v9357_v20 }
 0xa8b   :  { %v9359_v6 = vadd.f32 %v12145_v42, %v9358_v46 }
 0xa8d   :  { %9360 = vadd.xlane.f32.xlu0 %v9359_v6 }
 0xb1a   :  { %v9361_v61 = vpop.xlane.xlu0 %9360 }
 0xb1b   :  { %v9363_v39 = vmul.f32 0.0013020834, %v9361_v61 }
 0xb1d   :  { %v9364_v26 = vsub.f32 %v12139_v35, %v9363_v39  ;;  %v9365_v30 = vsub.f32 %v12141_v49, %v9363_v39  ;;  %v17256_v51 = vsub.f32 %v12142_v47, %v9363_v39  ;;  %v9367_v12 = vsub.f32 %v12143_v44, %v9363_v39  ;;  %v14337_v35 = vld [vmem:[#allocation20 + $0x30] sm:$0xff]   ;;  %v14339_v49 = vld [vmem:[#allocation20 + $0x38] sm:$0xff]  }
 0xb1e   :  { %v9368_v41 = vsub.f32 %v12144_v48, %v9363_v39  ;;  %v17260_v18 = vsub.f32 %v12145_v42, %v9363_v39  ;;  %10901 = vmatpush3.bf16.msra.mxu1 %v14337_v35  ;;  %v9401_v47 = vrot.slane %v9392_v17, %v17240_v45  ;;  %v9439_v44 = vrot.slane %v17264_v31, %v17240_v45  ;;  %v14356_v35 = vld [vmem:[#allocation20 + $0x140] sm:$0xff]  }
 0xb1f   :  { %v9370_v8 = vmul.f32 %v9364_v26, %v9364_v26  ;;  %v9371_v37 = vmul.f32 %v9365_v30, %v9365_v30  ;;  %v9372_v13 = vmul.f32 %v17256_v51, %v17256_v51  ;;  %v9373_v11 = vmul.f32 %v9367_v12, %v9367_v12  ;;  %10902 = vmatprep.subr.bf16.mxu1 %v14338_v5 }
 0xb20   :  { %v9374_v15 = vmul.f32 %v9368_v41, %v9368_v41  ;;  %v9375_v28 = vmul.f32 %v17260_v18, %v17260_v18  ;;  %v9447_v48 = vrot.slane %v17264_v31, %v17247_v25  ;;  %v9451_v42 = vrot.slane %v17264_v31, %v17250_v19  ;;  %v14342_v25 = vld [vmem:[#allocation20 + $0xc8] sm:$0xff]   ;;  %v14363_v31 = vld [vmem:[#allocation20 + $0x118] sm:$0xff]  }
 0xb21   :  { %v9376_v56 = vadd.f32 %v9371_v37, %v9370_v8  ;;  %v14343_v19 = vld [vmem:[#allocation20 + $0x88] sm:$0xff]   ;;  %v14344_v8 = vld [vmem:[#allocation20 + $0xd0] sm:$0xff]  }
 0xb22   :  { %10903 = vmatpush3.bf16.msra.mxu1 %v14339_v49  ;;  %v14345_v37 = vld [vmem:[#allocation20 + $0x90] sm:$0xff]   ;;  %v14357_v49 = vld [vmem:[#allocation20 + $0x100] sm:$0xff]  }
 0xb23   :  { %v9377_v29 = vadd.f32 %v9376_v56, %v9372_v13  ;;  %10910 = vmatprep.subr.bf16.mxu1 %v14340_v23  ;;  %v14347_v13 = vld [vmem:[#allocation20 + $0x98] sm:$0xff]   ;;  %v14348_v56 = vld [vmem:[#allocation20 + $0xe0] sm:$0xff]  }
 0xb25   :  { %v9378_v57 = vadd.f32 %v9377_v29, %v9373_v11  ;;  %v14349_v11 = vld [vmem:[#allocation20 + $0xa0] sm:$0xff]   ;;  %v9405_v29 = vrot.slane %v9392_v17, %v17244_v53  ;;  %v14358_v53 = vld [vmem:[#allocation20 + $0x148] sm:$0xff]  }
 0xb27   :  { %v9379_v52 = vadd.f32 %v9378_v57, %v9374_v15  ;;  %v14350_v15 = vld [vmem:[#allocation20 + $0xe8] sm:$0xff]  }
 0xb29   :  { %v9380_v16 = vadd.f32 %v9379_v52, %v9375_v28  ;;  %v9417_v52 = vrot.slane %v9392_v17, %v17252_v21  ;;  %v14359_v21 = vld [vmem:[#allocation20 + $0x108] sm:$0xff]   ;;  %v14362_v17 = vld [vmem:[#allocation20 + $0x158] sm:$0xff]  }
 0xb2b   :  { %9381 = vadd.xlane.f32.xlu0 %v9380_v16  ;;  %v14351_v16 = vld [vmem:[#allocation20 + $0xa8] sm:$0xff]  }
 0xbb8   :  { %v9382_v58 = vpop.xlane.xlu0 %9381 }
 0xbb9   :  { %v9383_v7 = vmul.f32 0.0013020834, %v9382_v58 }
 0xbbb   :  { %v9384_v54 = vadd.f32 1e-05, %v9383_v7  ;;  %v14360_v7 = vld [vmem:[#allocation20 + $0x150] sm:$0xff]  }
 0xbbd   :  { %14372 = vrsqrt.f32 %v9384_v54  ;;  %v14361_v54 = vld [vmem:[#allocation20 + $0x110] sm:$0xff]  }
 0xbc7   :  { %v14373_v9 = vpop.eup %14372 }
 0xbc8   :  { %v9387_v1 = vmul.f32 %v14373_v9, %v9365_v30  ;;  %v9386_v27 = vmul.f32 %v14373_v9, %v9364_v26  ;;  %v9389_v20 = vmul.f32 %v14373_v9, %v9367_v12  ;;  %v9390_v2 = vmul.f32 %v14373_v9, %v9368_v41  ;;  %v14341_v30 = vld [vmem:[#allocation20 + $0x80] sm:$0xff]   ;;  %v14346_v41 = vld [vmem:[#allocation20 + $0xd8] sm:$0xff]  }
 0xbc9   :  { %v9388_v57 = vmul.f32 %v14373_v9, %v17256_v51  ;;  %v9391_v28 = vmul.f32 %v14373_v9, %v17260_v18  ;;  %v14354_v51 = vld [vmem:[#allocation20 + $0xf8] sm:$0xff]   ;;  %v14367_v9 = vld [vmem:[#allocation20 + $0x128] sm:$0xff]  }
 0xbca   :  { %v9425_v55 = vmul.f32 %v9401_v47, %v9387_v1  ;;  %v9424_v50 = vmul.f32 %v9397_v22, %v9386_v27  ;;  %v9427_v46 = vmul.f32 %v9409_v10, %v9389_v20  ;;  %v9428_v6 = vmul.f32 %v9413_v43, %v9390_v2  ;;  %v14364_v22 = vld [vmem:[#allocation20 + $0x160] sm:$0xff]   ;;  %v14366_v10 = vld [vmem:[#allocation20 + $0x168] sm:$0xff]   ;;  %v14368_v43 = vld [vmem:[#allocation20 + $0x170] sm:$0xff]  }
 0xbcb   :  { %v9426_v32 = vmul.f32 %v9405_v29, %v9388_v57  ;;  %v9429_v62 = vmul.f32 %v9417_v52, %v9391_v28  ;;  %v14365_v47 = vld [vmem:[#allocation20 + $0x120] sm:$0xff]   ;;  %v14371_v1 = vld [vmem:[#allocation20 + $0x138] sm:$0xff]  }
 0xbcc   :  { %v9463_v0 = vadd.f32 %v9439_v44, %v9425_v55  ;;  %v9462_v38 = vadd.f32 %v9435_v36, %v9424_v50  ;;  %v9465_v45 = vadd.f32 %v9447_v48, %v9427_v46  ;;  %v17278_v33 = vadd.f32 %v9451_v42, %v9428_v6  ;;  %v14369_v44 = vld [vmem:[#allocation20 + $0x130] sm:$0xff]   ;;  %v14370_v36 = vld [vmem:[#allocation20 + $0x178] sm:$0xff]   ;;  %v10837_v46 = vld [vmem:[#allocation22] ss:$0 sm:$0xff] }
 0xbcd   :  { %v9464_v59 = vadd.f32 %v9443_v63, %v9426_v32  ;;  %v9467_v18 = vadd.f32 %v9455_v14, %v9429_v62 }
 0xbce   :  { %v9469_v4 = vmax.f32 %v9463_v0, 0.0  ;;  %v9468_v60 = vmax.f32 %v9462_v38, 0.0  ;;  %v9471_v61 = vmax.f32 %v9465_v45, 0.0  ;;  %v9472_v27 = vmax.f32 %v17278_v33, 0.0 }
 0xbcf   :  { %v9470_v34 = vmax.f32 %v9464_v59, 0.0  ;;  %v9473_v5 = vmax.f32 %v9467_v18, 0.0 }
 0xbd0   :  { %v9475_v39 = vpack.c.bf16 %v9469_v4, %v9469_v4  ;;  %v9474_v26 = vpack.c.bf16 %v9468_v60, %v9468_v60  ;;  %v9477_v12 = vpack.c.bf16 %v9471_v61, %v9471_v61  ;;  %v9478_v20 = vpack.c.bf16 %v9472_v27, %v9472_v27 }
 0xbd1   :  { %v9476_v23 = vpack.c.bf16 %v9470_v34, %v9470_v34  ;;  %v9479_v58 = vpack.c.bf16 %v9473_v5, %v9473_v5 }
 0xbd2   :  { %9903 = vmatprep.mubr.bf16.mxu1 %v9475_v39 }
 0xbd3   :  { %9904 = vmatmul.mubr.bf16.vlgmr.msra.gmra.mrb[8].mxu1 %v9474_v26 }
 0xbd4   :  { %10911 = vmatpush3.bf16.msra.mxu1 %v14341_v30  ;;  %9943 = vmatprep.mubr.bf16.mxu1 %v9477_v12 }
 0xbd5   :  { %10912 = vmatprep.subr.bf16.mxu1 %v14342_v25 }
 0xbd8   :  { %10913 = vmatpush3.bf16.msra.mxu1 %v14343_v19 }
 0xbd9   :  { %10914 = vmatprep.subr.bf16.mxu1 %v14344_v8 }
 0xbdc   :  { %10915 = vmatpush3.bf16.msra.mxu1 %v14345_v37 }
 0xbdd   :  { %10916 = vmatprep.subr.bf16.mxu1 %v14346_v41 }
 0xbe0   :  { %10917 = vmatpush3.bf16.msra.mxu1 %v14347_v13 }
 0xbe1   :  { %10918 = vmatprep.subr.bf16.mxu1 %v14348_v56 }
 0xbe4   :  { %10919 = vmatpush3.bf16.msra.mxu1 %v14349_v11 }
 0xbe5   :  { %10920 = vmatprep.subr.bf16.mxu1 %v14350_v15 }
 0xbe8   :  { %10921 = vmatpush3.bf16.msra.mxu1 %v14351_v16 }
 0xbe9   :  { %10922 = vmatprep.subr.bf16.mxu1 %v14352_v24 }
 0xbec   :  { %10923 = vmatpush3.bf16.msra.mxu1 %v14353_v40 }
 0xbed   :  { %10924 = vmatprep.subr.bf16.mxu1 %v14354_v51 }
 0xbf0   :  { %10925 = vmatpush3.bf16.msra.mxu1 %v14355_v3 }
 0xbf1   :  { %10932 = vmatprep.subr.bf16.mxu1 %v14356_v35 }
 0xbf3   :  { %9944 = vmatmul.mubr.bf16.vlgmr.msra.gmra.mrb[12].mxu1 %v9476_v23 }
 0xbf4   :  { %10933 = vmatpush3.bf16.msra.mxu1 %v14357_v49  ;;  %9983 = vmatprep.mubr.bf16.mxu1 %v9479_v58 }
 0xbf5   :  { %10934 = vmatprep.subr.bf16.mxu1 %v14358_v53 }
 0xbf8   :  { %10935 = vmatpush3.bf16.msra.mxu1 %v14359_v21 }
 0xbf9   :  { %10936 = vmatprep.subr.bf16.mxu1 %v14360_v7 }
 0xbfc   :  { %10937 = vmatpush3.bf16.msra.mxu1 %v14361_v54 }
 0xbfd   :  { %10938 = vmatprep.subr.bf16.mxu1 %v14362_v17 }
 0xc00   :  { %10939 = vmatpush3.bf16.msra.mxu1 %v14363_v31 }
 0xc01   :  { %10940 = vmatprep.subr.bf16.mxu1 %v14364_v22 }
 0xc04   :  { %10941 = vmatpush3.bf16.msra.mxu1 %v14365_v47 }
 0xc05   :  { %10942 = vmatprep.subr.bf16.mxu1 %v14366_v10 }
 0xc08   :  { %10943 = vmatpush3.bf16.msra.mxu1 %v14367_v9 }
 0xc09   :  { %10944 = vmatprep.subr.bf16.mxu1 %v14368_v43 }
 0xc0c   :  { %10945 = vmatpush3.bf16.msra.mxu1 %v14369_v44 }
 0xc0d   :  { %10946 = vmatprep.subr.bf16.mxu1 %v14370_v36 }
 0xc10   :  { %10947 = vmatpush3.bf16.msra.mxu1 %v14371_v1 }
 0xc13   :  { %9984 = vmatmul.mubr.bf16.vlgmr.msra.gmra.mrb[16].mxu1 %v9478_v20 }
 0xca6   :  { %v10904_v48 = vpop.f32.mrb[8].mxu1 }
 0xca7   :  { %v10905_v2 = vpop.f32.mrb[9].mxu1 }
 0xca8   :  { %v10906_v42 = vadd.f32 %v10905_v2, %v10904_v48  ;;  %v10907_v55 = vpop.f32.mrb[10].mxu1 }
 0xca9   :  { %v10908_v50 = vpop.f32.mrb[11].mxu1 }
 0xcaa   :  { %v9906_v38 = vadd.f32 %v10906_v42, %v10837_v46 }
 0xcc6   :  { %v10926_v6 = vpop.f32.mrb[12].mxu1 }
 0xcc7   :  { %v10927_v0 = vpop.f32.mrb[13].mxu1 }
 0xcc8   :  { %v10928_v45 = vadd.f32 %v10927_v0, %v10926_v6  ;;  %v10929_v4 = vpop.f32.mrb[14].mxu1 }
 0xcc9   :  { %v10930_v60 = vpop.f32.mrb[15].mxu1 }
 0xcca   :  { %v9946_v61 = vadd.f32 %v10928_v45, %v9906_v38 }
 0xce6   :  { %v10948_v39 = vpop.f32.mrb[16].mxu1 }
 0xce7   :  { %v10949_v26 = vpop.f32.mrb[17].mxu1 }
 0xce8   :  { %v10950_v33 = vadd.f32 %v10949_v26, %v10948_v39  ;;  %v10951_v30 = vpop.f32.mrb[18].mxu1 }
 0xce9   :  { %v10952_v25 = vpop.f32.mrb[19].mxu1 }
 0xcea   :  { %v9986_v12 = vadd.f32 %v10950_v33, %v9946_v61 }
 0xcec   :  { %9991 = vst [vmem:[#allocation23] sm:$0xff] %v9986_v12 }
 0xced   :  { %14633 = shalt.err (!%p14630_p8)
}
 0xcee   :  { %s14634_s2 = scalar_lea.hbm %s17313_s12, 128 }
 0xcef   :  { %p14635_p9 = scmp.ne.s32.totalorder %s17313_s12, %s14634_s2  ;;  %p14638_p10 = scmp.lt.u32.totalorder %s14634_s2, %s17313_s12 }
 0xcf1   :  { %p14640_p11 = pnand %p14638_p10, %p14635_p9 }
 0xcf3   :  { %14643 = shalt.err (!%p14640_p11)
}
 0xcf4   :  { %10001 = dma.vmem_to_hbm [thread:$0]  %s9999_s27, 128, %s17313_s12, [#allocation7]  }
 0xcf5   :  { %14656 = dma.done.wait [#allocation7], 128  }
 0xcf6   :  { %14657 = vsyncadd [#allocation7], 4294967168 }
 0xcf7   :  { %10005 = vsyncpa [#allocation6], 1 }
 0xcf8   :  { %10006 = vsyncpa [#allocation9], 1 }
 0xcf9   :  { %10007 = vsyncpa [#allocation12], 1 }
 0xcfa   :  { %10008 = vsyncpa [#allocation15], 1 }
 0xcfb   :  { %10009 = vsyncpa [#allocation18], 1 }
 0xcfc   :  { %10010 = vsyncpa [#allocation21], 1 }
 0xcfd   :  { %10011 = vsyncpa [#allocation7], 1 }

</bundles_post_ra>
